<compile_context>
chip_gen: v5e
topology: v5e:2x2
jax: 0.10.0
libtpu: 0.0.40
codegen_flags: <defaults>
</compile_context>

<pallas_src>
import functools

import jax
import jax.numpy as jnp
import numpy as np
from jax.experimental import pallas as pl
from jax.experimental.pallas import tpu as pltpu


# ----------------------------------------------------------------------------
# Pallas kernel: single-shot  relu_opt(X @ W + b)  (used for the two convs).
# Whole problem fits in VMEM -> one grid step, no accumulator scratch.
# ----------------------------------------------------------------------------
def _matmul_bias_act_kernel(x_ref, w_ref, b_ref, o_ref, *, apply_relu):
    y = jnp.dot(x_ref[...], w_ref[...],
                preferred_element_type=jnp.float32) + b_ref[...]
    if apply_relu:
        y = jnp.maximum(y, 0.0)
    o_ref[...] = y.astype(o_ref.dtype)


def matmul_bias_relu_pallas(x, w, b, *, relu=True, out_dtype=jnp.float32):
    """relu_opt(x @ w + b); f32 MXU dot, store in `out_dtype`."""
    M, K = x.shape
    K2, N = w.shape
    assert K == K2, (K, K2)
    kernel = functools.partial(_matmul_bias_act_kernel, apply_relu=relu)
    return pl.pallas_call(
        kernel,
        out_shape=jax.ShapeDtypeStruct((M, N), out_dtype),
        grid_spec=pltpu.PrefetchScalarGridSpec(
            num_scalar_prefetch=0,
            grid=(1,),
            in_specs=[
                pl.BlockSpec((M, K), lambda i: (0, 0)),
                pl.BlockSpec((K, N), lambda i: (0, 0)),
                pl.BlockSpec((1, N), lambda i: (0, 0)),
            ],
            out_specs=pl.BlockSpec((M, N), lambda i: (0, 0)),
        ),
        compiler_params=pltpu.CompilerParams(
            dimension_semantics=("arbitrary",)),
    )(x, w, b.reshape(1, N))


# ----------------------------------------------------------------------------
# Pallas kernel: fused MLP tail.
#   fc1 (K-tiled, bf16 x bf16 -> f32 accumulate) -> ReLU -> fc2 -> ReLU
#   -> fused head hidden (256 wide) -> ReLU -> fused head output (128 wide).
# All intermediate activations stay in VMEM; only a lane-dense (B,128) slab
# is stored.
# ----------------------------------------------------------------------------
def _mlp_tail_kernel(x_ref, wfc1_ref, bfc1_ref, wfc2_ref, bfc2_ref,
                     wh1_ref, bh1_ref, wh2_ref, bh2_ref, o_ref, acc_ref):
    k = pl.program_id(0)

    @pl.when(k == 0)
    def _():
        acc_ref[...] = jnp.zeros_like(acc_ref)

    # fc1 partial product: bf16 x bf16 -> f32 accumulate.
    acc_ref[...] += jnp.dot(x_ref[...], wfc1_ref[...],
                            preferred_element_type=jnp.float32)

    @pl.when(k == pl.num_programs(0) - 1)
    def _():
        h1 = jnp.maximum(acc_ref[...] + bfc1_ref[...], 0.0)           # (B,256)
        h2 = jnp.dot(h1, wfc2_ref[...],
                     preferred_element_type=jnp.float32) + bfc2_ref[...]
        h2 = jnp.maximum(h2, 0.0)                                      # (B,128)
        hh = jnp.dot(h2, wh1_ref[...],
                     preferred_element_type=jnp.float32) + bh1_ref[...]
        hh = jnp.maximum(hh, 0.0)                                      # (B,256)
        out = jnp.dot(hh, wh2_ref[...],
                      preferred_element_type=jnp.float32) + bh2_ref[...]
        o_ref[...] = out.astype(o_ref.dtype)                           # (B,128)


def _pick_tk(K, max_tk=8192):
    """Full K if it fits; else the largest 128-multiple divisor of K <= max_tk."""
    if K <= max_tk:
        return K
    best = None
    for m in range(1, max_tk // 128 + 1):
        tk = 128 * m
        if K % tk == 0:
            best = tk
    if best is None:
        # Fallback: run the whole K in one step (vmem_limit is raised below).
        return K
    return best


def mlp_tail_pallas(h_flat_bf16, pp):
    """Fused fc1/fc2/policy/value tail.  Returns lane-dense (B,128) f32 slab."""
    B, K = h_flat_bf16.shape
    tk = _pick_tk(K)
    nk = K // tk
    return pl.pallas_call(
        _mlp_tail_kernel,
        out_shape=jax.ShapeDtypeStruct((B, 128), jnp.float32),
        grid_spec=pltpu.PrefetchScalarGridSpec(
            num_scalar_prefetch=0,
            grid=(nk,),
            in_specs=[
                pl.BlockSpec((B, tk), lambda k: (0, k)),      # activations bf16
                pl.BlockSpec((tk, 256), lambda k: (k, 0)),    # w_fc1 bf16
                pl.BlockSpec((1, 256), lambda k: (0, 0)),     # b_fc1
                pl.BlockSpec((256, 128), lambda k: (0, 0)),   # w_fc2
                pl.BlockSpec((1, 128), lambda k: (0, 0)),     # b_fc2
                pl.BlockSpec((128, 256), lambda k: (0, 0)),   # w_heads_hidden
                pl.BlockSpec((1, 256), lambda k: (0, 0)),     # b_heads_hidden
                pl.BlockSpec((256, 128), lambda k: (0, 0)),   # w_heads_out
                pl.BlockSpec((1, 128), lambda k: (0, 0)),     # b_heads_out
            ],
            out_specs=pl.BlockSpec((B, 128), lambda k: (0, 0)),
            scratch_shapes=[pltpu.VMEM((B, 256), jnp.float32)],
        ),
        compiler_params=pltpu.CompilerParams(
            dimension_semantics=("arbitrary",),
            vmem_limit_bytes=32 * 1024 * 1024,
        ),
    )(h_flat_bf16, pp["w_fc1"], pp["b_fc1"], pp["w_fc2"], pp["b_fc2"],
      pp["w_h1"], pp["b_h1"], pp["w_h2"], pp["b_h2"])


# ----------------------------------------------------------------------------
# Full Mazenet forward (uses kernel-layout params from prepare_params).
# ----------------------------------------------------------------------------
def mazenet_forward(x_nchw, pp, *, actions_n):
    x = jnp.transpose(x_nchw, (0, 2, 3, 1))                     # NCHW -> NHWC
    B, H, W, C = x.shape

    # conv1: 2x2 VALID, Cin -> 32.  im2col (tiny) in XLA, matmul in Pallas.
    # TODO(synk): im2col patch extraction stays as XLA slicing glue; only the
    # matmuls run in Pallas.
    Ho, Wo = H - 1, W - 1
    cols1 = jnp.concatenate(
        [x[:, di:di + Ho, dj:dj + Wo, :] for di in (0, 1) for dj in (0, 1)],
        axis=-1).reshape(B * Ho * Wo, 4 * C)
    h1 = matmul_bias_relu_pallas(cols1, pp["w_conv1"], pp["b_conv1"])
    h1 = h1.reshape(B, Ho, Wo, 32)

    # conv2: 2x2 VALID, 32 -> 64.  Output is stored directly in bf16 (the fc1
    # input dtype), so no extra cast pass and half the activation HBM traffic.
    Ho2, Wo2 = Ho - 1, Wo - 1
    cols2 = jnp.concatenate(
        [h1[:, di:di + Ho2, dj:dj + Wo2, :] for di in (0, 1) for dj in (0, 1)],
        axis=-1).reshape(B * Ho2 * Wo2, 4 * 32)
    h2 = matmul_bias_relu_pallas(cols2, pp["w_conv2"], pp["b_conv2"],
                                 out_dtype=jnp.bfloat16)

    # NHWC-major flatten: free row-major reshape (fc1 weight rows were
    # pre-permuted to match, so no NCHW transpose is needed).
    h_flat = h2.reshape(B, Ho2 * Wo2 * 64)                       # bf16

    out = mlp_tail_pallas(h_flat, pp)                            # (B,128) f32
    pol = out[:, :actions_n]
    val = out[:, actions_n:actions_n + 1]
    return pol, val


# ----------------------------------------------------------------------------
# One-time (host/init-time) conversion of PyTorch-convention params to the
# kernel layout: reshaped conv weights, NHWC-ordered bf16 fc1, fused heads.
# ----------------------------------------------------------------------------
def prepare_params(p, actions_n, maze_shape):
    H, W = maze_shape
    Ho2, Wo2 = H - 2, W - 2
    cin = p["w_conv1"].shape[2]
    assert actions_n + 1 <= 128, "fused head slab assumes actions_n + 1 <= 128"

    pp = {}
    # Conv weights: (kh, kw, cin, cout) -> (kh*kw*cin, cout), matching the
    # (di, dj, channel) im2col column order used in mazenet_forward.
    pp["w_conv1"] = p["w_conv1"].reshape(4 * cin, 32)
    pp["b_conv1"] = p["b_conv1"]
    pp["w_conv2"] = p["w_conv2"].reshape(4 * 32, 64)
    pp["b_conv2"] = p["b_conv2"]

    # fc1: reorder rows from PyTorch NCHW-flatten to NHWC-flatten, cast bf16.
    w_fc1 = p["w_fc1"].reshape(64, Ho2, Wo2, 256)
    w_fc1 = jnp.transpose(w_fc1, (1, 2, 0, 3)).reshape(Ho2 * Wo2 * 64, 256)
    pp["w_fc1"] = w_fc1.astype(jnp.bfloat16)
    pp["b_fc1"] = p["b_fc1"].reshape(1, 256)

    pp["w_fc2"] = p["w_fc2"]
    pp["b_fc2"] = p["b_fc2"].reshape(1, 128)

    # Fused head hidden layer: [w_p1 | w_v1] -> (128, 256).
    pp["w_h1"] = jnp.concatenate([p["w_p1"], p["w_v1"]], axis=1)
    pp["b_h1"] = jnp.concatenate([p["b_p1"], p["b_v1"]]).reshape(1, 256)

    # Fused, lane-dense head output layer: (256, 128) slab.
    #   cols [0, actions_n)  <- policy logits (from rows 0..127, w_p2)
    #   col  actions_n       <- value         (from rows 128..255, w_v2)
    w_h2 = jnp.zeros((256, 128), jnp.float32)
    w_h2 = w_h2.at[:128, :actions_n].set(p["w_p2"])
    w_h2 = w_h2.at[128:, actions_n].set(p["w_v2"][:, 0])
    b_h2 = jnp.zeros((128,), jnp.float32)
    b_h2 = b_h2.at[:actions_n].set(p["b_p2"])
    b_h2 = b_h2.at[actions_n].set(p["b_v2"][0])
    pp["w_h2"] = w_h2
    pp["b_h2"] = b_h2.reshape(1, 128)
    return pp


# ----------------------------------------------------------------------------
# Pure-JAX reference (PyTorch weight/flatten conventions) for validation.
# ----------------------------------------------------------------------------
def mazenet_reference(x_nchw, p):
    x = jnp.transpose(x_nchw, (0, 2, 3, 1))

    def conv(x, w, b):
        y = jax.lax.conv_general_dilated(
            x, w, window_strides=(1, 1), padding="VALID",
            dimension_numbers=("NHWC", "HWIO", "NHWC"))
        return jax.nn.relu(y + b)

    h = conv(x, p["w_conv1"], p["b_conv1"])
    h = conv(h, p["w_conv2"], p["b_conv2"])
    hf = jnp.transpose(h, (0, 3, 1, 2)).reshape(h.shape[0], -1)  # NCHW flatten
    h = jax.nn.relu(hf @ p["w_fc1"] + p["b_fc1"])
    h = jax.nn.relu(h @ p["w_fc2"] + p["b_fc2"])
    pol = jax.nn.relu(h @ p["w_p1"] + p["b_p1"]) @ p["w_p2"] + p["b_p2"]
    val = jax.nn.relu(h @ p["w_v1"] + p["b_v1"]) @ p["w_v2"] + p["b_v2"]
    return pol, val


# ----------------------------------------------------------------------------
# Deterministic parameter init (PyTorch-style U(-1/sqrt(fan_in), 1/sqrt(fan_in))).
# ----------------------------------------------------------------------------
def init_params(key, in_channels, maze_shape, actions_n):
    H, W = maze_shape
    lin = 64 * (H - 2) * (W - 2)        # after two 2x2 VALID convs

    def uni(k, shape, fan_in):
        bound = 1.0 / float(np.sqrt(fan_in))
        return jax.random.uniform(k, shape, jnp.float32, -bound, bound)

    ks = jax.random.split(key, 16)
    p = {
        "w_conv1": uni(ks[0], (2, 2, in_channels, 32), in_channels * 4),
        "b_conv1": uni(ks[1], (32,), in_channels * 4),
        "w_conv2": uni(ks[2], (2, 2, 32, 64), 32 * 4),
        "b_conv2": uni(ks[3], (64,), 32 * 4),
        "w_fc1": uni(ks[4], (lin, 256), lin),
        "b_fc1": uni(ks[5], (256,), lin),
        "w_fc2": uni(ks[6], (256, 128), 256),
        "b_fc2": uni(ks[7], (128,), 256),
        "w_p1": uni(ks[8], (128, 128), 128),
        "b_p1": uni(ks[9], (128,), 128),
        "w_p2": uni(ks[10], (128, actions_n), 128),
        "b_p2": uni(ks[11], (actions_n,), 128),
        "w_v1": uni(ks[12], (128, 128), 128),
        "b_v1": uni(ks[13], (128,), 128),
        "w_v2": uni(ks[14], (128, 1), 128),
        "b_v2": uni(ks[15], (1,), 128),
    }
    return p


if __name__ == "__main__":
    maze_shape = (16, 16)
    in_channels = 4
    actions_n = 6
    batch = 2

    key = jax.random.PRNGKey(0)
    params = init_params(key, in_channels, maze_shape, actions_n)
    prepared = prepare_params(params, actions_n, maze_shape)
    x = jax.random.normal(jax.random.fold_in(key, 999),
                          (batch, in_channels, *maze_shape), jnp.float32)

    fwd = jax.jit(functools.partial(mazenet_forward, actions_n=actions_n))
    pol, val = jax.block_until_ready(fwd(x, prepared))
    assert pol.shape == (batch, actions_n) and val.shape == (batch, 1)

    # Tolerance is 2e-2 deliberately: w_fc1 and the fc1 activations are bf16
    # in the kernel path (f32 accumulation), the reference is f32.
    pol_ref, val_ref = mazenet_reference(x, params)
    np.testing.assert_allclose(np.asarray(pol), np.asarray(pol_ref),
                               rtol=2e-2, atol=2e-2)
    np.testing.assert_allclose(np.asarray(val), np.asarray(val_ref),
                               rtol=2e-2, atol=2e-2)

    print("KERNEL_OK")
</pallas_src>

<mosaic_0001>
module attributes {stable_mosaic.version = 11 : i64} {
  func.func @_matmul_bias_act_kernel(%arg0: i32, %arg1: memref<450x16xf32, #tpu.memory_space<vmem>>, %arg2: memref<16x32xf32, #tpu.memory_space<vmem>>, %arg3: memref<1x32xf32, #tpu.memory_space<vmem>>, %arg4: memref<450x32xf32, #tpu.memory_space<vmem>>) attributes {dimension_semantics = [#tpu.dimension_semantics<arbitrary>], iteration_bounds = array<i64: 1>, scalar_prefetch = 0 : i64, scratch_operands = 0 : i64, tpu.core_type = #tpu.core_type<tc>, window_params = [{pipeline_mode = #tpu.pipeline_mode<synchronous>, transform_indices = @transform_0, window_bounds = array<i64: 450, 16>}, {pipeline_mode = #tpu.pipeline_mode<synchronous>, transform_indices = @transform_1, window_bounds = array<i64: 16, 32>}, {pipeline_mode = #tpu.pipeline_mode<synchronous>, transform_indices = @transform_2, window_bounds = array<i64: 1, 32>}, {pipeline_mode = #tpu.pipeline_mode<synchronous>, transform_indices = @transform_3, window_bounds = array<i64: 450, 32>}]} {
    %c0 = arith.constant 0 : index
    %c0_0 = arith.constant 0 : index
    %0 = vector.load %arg1[%c0, %c0_0] : memref<450x16xf32, #tpu.memory_space<vmem>>, vector<450x16xf32>
    %c0_1 = arith.constant 0 : index
    %c0_2 = arith.constant 0 : index
    %1 = vector.load %arg2[%c0_1, %c0_2] : memref<16x32xf32, #tpu.memory_space<vmem>>, vector<16x32xf32>
    %cst = arith.constant dense<0.000000e+00> : vector<450x32xf32>
    %2 = tpu.matmul %0, %1, %cst {dimension_numbers = #tpu.dot_dimension_numbers<[1], [0], [0], [1], [0, 0, 1, 1], [], []>} : vector<450x16xf32>, vector<16x32xf32>, vector<450x32xf32> -> vector<450x32xf32>
    %c0_3 = arith.constant 0 : index
    %c0_4 = arith.constant 0 : index
    %3 = vector.load %arg3[%c0_3, %c0_4] : memref<1x32xf32, #tpu.memory_space<vmem>>, vector<1x32xf32>
    %4 = vector.broadcast %3 : vector<1x32xf32> to vector<450x32xf32>
    %5 = arith.addf %2, %4 : vector<450x32xf32>
    %cst_5 = arith.constant 0.000000e+00 : f32
    %6 = vector.broadcast %cst_5 : f32 to vector<450x32xf32>
    %7 = arith.maximumf %5, %6 : vector<450x32xf32>
    %c0_6 = arith.constant 0 : index
    %c0_7 = arith.constant 0 : index
    %8 = vector.load %arg4[%c0_6, %c0_7] : memref<450x32xf32, #tpu.memory_space<vmem>>, vector<450x32xf32>
    tpu.vector_store %arg4[%c0_6, %c0_7], %7 {strides = array<i32>} : memref<450x32xf32, #tpu.memory_space<vmem>>, vector<450x32xf32>,
    return
  }
  func.func @transform_0(%arg0: i32) -> (i32, i32) {
    %c0_i32 = arith.constant 0 : i32
    %c0_i32_0 = arith.constant 0 : i32
    %c0_i32_1 = arith.constant 0 : i32
    return %c0_i32, %c0_i32_0 : i32, i32
  }
  func.func @transform_1(%arg0: i32) -> (i32, i32) {
    %c0_i32 = arith.constant 0 : i32
    %c0_i32_0 = arith.constant 0 : i32
    %c0_i32_1 = arith.constant 0 : i32
    return %c0_i32, %c0_i32_0 : i32, i32
  }
  func.func @transform_2(%arg0: i32) -> (i32, i32) {
    %c0_i32 = arith.constant 0 : i32
    %c0_i32_0 = arith.constant 0 : i32
    %c0_i32_1 = arith.constant 0 : i32
    return %c0_i32, %c0_i32_0 : i32, i32
  }
  func.func @transform_3(%arg0: i32) -> (i32, i32) {
    %c0_i32 = arith.constant 0 : i32
    %c0_i32_0 = arith.constant 0 : i32
    %c0_i32_1 = arith.constant 0 : i32
    return %c0_i32, %c0_i32_0 : i32, i32
  }
}

module attributes {stable_mosaic.version = 11 : i64} {
  func.func @_matmul_bias_act_kernel(%arg0: i32, %arg1: memref<392x128xf32, #tpu.memory_space<vmem>>, %arg2: memref<128x64xf32, #tpu.memory_space<vmem>>, %arg3: memref<1x64xf32, #tpu.memory_space<vmem>>, %arg4: memref<392x64xbf16, #tpu.memory_space<vmem>>) attributes {dimension_semantics = [#tpu.dimension_semantics<arbitrary>], iteration_bounds = array<i64: 1>, scalar_prefetch = 0 : i64, scratch_operands = 0 : i64, tpu.core_type = #tpu.core_type<tc>, window_params = [{pipeline_mode = #tpu.pipeline_mode<synchronous>, transform_indices = @transform_0, window_bounds = array<i64: 392, 128>}, {pipeline_mode = #tpu.pipeline_mode<synchronous>, transform_indices = @transform_1, window_bounds = array<i64: 128, 64>}, {pipeline_mode = #tpu.pipeline_mode<synchronous>, transform_indices = @transform_2, window_bounds = array<i64: 1, 64>}, {pipeline_mode = #tpu.pipeline_mode<synchronous>, transform_indices = @transform_3, window_bounds = array<i64: 392, 64>}]} {
    %c0 = arith.constant 0 : index
    %c0_0 = arith.constant 0 : index
    %0 = vector.load %arg1[%c0, %c0_0] : memref<392x128xf32, #tpu.memory_space<vmem>>, vector<392x128xf32>
    %c0_1 = arith.constant 0 : index
    %c0_2 = arith.constant 0 : index
    %1 = vector.load %arg2[%c0_1, %c0_2] : memref<128x64xf32, #tpu.memory_space<vmem>>, vector<128x64xf32>
    %cst = arith.constant dense<0.000000e+00> : vector<392x64xf32>
    %2 = tpu.matmul %0, %1, %cst {dimension_numbers = #tpu.dot_dimension_numbers<[1], [0], [0], [1], [0, 0, 1, 1], [], []>} : vector<392x128xf32>, vector<128x64xf32>, vector<392x64xf32> -> vector<392x64xf32>
    %c0_3 = arith.constant 0 : index
    %c0_4 = arith.constant 0 : index
    %3 = vector.load %arg3[%c0_3, %c0_4] : memref<1x64xf32, #tpu.memory_space<vmem>>, vector<1x64xf32>
    %4 = vector.broadcast %3 : vector<1x64xf32> to vector<392x64xf32>
    %5 = arith.addf %2, %4 : vector<392x64xf32>
    %cst_5 = arith.constant 0.000000e+00 : f32
    %6 = vector.broadcast %cst_5 : f32 to vector<392x64xf32>
    %7 = arith.maximumf %5, %6 : vector<392x64xf32>
    %8 = arith.truncf %7 : vector<392x64xf32> to vector<392x64xbf16>
    %c0_6 = arith.constant 0 : index
    %c0_7 = arith.constant 0 : index
    %9 = vector.load %arg4[%c0_6, %c0_7] : memref<392x64xbf16, #tpu.memory_space<vmem>>, vector<392x64xbf16>
    tpu.vector_store %arg4[%c0_6, %c0_7], %8 {strides = array<i32>} : memref<392x64xbf16, #tpu.memory_space<vmem>>, vector<392x64xbf16>,
    return
  }
  func.func @transform_0(%arg0: i32) -> (i32, i32) {
    %c0_i32 = arith.constant 0 : i32
    %c0_i32_0 = arith.constant 0 : i32
    %c0_i32_1 = arith.constant 0 : i32
    return %c0_i32, %c0_i32_0 : i32, i32
  }
  func.func @transform_1(%arg0: i32) -> (i32, i32) {
    %c0_i32 = arith.constant 0 : i32
    %c0_i32_0 = arith.constant 0 : i32
    %c0_i32_1 = arith.constant 0 : i32
    return %c0_i32, %c0_i32_0 : i32, i32
  }
  func.func @transform_2(%arg0: i32) -> (i32, i32) {
    %c0_i32 = arith.constant 0 : i32
    %c0_i32_0 = arith.constant 0 : i32
    %c0_i32_1 = arith.constant 0 : i32
    return %c0_i32, %c0_i32_0 : i32, i32
  }
  func.func @transform_3(%arg0: i32) -> (i32, i32) {
    %c0_i32 = arith.constant 0 : i32
    %c0_i32_0 = arith.constant 0 : i32
    %c0_i32_1 = arith.constant 0 : i32
    return %c0_i32, %c0_i32_0 : i32, i32
  }
}

module attributes {stable_mosaic.version = 11 : i64} {
  func.func @_mlp_tail_kernel(%arg0: i32, %arg1: memref<2x6272xbf16, #tpu.memory_space<vmem>>, %arg2: memref<6272x256xbf16, #tpu.memory_space<vmem>>, %arg3: memref<1x256xf32, #tpu.memory_space<vmem>>, %arg4: memref<256x128xf32, #tpu.memory_space<vmem>>, %arg5: memref<1x128xf32, #tpu.memory_space<vmem>>, %arg6: memref<128x256xf32, #tpu.memory_space<vmem>>, %arg7: memref<1x256xf32, #tpu.memory_space<vmem>>, %arg8: memref<256x128xf32, #tpu.memory_space<vmem>>, %arg9: memref<1x128xf32, #tpu.memory_space<vmem>>, %arg10: memref<2x128xf32, #tpu.memory_space<vmem>>, %arg11: memref<2x256xf32, #tpu.memory_space<vmem>>) attributes {dimension_semantics = [#tpu.dimension_semantics<arbitrary>], iteration_bounds = array<i64: 2>, scalar_prefetch = 0 : i64, scratch_operands = 1 : i64, tpu.core_type = #tpu.core_type<tc>, window_params = [{transform_indices = @transform_0, window_bounds = array<i64: 2, 6272>}, {transform_indices = @transform_1, window_bounds = array<i64: 6272, 256>}, {pipeline_mode = #tpu.pipeline_mode<synchronous>, transform_indices = @transform_2, window_bounds = array<i64: 1, 256>}, {pipeline_mode = #tpu.pipeline_mode<synchronous>, transform_indices = @transform_3, window_bounds = array<i64: 256, 128>}, {pipeline_mode = #tpu.pipeline_mode<synchronous>, transform_indices = @transform_4, window_bounds = array<i64: 1, 128>}, {pipeline_mode = #tpu.pipeline_mode<synchronous>, transform_indices = @transform_5, window_bounds = array<i64: 128, 256>}, {pipeline_mode = #tpu.pipeline_mode<synchronous>, transform_indices = @transform_6, window_bounds = array<i64: 1, 256>}, {pipeline_mode = #tpu.pipeline_mode<synchronous>, transform_indices = @transform_7, window_bounds = array<i64: 256, 128>}, {pipeline_mode = #tpu.pipeline_mode<synchronous>, transform_indices = @transform_8, window_bounds = array<i64: 1, 128>}, {pipeline_mode = #tpu.pipeline_mode<synchronous>, transform_indices = @transform_9, window_bounds = array<i64: 2, 128>}]} {
    %c0_i32 = arith.constant 0 : i32
    %0 = arith.cmpi eq, %arg0, %c0_i32 : i32
    %1 = arith.extui %0 : i1 to i32
    %c0_i32_0 = arith.constant 0 : i32
    %2 = arith.cmpi ne, %1, %c0_i32_0 : i32
    scf.if %2 {
      %cst_9 = arith.constant 0.000000e+00 : f32
      %12 = vector.broadcast %cst_9 : f32 to vector<2x256xf32>
      %c0_10 = arith.constant 0 : index
      %c0_11 = arith.constant 0 : index
      %13 = vector.load %arg11[%c0_10, %c0_11] : memref<2x256xf32, #tpu.memory_space<vmem>>, vector<2x256xf32>
      tpu.vector_store %arg11[%c0_10, %c0_11], %12 {strides = array<i32>} : memref<2x256xf32, #tpu.memory_space<vmem>>, vector<2x256xf32>,
    } else {
    }
    %c0 = arith.constant 0 : index
    %c0_1 = arith.constant 0 : index
    %3 = vector.load %arg11[%c0, %c0_1] : memref<2x256xf32, #tpu.memory_space<vmem>>, vector<2x256xf32>
    %c0_2 = arith.constant 0 : index
    %c0_3 = arith.constant 0 : index
    %4 = vector.load %arg1[%c0_2, %c0_3] : memref<2x6272xbf16, #tpu.memory_space<vmem>>, vector<2x6272xbf16>
    %c0_4 = arith.constant 0 : index
    %c0_5 = arith.constant 0 : index
    %5 = vector.load %arg2[%c0_4, %c0_5] : memref<6272x256xbf16, #tpu.memory_space<vmem>>, vector<6272x256xbf16>
    %cst = arith.constant dense<0.000000e+00> : vector<2x256xf32>
    %6 = tpu.matmul %4, %5, %cst {dimension_numbers = #tpu.dot_dimension_numbers<[1], [0], [0], [1], [0, 0, 1, 1], [], []>} : vector<2x6272xbf16>, vector<6272x256xbf16>, vector<2x256xf32> -> vector<2x256xf32>
    %7 = arith.addf %3, %6 : vector<2x256xf32>
    %c0_6 = arith.constant 0 : index
    %c0_7 = arith.constant 0 : index
    %8 = vector.load %arg11[%c0_6, %c0_7] : memref<2x256xf32, #tpu.memory_space<vmem>>, vector<2x256xf32>
    tpu.vector_store %arg11[%c0_6, %c0_7], %7 {strides = array<i32>} : memref<2x256xf32, #tpu.memory_space<vmem>>, vector<2x256xf32>,
    %c1_i32 = arith.constant 1 : i32
    %9 = arith.cmpi eq, %arg0, %c1_i32 : i32
    %10 = arith.extui %9 : i1 to i32
    %c0_i32_8 = arith.constant 0 : i32
    %11 = arith.cmpi ne, %10, %c0_i32_8 : i32
    scf.if %11 {
      %c0_9 = arith.constant 0 : index
      %c0_10 = arith.constant 0 : index
      %12 = vector.load %arg11[%c0_9, %c0_10] : memref<2x256xf32, #tpu.memory_space<vmem>>, vector<2x256xf32>
      %c0_11 = arith.constant 0 : index
      %c0_12 = arith.constant 0 : index
      %13 = vector.load %arg3[%c0_11, %c0_12] : memref<1x256xf32, #tpu.memory_space<vmem>>, vector<1x256xf32>
      %14 = vector.broadcast %13 : vector<1x256xf32> to vector<2x256xf32>
      %15 = arith.addf %12, %14 : vector<2x256xf32>
      %cst_13 = arith.constant 0.000000e+00 : f32
      %16 = vector.broadcast %cst_13 : f32 to vector<2x256xf32>
      %17 = arith.maximumf %15, %16 : vector<2x256xf32>
      %c0_14 = arith.constant 0 : index
      %c0_15 = arith.constant 0 : index
      %18 = vector.load %arg4[%c0_14, %c0_15] : memref<256x128xf32, #tpu.memory_space<vmem>>, vector<256x128xf32>
      %cst_16 = arith.constant dense<0.000000e+00> : vector<2x128xf32>
      %19 = tpu.matmul %17, %18, %cst_16 {dimension_numbers = #tpu.dot_dimension_numbers<[1], [0], [0], [1], [0, 0, 1, 1], [], []>} : vector<2x256xf32>, vector<256x128xf32>, vector<2x128xf32> -> vector<2x128xf32>
      %c0_17 = arith.constant 0 : index
      %c0_18 = arith.constant 0 : index
      %20 = vector.load %arg5[%c0_17, %c0_18] : memref<1x128xf32, #tpu.memory_space<vmem>>, vector<1x128xf32>
      %21 = vector.broadcast %20 : vector<1x128xf32> to vector<2x128xf32>
      %22 = arith.addf %19, %21 : vector<2x128xf32>
      %cst_19 = arith.constant 0.000000e+00 : f32
      %23 = vector.broadcast %cst_19 : f32 to vector<2x128xf32>
      %24 = arith.maximumf %22, %23 : vector<2x128xf32>
      %c0_20 = arith.constant 0 : index
      %c0_21 = arith.constant 0 : index
      %25 = vector.load %arg6[%c0_20, %c0_21] : memref<128x256xf32, #tpu.memory_space<vmem>>, vector<128x256xf32>
      %cst_22 = arith.constant dense<0.000000e+00> : vector<2x256xf32>
      %26 = tpu.matmul %24, %25, %cst_22 {dimension_numbers = #tpu.dot_dimension_numbers<[1], [0], [0], [1], [0, 0, 1, 1], [], []>} : vector<2x128xf32>, vector<128x256xf32>, vector<2x256xf32> -> vector<2x256xf32>
      %c0_23 = arith.constant 0 : index
      %c0_24 = arith.constant 0 : index
      %27 = vector.load %arg7[%c0_23, %c0_24] : memref<1x256xf32, #tpu.memory_space<vmem>>, vector<1x256xf32>
      %28 = vector.broadcast %27 : vector<1x256xf32> to vector<2x256xf32>
      %29 = arith.addf %26, %28 : vector<2x256xf32>
      %cst_25 = arith.constant 0.000000e+00 : f32
      %30 = vector.broadcast %cst_25 : f32 to vector<2x256xf32>
      %31 = arith.maximumf %29, %30 : vector<2x256xf32>
      %c0_26 = arith.constant 0 : index
      %c0_27 = arith.constant 0 : index
      %32 = vector.load %arg8[%c0_26, %c0_27] : memref<256x128xf32, #tpu.memory_space<vmem>>, vector<256x128xf32>
      %cst_28 = arith.constant dense<0.000000e+00> : vector<2x128xf32>
      %33 = tpu.matmul %31, %32, %cst_28 {dimension_numbers = #tpu.dot_dimension_numbers<[1], [0], [0], [1], [0, 0, 1, 1], [], []>} : vector<2x256xf32>, vector<256x128xf32>, vector<2x128xf32> -> vector<2x128xf32>
      %c0_29 = arith.constant 0 : index
      %c0_30 = arith.constant 0 : index
      %34 = vector.load %arg9[%c0_29, %c0_30] : memref<1x128xf32, #tpu.memory_space<vmem>>, vector<1x128xf32>
      %35 = vector.broadcast %34 : vector<1x128xf32> to vector<2x128xf32>
      %36 = arith.addf %33, %35 : vector<2x128xf32>
      %c0_31 = arith.constant 0 : index
      %c0_32 = arith.constant 0 : index
      %37 = vector.load %arg10[%c0_31, %c0_32] : memref<2x128xf32, #tpu.memory_space<vmem>>, vector<2x128xf32>
      tpu.vector_store %arg10[%c0_31, %c0_32], %36 {strides = array<i32>} : memref<2x128xf32, #tpu.memory_space<vmem>>, vector<2x128xf32>,
    } else {
    }
    return
  }
  func.func @transform_0(%arg0: i32) -> (i32, i32) {
    %c0_i32 = arith.constant 0 : i32
    %c0_i32_0 = arith.constant 0 : i32
    return %c0_i32, %arg0 : i32, i32
  }
  func.func @transform_1(%arg0: i32) -> (i32, i32) {
    %c0_i32 = arith.constant 0 : i32
    %c0_i32_0 = arith.constant 0 : i32
    return %arg0, %c0_i32 : i32, i32
  }
  func.func @transform_2(%arg0: i32) -> (i32, i32) {
    %c0_i32 = arith.constant 0 : i32
    %c0_i32_0 = arith.constant 0 : i32
    %c0_i32_1 = arith.constant 0 : i32
    return %c0_i32, %c0_i32_0 : i32, i32
  }
  func.func @transform_3(%arg0: i32) -> (i32, i32) {
    %c0_i32 = arith.constant 0 : i32
    %c0_i32_0 = arith.constant 0 : i32
    %c0_i32_1 = arith.constant 0 : i32
    return %c0_i32, %c0_i32_0 : i32, i32
  }
  func.func @transform_4(%arg0: i32) -> (i32, i32) {
    %c0_i32 = arith.constant 0 : i32
    %c0_i32_0 = arith.constant 0 : i32
    %c0_i32_1 = arith.constant 0 : i32
    return %c0_i32, %c0_i32_0 : i32, i32
  }
  func.func @transform_5(%arg0: i32) -> (i32, i32) {
    %c0_i32 = arith.constant 0 : i32
    %c0_i32_0 = arith.constant 0 : i32
    %c0_i32_1 = arith.constant 0 : i32
    return %c0_i32, %c0_i32_0 : i32, i32
  }
  func.func @transform_6(%arg0: i32) -> (i32, i32) {
    %c0_i32 = arith.constant 0 : i32
    %c0_i32_0 = arith.constant 0 : i32
    %c0_i32_1 = arith.constant 0 : i32
    return %c0_i32, %c0_i32_0 : i32, i32
  }
  func.func @transform_7(%arg0: i32) -> (i32, i32) {
    %c0_i32 = arith.constant 0 : i32
    %c0_i32_0 = arith.constant 0 : i32
    %c0_i32_1 = arith.constant 0 : i32
    return %c0_i32, %c0_i32_0 : i32, i32
  }
  func.func @transform_8(%arg0: i32) -> (i32, i32) {
    %c0_i32 = arith.constant 0 : i32
    %c0_i32_0 = arith.constant 0 : i32
    %c0_i32_1 = arith.constant 0 : i32
    return %c0_i32, %c0_i32_0 : i32, i32
  }
  func.func @transform_9(%arg0: i32) -> (i32, i32) {
    %c0_i32 = arith.constant 0 : i32
    %c0_i32_0 = arith.constant 0 : i32
    %c0_i32_1 = arith.constant 0 : i32
    return %c0_i32, %c0_i32_0 : i32, i32
  }
}

</mosaic_0001>

<bundles_post_ra>
// kernel: mazenet_forward.3
= control target key start
LH: loop header
LB: loop body
LE: loop exit
PB: predicated region body
PF: predicated region fallthrough
CT: control target
= control target key end

     0   :  { %8 = vsyncpa [#allocation3], 0  ;;  %s1253_s0 = inlined_call_operand.vmem [shape: f32[450,16], index: 0, kind: input, shape index: {}]   ;;  %s1254_s1 = inlined_call_operand.hbm [shape: f32[16,32], index: 1, kind: input, shape index: {}]   ;;  %s1255_s2 = inlined_call_operand.hbm [shape: f32[1,32], index: 2, kind: input, shape index: {}]   ;;  %s1256_s3 = inlined_call_operand.vmem [shape: f32[450,32], index: 3, kind: output, shape index: {}]  }
   0x1   :  { %s16_s14 = sshll.u32 %s1254_s1, 4  ;;  %s17_s14 = int_to_ptr.hbm [resolvable:$true] %s16_s14 }
   0x2   :  { %9 = vsyncpa [#allocation5], 0  ;;  %s709_s15 = smov [#allocation2]   ;;  %s30_s19 = sshll.u32 %s1255_s2, 4  ;;  %s31_s19 = int_to_ptr.hbm [resolvable:$true] %s30_s19 }
   0x3   :  { %s18_s16 = sshll.u32 %s709_s15, 4  ;;  %s710_s20 = smov 128   ;;  %s19_s16 = int_to_ptr.vmem [resolvable:$true] %s18_s16 }
   0x4   :  { %s711_s21 = smov 8   ;;  %s712_s22 = smov [#allocation4]  }
   0x5   :  { %24 = dma.hbm_to_vmem [thread:$0]  %s17_s14, 256, %s19_s16, [#allocation3], %s710_s20, %s710_s20, %s711_s21  }
   0x6   :  { %s32_s23 = sshll.u32 %s712_s22, 4  ;;  %s33_s23 = int_to_ptr.vmem [resolvable:$true] %s32_s23 }
   0x7   :  { %35 = dma.hbm_to_vmem [thread:$0]  %s31_s19, 16, %s33_s23, [#allocation5]  }
   0x8   :  { %705 = dma.done.wait [#allocation3], 256  }
   0x9   :  { %706 = vsyncadd [#allocation3], 4294967040 }
   0xa   :  { %707 = dma.done.wait [#allocation5], 16  }
   0xb   :  { %708 = vsyncadd [#allocation5], 4294967280  ;;  %v102_v0 = vld [vmem:[#allocation2 + $0x8] sm:$0xff]  ;;  %v101_v1 = vld [vmem:[#allocation2] sm:$0xff]  ;;  %vm107_vm0 = vcmask 130048   ;;  %vm524_vm1 = vcmask 261120  }
   0xc   :  { %647 = vmatpush.msra.mxu2 %v102_v0  ;;  %v73_v2 = vld [vmem:[%s1253_s0 + $0xe8] sm:$0xff]  ;;  %646 = vmatpush.msra.mxu1 %v102_v0  ;;  %v58_v3 = vld [vmem:[%s1253_s0 + $0x70] sm:$0xff]  ;;  %v44_v4 = vld [vmem:[%s1253_s0] sm:$0xff]  ;;  %vm581_vm2 = vcmask 254976  }
   0xd   :  { %293 = vmatpush.msra.mxu0 %v102_v0  ;;  %648 = vmatpush.msra.mxu3 %v102_v0  ;;  %v88_v5 = vld [vmem:[%s1253_s0 + $0x160] sm:$0xff]  ;;  %v74_v6 = vld [vmem:[%s1253_s0 + $0xf0] sm:$0xff]  ;;  %v59_v7 = vld [vmem:[%s1253_s0 + $0x78] sm:$0xff] }
   0xe   :  { %650 = vmatpush.msra.mxu2 %v101_v1  ;;  %649 = vmatpush.msra.mxu1 %v101_v1  ;;  %v45_v8 = vld [vmem:[%s1253_s0 + $0x8] sm:$0xff]  ;;  %v75_v10 = vld [vmem:[%s1253_s0 + $0xf8] sm:$0xff]  ;;  %v60_v11 = vld [vmem:[%s1253_s0 + $0x80] sm:$0xff] }
   0xf   :  { %618 = vmatmul.msk.f32.vlgmr.msra.gmra.mxu2 %vm107_vm0, %v73_v2  ;;  %603 = vmatmul.msk.f32.vlgmr.msra.gmra.mxu1 %vm107_vm0, %v58_v3  ;;  %v89_v9 = vld [vmem:[%s1253_s0 + $0x168] sm:$0xff]  ;;  %v46_v12 = vld [vmem:[%s1253_s0 + $0x10] sm:$0xff]  ;;  %v76_v14 = vld [vmem:[%s1253_s0 + $0x100] sm:$0xff] }
  0x10   :  { %294 = vmatpush.msra.mxu0 %v101_v1  ;;  %651 = vmatpush.msra.mxu3 %v101_v1  ;;  %v90_v13 = vld [vmem:[%s1253_s0 + $0x170] sm:$0xff]  ;;  %v61_v15 = vld [vmem:[%s1253_s0 + $0x88] sm:$0xff]  ;;  %v47_v16 = vld [vmem:[%s1253_s0 + $0x18] sm:$0xff] }
  0x11   :  { %589 = vmatmul.msk.f32.vlgmr.msra.gmra.mxu0 %vm107_vm0, %v44_v4  ;;  %633 = vmatmul.msk.f32.vlgmr.msra.gmra.mxu3 %vm107_vm0, %v88_v5  ;;  %v91_v17 = vld [vmem:[%s1253_s0 + $0x178] sm:$0xff]  ;;  %v77_v18 = vld [vmem:[%s1253_s0 + $0x108] sm:$0xff]  ;;  %v62_v19 = vld [vmem:[%s1253_s0 + $0x90] sm:$0xff] }
  0x12   :  { %v48_v20 = vld [vmem:[%s1253_s0 + $0x20] sm:$0xff]  ;;  %v78_v22 = vld [vmem:[%s1253_s0 + $0x110] sm:$0xff]  ;;  %v63_v23 = vld [vmem:[%s1253_s0 + $0x98] sm:$0xff] }
  0x13   :  { %v92_v21 = vld [vmem:[%s1253_s0 + $0x180] sm:$0xff]  ;;  %v49_v24 = vld [vmem:[%s1253_s0 + $0x28] sm:$0xff]  ;;  %v79_v26 = vld [vmem:[%s1253_s0 + $0x118] sm:$0xff] }
  0x14   :  { %v93_v25 = vld [vmem:[%s1253_s0 + $0x188] sm:$0xff]  ;;  %v64_v27 = vld [vmem:[%s1253_s0 + $0xa0] sm:$0xff]  ;;  %v50_v28 = vld [vmem:[%s1253_s0 + $0x30] sm:$0xff] }
  0x15   :  { %v94_v29 = vld [vmem:[%s1253_s0 + $0x190] sm:$0xff]  ;;  %v80_v30 = vld [vmem:[%s1253_s0 + $0x120] sm:$0xff]  ;;  %v65_v31 = vld [vmem:[%s1253_s0 + $0xa8] sm:$0xff] }
  0x16   :  { %v51_v32 = vld [vmem:[%s1253_s0 + $0x38] sm:$0xff]  ;;  %v81_v34 = vld [vmem:[%s1253_s0 + $0x128] sm:$0xff]  ;;  %v66_v35 = vld [vmem:[%s1253_s0 + $0xb0] sm:$0xff] }
  0x17   :  { %619 = vmatmul.msk.f32.gmra.mxu2 %vm107_vm0, %v74_v6  ;;  %604 = vmatmul.msk.f32.gmra.mxu1 %vm107_vm0, %v59_v7  ;;  %v95_v33 = vld [vmem:[%s1253_s0 + $0x198] sm:$0xff]  ;;  %v52_v36 = vld [vmem:[%s1253_s0 + $0x40] sm:$0xff]  ;;  %v82_v38 = vld [vmem:[%s1253_s0 + $0x130] sm:$0xff] }
  0x18   :  { %v96_v37 = vld [vmem:[%s1253_s0 + $0x1a0] sm:$0xff]  ;;  %v67_v39 = vld [vmem:[%s1253_s0 + $0xb8] sm:$0xff]  ;;  %v53_v40 = vld [vmem:[%s1253_s0 + $0x48] sm:$0xff] }
  0x19   :  { %590 = vmatmul.msk.f32.gmra.mxu0 %vm107_vm0, %v45_v8  ;;  %634 = vmatmul.msk.f32.gmra.mxu3 %vm107_vm0, %v89_v9  ;;  %v97_v41 = vld [vmem:[%s1253_s0 + $0x1a8] sm:$0xff]  ;;  %v83_v42 = vld [vmem:[%s1253_s0 + $0x138] sm:$0xff]  ;;  %v68_v43 = vld [vmem:[%s1253_s0 + $0xc0] sm:$0xff] }
  0x1a   :  { %v54_v44 = vld [vmem:[%s1253_s0 + $0x50] sm:$0xff]  ;;  %v84_v46 = vld [vmem:[%s1253_s0 + $0x140] sm:$0xff]  ;;  %v69_v47 = vld [vmem:[%s1253_s0 + $0xc8] sm:$0xff] }
  0x1b   :  { %v98_v45 = vld [vmem:[%s1253_s0 + $0x1b0] sm:$0xff]  ;;  %v55_v48 = vld [vmem:[%s1253_s0 + $0x58] sm:$0xff]  ;;  %v85_v50 = vld [vmem:[%s1253_s0 + $0x148] sm:$0xff] }
  0x1c   :  { %v99_v49 = vld [vmem:[%s1253_s0 + $0x1b8] sm:$0xff]  ;;  %v70_v51 = vld [vmem:[%s1253_s0 + $0xd0] sm:$0xff]  ;;  %v56_v52 = vld [vmem:[%s1253_s0 + $0x60] sm:$0xff] }
  0x1d   :  { %v100_v53 = vld [vmem:[%s1253_s0 + $0x1c0] sm:$0x3]  ;;  %v86_v54 = vld [vmem:[%s1253_s0 + $0x150] sm:$0xff]  ;;  %v71_v55 = vld [vmem:[%s1253_s0 + $0xd8] sm:$0xff] }
  0x1e   :  { %v57_v56 = vld [vmem:[%s1253_s0 + $0x68] sm:$0xff]  ;;  %v87_v57 = vld [vmem:[%s1253_s0 + $0x158] sm:$0xff]  ;;  %v72_v58 = vld [vmem:[%s1253_s0 + $0xe0] sm:$0xff] }
  0x1f   :  { %620 = vmatmul.msk.f32.gmra.mxu2 %vm107_vm0, %v75_v10  ;;  %605 = vmatmul.msk.f32.gmra.mxu1 %vm107_vm0, %v60_v11  ;;  %v967_v59 = vld [vmem:[#allocation4] ss:$0 sm:$0xff] }
  0x21   :  { %591 = vmatmul.msk.f32.gmra.mxu0 %vm107_vm0, %v46_v12  ;;  %635 = vmatmul.msk.f32.gmra.mxu3 %vm107_vm0, %v90_v13 }
  0x27   :  { %621 = vmatmul.msk.f32.gmra.mxu2 %vm107_vm0, %v76_v14  ;;  %606 = vmatmul.msk.f32.gmra.mxu1 %vm107_vm0, %v61_v15 }
  0x29   :  { %592 = vmatmul.msk.f32.gmra.mxu0 %vm107_vm0, %v47_v16  ;;  %636 = vmatmul.msk.f32.gmra.mxu3 %vm107_vm0, %v91_v17 }
  0x2f   :  { %622 = vmatmul.msk.f32.gmra.mxu2 %vm107_vm0, %v77_v18  ;;  %607 = vmatmul.msk.f32.gmra.mxu1 %vm107_vm0, %v62_v19 }
  0x31   :  { %593 = vmatmul.msk.f32.gmra.mxu0 %vm107_vm0, %v48_v20  ;;  %637 = vmatmul.msk.f32.gmra.mxu3 %vm107_vm0, %v92_v21 }
  0x37   :  { %623 = vmatmul.msk.f32.gmra.mxu2 %vm107_vm0, %v78_v22  ;;  %608 = vmatmul.msk.f32.gmra.mxu1 %vm107_vm0, %v63_v23 }
  0x39   :  { %594 = vmatmul.msk.f32.gmra.mxu0 %vm107_vm0, %v49_v24  ;;  %638 = vmatmul.msk.f32.gmra.mxu3 %vm107_vm0, %v93_v25 }
  0x3f   :  { %624 = vmatmul.msk.f32.gmra.mxu2 %vm107_vm0, %v79_v26  ;;  %609 = vmatmul.msk.f32.gmra.mxu1 %vm107_vm0, %v64_v27 }
  0x41   :  { %595 = vmatmul.msk.f32.gmra.mxu0 %vm107_vm0, %v50_v28  ;;  %639 = vmatmul.msk.f32.gmra.mxu3 %vm107_vm0, %v94_v29 }
  0x47   :  { %625 = vmatmul.msk.f32.gmra.mxu2 %vm107_vm0, %v80_v30  ;;  %610 = vmatmul.msk.f32.gmra.mxu1 %vm107_vm0, %v65_v31 }
  0x49   :  { %596 = vmatmul.msk.f32.gmra.mxu0 %vm107_vm0, %v51_v32  ;;  %640 = vmatmul.msk.f32.gmra.mxu3 %vm107_vm0, %v95_v33 }
  0x4f   :  { %626 = vmatmul.msk.f32.gmra.mxu2 %vm107_vm0, %v81_v34  ;;  %611 = vmatmul.msk.f32.gmra.mxu1 %vm107_vm0, %v66_v35 }
  0x51   :  { %597 = vmatmul.msk.f32.gmra.mxu0 %vm107_vm0, %v52_v36  ;;  %641 = vmatmul.msk.f32.gmra.mxu3 %vm107_vm0, %v96_v37 }
  0x57   :  { %627 = vmatmul.msk.f32.gmra.mxu2 %vm107_vm0, %v82_v38  ;;  %612 = vmatmul.msk.f32.gmra.mxu1 %vm107_vm0, %v67_v39 }
  0x59   :  { %598 = vmatmul.msk.f32.gmra.mxu0 %vm107_vm0, %v53_v40  ;;  %642 = vmatmul.msk.f32.gmra.mxu3 %vm107_vm0, %v97_v41 }
  0x5f   :  { %628 = vmatmul.msk.f32.gmra.mxu2 %vm107_vm0, %v83_v42  ;;  %613 = vmatmul.msk.f32.gmra.mxu1 %vm107_vm0, %v68_v43 }
  0x61   :  { %599 = vmatmul.msk.f32.gmra.mxu0 %vm107_vm0, %v54_v44  ;;  %643 = vmatmul.msk.f32.gmra.mxu3 %vm107_vm0, %v98_v45 }
  0x67   :  { %629 = vmatmul.msk.f32.gmra.mxu2 %vm107_vm0, %v84_v46  ;;  %614 = vmatmul.msk.f32.gmra.mxu1 %vm107_vm0, %v69_v47 }
  0x69   :  { %600 = vmatmul.msk.f32.gmra.mxu0 %vm107_vm0, %v55_v48  ;;  %644 = vmatmul.msk.f32.gmra.mxu3 %vm107_vm0, %v99_v49 }
  0x6f   :  { %630 = vmatmul.msk.f32.gmra.mxu2 %vm107_vm0, %v85_v50  ;;  %615 = vmatmul.msk.f32.gmra.mxu1 %vm107_vm0, %v70_v51 }
  0x71   :  { %601 = vmatmul.msk.f32.gmra.mxu0 %vm107_vm0, %v56_v52  ;;  %645 = vmatmul.msk.f32.gmra.mxu3 %vm107_vm0, %v100_v53 }
  0x77   :  { %631 = vmatmul.msk.f32.gmra.mxu2 %vm107_vm0, %v86_v54  ;;  %616 = vmatmul.msk.f32.gmra.mxu1 %vm107_vm0, %v71_v55 }
  0x79   :  { %602 = vmatmul.msk.f32.gmra.mxu0 %vm107_vm0, %v57_v56 }
  0x7f   :  { %632 = vmatmul.msk.f32.gmra.mxu2 %vm107_vm0, %v87_v57  ;;  %617 = vmatmul.msk.f32.gmra.mxu1 %vm107_vm0, %v72_v58 }
  0x8c   :  { %v338_v60 = vpop.f32.mrf.mxu1 }
  0x8d   :  { %v339_v61 = vadd.f32 %v967_v59, %v338_v60 }
  0x8e   :  { %v296_v62 = vpop.f32.mrf.mxu0 }
  0x8f   :  { %v481_v63 = vmax.f32 %v339_v61, 0.0  ;;  %v297_v0 = vadd.f32 %v967_v59, %v296_v62 }
  0x91   :  { %539 = vst.msk [vmem:[%s1256_s3 + $0x70] sm:$0xff] %vm524_vm1, %v481_v63  ;;  %v467_v1 = vmax.f32 %v297_v0, 0.0 }
  0x92   :  { %v383_v2 = vpop.f32.mrf.mxu2 }
  0x93   :  { %v384_v3 = vadd.f32 %v967_v59, %v383_v2  ;;  %525 = vst.msk [vmem:[%s1256_s3] sm:$0xff] %vm524_vm1, %v467_v1 }
  0x94   :  { %v341_v4 = vpop.f32.mrf.mxu1  ;;  %v428_v5 = vpop.f32.mrf.mxu3 }
  0x95   :  { %v496_v6 = vmax.f32 %v384_v3, 0.0  ;;  %v342_v7 = vadd.f32 %v967_v59, %v341_v4  ;;  %v429_v8 = vadd.f32 %v967_v59, %v428_v5 }
  0x96   :  { %v299_v9 = vpop.f32.mrf.mxu0 }
  0x97   :  { %554 = vst.msk [vmem:[%s1256_s3 + $0xe8] sm:$0xff] %vm524_vm1, %v496_v6  ;;  %v482_v10 = vmax.f32 %v342_v7, 0.0  ;;  %v300_v11 = vadd.f32 %v967_v59, %v299_v9  ;;  %v511_v12 = vmax.f32 %v429_v8, 0.0 }
  0x99   :  { %540 = vst.msk [vmem:[%s1256_s3 + $0x78] sm:$0xff] %vm524_vm1, %v482_v10  ;;  %v468_v13 = vmax.f32 %v300_v11, 0.0 }
  0x9a   :  { %v386_v14 = vpop.f32.mrf.mxu2  ;;  %569 = vst.msk [vmem:[%s1256_s3 + $0x160] sm:$0xff] %vm524_vm1, %v511_v12 }
  0x9b   :  { %v387_v15 = vadd.f32 %v967_v59, %v386_v14  ;;  %526 = vst.msk [vmem:[%s1256_s3 + $0x8] sm:$0xff] %vm524_vm1, %v468_v13 }
  0x9c   :  { %v344_v16 = vpop.f32.mrf.mxu1  ;;  %v431_v17 = vpop.f32.mrf.mxu3 }
  0x9d   :  { %v497_v18 = vmax.f32 %v387_v15, 0.0  ;;  %v345_v19 = vadd.f32 %v967_v59, %v344_v16  ;;  %v432_v20 = vadd.f32 %v967_v59, %v431_v17 }
  0x9e   :  { %v302_v21 = vpop.f32.mrf.mxu0 }
  0x9f   :  { %555 = vst.msk [vmem:[%s1256_s3 + $0xf0] sm:$0xff] %vm524_vm1, %v497_v18  ;;  %v483_v22 = vmax.f32 %v345_v19, 0.0  ;;  %v303_v23 = vadd.f32 %v967_v59, %v302_v21  ;;  %v512_v24 = vmax.f32 %v432_v20, 0.0 }
  0xa1   :  { %541 = vst.msk [vmem:[%s1256_s3 + $0x80] sm:$0xff] %vm524_vm1, %v483_v22  ;;  %v469_v25 = vmax.f32 %v303_v23, 0.0 }
  0xa2   :  { %v389_v26 = vpop.f32.mrf.mxu2  ;;  %570 = vst.msk [vmem:[%s1256_s3 + $0x168] sm:$0xff] %vm524_vm1, %v512_v24 }
  0xa3   :  { %v390_v27 = vadd.f32 %v967_v59, %v389_v26  ;;  %527 = vst.msk [vmem:[%s1256_s3 + $0x10] sm:$0xff] %vm524_vm1, %v469_v25 }
  0xa4   :  { %v347_v28 = vpop.f32.mrf.mxu1  ;;  %v434_v29 = vpop.f32.mrf.mxu3 }
  0xa5   :  { %v498_v30 = vmax.f32 %v390_v27, 0.0  ;;  %v348_v31 = vadd.f32 %v967_v59, %v347_v28  ;;  %v435_v32 = vadd.f32 %v967_v59, %v434_v29 }
  0xa6   :  { %v305_v33 = vpop.f32.mrf.mxu0 }
  0xa7   :  { %556 = vst.msk [vmem:[%s1256_s3 + $0xf8] sm:$0xff] %vm524_vm1, %v498_v30  ;;  %v484_v34 = vmax.f32 %v348_v31, 0.0  ;;  %v306_v35 = vadd.f32 %v967_v59, %v305_v33  ;;  %v513_v36 = vmax.f32 %v435_v32, 0.0 }
  0xa9   :  { %542 = vst.msk [vmem:[%s1256_s3 + $0x88] sm:$0xff] %vm524_vm1, %v484_v34  ;;  %v470_v37 = vmax.f32 %v306_v35, 0.0 }
  0xaa   :  { %v392_v38 = vpop.f32.mrf.mxu2  ;;  %571 = vst.msk [vmem:[%s1256_s3 + $0x170] sm:$0xff] %vm524_vm1, %v513_v36 }
  0xab   :  { %v393_v39 = vadd.f32 %v967_v59, %v392_v38  ;;  %528 = vst.msk [vmem:[%s1256_s3 + $0x18] sm:$0xff] %vm524_vm1, %v470_v37 }
  0xac   :  { %v350_v40 = vpop.f32.mrf.mxu1  ;;  %v437_v41 = vpop.f32.mrf.mxu3 }
  0xad   :  { %v499_v42 = vmax.f32 %v393_v39, 0.0  ;;  %v351_v43 = vadd.f32 %v967_v59, %v350_v40  ;;  %v438_v44 = vadd.f32 %v967_v59, %v437_v41 }
  0xae   :  { %v308_v45 = vpop.f32.mrf.mxu0 }
  0xaf   :  { %557 = vst.msk [vmem:[%s1256_s3 + $0x100] sm:$0xff] %vm524_vm1, %v499_v42  ;;  %v485_v46 = vmax.f32 %v351_v43, 0.0  ;;  %v309_v47 = vadd.f32 %v967_v59, %v308_v45  ;;  %v514_v48 = vmax.f32 %v438_v44, 0.0 }
  0xb1   :  { %543 = vst.msk [vmem:[%s1256_s3 + $0x90] sm:$0xff] %vm524_vm1, %v485_v46  ;;  %v471_v49 = vmax.f32 %v309_v47, 0.0 }
  0xb2   :  { %v395_v50 = vpop.f32.mrf.mxu2  ;;  %572 = vst.msk [vmem:[%s1256_s3 + $0x178] sm:$0xff] %vm524_vm1, %v514_v48 }
  0xb3   :  { %v396_v51 = vadd.f32 %v967_v59, %v395_v50  ;;  %529 = vst.msk [vmem:[%s1256_s3 + $0x20] sm:$0xff] %vm524_vm1, %v471_v49 }
  0xb4   :  { %v353_v52 = vpop.f32.mrf.mxu1  ;;  %v440_v53 = vpop.f32.mrf.mxu3 }
  0xb5   :  { %v500_v54 = vmax.f32 %v396_v51, 0.0  ;;  %v354_v55 = vadd.f32 %v967_v59, %v353_v52  ;;  %v441_v56 = vadd.f32 %v967_v59, %v440_v53 }
  0xb6   :  { %v311_v57 = vpop.f32.mrf.mxu0 }
  0xb7   :  { %558 = vst.msk [vmem:[%s1256_s3 + $0x108] sm:$0xff] %vm524_vm1, %v500_v54  ;;  %v486_v58 = vmax.f32 %v354_v55, 0.0  ;;  %v312_v60 = vadd.f32 %v967_v59, %v311_v57  ;;  %v515_v61 = vmax.f32 %v441_v56, 0.0 }
  0xb9   :  { %544 = vst.msk [vmem:[%s1256_s3 + $0x98] sm:$0xff] %vm524_vm1, %v486_v58  ;;  %v472_v62 = vmax.f32 %v312_v60, 0.0 }
  0xba   :  { %v398_v63 = vpop.f32.mrf.mxu2  ;;  %573 = vst.msk [vmem:[%s1256_s3 + $0x180] sm:$0xff] %vm524_vm1, %v515_v61 }
  0xbb   :  { %v399_v0 = vadd.f32 %v967_v59, %v398_v63  ;;  %530 = vst.msk [vmem:[%s1256_s3 + $0x28] sm:$0xff] %vm524_vm1, %v472_v62 }
  0xbc   :  { %v356_v1 = vpop.f32.mrf.mxu1  ;;  %v443_v2 = vpop.f32.mrf.mxu3 }
  0xbd   :  { %v501_v3 = vmax.f32 %v399_v0, 0.0  ;;  %v357_v4 = vadd.f32 %v967_v59, %v356_v1  ;;  %v444_v5 = vadd.f32 %v967_v59, %v443_v2 }
  0xbe   :  { %v314_v6 = vpop.f32.mrf.mxu0 }
  0xbf   :  { %559 = vst.msk [vmem:[%s1256_s3 + $0x110] sm:$0xff] %vm524_vm1, %v501_v3  ;;  %v487_v7 = vmax.f32 %v357_v4, 0.0  ;;  %v315_v8 = vadd.f32 %v967_v59, %v314_v6  ;;  %v516_v9 = vmax.f32 %v444_v5, 0.0 }
  0xc1   :  { %545 = vst.msk [vmem:[%s1256_s3 + $0xa0] sm:$0xff] %vm524_vm1, %v487_v7  ;;  %v473_v10 = vmax.f32 %v315_v8, 0.0 }
  0xc2   :  { %v401_v11 = vpop.f32.mrf.mxu2  ;;  %574 = vst.msk [vmem:[%s1256_s3 + $0x188] sm:$0xff] %vm524_vm1, %v516_v9 }
  0xc3   :  { %v402_v12 = vadd.f32 %v967_v59, %v401_v11  ;;  %531 = vst.msk [vmem:[%s1256_s3 + $0x30] sm:$0xff] %vm524_vm1, %v473_v10 }
  0xc4   :  { %v359_v13 = vpop.f32.mrf.mxu1  ;;  %v446_v14 = vpop.f32.mrf.mxu3 }
  0xc5   :  { %v502_v15 = vmax.f32 %v402_v12, 0.0  ;;  %v360_v16 = vadd.f32 %v967_v59, %v359_v13  ;;  %v447_v17 = vadd.f32 %v967_v59, %v446_v14 }
  0xc6   :  { %v317_v18 = vpop.f32.mrf.mxu0 }
  0xc7   :  { %560 = vst.msk [vmem:[%s1256_s3 + $0x118] sm:$0xff] %vm524_vm1, %v502_v15  ;;  %v488_v19 = vmax.f32 %v360_v16, 0.0  ;;  %v318_v20 = vadd.f32 %v967_v59, %v317_v18  ;;  %v517_v21 = vmax.f32 %v447_v17, 0.0 }
  0xc9   :  { %546 = vst.msk [vmem:[%s1256_s3 + $0xa8] sm:$0xff] %vm524_vm1, %v488_v19  ;;  %v474_v22 = vmax.f32 %v318_v20, 0.0 }
  0xca   :  { %v404_v23 = vpop.f32.mrf.mxu2  ;;  %575 = vst.msk [vmem:[%s1256_s3 + $0x190] sm:$0xff] %vm524_vm1, %v517_v21 }
  0xcb   :  { %v405_v24 = vadd.f32 %v967_v59, %v404_v23  ;;  %532 = vst.msk [vmem:[%s1256_s3 + $0x38] sm:$0xff] %vm524_vm1, %v474_v22 }
  0xcc   :  { %v362_v25 = vpop.f32.mrf.mxu1  ;;  %v449_v26 = vpop.f32.mrf.mxu3 }
  0xcd   :  { %v503_v27 = vmax.f32 %v405_v24, 0.0  ;;  %v363_v28 = vadd.f32 %v967_v59, %v362_v25  ;;  %v450_v29 = vadd.f32 %v967_v59, %v449_v26 }
  0xce   :  { %v320_v30 = vpop.f32.mrf.mxu0 }
  0xcf   :  { %561 = vst.msk [vmem:[%s1256_s3 + $0x120] sm:$0xff] %vm524_vm1, %v503_v27  ;;  %v489_v31 = vmax.f32 %v363_v28, 0.0  ;;  %v321_v32 = vadd.f32 %v967_v59, %v320_v30  ;;  %v518_v33 = vmax.f32 %v450_v29, 0.0 }
  0xd1   :  { %547 = vst.msk [vmem:[%s1256_s3 + $0xb0] sm:$0xff] %vm524_vm1, %v489_v31  ;;  %v475_v34 = vmax.f32 %v321_v32, 0.0 }
  0xd2   :  { %v407_v35 = vpop.f32.mrf.mxu2  ;;  %576 = vst.msk [vmem:[%s1256_s3 + $0x198] sm:$0xff] %vm524_vm1, %v518_v33 }
  0xd3   :  { %v408_v36 = vadd.f32 %v967_v59, %v407_v35  ;;  %533 = vst.msk [vmem:[%s1256_s3 + $0x40] sm:$0xff] %vm524_vm1, %v475_v34 }
  0xd4   :  { %v365_v37 = vpop.f32.mrf.mxu1  ;;  %v452_v38 = vpop.f32.mrf.mxu3 }
  0xd5   :  { %v504_v39 = vmax.f32 %v408_v36, 0.0  ;;  %v366_v40 = vadd.f32 %v967_v59, %v365_v37  ;;  %v453_v41 = vadd.f32 %v967_v59, %v452_v38 }
  0xd6   :  { %v323_v42 = vpop.f32.mrf.mxu0 }
  0xd7   :  { %562 = vst.msk [vmem:[%s1256_s3 + $0x128] sm:$0xff] %vm524_vm1, %v504_v39  ;;  %v490_v43 = vmax.f32 %v366_v40, 0.0  ;;  %v324_v44 = vadd.f32 %v967_v59, %v323_v42  ;;  %v519_v45 = vmax.f32 %v453_v41, 0.0 }
  0xd9   :  { %548 = vst.msk [vmem:[%s1256_s3 + $0xb8] sm:$0xff] %vm524_vm1, %v490_v43  ;;  %v476_v46 = vmax.f32 %v324_v44, 0.0 }
  0xda   :  { %v410_v47 = vpop.f32.mrf.mxu2  ;;  %577 = vst.msk [vmem:[%s1256_s3 + $0x1a0] sm:$0xff] %vm524_vm1, %v519_v45 }
  0xdb   :  { %v411_v48 = vadd.f32 %v967_v59, %v410_v47  ;;  %534 = vst.msk [vmem:[%s1256_s3 + $0x48] sm:$0xff] %vm524_vm1, %v476_v46 }
  0xdc   :  { %v368_v49 = vpop.f32.mrf.mxu1  ;;  %v455_v50 = vpop.f32.mrf.mxu3 }
  0xdd   :  { %v505_v51 = vmax.f32 %v411_v48, 0.0  ;;  %v369_v52 = vadd.f32 %v967_v59, %v368_v49  ;;  %v456_v53 = vadd.f32 %v967_v59, %v455_v50 }
  0xde   :  { %v326_v54 = vpop.f32.mrf.mxu0 }
  0xdf   :  { %563 = vst.msk [vmem:[%s1256_s3 + $0x130] sm:$0xff] %vm524_vm1, %v505_v51  ;;  %v491_v55 = vmax.f32 %v369_v52, 0.0  ;;  %v327_v56 = vadd.f32 %v967_v59, %v326_v54  ;;  %v520_v57 = vmax.f32 %v456_v53, 0.0 }
  0xe1   :  { %549 = vst.msk [vmem:[%s1256_s3 + $0xc0] sm:$0xff] %vm524_vm1, %v491_v55  ;;  %v477_v58 = vmax.f32 %v327_v56, 0.0 }
  0xe2   :  { %v413_v60 = vpop.f32.mrf.mxu2  ;;  %578 = vst.msk [vmem:[%s1256_s3 + $0x1a8] sm:$0xff] %vm524_vm1, %v520_v57 }
  0xe3   :  { %v414_v61 = vadd.f32 %v967_v59, %v413_v60  ;;  %535 = vst.msk [vmem:[%s1256_s3 + $0x50] sm:$0xff] %vm524_vm1, %v477_v58 }
  0xe4   :  { %v371_v62 = vpop.f32.mrf.mxu1  ;;  %v458_v63 = vpop.f32.mrf.mxu3 }
  0xe5   :  { %v506_v0 = vmax.f32 %v414_v61, 0.0  ;;  %v372_v1 = vadd.f32 %v967_v59, %v371_v62  ;;  %v459_v2 = vadd.f32 %v967_v59, %v458_v63 }
  0xe6   :  { %v329_v3 = vpop.f32.mrf.mxu0 }
  0xe7   :  { %564 = vst.msk [vmem:[%s1256_s3 + $0x138] sm:$0xff] %vm524_vm1, %v506_v0  ;;  %v492_v4 = vmax.f32 %v372_v1, 0.0  ;;  %v330_v5 = vadd.f32 %v967_v59, %v329_v3  ;;  %v521_v6 = vmax.f32 %v459_v2, 0.0 }
  0xe9   :  { %550 = vst.msk [vmem:[%s1256_s3 + $0xc8] sm:$0xff] %vm524_vm1, %v492_v4  ;;  %v478_v7 = vmax.f32 %v330_v5, 0.0 }
  0xea   :  { %v416_v8 = vpop.f32.mrf.mxu2  ;;  %579 = vst.msk [vmem:[%s1256_s3 + $0x1b0] sm:$0xff] %vm524_vm1, %v521_v6 }
  0xeb   :  { %v417_v9 = vadd.f32 %v967_v59, %v416_v8  ;;  %536 = vst.msk [vmem:[%s1256_s3 + $0x58] sm:$0xff] %vm524_vm1, %v478_v7 }
  0xec   :  { %v374_v10 = vpop.f32.mrf.mxu1  ;;  %v461_v11 = vpop.f32.mrf.mxu3 }
  0xed   :  { %v507_v12 = vmax.f32 %v417_v9, 0.0  ;;  %v375_v13 = vadd.f32 %v967_v59, %v374_v10  ;;  %v462_v14 = vadd.f32 %v967_v59, %v461_v11 }
  0xee   :  { %v332_v15 = vpop.f32.mrf.mxu0 }
  0xef   :  { %565 = vst.msk [vmem:[%s1256_s3 + $0x140] sm:$0xff] %vm524_vm1, %v507_v12  ;;  %v493_v16 = vmax.f32 %v375_v13, 0.0  ;;  %v333_v17 = vadd.f32 %v967_v59, %v332_v15  ;;  %v522_v18 = vmax.f32 %v462_v14, 0.0 }
  0xf1   :  { %551 = vst.msk [vmem:[%s1256_s3 + $0xd0] sm:$0xff] %vm524_vm1, %v493_v16  ;;  %v479_v19 = vmax.f32 %v333_v17, 0.0 }
  0xf2   :  { %v419_v20 = vpop.f32.mrf.mxu2  ;;  %580 = vst.msk [vmem:[%s1256_s3 + $0x1b8] sm:$0xff] %vm524_vm1, %v522_v18 }
  0xf3   :  { %v420_v21 = vadd.f32 %v967_v59, %v419_v20  ;;  %537 = vst.msk [vmem:[%s1256_s3 + $0x60] sm:$0xff] %vm524_vm1, %v479_v19 }
  0xf4   :  { %v377_v22 = vpop.f32.mrf.mxu1  ;;  %v464_v23 = vpop.f32.mrf.mxu3 }
  0xf5   :  { %v508_v24 = vmax.f32 %v420_v21, 0.0  ;;  %v378_v25 = vadd.f32 %v967_v59, %v377_v22  ;;  %v465_v26 = vadd.f32 %v967_v59, %v464_v23 }
  0xf6   :  { %v335_v27 = vpop.f32.mrf.mxu0 }
  0xf7   :  { %566 = vst.msk [vmem:[%s1256_s3 + $0x148] sm:$0xff] %vm524_vm1, %v508_v24  ;;  %v494_v28 = vmax.f32 %v378_v25, 0.0  ;;  %v336_v29 = vadd.f32 %v967_v59, %v335_v27  ;;  %v523_v30 = vmax.f32 %v465_v26, 0.0 }
  0xf9   :  { %552 = vst.msk [vmem:[%s1256_s3 + $0xd8] sm:$0xff] %vm524_vm1, %v494_v28  ;;  %v480_v31 = vmax.f32 %v336_v29, 0.0 }
  0xfa   :  { %v422_v32 = vpop.f32.mrf.mxu2  ;;  %582 = vst.msk [vmem:[%s1256_s3 + $0x1c0] sm:$0x3] %vm581_vm2, %v523_v30 }
  0xfb   :  { %v423_v33 = vadd.f32 %v967_v59, %v422_v32  ;;  %538 = vst.msk [vmem:[%s1256_s3 + $0x68] sm:$0xff] %vm524_vm1, %v480_v31 }
  0xfc   :  { %v380_v34 = vpop.f32.mrf.mxu1 }
  0xfd   :  { %v509_v35 = vmax.f32 %v423_v33, 0.0  ;;  %v381_v36 = vadd.f32 %v967_v59, %v380_v34 }
  0xff   :  { %567 = vst.msk [vmem:[%s1256_s3 + $0x150] sm:$0xff] %vm524_vm1, %v509_v35  ;;  %v495_v37 = vmax.f32 %v381_v36, 0.0 }
 0x101   :  { %553 = vst.msk [vmem:[%s1256_s3 + $0xe0] sm:$0xff] %vm524_vm1, %v495_v37 }
 0x102   :  { %v425_v38 = vpop.f32.mrf.mxu2 }
 0x103   :  { %v426_v39 = vadd.f32 %v967_v59, %v425_v38 }
 0x105   :  { %v510_v40 = vmax.f32 %v426_v39, 0.0 }
 0x107   :  { %568 = vst.msk [vmem:[%s1256_s3 + $0x158] sm:$0xff] %vm524_vm1, %v510_v40 }
 0x108   :  { %587 = vsyncpa [#allocation3], 1 }
 0x109   :  { %588 = vsyncpa [#allocation5], 1 }

// kernel: mazenet_forward.4
= control target key start
LH: loop header
LB: loop body
LE: loop exit
PB: predicated region body
PF: predicated region fallthrough
CT: control target
= control target key end

     0   :  { %8 = vsyncpa [#allocation3], 0  ;;  %s490_s15 = smov [#allocation2]   ;;  %s956_s0 = inlined_call_operand.vmem [shape: f32[392,128], index: 0, kind: input, shape index: {}]   ;;  %s957_s1 = inlined_call_operand.vmem [shape: f32[128,64], index: 1, kind: input, shape index: {}]   ;;  %s958_s2 = inlined_call_operand.hbm [shape: f32[1,64], index: 2, kind: input, shape index: {}]   ;;  %s959_s3 = inlined_call_operand.vmem [shape: bf16[392,64], index: 3, kind: output, shape index: {}]  }
   0x1   :  { %s18_s14 = sshll.u32 %s958_s2, 4  ;;  %s20_s16 = sshll.u32 %s490_s15, 4  ;;  %s19_s14 = int_to_ptr.hbm [resolvable:$true] %s18_s14  ;;  %s21_s16 = int_to_ptr.vmem [resolvable:$true] %s20_s16 }
   0x2   :  { %23 = dma.hbm_to_vmem [thread:$0]  %s19_s14, 16, %s21_s16, [#allocation3]  }
   0x3   :  { %488 = dma.done.wait [#allocation3], 16  }
   0x4   :  { %489 = vsyncadd [#allocation3], 4294967280  ;;  %v92_v0 = vld [vmem:[%s957_s1 + $0x78] sm:$0xff]  ;;  %v91_v1 = vld [vmem:[%s957_s1 + $0x70] sm:$0xff]  ;;  %vm359_vm0 = vcmask 519168  }
   0x5   :  { %415 = vmatpush.msra.mxu2 %v92_v0  ;;  %416 = vmatpush.msra.mxu3 %v92_v0  ;;  %v90_v2 = vld [vmem:[%s957_s1 + $0x68] sm:$0xff]  ;;  %v89_v3 = vld [vmem:[%s957_s1 + $0x60] sm:$0xff]  ;;  %v88_v4 = vld [vmem:[%s957_s1 + $0x58] sm:$0xff] }
   0x6   :  { %414 = vmatpush.msra.mxu1 %v92_v0  ;;  %97 = vmatpush.msra.mxu0 %v92_v0  ;;  %v87_v5 = vld [vmem:[%s957_s1 + $0x50] sm:$0xff]  ;;  %v86_v6 = vld [vmem:[%s957_s1 + $0x48] sm:$0xff]  ;;  %v85_v7 = vld [vmem:[%s957_s1 + $0x40] sm:$0xff] }
   0x7   :  { %418 = vmatpush.msra.mxu2 %v91_v1  ;;  %419 = vmatpush.msra.mxu3 %v91_v1  ;;  %v84_v8 = vld [vmem:[%s957_s1 + $0x38] sm:$0xff]  ;;  %v83_v9 = vld [vmem:[%s957_s1 + $0x30] sm:$0xff]  ;;  %v82_v10 = vld [vmem:[%s957_s1 + $0x28] sm:$0xff] }
   0x8   :  { %417 = vmatpush.msra.mxu1 %v91_v1  ;;  %98 = vmatpush.msra.mxu0 %v91_v1  ;;  %v81_v11 = vld [vmem:[%s957_s1 + $0x20] sm:$0xff]  ;;  %v80_v12 = vld [vmem:[%s957_s1 + $0x18] sm:$0xff]  ;;  %v79_v13 = vld [vmem:[%s957_s1 + $0x10] sm:$0xff] }
   0x9   :  { %421 = vmatpush.msra.mxu2 %v90_v2  ;;  %422 = vmatpush.msra.mxu3 %v90_v2  ;;  %v78_v14 = vld [vmem:[%s957_s1 + $0x8] sm:$0xff]  ;;  %v77_v15 = vld [vmem:[%s957_s1] sm:$0xff]  ;;  %v51_v16 = vld [vmem:[%s956_s0 + $0xb8] sm:$0xff] }
   0xa   :  { %420 = vmatpush.msra.mxu1 %v90_v2  ;;  %99 = vmatpush.msra.mxu0 %v90_v2  ;;  %v64_v17 = vld [vmem:[%s956_s0 + $0x120] sm:$0xff]  ;;  %v39_v18 = vld [vmem:[%s956_s0 + $0x58] sm:$0xff]  ;;  %v65_v21 = vld [vmem:[%s956_s0 + $0x128] sm:$0xff] }
   0xb   :  { %424 = vmatpush.msra.mxu2 %v89_v3  ;;  %425 = vmatpush.msra.mxu3 %v89_v3  ;;  %v28_v19 = vld [vmem:[%s956_s0] sm:$0xff]  ;;  %v29_v23 = vld [vmem:[%s956_s0 + $0x8] sm:$0xff]  ;;  %v66_v25 = vld [vmem:[%s956_s0 + $0x130] sm:$0xff] }
   0xc   :  { %423 = vmatpush.msra.mxu1 %v89_v3  ;;  %100 = vmatpush.msra.mxu0 %v89_v3  ;;  %v52_v20 = vld [vmem:[%s956_s0 + $0xc0] sm:$0xff]  ;;  %v53_v24 = vld [vmem:[%s956_s0 + $0xc8] sm:$0xff]  ;;  %v30_v27 = vld [vmem:[%s956_s0 + $0x10] sm:$0xff] }
   0xd   :  { %427 = vmatpush.msra.mxu2 %v88_v4  ;;  %428 = vmatpush.msra.mxu3 %v88_v4  ;;  %v40_v22 = vld [vmem:[%s956_s0 + $0x60] sm:$0xff]  ;;  %v41_v26 = vld [vmem:[%s956_s0 + $0x68] sm:$0xff]  ;;  %v54_v28 = vld [vmem:[%s956_s0 + $0xd0] sm:$0xff] }
   0xe   :  { %426 = vmatpush.msra.mxu1 %v88_v4  ;;  %101 = vmatpush.msra.mxu0 %v88_v4  ;;  %v67_v29 = vld [vmem:[%s956_s0 + $0x138] sm:$0xff]  ;;  %v42_v30 = vld [vmem:[%s956_s0 + $0x70] sm:$0xff]  ;;  %v68_v33 = vld [vmem:[%s956_s0 + $0x140] sm:$0xff] }
   0xf   :  { %430 = vmatpush.msra.mxu2 %v87_v5  ;;  %431 = vmatpush.msra.mxu3 %v87_v5  ;;  %v31_v31 = vld [vmem:[%s956_s0 + $0x18] sm:$0xff]  ;;  %v32_v35 = vld [vmem:[%s956_s0 + $0x20] sm:$0xff]  ;;  %v69_v37 = vld [vmem:[%s956_s0 + $0x148] sm:$0xff] }
  0x10   :  { %429 = vmatpush.msra.mxu1 %v87_v5  ;;  %102 = vmatpush.msra.mxu0 %v87_v5  ;;  %v55_v32 = vld [vmem:[%s956_s0 + $0xd8] sm:$0xff]  ;;  %v56_v36 = vld [vmem:[%s956_s0 + $0xe0] sm:$0xff]  ;;  %v33_v39 = vld [vmem:[%s956_s0 + $0x28] sm:$0xff] }
  0x11   :  { %433 = vmatpush.msra.mxu2 %v86_v6  ;;  %434 = vmatpush.msra.mxu3 %v86_v6  ;;  %v43_v34 = vld [vmem:[%s956_s0 + $0x78] sm:$0xff]  ;;  %v44_v38 = vld [vmem:[%s956_s0 + $0x80] sm:$0xff]  ;;  %v57_v40 = vld [vmem:[%s956_s0 + $0xe8] sm:$0xff] }
  0x12   :  { %432 = vmatpush.msra.mxu1 %v86_v6  ;;  %103 = vmatpush.msra.mxu0 %v86_v6  ;;  %v70_v41 = vld [vmem:[%s956_s0 + $0x150] sm:$0xff]  ;;  %v45_v42 = vld [vmem:[%s956_s0 + $0x88] sm:$0xff]  ;;  %v71_v45 = vld [vmem:[%s956_s0 + $0x158] sm:$0xff] }
  0x13   :  { %436 = vmatpush.msra.mxu2 %v85_v7  ;;  %437 = vmatpush.msra.mxu3 %v85_v7  ;;  %v34_v43 = vld [vmem:[%s956_s0 + $0x30] sm:$0xff]  ;;  %v35_v47 = vld [vmem:[%s956_s0 + $0x38] sm:$0xff]  ;;  %v72_v49 = vld [vmem:[%s956_s0 + $0x160] sm:$0xff] }
  0x14   :  { %435 = vmatpush.msra.mxu1 %v85_v7  ;;  %104 = vmatpush.msra.mxu0 %v85_v7  ;;  %v58_v44 = vld [vmem:[%s956_s0 + $0xf0] sm:$0xff]  ;;  %v59_v48 = vld [vmem:[%s956_s0 + $0xf8] sm:$0xff]  ;;  %v36_v51 = vld [vmem:[%s956_s0 + $0x40] sm:$0xff] }
  0x15   :  { %439 = vmatpush.msra.mxu2 %v84_v8  ;;  %440 = vmatpush.msra.mxu3 %v84_v8  ;;  %v46_v46 = vld [vmem:[%s956_s0 + $0x90] sm:$0xff]  ;;  %v47_v50 = vld [vmem:[%s956_s0 + $0x98] sm:$0xff]  ;;  %v60_v52 = vld [vmem:[%s956_s0 + $0x100] sm:$0xff] }
  0x16   :  { %438 = vmatpush.msra.mxu1 %v84_v8  ;;  %105 = vmatpush.msra.mxu0 %v84_v8  ;;  %v73_v53 = vld [vmem:[%s956_s0 + $0x168] sm:$0xff]  ;;  %v48_v54 = vld [vmem:[%s956_s0 + $0xa0] sm:$0xff]  ;;  %v74_v57 = vld [vmem:[%s956_s0 + $0x170] sm:$0xff] }
  0x17   :  { %442 = vmatpush.msra.mxu2 %v83_v9  ;;  %443 = vmatpush.msra.mxu3 %v83_v9  ;;  %v37_v55 = vld [vmem:[%s956_s0 + $0x48] sm:$0xff]  ;;  %v38_v59 = vld [vmem:[%s956_s0 + $0x50] sm:$0xff]  ;;  %v75_v61 = vld [vmem:[%s956_s0 + $0x178] sm:$0xff] }
  0x18   :  { %441 = vmatpush.msra.mxu1 %v83_v9  ;;  %106 = vmatpush.msra.mxu0 %v83_v9  ;;  %v61_v56 = vld [vmem:[%s956_s0 + $0x108] sm:$0xff]  ;;  %v62_v60 = vld [vmem:[%s956_s0 + $0x110] sm:$0xff]  ;;  %v63_v63 = vld [vmem:[%s956_s0 + $0x118] sm:$0xff] }
  0x19   :  { %445 = vmatpush.msra.mxu2 %v82_v10  ;;  %446 = vmatpush.msra.mxu3 %v82_v10  ;;  %v49_v58 = vld [vmem:[%s956_s0 + $0xa8] sm:$0xff]  ;;  %v50_v62 = vld [vmem:[%s956_s0 + $0xb0] sm:$0xff]  ;;  %v76_v0 = vld [vmem:[%s956_s0 + $0x180] sm:$0xff] }
  0x1a   :  { %444 = vmatpush.msra.mxu1 %v82_v10  ;;  %107 = vmatpush.msra.mxu0 %v82_v10  ;;  %v709_v1 = vld [vmem:[#allocation2] ss:$0 sm:$0xff] }
  0x1b   :  { %448 = vmatpush.msra.mxu2 %v81_v11  ;;  %449 = vmatpush.msra.mxu3 %v81_v11 }
  0x1c   :  { %447 = vmatpush.msra.mxu1 %v81_v11  ;;  %108 = vmatpush.msra.mxu0 %v81_v11 }
  0x1d   :  { %451 = vmatpush.msra.mxu2 %v80_v12  ;;  %452 = vmatpush.msra.mxu3 %v80_v12 }
  0x1e   :  { %450 = vmatpush.msra.mxu1 %v80_v12  ;;  %109 = vmatpush.msra.mxu0 %v80_v12 }
  0x1f   :  { %454 = vmatpush.msra.mxu2 %v79_v13  ;;  %455 = vmatpush.msra.mxu3 %v79_v13 }
  0x20   :  { %453 = vmatpush.msra.mxu1 %v79_v13  ;;  %110 = vmatpush.msra.mxu0 %v79_v13 }
  0x21   :  { %457 = vmatpush.msra.mxu2 %v78_v14  ;;  %458 = vmatpush.msra.mxu3 %v78_v14 }
  0x22   :  { %456 = vmatpush.msra.mxu1 %v78_v14  ;;  %111 = vmatpush.msra.mxu0 %v78_v14 }
  0x23   :  { %460 = vmatpush.msra.mxu2 %v77_v15  ;;  %461 = vmatpush.msra.mxu3 %v77_v15 }
  0x24   :  { %182 = vmatmul.f32.vlgmr.msra.gmra.mxu2 %v51_v16  ;;  %221 = vmatmul.f32.vlgmr.msra.gmra.mxu3 %v64_v17 }
  0x25   :  { %459 = vmatpush.msra.mxu1 %v77_v15  ;;  %112 = vmatpush.msra.mxu0 %v77_v15 }
  0x26   :  { %146 = vmatmul.f32.vlgmr.msra.gmra.mxu1 %v39_v18  ;;  %113 = vmatmul.f32.vlgmr.msra.gmra.mxu0 %v28_v19 }
  0x2c   :  { %185 = vmatmul.f32.gmra.mxu2 %v52_v20  ;;  %224 = vmatmul.f32.gmra.mxu3 %v65_v21 }
  0x2e   :  { %149 = vmatmul.f32.gmra.mxu1 %v40_v22  ;;  %116 = vmatmul.f32.gmra.mxu0 %v29_v23 }
  0x34   :  { %188 = vmatmul.f32.gmra.mxu2 %v53_v24  ;;  %227 = vmatmul.f32.gmra.mxu3 %v66_v25 }
  0x36   :  { %152 = vmatmul.f32.gmra.mxu1 %v41_v26  ;;  %119 = vmatmul.f32.gmra.mxu0 %v30_v27 }
  0x3c   :  { %191 = vmatmul.f32.gmra.mxu2 %v54_v28  ;;  %230 = vmatmul.f32.gmra.mxu3 %v67_v29 }
  0x3e   :  { %155 = vmatmul.f32.gmra.mxu1 %v42_v30  ;;  %122 = vmatmul.f32.gmra.mxu0 %v31_v31 }
  0x44   :  { %194 = vmatmul.f32.gmra.mxu2 %v55_v32  ;;  %233 = vmatmul.f32.gmra.mxu3 %v68_v33 }
  0x46   :  { %158 = vmatmul.f32.gmra.mxu1 %v43_v34  ;;  %125 = vmatmul.f32.gmra.mxu0 %v32_v35 }
  0x4c   :  { %197 = vmatmul.f32.gmra.mxu2 %v56_v36  ;;  %236 = vmatmul.f32.gmra.mxu3 %v69_v37 }
  0x4e   :  { %161 = vmatmul.f32.gmra.mxu1 %v44_v38  ;;  %128 = vmatmul.f32.gmra.mxu0 %v33_v39 }
  0x54   :  { %200 = vmatmul.f32.gmra.mxu2 %v57_v40  ;;  %239 = vmatmul.f32.gmra.mxu3 %v70_v41 }
  0x56   :  { %164 = vmatmul.f32.gmra.mxu1 %v45_v42  ;;  %131 = vmatmul.f32.gmra.mxu0 %v34_v43 }
  0x5c   :  { %203 = vmatmul.f32.gmra.mxu2 %v58_v44  ;;  %242 = vmatmul.f32.gmra.mxu3 %v71_v45 }
  0x5e   :  { %167 = vmatmul.f32.gmra.mxu1 %v46_v46  ;;  %134 = vmatmul.f32.gmra.mxu0 %v35_v47 }
  0x64   :  { %206 = vmatmul.f32.gmra.mxu2 %v59_v48  ;;  %245 = vmatmul.f32.gmra.mxu3 %v72_v49 }
  0x66   :  { %170 = vmatmul.f32.gmra.mxu1 %v47_v50  ;;  %137 = vmatmul.f32.gmra.mxu0 %v36_v51 }
  0x6c   :  { %209 = vmatmul.f32.gmra.mxu2 %v60_v52  ;;  %248 = vmatmul.f32.gmra.mxu3 %v73_v53 }
  0x6e   :  { %173 = vmatmul.f32.gmra.mxu1 %v48_v54  ;;  %140 = vmatmul.f32.gmra.mxu0 %v37_v55 }
  0x74   :  { %212 = vmatmul.f32.gmra.mxu2 %v61_v56  ;;  %251 = vmatmul.f32.gmra.mxu3 %v74_v57 }
  0x76   :  { %176 = vmatmul.f32.gmra.mxu1 %v49_v58  ;;  %143 = vmatmul.f32.gmra.mxu0 %v38_v59 }
  0x7c   :  { %215 = vmatmul.f32.gmra.mxu2 %v62_v60  ;;  %254 = vmatmul.f32.gmra.mxu3 %v75_v61 }
  0x7e   :  { %179 = vmatmul.f32.gmra.mxu1 %v50_v62 }
  0x84   :  { %218 = vmatmul.f32.gmra.mxu2 %v63_v63  ;;  %257 = vmatmul.f32.gmra.mxu3 %v76_v0 }
  0xa3   :  { %v147_v2 = vpop.f32.mrf.mxu1  ;;  %v114_v3 = vpop.f32.mrf.mxu0 }
  0xa4   :  { %v148_v4 = vadd.f32 %v709_v1, %v147_v2  ;;  %v115_v5 = vadd.f32 %v709_v1, %v114_v3 }
  0xa6   :  { %v272_v6 = vmax.f32 %v148_v4, 0.0  ;;  %v261_v7 = vmax.f32 %v115_v5, 0.0 }
  0xa7   :  { %v183_v8 = vpop.f32.mrf.mxu2  ;;  %v222_v9 = vpop.f32.mrf.mxu3 }
  0xa8   :  { %v184_v10 = vadd.f32 %v709_v1, %v183_v8  ;;  %v223_v11 = vadd.f32 %v709_v1, %v222_v9  ;;  %v321_v12 = vpack.c.bf16 %v272_v6, %v272_v6  ;;  %v310_v13 = vpack.c.bf16 %v261_v7, %v261_v7 }
  0xaa   :  { %v284_v14 = vmax.f32 %v184_v10, 0.0  ;;  %v297_v15 = vmax.f32 %v223_v11, 0.0  ;;  %371 = vst.msk [vmem:[%s959_s3 + $0x2c] sm:$0xf] %vm359_vm0, %v321_v12 }
  0xab   :  { %360 = vst.msk [vmem:[%s959_s3] sm:$0xf] %vm359_vm0, %v310_v13  ;;  %v150_v16 = vpop.f32.mrf.mxu1  ;;  %v117_v17 = vpop.f32.mrf.mxu0 }
  0xac   :  { %v333_v18 = vpack.c.bf16 %v284_v14, %v284_v14  ;;  %v346_v19 = vpack.c.bf16 %v297_v15, %v297_v15  ;;  %v151_v20 = vadd.f32 %v709_v1, %v150_v16  ;;  %v118_v21 = vadd.f32 %v709_v1, %v117_v17 }
  0xae   :  { %383 = vst.msk [vmem:[%s959_s3 + $0x5c] sm:$0xf] %vm359_vm0, %v333_v18  ;;  %v273_v22 = vmax.f32 %v151_v20, 0.0  ;;  %v262_v23 = vmax.f32 %v118_v21, 0.0 }
  0xaf   :  { %396 = vst.msk [vmem:[%s959_s3 + $0x90] sm:$0xf] %vm359_vm0, %v346_v19  ;;  %v186_v24 = vpop.f32.mrf.mxu2  ;;  %v225_v25 = vpop.f32.mrf.mxu3 }
  0xb0   :  { %v187_v26 = vadd.f32 %v709_v1, %v186_v24  ;;  %v226_v27 = vadd.f32 %v709_v1, %v225_v25  ;;  %v322_v28 = vpack.c.bf16 %v273_v22, %v273_v22  ;;  %v311_v29 = vpack.c.bf16 %v262_v23, %v262_v23 }
  0xb2   :  { %v285_v30 = vmax.f32 %v187_v26, 0.0  ;;  %v298_v31 = vmax.f32 %v226_v27, 0.0  ;;  %372 = vst.msk [vmem:[%s959_s3 + $0x30] sm:$0xf] %vm359_vm0, %v322_v28 }
  0xb3   :  { %361 = vst.msk [vmem:[%s959_s3 + $0x4] sm:$0xf] %vm359_vm0, %v311_v29  ;;  %v153_v32 = vpop.f32.mrf.mxu1  ;;  %v120_v33 = vpop.f32.mrf.mxu0 }
  0xb4   :  { %v334_v34 = vpack.c.bf16 %v285_v30, %v285_v30  ;;  %v347_v35 = vpack.c.bf16 %v298_v31, %v298_v31  ;;  %v154_v36 = vadd.f32 %v709_v1, %v153_v32  ;;  %v121_v37 = vadd.f32 %v709_v1, %v120_v33 }
  0xb6   :  { %384 = vst.msk [vmem:[%s959_s3 + $0x60] sm:$0xf] %vm359_vm0, %v334_v34  ;;  %v274_v38 = vmax.f32 %v154_v36, 0.0  ;;  %v263_v39 = vmax.f32 %v121_v37, 0.0 }
  0xb7   :  { %397 = vst.msk [vmem:[%s959_s3 + $0x94] sm:$0xf] %vm359_vm0, %v347_v35  ;;  %v189_v40 = vpop.f32.mrf.mxu2  ;;  %v228_v41 = vpop.f32.mrf.mxu3 }
  0xb8   :  { %v190_v42 = vadd.f32 %v709_v1, %v189_v40  ;;  %v229_v43 = vadd.f32 %v709_v1, %v228_v41  ;;  %v323_v44 = vpack.c.bf16 %v274_v38, %v274_v38  ;;  %v312_v45 = vpack.c.bf16 %v263_v39, %v263_v39 }
  0xba   :  { %v286_v46 = vmax.f32 %v190_v42, 0.0  ;;  %v299_v47 = vmax.f32 %v229_v43, 0.0  ;;  %373 = vst.msk [vmem:[%s959_s3 + $0x34] sm:$0xf] %vm359_vm0, %v323_v44 }
  0xbb   :  { %362 = vst.msk [vmem:[%s959_s3 + $0x8] sm:$0xf] %vm359_vm0, %v312_v45  ;;  %v156_v48 = vpop.f32.mrf.mxu1  ;;  %v123_v49 = vpop.f32.mrf.mxu0 }
  0xbc   :  { %v335_v50 = vpack.c.bf16 %v286_v46, %v286_v46  ;;  %v348_v51 = vpack.c.bf16 %v299_v47, %v299_v47  ;;  %v157_v52 = vadd.f32 %v709_v1, %v156_v48  ;;  %v124_v53 = vadd.f32 %v709_v1, %v123_v49 }
  0xbe   :  { %385 = vst.msk [vmem:[%s959_s3 + $0x64] sm:$0xf] %vm359_vm0, %v335_v50  ;;  %v275_v54 = vmax.f32 %v157_v52, 0.0  ;;  %v264_v55 = vmax.f32 %v124_v53, 0.0 }
  0xbf   :  { %398 = vst.msk [vmem:[%s959_s3 + $0x98] sm:$0xf] %vm359_vm0, %v348_v51  ;;  %v192_v56 = vpop.f32.mrf.mxu2  ;;  %v231_v57 = vpop.f32.mrf.mxu3 }
  0xc0   :  { %v193_v58 = vadd.f32 %v709_v1, %v192_v56  ;;  %v232_v59 = vadd.f32 %v709_v1, %v231_v57  ;;  %v324_v60 = vpack.c.bf16 %v275_v54, %v275_v54  ;;  %v313_v61 = vpack.c.bf16 %v264_v55, %v264_v55 }
  0xc2   :  { %v287_v62 = vmax.f32 %v193_v58, 0.0  ;;  %v300_v63 = vmax.f32 %v232_v59, 0.0  ;;  %374 = vst.msk [vmem:[%s959_s3 + $0x38] sm:$0xf] %vm359_vm0, %v324_v60 }
  0xc3   :  { %363 = vst.msk [vmem:[%s959_s3 + $0xc] sm:$0xf] %vm359_vm0, %v313_v61  ;;  %v159_v0 = vpop.f32.mrf.mxu1  ;;  %v126_v2 = vpop.f32.mrf.mxu0 }
  0xc4   :  { %v336_v3 = vpack.c.bf16 %v287_v62, %v287_v62  ;;  %v349_v4 = vpack.c.bf16 %v300_v63, %v300_v63  ;;  %v160_v5 = vadd.f32 %v709_v1, %v159_v0  ;;  %v127_v6 = vadd.f32 %v709_v1, %v126_v2 }
  0xc6   :  { %386 = vst.msk [vmem:[%s959_s3 + $0x68] sm:$0xf] %vm359_vm0, %v336_v3  ;;  %v276_v7 = vmax.f32 %v160_v5, 0.0  ;;  %v265_v8 = vmax.f32 %v127_v6, 0.0 }
  0xc7   :  { %399 = vst.msk [vmem:[%s959_s3 + $0x9c] sm:$0xf] %vm359_vm0, %v349_v4  ;;  %v195_v9 = vpop.f32.mrf.mxu2  ;;  %v234_v10 = vpop.f32.mrf.mxu3 }
  0xc8   :  { %v196_v11 = vadd.f32 %v709_v1, %v195_v9  ;;  %v235_v12 = vadd.f32 %v709_v1, %v234_v10  ;;  %v325_v13 = vpack.c.bf16 %v276_v7, %v276_v7  ;;  %v314_v14 = vpack.c.bf16 %v265_v8, %v265_v8 }
  0xca   :  { %v288_v15 = vmax.f32 %v196_v11, 0.0  ;;  %v301_v16 = vmax.f32 %v235_v12, 0.0  ;;  %375 = vst.msk [vmem:[%s959_s3 + $0x3c] sm:$0xf] %vm359_vm0, %v325_v13 }
  0xcb   :  { %364 = vst.msk [vmem:[%s959_s3 + $0x10] sm:$0xf] %vm359_vm0, %v314_v14  ;;  %v162_v17 = vpop.f32.mrf.mxu1  ;;  %v129_v18 = vpop.f32.mrf.mxu0 }
  0xcc   :  { %v337_v19 = vpack.c.bf16 %v288_v15, %v288_v15  ;;  %v350_v20 = vpack.c.bf16 %v301_v16, %v301_v16  ;;  %v163_v21 = vadd.f32 %v709_v1, %v162_v17  ;;  %v130_v22 = vadd.f32 %v709_v1, %v129_v18 }
  0xce   :  { %387 = vst.msk [vmem:[%s959_s3 + $0x6c] sm:$0xf] %vm359_vm0, %v337_v19  ;;  %v277_v23 = vmax.f32 %v163_v21, 0.0  ;;  %v266_v24 = vmax.f32 %v130_v22, 0.0 }
  0xcf   :  { %400 = vst.msk [vmem:[%s959_s3 + $0xa0] sm:$0xf] %vm359_vm0, %v350_v20  ;;  %v198_v25 = vpop.f32.mrf.mxu2  ;;  %v237_v26 = vpop.f32.mrf.mxu3 }
  0xd0   :  { %v199_v27 = vadd.f32 %v709_v1, %v198_v25  ;;  %v238_v28 = vadd.f32 %v709_v1, %v237_v26  ;;  %v326_v29 = vpack.c.bf16 %v277_v23, %v277_v23  ;;  %v315_v30 = vpack.c.bf16 %v266_v24, %v266_v24 }
  0xd2   :  { %v289_v31 = vmax.f32 %v199_v27, 0.0  ;;  %v302_v32 = vmax.f32 %v238_v28, 0.0  ;;  %376 = vst.msk [vmem:[%s959_s3 + $0x40] sm:$0xf] %vm359_vm0, %v326_v29 }
  0xd3   :  { %365 = vst.msk [vmem:[%s959_s3 + $0x14] sm:$0xf] %vm359_vm0, %v315_v30  ;;  %v165_v33 = vpop.f32.mrf.mxu1  ;;  %v132_v34 = vpop.f32.mrf.mxu0 }
  0xd4   :  { %v338_v35 = vpack.c.bf16 %v289_v31, %v289_v31  ;;  %v351_v36 = vpack.c.bf16 %v302_v32, %v302_v32  ;;  %v166_v37 = vadd.f32 %v709_v1, %v165_v33  ;;  %v133_v38 = vadd.f32 %v709_v1, %v132_v34 }
  0xd6   :  { %388 = vst.msk [vmem:[%s959_s3 + $0x70] sm:$0xf] %vm359_vm0, %v338_v35  ;;  %v278_v39 = vmax.f32 %v166_v37, 0.0  ;;  %v267_v40 = vmax.f32 %v133_v38, 0.0 }
  0xd7   :  { %401 = vst.msk [vmem:[%s959_s3 + $0xa4] sm:$0xf] %vm359_vm0, %v351_v36  ;;  %v201_v41 = vpop.f32.mrf.mxu2  ;;  %v240_v42 = vpop.f32.mrf.mxu3 }
  0xd8   :  { %v202_v43 = vadd.f32 %v709_v1, %v201_v41  ;;  %v241_v44 = vadd.f32 %v709_v1, %v240_v42  ;;  %v327_v45 = vpack.c.bf16 %v278_v39, %v278_v39  ;;  %v316_v46 = vpack.c.bf16 %v267_v40, %v267_v40 }
  0xda   :  { %v290_v47 = vmax.f32 %v202_v43, 0.0  ;;  %v303_v48 = vmax.f32 %v241_v44, 0.0  ;;  %377 = vst.msk [vmem:[%s959_s3 + $0x44] sm:$0xf] %vm359_vm0, %v327_v45 }
  0xdb   :  { %366 = vst.msk [vmem:[%s959_s3 + $0x18] sm:$0xf] %vm359_vm0, %v316_v46  ;;  %v168_v49 = vpop.f32.mrf.mxu1  ;;  %v135_v50 = vpop.f32.mrf.mxu0 }
  0xdc   :  { %v339_v51 = vpack.c.bf16 %v290_v47, %v290_v47  ;;  %v352_v52 = vpack.c.bf16 %v303_v48, %v303_v48  ;;  %v169_v53 = vadd.f32 %v709_v1, %v168_v49  ;;  %v136_v54 = vadd.f32 %v709_v1, %v135_v50 }
  0xde   :  { %389 = vst.msk [vmem:[%s959_s3 + $0x74] sm:$0xf] %vm359_vm0, %v339_v51  ;;  %v279_v55 = vmax.f32 %v169_v53, 0.0  ;;  %v268_v56 = vmax.f32 %v136_v54, 0.0 }
  0xdf   :  { %402 = vst.msk [vmem:[%s959_s3 + $0xa8] sm:$0xf] %vm359_vm0, %v352_v52  ;;  %v204_v57 = vpop.f32.mrf.mxu2  ;;  %v243_v58 = vpop.f32.mrf.mxu3 }
  0xe0   :  { %v205_v59 = vadd.f32 %v709_v1, %v204_v57  ;;  %v244_v60 = vadd.f32 %v709_v1, %v243_v58  ;;  %v328_v61 = vpack.c.bf16 %v279_v55, %v279_v55  ;;  %v317_v62 = vpack.c.bf16 %v268_v56, %v268_v56 }
  0xe2   :  { %v291_v63 = vmax.f32 %v205_v59, 0.0  ;;  %v304_v0 = vmax.f32 %v244_v60, 0.0  ;;  %378 = vst.msk [vmem:[%s959_s3 + $0x48] sm:$0xf] %vm359_vm0, %v328_v61 }
  0xe3   :  { %367 = vst.msk [vmem:[%s959_s3 + $0x1c] sm:$0xf] %vm359_vm0, %v317_v62  ;;  %v171_v2 = vpop.f32.mrf.mxu1  ;;  %v138_v3 = vpop.f32.mrf.mxu0 }
  0xe4   :  { %v340_v4 = vpack.c.bf16 %v291_v63, %v291_v63  ;;  %v353_v5 = vpack.c.bf16 %v304_v0, %v304_v0  ;;  %v172_v6 = vadd.f32 %v709_v1, %v171_v2  ;;  %v139_v7 = vadd.f32 %v709_v1, %v138_v3 }
  0xe6   :  { %390 = vst.msk [vmem:[%s959_s3 + $0x78] sm:$0xf] %vm359_vm0, %v340_v4  ;;  %v280_v8 = vmax.f32 %v172_v6, 0.0  ;;  %v269_v9 = vmax.f32 %v139_v7, 0.0 }
  0xe7   :  { %403 = vst.msk [vmem:[%s959_s3 + $0xac] sm:$0xf] %vm359_vm0, %v353_v5  ;;  %v207_v10 = vpop.f32.mrf.mxu2  ;;  %v246_v11 = vpop.f32.mrf.mxu3 }
  0xe8   :  { %v208_v12 = vadd.f32 %v709_v1, %v207_v10  ;;  %v247_v13 = vadd.f32 %v709_v1, %v246_v11  ;;  %v329_v14 = vpack.c.bf16 %v280_v8, %v280_v8  ;;  %v318_v15 = vpack.c.bf16 %v269_v9, %v269_v9 }
  0xea   :  { %v292_v16 = vmax.f32 %v208_v12, 0.0  ;;  %v305_v17 = vmax.f32 %v247_v13, 0.0  ;;  %379 = vst.msk [vmem:[%s959_s3 + $0x4c] sm:$0xf] %vm359_vm0, %v329_v14 }
  0xeb   :  { %368 = vst.msk [vmem:[%s959_s3 + $0x20] sm:$0xf] %vm359_vm0, %v318_v15  ;;  %v174_v18 = vpop.f32.mrf.mxu1  ;;  %v141_v19 = vpop.f32.mrf.mxu0 }
  0xec   :  { %v341_v20 = vpack.c.bf16 %v292_v16, %v292_v16  ;;  %v354_v21 = vpack.c.bf16 %v305_v17, %v305_v17  ;;  %v175_v22 = vadd.f32 %v709_v1, %v174_v18  ;;  %v142_v23 = vadd.f32 %v709_v1, %v141_v19 }
  0xee   :  { %391 = vst.msk [vmem:[%s959_s3 + $0x7c] sm:$0xf] %vm359_vm0, %v341_v20  ;;  %v281_v24 = vmax.f32 %v175_v22, 0.0  ;;  %v270_v25 = vmax.f32 %v142_v23, 0.0 }
  0xef   :  { %404 = vst.msk [vmem:[%s959_s3 + $0xb0] sm:$0xf] %vm359_vm0, %v354_v21  ;;  %v210_v26 = vpop.f32.mrf.mxu2  ;;  %v249_v27 = vpop.f32.mrf.mxu3 }
  0xf0   :  { %v211_v28 = vadd.f32 %v709_v1, %v210_v26  ;;  %v250_v29 = vadd.f32 %v709_v1, %v249_v27  ;;  %v330_v30 = vpack.c.bf16 %v281_v24, %v281_v24  ;;  %v319_v31 = vpack.c.bf16 %v270_v25, %v270_v25 }
  0xf2   :  { %v293_v32 = vmax.f32 %v211_v28, 0.0  ;;  %v306_v33 = vmax.f32 %v250_v29, 0.0  ;;  %380 = vst.msk [vmem:[%s959_s3 + $0x50] sm:$0xf] %vm359_vm0, %v330_v30 }
  0xf3   :  { %369 = vst.msk [vmem:[%s959_s3 + $0x24] sm:$0xf] %vm359_vm0, %v319_v31  ;;  %v177_v34 = vpop.f32.mrf.mxu1  ;;  %v144_v35 = vpop.f32.mrf.mxu0 }
  0xf4   :  { %v342_v36 = vpack.c.bf16 %v293_v32, %v293_v32  ;;  %v355_v37 = vpack.c.bf16 %v306_v33, %v306_v33  ;;  %v178_v38 = vadd.f32 %v709_v1, %v177_v34  ;;  %v145_v39 = vadd.f32 %v709_v1, %v144_v35 }
  0xf6   :  { %392 = vst.msk [vmem:[%s959_s3 + $0x80] sm:$0xf] %vm359_vm0, %v342_v36  ;;  %v282_v40 = vmax.f32 %v178_v38, 0.0  ;;  %v271_v41 = vmax.f32 %v145_v39, 0.0 }
  0xf7   :  { %405 = vst.msk [vmem:[%s959_s3 + $0xb4] sm:$0xf] %vm359_vm0, %v355_v37  ;;  %v213_v42 = vpop.f32.mrf.mxu2  ;;  %v252_v43 = vpop.f32.mrf.mxu3 }
  0xf8   :  { %v214_v44 = vadd.f32 %v709_v1, %v213_v42  ;;  %v253_v45 = vadd.f32 %v709_v1, %v252_v43  ;;  %v331_v46 = vpack.c.bf16 %v282_v40, %v282_v40  ;;  %v320_v47 = vpack.c.bf16 %v271_v41, %v271_v41 }
  0xfa   :  { %v294_v48 = vmax.f32 %v214_v44, 0.0  ;;  %v307_v49 = vmax.f32 %v253_v45, 0.0  ;;  %381 = vst.msk [vmem:[%s959_s3 + $0x54] sm:$0xf] %vm359_vm0, %v331_v46 }
  0xfb   :  { %370 = vst.msk [vmem:[%s959_s3 + $0x28] sm:$0xf] %vm359_vm0, %v320_v47  ;;  %v180_v50 = vpop.f32.mrf.mxu1 }
  0xfc   :  { %v343_v51 = vpack.c.bf16 %v294_v48, %v294_v48  ;;  %v356_v52 = vpack.c.bf16 %v307_v49, %v307_v49  ;;  %v181_v53 = vadd.f32 %v709_v1, %v180_v50 }
  0xfe   :  { %393 = vst.msk [vmem:[%s959_s3 + $0x84] sm:$0xf] %vm359_vm0, %v343_v51  ;;  %v283_v54 = vmax.f32 %v181_v53, 0.0 }
  0xff   :  { %406 = vst.msk [vmem:[%s959_s3 + $0xb8] sm:$0xf] %vm359_vm0, %v356_v52  ;;  %v216_v55 = vpop.f32.mrf.mxu2  ;;  %v255_v56 = vpop.f32.mrf.mxu3 }
 0x100   :  { %v217_v57 = vadd.f32 %v709_v1, %v216_v55  ;;  %v256_v58 = vadd.f32 %v709_v1, %v255_v56  ;;  %v332_v59 = vpack.c.bf16 %v283_v54, %v283_v54 }
 0x102   :  { %v295_v60 = vmax.f32 %v217_v57, 0.0  ;;  %v308_v61 = vmax.f32 %v256_v58, 0.0  ;;  %382 = vst.msk [vmem:[%s959_s3 + $0x58] sm:$0xf] %vm359_vm0, %v332_v59 }
 0x104   :  { %v344_v62 = vpack.c.bf16 %v295_v60, %v295_v60  ;;  %v357_v63 = vpack.c.bf16 %v308_v61, %v308_v61 }
 0x106   :  { %394 = vst.msk [vmem:[%s959_s3 + $0x88] sm:$0xf] %vm359_vm0, %v344_v62 }
 0x107   :  { %407 = vst.msk [vmem:[%s959_s3 + $0xbc] sm:$0xf] %vm359_vm0, %v357_v63  ;;  %v219_v0 = vpop.f32.mrf.mxu2  ;;  %v258_v2 = vpop.f32.mrf.mxu3 }
 0x108   :  { %v220_v3 = vadd.f32 %v709_v1, %v219_v0  ;;  %v259_v4 = vadd.f32 %v709_v1, %v258_v2 }
 0x10a   :  { %v296_v5 = vmax.f32 %v220_v3, 0.0  ;;  %v309_v6 = vmax.f32 %v259_v4, 0.0 }
 0x10c   :  { %v345_v7 = vpack.c.bf16 %v296_v5, %v296_v5  ;;  %v358_v8 = vpack.c.bf16 %v309_v6, %v309_v6 }
 0x10e   :  { %395 = vst.msk [vmem:[%s959_s3 + $0x8c] sm:$0xf] %vm359_vm0, %v345_v7 }
 0x10f   :  { %408 = vst.msk [vmem:[%s959_s3 + $0xc0] sm:$0xf] %vm359_vm0, %v358_v8 }
 0x110   :  { %413 = vsyncpa [#allocation3], 1 }

// kernel: mazenet_forward.5
= control target key start
LH: loop header
LB: loop body
LE: loop exit
PB: predicated region body
PF: predicated region fallthrough
CT: control target
= control target key end

     0   :  { %s13372_s0 = inlined_call_operand.vmem [shape: bf16[2,12544], index: 0, kind: input, shape index: {}]   ;;  %s13373_s1 = inlined_call_operand.hbm [shape: bf16[12544,256], index: 1, kind: input, shape index: {}]   ;;  %s13374_s2 = inlined_call_operand.hbm [shape: f32[1,256], index: 2, kind: input, shape index: {}]   ;;  %s13375_s3 = inlined_call_operand.hbm [shape: f32[256,128], index: 3, kind: input, shape index: {}]   ;;  %s13376_s4 = inlined_call_operand.hbm [shape: f32[1,128], index: 4, kind: input, shape index: {}]   ;;  %s13377_s5 = inlined_call_operand.hbm [shape: f32[128,256], index: 5, kind: input, shape index: {}]   ;;  %s13378_s6 = inlined_call_operand.hbm [shape: f32[1,256], index: 6, kind: input, shape index: {}]   ;;  %s13379_s7 = inlined_call_operand.hbm [shape: f32[256,128], index: 7, kind: input, shape index: {}]   ;;  %s13380_s8 = inlined_call_operand.hbm [shape: f32[1,128], index: 8, kind: input, shape index: {}]   ;;  %s13381_s9 = inlined_call_operand.vmem [shape: f32[2,128], index: 9, kind: output, shape index: {}]  }
   0x1   :  { %13397 = sst [smem:[#allocation34_spill]] %s13374_s2 }
   0x2   :  { %14 = vsyncpa [#allocation4], 0 }
   0x3   :  { %16 = vsyncpa [#allocation4 + $0x1], 0 }
   0x4   :  { %17 = vsyncpa [#allocation6], 0 }
   0x5   :  { %18 = vsyncpa [#allocation9], 0 }
   0x6   :  { %19 = vsyncpa [#allocation12], 0 }
   0x7   :  { %20 = vsyncpa [#allocation15], 0  ;;  %s11370_s30 = smov 0   ;;  %s11372_s10 = smov 0  }
   0x8   :  { %s11374_s11 = smov 0   ;;  %s11376_s12 = smov 0  }
   0x9 LB: > { %s13398_s2 = sld [smem:[#allocation34_spill]]  ;;  %s11394_s16 = sadd.s32 4294967295, %s11306_s12   ;;  %s11306_s12 = sphi %s11376_s12, %s13434_s12   ;;  %s11302_s11 = sphi %s11374_s11, %s13433_s11   ;;  %s11298_s10 = sphi %s11372_s10, %s13432_s10   ;;  %s11294_s30 = sphi %s11370_s30, %s13431_s30  }
   0xa   : > { %p6950_p0 = scmp.ge.s32.totalorder %s11306_s12, 1  ;;  %p73_p1 = scmp.eq.s32.totalorder %s11394_s16, 0 }
   0xb   : > { %p251_p2 = scmp.lt.s32.totalorder %s11306_s12, 3  ;;  %p6951_p3 = scmp.ne.s32.totalorder %s11394_s16, 0 }
   0xc   : > { %s11308_s18 = smov [#allocation5]   ;;  %s289_s22 = sshll.u32 %s13376_s4, 4  ;;  %s290_s22 = int_to_ptr.hbm [resolvable:$true] %s289_s22 }
   0xd   : > { %p11400_p4 = pnand %p6950_p0, %p251_p2  ;;  %s265_s19 = sshll.u32 %s11308_s18, 4  ;;  %s266_s19 = int_to_ptr.vmem [resolvable:$true] %s265_s19 }
   0xe   : > { %s11309_s24 = smov [#allocation8]   ;;  %s315_s28 = sshll.u32 %s13378_s6, 4  ;;  %s316_s28 = int_to_ptr.hbm [resolvable:$true] %s315_s28 }
   0xf   : > { %s263_s15 = sshll.u32 %s13398_s2, 4  ;;  %p10928_p5 = pneg %p11400_p4  ;;  %s264_s15 = int_to_ptr.hbm [resolvable:$true] %s263_s15 }
  0x10   : > { %s291_s25 = sshll.u32 %s11309_s24, 4  ;;  %s274_s14 = sshll.u32 %s13375_s3, 4  ;;  %s292_s25 = int_to_ptr.vmem [resolvable:$true] %s291_s25  ;;  %s275_s14 = int_to_ptr.hbm [resolvable:$true] %s274_s14 }
  0x11   : > { %p11411_p6 = pnand %p10928_p5, %p73_p1  ;;  %s11310_s18 = smov [#allocation11]  }
  0x12   : > { %s317_s20 = sshll.u32 %s11310_s18, 4  ;;  %s11311_s21 = smov [#allocation7]   ;;  %s318_s20 = int_to_ptr.vmem [resolvable:$true] %s317_s20 }
  0x13   : > { %10931 = dma.hbm_to_vmem [thread:$0]  (!%p11411_p6), %s264_s15, 32, %s266_s19, [#allocation6]  }
  0x14   : > { %10937 = dma.hbm_to_vmem [thread:$0]  (!%p11411_p6), %s290_s22, 16, %s292_s25, [#allocation9]  }
  0x15   : > { %10943 = dma.hbm_to_vmem [thread:$0]  (!%p11411_p6), %s316_s28, 32, %s318_s20, [#allocation12]  }
  0x16   : > { %s276_s24 = sshll.u32 %s11311_s21, 4  ;;  %s13382_s26 = smov 128   ;;  %s277_s24 = int_to_ptr.vmem [resolvable:$true] %s276_s24 }
  0x17   : > { %s13383_s27 = smov 8   ;;  %s300_s22 = sshll.u32 %s13377_s5, 4  ;;  %s301_s22 = int_to_ptr.hbm [resolvable:$true] %s300_s22 }
  0x18   : > { %10934 = dma.hbm_to_vmem [thread:$0]  (!%p11411_p6), %s275_s14, 4096, %s277_s24, [#allocation6], %s13382_s26, %s13382_s26, %s13383_s27  }
  0x19   : > { %s11314_s25 = smov [#allocation10]   ;;  %s326_s18 = sshll.u32 %s13379_s7, 4  ;;  %s327_s18 = int_to_ptr.hbm [resolvable:$true] %s326_s18 }
  0x1a   : > { %s302_s29 = sshll.u32 %s11314_s25, 4  ;;  %s11315_s20 = smov 256   ;;  %s303_s29 = int_to_ptr.vmem [resolvable:$true] %s302_s29 }
  0x1b   : > { %s11316_s21 = smov 16   ;;  %s11317_s14 = smov [#allocation13]  }
  0x1c   : > { %10940 = dma.hbm_to_vmem [thread:$0]  (!%p11411_p6), %s301_s22, 4096, %s303_s29, [#allocation9], %s11315_s20, %s11315_s20, %s11316_s21  }
  0x1d   : > { %s328_s24 = sshll.u32 %s11317_s14, 4  ;;  %s341_s25 = sshll.u32 %s13380_s8, 4  ;;  %s329_s24 = int_to_ptr.vmem [resolvable:$true] %s328_s24  ;;  %s342_s25 = int_to_ptr.hbm [resolvable:$true] %s341_s25 }
  0x1e   : > { %10946 = dma.hbm_to_vmem [thread:$0]  (!%p11411_p6), %s327_s18, 4096, %s329_s24, [#allocation12], %s13382_s26, %s13382_s26, %s13383_s27  }
  0x1f   : > { %s11318_s22 = smov [#allocation14]   ;;  %s11451_s28 = sadd.s32 1, %s11306_s12  }
  0x20   : > { %s343_s29 = sshll.u32 %s11318_s22, 4  ;;  %s56_s13 = ssub.s32 %s11306_s12, %s11451_s28  ;;  %s344_s29 = int_to_ptr.vmem [resolvable:$true] %s343_s29 }
  0x21   : > { %10949 = dma.hbm_to_vmem [thread:$0]  (!%p11411_p6), %s342_s25, 16, %s344_s29, [#allocation15]  }
  0x22   : > { %s59_s20 = sadd.s32 1, %s11302_s11  ;;  %p57_p7 = scmp.eq.s32.totalorder %s56_s13, 0 }
  0x23   : > { %p66_p8 = scmp.ne.s32.totalorder %s11302_s11, %s11298_s10  ;;  %p67_p9 = scmp.eq.s32.totalorder %s11306_s12, 0 }
  0x24   : > { %p72_p10 = scmp.ne.s32.totalorder %s11298_s10, %s11294_s30  ;;  %p10961_p13 = scmp.lt.s32.totalorder %s11306_s12, 2 }
  0x25   : > { %s11462_s21 = scalar_select %p57_p7, %s11302_s11, %s59_s20  }
  0x26   : > { %p68_p11 = por %p67_p9, %p66_p8  ;;  %p11466_p12 = por %p73_p1, %p72_p10 }
  0x27   : > { %s362_s23 = sand.u32 1, %s11302_s11   ;;  %s10895_s24 = smul.u32 6272, %s11306_s12 }
  0x28   : > { %s10896_s14 = smul.u32 6272, %s362_s23  ;;  %p11473_p0 = pnand %p10961_p13, %p68_p11 }
  0x29   : > { %s372_s30 = scalar_lea.hbm %s13373_s1, %s10895_s24  ;;  %s363_s20 = scalar_lea.sflag [#allocation4], %s362_s23 }
  0x2a   : > { %s366_s22 = scalar_lea.vmem [#allocation3], %s10896_s14  ;;  %s373_s13 = sshll.u32 %s372_s30, 4  ;;  %s374_s13 = int_to_ptr.hbm [resolvable:$true] %s373_s13 }
  0x2b   : > { %s375_s29 = sshll.u32 %s366_s22, 4  ;;  %s11226_s26 = sshra.s32 %s374_s13, 4  ;;  %s376_s29 = int_to_ptr.vmem [resolvable:$true] %s375_s29  ;;  %s11227_s26 = int_to_ptr.hbm [resolvable:$true] %s11226_s26 }
  0x2c   : > { %s11228_s27 = scalar_lea.hbm %s11227_s26, 6272  ;;  %p11230_p5 = pneg %p11473_p0 }
  0x2d   : > { %p11229_p2 = scmp.ne.s32.totalorder %s11227_s26, %s11228_s27  ;;  %s11233_s19 = scalar_lea.hbm %s13373_s1, 12544 }
  0x2e   : > { %p11234_p8 = scmp.lt.s32.totalorder %s11227_s26, %s13373_s1  ;;  %p11235_p9 = scmp.lt.s32.totalorder %s11233_s19, %s11228_s27 }
  0x2f   : > { %p11231_p6 = pnand %p11230_p5, %p11229_p2 }
  0x30   : > { %p11236_p10 = por %p11235_p9, %p11234_p8 }
  0x31   : > { %p11232_p7 = pneg %p11231_p6 }
  0x33   : > { %p11237_p11 = pnand %p11236_p10, %p11232_p7 }
  0x35   : > { %11240 = shalt.err (!%p11237_p11)
}
  0x36   : > { %s13403_s23 = smov 8   ;;  %s13404_s14 = smov 128  }
  0x37   : > { %10953 = dma.hbm_to_vmem [thread:$0]  (!%p11473_p0), %s374_s13, 100352, %s376_s29, %s363_s20, %s13404_s14, %s13404_s14, %s13403_s23  }
  0x38   : > { %387 = sbr.rel (%p11400_p4) target bundleno = 1451 (0x5ab), region = 56 }
  0x3d   : > { %s389_s2 = sand.u32 1, %s11298_s10  }
  0x3e   : > { %s10897_s30 = smul.u32 6272, %s389_s2  ;;  %s390_s22 = scalar_lea.sflag [#allocation4], %s389_s2 }
  0x40   : > { %s11496_s12 = scalar_lea.vmem [#allocation3], %s10897_s30 }
  0x41   : > { %11273 = dma.done.wait (%p11466_p12), %s390_s22, 100352  }
  0x42   : > { %11275 = vsyncadd (%p11466_p12), %s390_s22, 4294866944 }
  0x43   : > { %11277 = dma.done.wait (%p73_p1), [#allocation6], 4128  }
  0x44   : > { %11279 = vsyncadd (%p73_p1), [#allocation6], 4294963168 }
  0x45   : > { %11281 = dma.done.wait (%p73_p1), [#allocation9], 4112  }
  0x46   : > { %11283 = vsyncadd (%p73_p1), [#allocation9], 4294963184 }
  0x47   : > { %11285 = dma.done.wait (%p73_p1), [#allocation12], 4128  }
  0x48   : > { %11287 = vsyncadd (%p73_p1), [#allocation12], 4294963168 }
  0x49   : > { %11289 = dma.done.wait (%p73_p1), [#allocation15], 16  }
  0x4a   : > { %11291 = vsyncadd (%p73_p1), [#allocation15], 4294967280  ;;  %s463_s17 = smul.u32 49, %s11394_s16 }
  0x4b   : > { %472 = sbr.rel (%p6951_p3) target bundleno = 82 (0x52), region = 92 }
  0x4c   : > { %p464_p4 = scmp.lt.s32.totalorder %s463_s17, 97 }
  0x4e   : > { %s13436_s17 = smov (!%p464_p4, %s463_s17), 97 }
  0x4f   : > { %s11522_s18 = scalar_lea.vmem %s13372_s0, %s13436_s17 }
  0x50   : > { %v11319_v0 = vmov 0.0  }
  0x51   : > { %473 = vst [vmem:[#allocation2] sm:$0xf] %v11319_v0 }
  0x52 PF: > { %v7028_v1 = vld [vmem:[%s11496_s12 + $0x70] sm:$0xf]  ;;  %v10126_v2 = vld [vmem:[%s11496_s12 + $0x74] sm:$0xf0]  ;;  %v7020_v12 = vld [vmem:[%s11496_s12 + $0x60] sm:$0xf] }
  0x53   : > { %v7092_v3 = vld [vmem:[%s11496_s12 + $0xf0] sm:$0xf]  ;;  %v7029_v4 = vor.u32 %v10126_v2, %v7028_v1  ;;  %v10142_v5 = vld [vmem:[%s11496_s12 + $0xf4] sm:$0xf0]  ;;  %v10124_v14 = vld [vmem:[%s11496_s12 + $0x64] sm:$0xf0] }
  0x54   : > { %v7156_v6 = vld [vmem:[%s11496_s12 + $0x170] sm:$0xf]  ;;  %v10158_v7 = vld [vmem:[%s11496_s12 + $0x174] sm:$0xf0]  ;;  %v7093_v8 = vor.u32 %v10142_v5, %v7092_v3  ;;  %v7084_v15 = vld [vmem:[%s11496_s12 + $0xe0] sm:$0xf]  ;;  %v7021_v17 = vor.u32 %v10124_v14, %v7020_v12 }
  0x55   : > { %v7157_v9 = vor.u32 %v10158_v7, %v7156_v6  ;;  %v7220_v10 = vld [vmem:[%s11496_s12 + $0x1f0] sm:$0xf]  ;;  %v10174_v11 = vld [vmem:[%s11496_s12 + $0x1f4] sm:$0xf0]  ;;  %5298 = vmatpush.bf16.msra.mxu0 %v7029_v4  ;;  %v10140_v16 = vld [vmem:[%s11496_s12 + $0xe4] sm:$0xf0] }
  0x56   : > { %v7221_v13 = vor.u32 %v10174_v11, %v7220_v10  ;;  %5311 = vmatpush.bf16.msra.mxu1 %v7093_v8  ;;  %v7085_v18 = vor.u32 %v10140_v16, %v7084_v15  ;;  %v7148_v19 = vld [vmem:[%s11496_s12 + $0x160] sm:$0xf]  ;;  %v10156_v20 = vld [vmem:[%s11496_s12 + $0x164] sm:$0xf0]  ;;  %v7012_v24 = vld [vmem:[%s11496_s12 + $0x50] sm:$0xf] }
  0x57   : > { %5324 = vmatpush.bf16.msra.mxu2 %v7157_v9  ;;  %v7212_v21 = vld [vmem:[%s11496_s12 + $0x1e0] sm:$0xf]  ;;  %v7149_v22 = vor.u32 %v10156_v20, %v7148_v19  ;;  %v10172_v23 = vld [vmem:[%s11496_s12 + $0x1e4] sm:$0xf0]  ;;  %v10122_v25 = vld [vmem:[%s11496_s12 + $0x54] sm:$0xf0] }
  0x58   : > { %5337 = vmatpush.bf16.msra.mxu3 %v7221_v13  ;;  %v7213_v26 = vor.u32 %v10172_v23, %v7212_v21  ;;  %v7076_v27 = vld [vmem:[%s11496_s12 + $0xd0] sm:$0xf]  ;;  %v10138_v28 = vld [vmem:[%s11496_s12 + $0xd4] sm:$0xf0]  ;;  %v7013_v30 = vor.u32 %v10122_v25, %v7012_v24  ;;  %v7004_v36 = vld [vmem:[%s11496_s12 + $0x40] sm:$0xf] }
  0x59   : > { %v7140_v29 = vld [vmem:[%s11496_s12 + $0x150] sm:$0xf]  ;;  %5299 = vmatpush.bf16.msra.mxu0 %v7021_v17  ;;  %v10154_v31 = vld [vmem:[%s11496_s12 + $0x154] sm:$0xf0]  ;;  %v7077_v34 = vor.u32 %v10138_v28, %v7076_v27  ;;  %v10120_v37 = vld [vmem:[%s11496_s12 + $0x44] sm:$0xf0] }
  0x5a   : > { %v7204_v32 = vld [vmem:[%s11496_s12 + $0x1d0] sm:$0xf]  ;;  %v10170_v33 = vld [vmem:[%s11496_s12 + $0x1d4] sm:$0xf0]  ;;  %5312 = vmatpush.bf16.msra.mxu1 %v7085_v18  ;;  %v7141_v35 = vor.u32 %v10154_v31, %v7140_v29  ;;  %v7068_v38 = vld [vmem:[%s11496_s12 + $0xc0] sm:$0xf]  ;;  %v7005_v45 = vor.u32 %v10120_v37, %v7004_v36 }
  0x5b   : > { %5325 = vmatpush.bf16.msra.mxu2 %v7149_v22  ;;  %v7205_v39 = vor.u32 %v10170_v33, %v7204_v32  ;;  %v10136_v40 = vld [vmem:[%s11496_s12 + $0xc4] sm:$0xf0]  ;;  %v7132_v41 = vld [vmem:[%s11496_s12 + $0x140] sm:$0xf]  ;;  %v6996_v48 = vld [vmem:[%s11496_s12 + $0x30] sm:$0xf] }
  0x5c   : > { %5338 = vmatpush.bf16.msra.mxu3 %v7213_v26  ;;  %v10152_v42 = vld [vmem:[%s11496_s12 + $0x144] sm:$0xf0]  ;;  %v7196_v43 = vld [vmem:[%s11496_s12 + $0x1c0] sm:$0xf]  ;;  %v7069_v46 = vor.u32 %v10136_v40, %v7068_v38  ;;  %v10118_v49 = vld [vmem:[%s11496_s12 + $0x34] sm:$0xf0] }
  0x5d   : > { %v10168_v44 = vld [vmem:[%s11496_s12 + $0x1c4] sm:$0xf0]  ;;  %5300 = vmatpush.bf16.msra.mxu0 %v7013_v30  ;;  %v7133_v47 = vor.u32 %v10152_v42, %v7132_v41  ;;  %v7060_v50 = vld [vmem:[%s11496_s12 + $0xb0] sm:$0xf]  ;;  %v10134_v52 = vld [vmem:[%s11496_s12 + $0xb4] sm:$0xf0]  ;;  %v6997_v57 = vor.u32 %v10118_v49, %v6996_v48 }
  0x5e   : > { %5313 = vmatpush.bf16.msra.mxu1 %v7077_v34  ;;  %v7197_v51 = vor.u32 %v10168_v44, %v7196_v43  ;;  %v7124_v53 = vld [vmem:[%s11496_s12 + $0x130] sm:$0xf]  ;;  %v10150_v54 = vld [vmem:[%s11496_s12 + $0x134] sm:$0xf0]  ;;  %v7061_v58 = vor.u32 %v10134_v52, %v7060_v50  ;;  %v6988_v60 = vld [vmem:[%s11496_s12 + $0x20] sm:$0xf] }
  0x5f   : > { %5326 = vmatpush.bf16.msra.mxu2 %v7141_v35  ;;  %v7188_v55 = vld [vmem:[%s11496_s12 + $0x1b0] sm:$0xf]  ;;  %v10166_v56 = vld [vmem:[%s11496_s12 + $0x1b4] sm:$0xf0]  ;;  %v7125_v59 = vor.u32 %v10150_v54, %v7124_v53  ;;  %v10116_v61 = vld [vmem:[%s11496_s12 + $0x24] sm:$0xf0] }
  0x60   : > { %5339 = vmatpush.bf16.msra.mxu3 %v7205_v39  ;;  %v7052_v62 = vld [vmem:[%s11496_s12 + $0xa0] sm:$0xf]  ;;  %v7189_v63 = vor.u32 %v10166_v56, %v7188_v55  ;;  %v10132_v0 = vld [vmem:[%s11496_s12 + $0xa4] sm:$0xf0]  ;;  %v6989_v5 = vor.u32 %v10116_v61, %v6988_v60  ;;  %v6980_v8 = vld [vmem:[%s11496_s12 + $0x10] sm:$0xf] }
  0x61   : > { %5301 = vmatpush.bf16.msra.mxu0 %v7005_v45  ;;  %v7116_v1 = vld [vmem:[%s11496_s12 + $0x120] sm:$0xf]  ;;  %v10148_v2 = vld [vmem:[%s11496_s12 + $0x124] sm:$0xf0]  ;;  %v7053_v6 = vor.u32 %v10132_v0, %v7052_v62  ;;  %v10114_v9 = vld [vmem:[%s11496_s12 + $0x14] sm:$0xf0] }
  0x62   : > { %5314 = vmatpush.bf16.msra.mxu1 %v7069_v46  ;;  %v7180_v3 = vld [vmem:[%s11496_s12 + $0x1a0] sm:$0xf]  ;;  %v10164_v4 = vld [vmem:[%s11496_s12 + $0x1a4] sm:$0xf0]  ;;  %v7117_v7 = vor.u32 %v10148_v2, %v7116_v1  ;;  %v7044_v10 = vld [vmem:[%s11496_s12 + $0x90] sm:$0xf]  ;;  %v6981_v17 = vor.u32 %v10114_v9, %v6980_v8 }
  0x63   : > { %5327 = vmatpush.bf16.msra.mxu2 %v7133_v47  ;;  %v7181_v11 = vor.u32 %v10164_v4, %v7180_v3  ;;  %v10130_v12 = vld [vmem:[%s11496_s12 + $0x94] sm:$0xf0]  ;;  %v7108_v13 = vld [vmem:[%s11496_s12 + $0x110] sm:$0xf]  ;;  %v6972_v18 = vld [vmem:[%s11496_s12] sm:$0xf] }
  0x64   : > { %5340 = vmatpush.bf16.msra.mxu3 %v7197_v51  ;;  %v10146_v14 = vld [vmem:[%s11496_s12 + $0x114] sm:$0xf0]  ;;  %v7172_v15 = vld [vmem:[%s11496_s12 + $0x190] sm:$0xf]  ;;  %v10112_v19 = vld [vmem:[%s11496_s12 + $0x4] sm:$0xf0]  ;;  %v7045_v20 = vor.u32 %v10130_v12, %v7044_v10 }
  0x65   : > { %5302 = vmatpush.bf16.msra.mxu0 %v6997_v57  ;;  %v10162_v16 = vld [vmem:[%s11496_s12 + $0x194] sm:$0xf0]  ;;  %v7109_v21 = vor.u32 %v10146_v14, %v7108_v13  ;;  %v7036_v22 = vld [vmem:[%s11496_s12 + $0x80] sm:$0xf]  ;;  %v10128_v23 = vld [vmem:[%s11496_s12 + $0x84] sm:$0xf0]  ;;  %v6973_v32 = vor.u32 %v10112_v19, %v6972_v18 }
  0x66   : > { %5315 = vmatpush.bf16.msra.mxu1 %v7061_v58  ;;  %v7100_v24 = vld [vmem:[%s11496_s12 + $0x100] sm:$0xf]  ;;  %v7173_v25 = vor.u32 %v10162_v16, %v7172_v15  ;;  %v10144_v26 = vld [vmem:[%s11496_s12 + $0x104] sm:$0xf0]  ;;  %v7284_v27 = vld [vmem:[%s11496_s12 + $0x270] sm:$0xf]  ;;  %v7037_v36 = vor.u32 %v10128_v23, %v7036_v22 }
  0x67   : > { %5328 = vmatpush.bf16.msra.mxu2 %v7125_v59  ;;  %v10190_v28 = vld [vmem:[%s11496_s12 + $0x274] sm:$0xf0]  ;;  %v7348_v29 = vld [vmem:[%s11496_s12 + $0x2f0] sm:$0xf]  ;;  %v7164_v34 = vld [vmem:[%s11496_s12 + $0x180] sm:$0xf]  ;;  %v7101_v37 = vor.u32 %v10144_v26, %v7100_v24 }
  0x68   : > { %5341 = vmatpush.bf16.msra.mxu3 %v7189_v63  ;;  %v10206_v30 = vld [vmem:[%s11496_s12 + $0x2f4] sm:$0xf0]  ;;  %v7412_v31 = vld [vmem:[%s11496_s12 + $0x370] sm:$0xf]  ;;  %v10160_v35 = vld [vmem:[%s11496_s12 + $0x184] sm:$0xf0]  ;;  %v7285_v40 = vor.u32 %v10190_v28, %v7284_v27 }
  0x69   : > { %5303 = vmatpush.bf16.msra.mxu0 %v6989_v5  ;;  %v10222_v33 = vld [vmem:[%s11496_s12 + $0x374] sm:$0xf0]  ;;  %v7476_v38 = vld [vmem:[%s11496_s12 + $0x3f0] sm:$0xf]  ;;  %v7349_v41 = vor.u32 %v10206_v30, %v7348_v29  ;;  %v7276_v42 = vld [vmem:[%s11496_s12 + $0x260] sm:$0xf]  ;;  %v7165_v44 = vor.u32 %v10160_v35, %v7164_v34 }
  0x6a   : > { %5316 = vmatpush.bf16.msra.mxu1 %v7053_v6  ;;  %v10238_v39 = vld [vmem:[%s11496_s12 + $0x3f4] sm:$0xf0]  ;;  %v7413_v43 = vor.u32 %v10222_v33, %v7412_v31  ;;  %v10188_v45 = vld [vmem:[%s11496_s12 + $0x264] sm:$0xf0]  ;;  %v7340_v46 = vld [vmem:[%s11496_s12 + $0x2e0] sm:$0xf] }
  0x6b   : > { %5329 = vmatpush.bf16.msra.mxu2 %v7117_v7  ;;  %v10204_v47 = vld [vmem:[%s11496_s12 + $0x2e4] sm:$0xf0]  ;;  %v7477_v48 = vor.u32 %v10238_v39, %v7476_v38  ;;  %v7404_v49 = vld [vmem:[%s11496_s12 + $0x360] sm:$0xf]  ;;  %v7277_v53 = vor.u32 %v10188_v45, %v7276_v42  ;;  %v7268_v55 = vld [vmem:[%s11496_s12 + $0x250] sm:$0xf] }
  0x6c   : > { %5342 = vmatpush.bf16.msra.mxu3 %v7181_v11  ;;  %v10220_v50 = vld [vmem:[%s11496_s12 + $0x364] sm:$0xf0]  ;;  %v7468_v51 = vld [vmem:[%s11496_s12 + $0x3e0] sm:$0xf]  ;;  %v7341_v54 = vor.u32 %v10204_v47, %v7340_v46  ;;  %v10186_v56 = vld [vmem:[%s11496_s12 + $0x254] sm:$0xf0] }
  0x6d   : > { %5304 = vmatpush.bf16.msra.mxu0 %v6981_v17  ;;  %v10236_v52 = vld [vmem:[%s11496_s12 + $0x3e4] sm:$0xf0]  ;;  %v7405_v57 = vor.u32 %v10220_v50, %v7404_v49  ;;  %v7332_v58 = vld [vmem:[%s11496_s12 + $0x2d0] sm:$0xf]  ;;  %v10202_v59 = vld [vmem:[%s11496_s12 + $0x2d4] sm:$0xf0]  ;;  %v7269_v2 = vor.u32 %v10186_v56, %v7268_v55 }
  0x6e   : > { %5317 = vmatpush.bf16.msra.mxu1 %v7045_v20  ;;  %v475_v60 = vld [vmem:[%s11522_s18] sm:$0xff]  ;;  %v7469_v61 = vor.u32 %v10236_v52, %v7468_v51  ;;  %v7396_v62 = vld [vmem:[%s11496_s12 + $0x350] sm:$0xf]  ;;  %v7333_v3 = vor.u32 %v10202_v59, %v7332_v58  ;;  %v7260_v4 = vld [vmem:[%s11496_s12 + $0x240] sm:$0xf]  ;;  %vm6575_vm0 = vcmask 1041408  }
  0x6f   : > { %5330 = vmatpush.bf16.msra.mxu2 %v7109_v21  ;;  %v10218_v63 = vld [vmem:[%s11496_s12 + $0x354] sm:$0xf0]  ;;  %1267 = vst [vmem:[#allocation1] ss:$9 sm:$0xff] %v475_v60  ;;  %v7460_v0 = vld [vmem:[%s11496_s12 + $0x3d0] sm:$0xf] }
  0x70   : > { %5343 = vmatpush.bf16.msra.mxu3 %v7173_v25  ;;  %v10234_v1 = vld [vmem:[%s11496_s12 + $0x3d4] sm:$0xf0]  ;;  %v7397_v5 = vor.u32 %v10218_v63, %v7396_v62  ;;  %v10184_v6 = vld [vmem:[%s11496_s12 + $0x244] sm:$0xf0]  ;;  %v7324_v7 = vld [vmem:[%s11496_s12 + $0x2c0] sm:$0xf] }
  0x71   : > { %5305 = vmatpush.bf16.msra.mxu0 %v6973_v32  ;;  %v10200_v8 = vld [vmem:[%s11496_s12 + $0x2c4] sm:$0xf0]  ;;  %v7461_v9 = vor.u32 %v10234_v1, %v7460_v0  ;;  %v7388_v10 = vld [vmem:[%s11496_s12 + $0x340] sm:$0xf]  ;;  %v7252_v14 = vld [vmem:[%s11496_s12 + $0x230] sm:$0xf]  ;;  %v7261_v15 = vor.u32 %v10184_v6, %v7260_v4 }
  0x72   : > { %5318 = vmatpush.bf16.msra.mxu1 %v7037_v36  ;;  %v10216_v11 = vld [vmem:[%s11496_s12 + $0x344] sm:$0xf0]  ;;  %v7452_v12 = vld [vmem:[%s11496_s12 + $0x3c0] sm:$0xf]  ;;  %v7325_v16 = vor.u32 %v10200_v8, %v7324_v7  ;;  %v10182_v17 = vld [vmem:[%s11496_s12 + $0x234] sm:$0xf0] }
  0x73   : > { %5331 = vmatpush.bf16.msra.mxu2 %v7101_v37  ;;  %v10232_v13 = vld [vmem:[%s11496_s12 + $0x3c4] sm:$0xf0]  ;;  %v7316_v18 = vld [vmem:[%s11496_s12 + $0x2b0] sm:$0xf]  ;;  %v10198_v19 = vld [vmem:[%s11496_s12 + $0x2b4] sm:$0xf0]  ;;  %v7389_v20 = vor.u32 %v10216_v11, %v7388_v10  ;;  %v7253_v30 = vor.u32 %v10182_v17, %v7252_v14 }
  0x74   : > { %5344 = vmatpush.bf16.msra.mxu3 %v7165_v44  ;;  %v7453_v24 = vor.u32 %v10232_v13, %v7452_v12  ;;  %v7380_v25 = vld [vmem:[%s11496_s12 + $0x330] sm:$0xf]  ;;  %v10214_v26 = vld [vmem:[%s11496_s12 + $0x334] sm:$0xf0]  ;;  %v7317_v31 = vor.u32 %v10198_v19, %v7316_v18  ;;  %v7244_v32 = vld [vmem:[%s11496_s12 + $0x220] sm:$0xf] }
  0x75   : > { %5350 = vmatpush.bf16.msrb.mxu0 %v7285_v40  ;;  %v7444_v28 = vld [vmem:[%s11496_s12 + $0x3b0] sm:$0xf]  ;;  %v10230_v29 = vld [vmem:[%s11496_s12 + $0x3b4] sm:$0xf0]  ;;  %v7381_v33 = vor.u32 %v10214_v26, %v7380_v25  ;;  %v10180_v34 = vld [vmem:[%s11496_s12 + $0x224] sm:$0xf0] }
  0x76   : > { %5363 = vmatpush.bf16.msrb.mxu1 %v7349_v41  ;;  %v11627_v21 = vld [vmem:[#allocation1 + $0x12] sm:$0xff]  ;;  %v11629_v22 = vld [vmem:[#allocation1] sm:$0xff]  ;;  %v11636_v27 = vld [vmem:[#allocation1 + $0x9] sm:$0xff]  ;;  %v7445_v37 = vor.u32 %v10230_v29, %v7444_v28  ;;  %v7245_v44 = vor.u32 %v10180_v34, %v7244_v32  ;;  %p10106_p1 = scmp.ne.s32.totalorder %s11394_s16, 1 }
  0x77   : > { %5376 = vmatpush.bf16.msrb.mxu2 %v7413_v43  ;;  %v11631_v23 = vld [vmem:[#allocation1 + $0x1b] sm:$0xff]  ;;  %5306 = vmatmul.bf16.vlgmr.msra.gmra.mxu0 %v11629_v22  ;;  %v7308_v35 = vld [vmem:[%s11496_s12 + $0x2a0] sm:$0xf]  ;;  %v10196_v36 = vld [vmem:[%s11496_s12 + $0x2a4] sm:$0xf0] }
  0x78   : > { %5389 = vmatpush.bf16.msrb.mxu3 %v7477_v48  ;;  %5332 = vmatmul.bf16.vlgmr.msra.gmra.mxu2 %v11627_v21  ;;  %v7372_v38 = vld [vmem:[%s11496_s12 + $0x320] sm:$0xf]  ;;  %v10212_v39 = vld [vmem:[%s11496_s12 + $0x324] sm:$0xf0]  ;;  %v7236_v42 = vld [vmem:[%s11496_s12 + $0x210] sm:$0xf]  ;;  %v7309_v45 = vor.u32 %v10196_v36, %v7308_v35 }
  0x79   : > { %5351 = vmatpush.bf16.msrb.mxu0 %v7277_v53  ;;  %5345 = vmatmul.bf16.vlgmr.msra.gmra.mxu3 %v11631_v23  ;;  %v7436_v40 = vld [vmem:[%s11496_s12 + $0x3a0] sm:$0xf]  ;;  %v10228_v41 = vld [vmem:[%s11496_s12 + $0x3a4] sm:$0xf0]  ;;  %v10178_v43 = vld [vmem:[%s11496_s12 + $0x214] sm:$0xf0]  ;;  %v7373_v49 = vor.u32 %v10212_v39, %v7372_v38 }
  0x7a   : > { %5364 = vmatpush.bf16.msrb.mxu1 %v7341_v54  ;;  %v7300_v46 = vld [vmem:[%s11496_s12 + $0x290] sm:$0xf]  ;;  %v10194_v47 = vld [vmem:[%s11496_s12 + $0x294] sm:$0xf0]  ;;  %v7437_v53 = vor.u32 %v10228_v41, %v7436_v40  ;;  %v476_v55 = vld [vmem:[%s11522_s18 + $0x8] sm:$0xff]  ;;  %v7237_v59 = vor.u32 %v10178_v43, %v7236_v42 }
  0x7b   : > { %5377 = vmatpush.bf16.msrb.mxu2 %v7405_v57  ;;  %5319 = vmatmul.bf16.vlgmr.msra.gmra.mxu1 %v11636_v27  ;;  %v7364_v48 = vld [vmem:[%s11496_s12 + $0x310] sm:$0xf]  ;;  %v10210_v50 = vld [vmem:[%s11496_s12 + $0x314] sm:$0xf0]  ;;  %v11664_v56 = vld [vmem:[#allocation1 + $0x2d] sm:$0xff]  ;;  %v7301_v60 = vor.u32 %v10194_v47, %v7300_v46 }
  0x7c   : > { %5390 = vmatpush.bf16.msrb.mxu3 %v7469_v61  ;;  %v11657_v51 = vld [vmem:[#allocation1 + $0x36] sm:$0xff]  ;;  %v11659_v52 = vld [vmem:[#allocation1 + $0x24] sm:$0xff]  ;;  %v7228_v61 = vld [vmem:[%s11496_s12 + $0x200] sm:$0xf]  ;;  %v7365_v0 = vor.u32 %v10210_v50, %v7364_v48 }
  0x7d   : > { %5352 = vmatpush.bf16.msrb.mxu0 %v7269_v2  ;;  %v11661_v54 = vld [vmem:[#allocation1 + $0x3f] sm:$0xff]  ;;  %v10176_v62 = vld [vmem:[%s11496_s12 + $0x204] sm:$0xf0]  ;;  %v7292_v63 = vld [vmem:[%s11496_s12 + $0x280] sm:$0xf] }
  0x7e   : > { %5365 = vmatpush.bf16.msrb.mxu1 %v7333_v3  ;;  %v7428_v57 = vld [vmem:[%s11496_s12 + $0x390] sm:$0xf]  ;;  %v10226_v58 = vld [vmem:[%s11496_s12 + $0x394] sm:$0xf0]  ;;  %1277 = vst [vmem:[#allocation1] ss:$9 sm:$0xff] %v476_v55  ;;  %v7229_v11 = vor.u32 %v10176_v62, %v7228_v61 }
  0x7f   : > { %5378 = vmatpush.bf16.msrb.mxu2 %v7397_v5  ;;  %v10192_v1 = vld [vmem:[%s11496_s12 + $0x284] sm:$0xf0]  ;;  %v7356_v2 = vld [vmem:[%s11496_s12 + $0x300] sm:$0xf]  ;;  %v7429_v4 = vor.u32 %v10226_v58, %v7428_v57  ;;  %v7540_v5 = vld [vmem:[%s11496_s12 + $0x470] sm:$0xf] }
  0x80   : > { %5391 = vmatpush.bf16.msrb.mxu3 %v7461_v9  ;;  %v10208_v3 = vld [vmem:[%s11496_s12 + $0x304] sm:$0xf0]  ;;  %v10254_v6 = vld [vmem:[%s11496_s12 + $0x474] sm:$0xf0]  ;;  %v7604_v7 = vld [vmem:[%s11496_s12 + $0x4f0] sm:$0xf]  ;;  %v7293_v12 = vor.u32 %v10192_v1, %v7292_v63 }
  0x81   : > { %5353 = vmatpush.bf16.msrb.mxu0 %v7261_v15  ;;  %v10270_v8 = vld [vmem:[%s11496_s12 + $0x4f4] sm:$0xf0]  ;;  %v7668_v9 = vld [vmem:[%s11496_s12 + $0x570] sm:$0xf]  ;;  %v7420_v13 = vld [vmem:[%s11496_s12 + $0x380] sm:$0xf]  ;;  %v7357_v15 = vor.u32 %v10208_v3, %v7356_v2 }
  0x82   : > { %5366 = vmatpush.bf16.msrb.mxu1 %v7325_v16  ;;  %v10286_v10 = vld [vmem:[%s11496_s12 + $0x574] sm:$0xf0]  ;;  %v10224_v14 = vld [vmem:[%s11496_s12 + $0x384] sm:$0xf0]  ;;  %v7541_v16 = vor.u32 %v10254_v6, %v7540_v5  ;;  %v7732_v17 = vld [vmem:[%s11496_s12 + $0x5f0] sm:$0xf]  ;;  %v7605_v19 = vor.u32 %v10270_v8, %v7604_v7 }
  0x83   : > { %5379 = vmatpush.bf16.msrb.mxu2 %v7389_v20  ;;  %v10302_v18 = vld [vmem:[%s11496_s12 + $0x5f4] sm:$0xf0]  ;;  %v7669_v20 = vor.u32 %v10286_v10, %v7668_v9  ;;  %v10252_v25 = vld [vmem:[%s11496_s12 + $0x464] sm:$0xf0]  ;;  %v7596_v26 = vld [vmem:[%s11496_s12 + $0x4e0] sm:$0xf]  ;;  %v7421_v28 = vor.u32 %v10224_v14, %v7420_v13 }
  0x84   : > { %5392 = vmatpush.bf16.msrb.mxu3 %v7453_v24  ;;  %v7532_v24 = vld [vmem:[%s11496_s12 + $0x460] sm:$0xf]  ;;  %v10268_v29 = vld [vmem:[%s11496_s12 + $0x4e4] sm:$0xf0]  ;;  %v7733_v32 = vor.u32 %v10302_v18, %v7732_v17  ;;  %v7524_v38 = vld [vmem:[%s11496_s12 + $0x450] sm:$0xf] }
  0x85   : > { %5354 = vmatpush.bf16.msrb.mxu0 %v7253_v30  ;;  %v7660_v30 = vld [vmem:[%s11496_s12 + $0x560] sm:$0xf]  ;;  %v10300_v35 = vld [vmem:[%s11496_s12 + $0x5e4] sm:$0xf0]  ;;  %v7597_v36 = vor.u32 %v10268_v29, %v7596_v26  ;;  %v10250_v39 = vld [vmem:[%s11496_s12 + $0x454] sm:$0xf0] }
  0x86   : > { %5367 = vmatpush.bf16.msrb.mxu1 %v7317_v31  ;;  %v10284_v31 = vld [vmem:[%s11496_s12 + $0x564] sm:$0xf0]  ;;  %v7724_v34 = vld [vmem:[%s11496_s12 + $0x5e0] sm:$0xf]  ;;  %v7588_v40 = vld [vmem:[%s11496_s12 + $0x4d0] sm:$0xf] }
  0x87   : > { %5380 = vmatpush.bf16.msrb.mxu2 %v7381_v33  ;;  %v7533_v33 = vor.u32 %v10252_v25, %v7532_v24  ;;  %v10266_v41 = vld [vmem:[%s11496_s12 + $0x4d4] sm:$0xf0]  ;;  %v7652_v42 = vld [vmem:[%s11496_s12 + $0x550] sm:$0xf]  ;;  %v7516_v50 = vld [vmem:[%s11496_s12 + $0x440] sm:$0xf] }
  0x88   : > { %5393 = vmatpush.bf16.msrb.mxu3 %v7445_v37  ;;  %v7661_v37 = vor.u32 %v10284_v31, %v7660_v30  ;;  %v10282_v43 = vld [vmem:[%s11496_s12 + $0x554] sm:$0xf0]  ;;  %v7716_v46 = vld [vmem:[%s11496_s12 + $0x5d0] sm:$0xf]  ;;  %v7589_v48 = vor.u32 %v10266_v41, %v7588_v40  ;;  %v7580_v55 = vld [vmem:[%s11496_s12 + $0x4c0] sm:$0xf] }
  0x89   : > { %5355 = vmatpush.bf16.msrb.mxu0 %v7245_v44  ;;  %v7725_v44 = vor.u32 %v10300_v35, %v7724_v34  ;;  %v10298_v47 = vld [vmem:[%s11496_s12 + $0x5d4] sm:$0xf0]  ;;  %v10264_v57 = vld [vmem:[%s11496_s12 + $0x4c4] sm:$0xf0]  ;;  %v7644_v58 = vld [vmem:[%s11496_s12 + $0x540] sm:$0xf] }
  0x8a   : > { %5368 = vmatpush.bf16.msrb.mxu1 %v7309_v45  ;;  %v7525_v45 = vor.u32 %v10250_v39, %v7524_v38  ;;  %v7708_v62 = vld [vmem:[%s11496_s12 + $0x5c0] sm:$0xf]  ;;  %v10296_v63 = vld [vmem:[%s11496_s12 + $0x5c4] sm:$0xf0]  ;;  %v7508_v2 = vld [vmem:[%s11496_s12 + $0x430] sm:$0xf] }
  0x8b   : > { %5381 = vmatpush.bf16.msrb.mxu2 %v7373_v49  ;;  %v7653_v49 = vor.u32 %v10282_v43, %v7652_v42  ;;  %v10246_v3 = vld [vmem:[%s11496_s12 + $0x434] sm:$0xf0]  ;;  %v7636_v6 = vld [vmem:[%s11496_s12 + $0x530] sm:$0xf]  ;;  %v7709_v8 = vor.u32 %v10296_v63, %v7708_v62  ;;  %v7500_v14 = vld [vmem:[%s11496_s12 + $0x420] sm:$0xf] }
  0x8c   : > { %5394 = vmatpush.bf16.msrb.mxu3 %v7437_v53  ;;  %v10248_v53 = vld [vmem:[%s11496_s12 + $0x444] sm:$0xf0]  ;;  %v10262_v5 = vld [vmem:[%s11496_s12 + $0x4b4] sm:$0xf0]  ;;  %v7509_v9 = vor.u32 %v10246_v3, %v7508_v2  ;;  %v7700_v10 = vld [vmem:[%s11496_s12 + $0x5b0] sm:$0xf] }
  0x8d   : > { %5356 = vmatpush.bf16.msrb.mxu0 %v7237_v59  ;;  %v10280_v59 = vld [vmem:[%s11496_s12 + $0x544] sm:$0xf0]  ;;  %v7517_v61 = vor.u32 %v10248_v53, %v7516_v50  ;;  %v10278_v7 = vld [vmem:[%s11496_s12 + $0x534] sm:$0xf0]  ;;  %v7628_v18 = vld [vmem:[%s11496_s12 + $0x520] sm:$0xf] }
  0x8e   : > { %5369 = vmatpush.bf16.msrb.mxu1 %v7301_v60  ;;  %v7717_v60 = vor.u32 %v10298_v47, %v7716_v46  ;;  %v7645_v1 = vor.u32 %v10280_v59, %v7644_v58  ;;  %v7637_v13 = vor.u32 %v10278_v7, %v7636_v6  ;;  %v10260_v17 = vld [vmem:[%s11496_s12 + $0x4a4] sm:$0xf0]  ;;  %v7692_v25 = vld [vmem:[%s11496_s12 + $0x5a0] sm:$0xf]  ;;  %v7492_v30 = vld [vmem:[%s11496_s12 + $0x410] sm:$0xf] }
  0x8f   : > { %5382 = vmatpush.bf16.msrb.mxu2 %v7365_v0  ;;  %v7581_v0 = vor.u32 %v10264_v57, %v7580_v55  ;;  %v10292_v26 = vld [vmem:[%s11496_s12 + $0x5a4] sm:$0xf0]  ;;  %v10242_v31 = vld [vmem:[%s11496_s12 + $0x414] sm:$0xf0]  ;;  %v7620_v34 = vld [vmem:[%s11496_s12 + $0x510] sm:$0xf] }
  0x90   : > { %5395 = vmatpush.bf16.msrb.mxu3 %v7429_v4  ;;  %v7572_v4 = vld [vmem:[%s11496_s12 + $0x4b0] sm:$0xf]  ;;  %v10274_v35 = vld [vmem:[%s11496_s12 + $0x514] sm:$0xf0]  ;;  %v7493_v38 = vor.u32 %v10242_v31, %v7492_v30  ;;  %v7484_v40 = vld [vmem:[%s11496_s12 + $0x400] sm:$0xf] }
  0x91   : > { %5357 = vmatpush.bf16.msrb.mxu0 %v7229_v11  ;;  %v10294_v11 = vld [vmem:[%s11496_s12 + $0x5b4] sm:$0xf0]  ;;  %v10240_v41 = vld [vmem:[%s11496_s12 + $0x404] sm:$0xf0]  ;;  %v7621_v43 = vor.u32 %v10274_v35, %v7620_v34  ;;  %v7612_v46 = vld [vmem:[%s11496_s12 + $0x500] sm:$0xf] }
  0x92   : > { %5370 = vmatpush.bf16.msrb.mxu1 %v7293_v12  ;;  %v7573_v12 = vor.u32 %v10262_v5, %v7572_v4  ;;  %v10290_v39 = vld [vmem:[%s11496_s12 + $0x594] sm:$0xf0]  ;;  %v10272_v47 = vld [vmem:[%s11496_s12 + $0x504] sm:$0xf0]  ;;  %v7860_v53 = vld [vmem:[%s11496_s12 + $0x6f0] sm:$0xf]  ;;  %v7485_v58 = vor.u32 %v10240_v41, %v7484_v40 }
  0x93   : > { %5383 = vmatpush.bf16.msrb.mxu2 %v7357_v15  ;;  %v10244_v15 = vld [vmem:[%s11496_s12 + $0x424] sm:$0xf0]  ;;  %v10334_v55 = vld [vmem:[%s11496_s12 + $0x6f4] sm:$0xf0]  ;;  %v7924_v57 = vld [vmem:[%s11496_s12 + $0x770] sm:$0xf]  ;;  %v7613_v63 = vor.u32 %v10272_v47, %v7612_v46 }
  0x94   : > { %5396 = vmatpush.bf16.msrb.mxu3 %v7421_v28  ;;  %5358 = vmatmul.bf16.vlgmr.msrb.gmra.mxu0 %v11659_v52  ;;  %v7501_v24 = vor.u32 %v10244_v15, %v7500_v14  ;;  %v10350_v59 = vld [vmem:[%s11496_s12 + $0x774] sm:$0xf0]  ;;  %v7988_v2 = vld [vmem:[%s11496_s12 + $0x7f0] sm:$0xf]  ;;  %v7788_v6 = vld [vmem:[%s11496_s12 + $0x660] sm:$0xf] }
  0x95   : > { %5402 = vmatpush.bf16.msra.mxu0 %v7541_v16  ;;  %5371 = vmatmul.bf16.vlgmr.msrb.gmra.mxu1 %v11664_v56  ;;  %v7564_v16 = vld [vmem:[%s11496_s12 + $0x4a0] sm:$0xf]  ;;  %v10366_v3 = vld [vmem:[%s11496_s12 + $0x7f4] sm:$0xf0]  ;;  %v7925_v4 = vor.u32 %v10350_v59, %v7924_v57  ;;  %v10316_v7 = vld [vmem:[%s11496_s12 + $0x664] sm:$0xf0] }
  0x96   : > { %5415 = vmatpush.bf16.msra.mxu1 %v7605_v19  ;;  %5384 = vmatmul.bf16.vlgmr.msrb.gmra.mxu2 %v11657_v51  ;;  %v10276_v19 = vld [vmem:[%s11496_s12 + $0x524] sm:$0xf0]  ;;  %v7565_v28 = vor.u32 %v10260_v17, %v7564_v16  ;;  %v7989_v14 = vor.u32 %v10366_v3, %v7988_v2  ;;  %v11762_v15 = vld [vmem:[#allocation1 + $0x9] sm:$0xff]  ;;  %v11764_v16 = vld [vmem:[#allocation1 + $0x1b] sm:$0xff]  ;;  %v7789_v17 = vor.u32 %v10316_v7, %v7788_v6 }
  0x97   : > { %5428 = vmatpush.bf16.msra.mxu2 %v7669_v20  ;;  %5397 = vmatmul.bf16.vlgmr.msrb.gmra.mxu3 %v11661_v54  ;;  %v7701_v20 = vor.u32 %v10294_v11, %v7700_v10  ;;  %v7629_v29 = vor.u32 %v10276_v19, %v7628_v18  ;;  %v7916_v10 = vld [vmem:[%s11496_s12 + $0x760] sm:$0xf]  ;;  %v10348_v11 = vld [vmem:[%s11496_s12 + $0x764] sm:$0xf0]  ;;  %v7908_v30 = vld [vmem:[%s11496_s12 + $0x750] sm:$0xf] }
  0x98   : > { %5441 = vmatpush.bf16.msra.mxu3 %v7733_v32  ;;  %v7556_v32 = vld [vmem:[%s11496_s12 + $0x490] sm:$0xf]  ;;  %v7980_v18 = vld [vmem:[%s11496_s12 + $0x7e0] sm:$0xf]  ;;  %v10364_v19 = vld [vmem:[%s11496_s12 + $0x7e4] sm:$0xf0] }
  0x99   : > { %5403 = vmatpush.bf16.msra.mxu0 %v7533_v33  ;;  %v10258_v33 = vld [vmem:[%s11496_s12 + $0x494] sm:$0xf0]  ;;  %v7972_v34 = vld [vmem:[%s11496_s12 + $0x7d0] sm:$0xf]  ;;  %v7836_v40 = vld [vmem:[%s11496_s12 + $0x6c0] sm:$0xf] }
  0x9a   : > { %5416 = vmatpush.bf16.msra.mxu1 %v7597_v36  ;;  %v7693_v36 = vor.u32 %v10292_v26, %v7692_v25  ;;  %v7557_v42 = vor.u32 %v10258_v33, %v7556_v32  ;;  %v7780_v25 = vld [vmem:[%s11496_s12 + $0x650] sm:$0xf]  ;;  %v10314_v26 = vld [vmem:[%s11496_s12 + $0x654] sm:$0xf0]  ;;  %v7981_v32 = vor.u32 %v10364_v19, %v7980_v18  ;;  %v10328_v41 = vld [vmem:[%s11496_s12 + $0x6c4] sm:$0xf0] }
  0x9b   : > { %5429 = vmatpush.bf16.msra.mxu2 %v7661_v37  ;;  %v7684_v37 = vld [vmem:[%s11496_s12 + $0x590] sm:$0xf]  ;;  %v10346_v31 = vld [vmem:[%s11496_s12 + $0x754] sm:$0xf0]  ;;  %v7781_v33 = vor.u32 %v10314_v26, %v7780_v25  ;;  %v7964_v46 = vld [vmem:[%s11496_s12 + $0x7c0] sm:$0xf] }
  0x9c   : > { %5442 = vmatpush.bf16.msra.mxu3 %v7725_v44  ;;  %v7548_v44 = vld [vmem:[%s11496_s12 + $0x480] sm:$0xf]  ;;  %v7685_v50 = vor.u32 %v10290_v39, %v7684_v37  ;;  %v10362_v35 = vld [vmem:[%s11496_s12 + $0x7d4] sm:$0xf0]  ;;  %v7909_v37 = vor.u32 %v10346_v31, %v7908_v30  ;;  %v10312_v39 = vld [vmem:[%s11496_s12 + $0x644] sm:$0xf0] }
  0x9d   : > { %5404 = vmatpush.bf16.msra.mxu0 %v7525_v45  ;;  %v10256_v45 = vld [vmem:[%s11496_s12 + $0x484] sm:$0xf0]  ;;  %v10326_v57 = vld [vmem:[%s11496_s12 + $0x6b4] sm:$0xf0]  ;;  %v7756_v2 = vld [vmem:[%s11496_s12 + $0x620] sm:$0xf] }
  0x9e   : > { %5417 = vmatpush.bf16.msra.mxu1 %v7589_v48  ;;  %v7796_v48 = vld [vmem:[%s11496_s12 + $0x670] sm:$0xf]  ;;  %v7549_v62 = vor.u32 %v10256_v45, %v7548_v44  ;;  %v7973_v44 = vor.u32 %v10362_v35, %v7972_v34  ;;  %v10360_v47 = vld [vmem:[%s11496_s12 + $0x7c4] sm:$0xf0]  ;;  %v10342_v59 = vld [vmem:[%s11496_s12 + $0x734] sm:$0xf0] }
  0x9f   : > { %5430 = vmatpush.bf16.msra.mxu2 %v7653_v49  ;;  %v10318_v49 = vld [vmem:[%s11496_s12 + $0x674] sm:$0xf0]  ;;  %v10308_v3 = vld [vmem:[%s11496_s12 + $0x624] sm:$0xf0]  ;;  %v7884_v6 = vld [vmem:[%s11496_s12 + $0x720] sm:$0xf] }
  0xa0   : > { %5443 = vmatpush.bf16.msra.mxu3 %v7717_v60  ;;  %v7676_v60 = vld [vmem:[%s11496_s12 + $0x580] sm:$0xf]  ;;  %v10340_v7 = vld [vmem:[%s11496_s12 + $0x724] sm:$0xf0]  ;;  %v10306_v19 = vld [vmem:[%s11496_s12 + $0x614] sm:$0xf0] }
  0xa1   : > { %5405 = vmatpush.bf16.msra.mxu0 %v7517_v61  ;;  %v10288_v61 = vld [vmem:[%s11496_s12 + $0x584] sm:$0xf0]  ;;  %v7885_v18 = vor.u32 %v10340_v7, %v7884_v6  ;;  %v7876_v25 = vld [vmem:[%s11496_s12 + $0x710] sm:$0xf]  ;;  %v10338_v26 = vld [vmem:[%s11496_s12 + $0x714] sm:$0xf0] }
  0xa2   : > { %5418 = vmatpush.bf16.msra.mxu1 %v7581_v0  ;;  %v7797_v0 = vor.u32 %v10318_v49, %v7796_v48  ;;  %v7677_v5 = vor.u32 %v10288_v61, %v7676_v60  ;;  %v7837_v48 = vor.u32 %v10328_v41, %v7836_v40  ;;  %v7965_v60 = vor.u32 %v10360_v47, %v7964_v46  ;;  %v10354_v30 = vld [vmem:[%s11496_s12 + $0x794] sm:$0xf0]  ;;  %v7740_v31 = vld [vmem:[%s11496_s12 + $0x600] sm:$0xf]  ;;  %v10320_v35 = vld [vmem:[%s11496_s12 + $0x684] sm:$0xf0] }
  0xa3   : > { %5431 = vmatpush.bf16.msra.mxu2 %v7645_v1  ;;  %v7861_v1 = vor.u32 %v10334_v55, %v7860_v53  ;;  %v10310_v53 = vld [vmem:[%s11496_s12 + $0x634] sm:$0xf0]  ;;  %v7828_v55 = vld [vmem:[%s11496_s12 + $0x6b0] sm:$0xf]  ;;  %v7804_v34 = vld [vmem:[%s11496_s12 + $0x680] sm:$0xf] }
  0xa4   : > { %5444 = vmatpush.bf16.msra.mxu3 %v7709_v8  ;;  %v7852_v8 = vld [vmem:[%s11496_s12 + $0x6e0] sm:$0xf]  ;;  %v8052_v40 = vld [vmem:[%s11496_s12 + $0x870] sm:$0xf]  ;;  %v10382_v41 = vld [vmem:[%s11496_s12 + $0x874] sm:$0xf0] }
  0xa5   : > { %5406 = vmatpush.bf16.msra.mxu0 %v7509_v9  ;;  %v10332_v9 = vld [vmem:[%s11496_s12 + $0x6e4] sm:$0xf0]  ;;  %v11827_v46 = vld [vmem:[#allocation1 + $0x3f] sm:$0xff]  ;;  %v8172_v7 = vld [vmem:[%s11496_s12 + $0x960] sm:$0xf] }
  0xa6   : > { %5419 = vmatpush.bf16.msra.mxu1 %v7573_v12  ;;  %v11758_v12 = vld [vmem:[#allocation1] sm:$0xff]  ;;  %v477_v47 = vld [vmem:[%s11522_s18 + $0x10] sm:$0xff] }
  0xa7   : > { %5432 = vmatpush.bf16.msra.mxu2 %v7637_v13  ;;  %v11760_v13 = vld [vmem:[#allocation1 + $0x12] sm:$0xff] }
  0xa8   : > { %5445 = vmatpush.bf16.msra.mxu3 %v7701_v20  ;;  %v7853_v20 = vor.u32 %v10332_v9, %v7852_v8  ;;  %v7757_v9 = vor.u32 %v10308_v3, %v7756_v2  ;;  %v8044_v3 = vld [vmem:[%s11496_s12 + $0x860] sm:$0xf]  ;;  %v10396_v6 = vld [vmem:[%s11496_s12 + $0x8e4] sm:$0xf0] }
  0xa9   : > { %5407 = vmatpush.bf16.msra.mxu0 %v7501_v24  ;;  %v7917_v24 = vor.u32 %v10348_v11, %v7916_v10  ;;  %v7948_v10 = vld [vmem:[%s11496_s12 + $0x7a0] sm:$0xf]  ;;  %v10356_v11 = vld [vmem:[%s11496_s12 + $0x7a4] sm:$0xf0] }
  0xaa   : > { %5420 = vmatpush.bf16.msra.mxu1 %v7565_v28  ;;  %v7844_v28 = vld [vmem:[%s11496_s12 + $0x6d0] sm:$0xf] }
  0xab   : > { %5433 = vmatpush.bf16.msra.mxu2 %v7629_v29  ;;  %v10330_v29 = vld [vmem:[%s11496_s12 + $0x6d4] sm:$0xf0] }
  0xac   : > { %5446 = vmatpush.bf16.msra.mxu3 %v7693_v36  ;;  %v7845_v36 = vor.u32 %v10330_v29, %v7844_v28  ;;  %v7940_v28 = vld [vmem:[%s11496_s12 + $0x790] sm:$0xf]  ;;  %v7949_v29 = vor.u32 %v10356_v11, %v7948_v10  ;;  %v8236_v11 = vld [vmem:[%s11496_s12 + $0x9e0] sm:$0xf] }
  0xad   : > { %5408 = vmatpush.bf16.msra.mxu0 %v7493_v38  ;;  %v7772_v38 = vld [vmem:[%s11496_s12 + $0x640] sm:$0xf] }
  0xae   : > { %5421 = vmatpush.bf16.msra.mxu1 %v7557_v42  ;;  %v7900_v42 = vld [vmem:[%s11496_s12 + $0x740] sm:$0xf]  ;;  %v7773_v45 = vor.u32 %v10312_v39, %v7772_v38  ;;  %v7877_v39 = vor.u32 %v10338_v26, %v7876_v25  ;;  %v10394_v25 = vld [vmem:[%s11496_s12 + $0x8d4] sm:$0xf0]  ;;  %v8164_v26 = vld [vmem:[%s11496_s12 + $0x950] sm:$0xf] }
  0xaf   : > { %5434 = vmatpush.bf16.msra.mxu2 %v7621_v43  ;;  %v10344_v43 = vld [vmem:[%s11496_s12 + $0x744] sm:$0xf0] }
  0xb0   : > { %5447 = vmatpush.bf16.msra.mxu3 %v7685_v50  ;;  %v7901_v49 = vor.u32 %v10344_v43, %v7900_v42  ;;  %v7764_v50 = vld [vmem:[%s11496_s12 + $0x630] sm:$0xf]  ;;  %v11821_v43 = vld [vmem:[#allocation1 + $0x24] sm:$0xff] }
  0xb1   : > { %5409 = vmatpush.bf16.msra.mxu0 %v7485_v58  ;;  %v7892_v58 = vld [vmem:[%s11496_s12 + $0x730] sm:$0xf]  ;;  %v7765_v61 = vor.u32 %v10310_v53, %v7764_v50 }
  0xb2   : > { %5422 = vmatpush.bf16.msra.mxu1 %v7549_v62  ;;  %v7956_v62 = vld [vmem:[%s11496_s12 + $0x7b0] sm:$0xf] }
  0xb3   : > { %5435 = vmatpush.bf16.msra.mxu2 %v7613_v63  ;;  %v10358_v63 = vld [vmem:[%s11496_s12 + $0x7b4] sm:$0xf0]  ;;  %v8116_v42 = vld [vmem:[%s11496_s12 + $0x8f0] sm:$0xf] }
  0xb4   : > { %5448 = vmatpush.bf16.msra.mxu3 %v7677_v5  ;;  %5410 = vmatmul.bf16.vlgmr.msra.gmra.mxu0 %v11758_v12  ;;  %v10324_v5 = vld [vmem:[%s11496_s12 + $0x6a4] sm:$0xf0]  ;;  %v7957_v8 = vor.u32 %v10358_v63, %v7956_v62  ;;  %v8180_v50 = vld [vmem:[%s11496_s12 + $0x970] sm:$0xf] }
  0xb5   : > { %5454 = vmatpush.bf16.msrb.mxu0 %v7797_v0  ;;  %5423 = vmatmul.bf16.vlgmr.msra.gmra.mxu1 %v11762_v15  ;;  %v7829_v0 = vor.u32 %v10326_v57, %v7828_v55  ;;  %v10414_v55 = vld [vmem:[%s11496_s12 + $0x974] sm:$0xf0]  ;;  %v7932_v57 = vld [vmem:[%s11496_s12 + $0x780] sm:$0xf]  ;;  %v8244_v63 = vld [vmem:[%s11496_s12 + $0x9f0] sm:$0xf] }
  0xb6   : > { %5467 = vmatpush.bf16.msrb.mxu1 %v7861_v1  ;;  %5436 = vmatmul.bf16.vlgmr.msra.gmra.mxu2 %v11760_v13  ;;  %v7893_v1 = vor.u32 %v10342_v59, %v7892_v58  ;;  %v10352_v58 = vld [vmem:[%s11496_s12 + $0x784] sm:$0xf0]  ;;  %v7805_v59 = vor.u32 %v10320_v35, %v7804_v34  ;;  %v8028_v35 = vld [vmem:[%s11496_s12 + $0x840] sm:$0xf] }
  0xb7   : > { %5480 = vmatpush.bf16.msrb.mxu2 %v7925_v4  ;;  %5449 = vmatmul.bf16.vlgmr.msra.gmra.mxu3 %v11764_v16  ;;  %v7820_v4 = vld [vmem:[%s11496_s12 + $0x6a0] sm:$0xf]  ;;  %v7933_v2 = vor.u32 %v10352_v58, %v7932_v57  ;;  %v8084_v57 = vld [vmem:[%s11496_s12 + $0x8b0] sm:$0xf]  ;;  %v10390_v58 = vld [vmem:[%s11496_s12 + $0x8b4] sm:$0xf0] }
  0xb8   : > { %5493 = vmatpush.bf16.msrb.mxu3 %v7989_v14  ;;  %v7748_v14 = vld [vmem:[%s11496_s12 + $0x610] sm:$0xf] }
  0xb9   : > { %5455 = vmatpush.bf16.msrb.mxu0 %v7789_v17  ;;  %v7821_v17 = vor.u32 %v10324_v5, %v7820_v4  ;;  %v10380_v4 = vld [vmem:[%s11496_s12 + $0x864] sm:$0xf0]  ;;  %v8108_v5 = vld [vmem:[%s11496_s12 + $0x8e0] sm:$0xf] }
  0xba   : > { %5468 = vmatpush.bf16.msrb.mxu1 %v7853_v20  ;;  %v7812_v20 = vld [vmem:[%s11496_s12 + $0x690] sm:$0xf]  ;;  %v8045_v10 = vor.u32 %v10380_v4, %v8044_v3  ;;  %v8012_v3 = vld [vmem:[%s11496_s12 + $0x820] sm:$0xf]  ;;  %v10372_v4 = vld [vmem:[%s11496_s12 + $0x824] sm:$0xf0] }
  0xbb   : > { %5481 = vmatpush.bf16.msrb.mxu2 %v7917_v24  ;;  %v10322_v24 = vld [vmem:[%s11496_s12 + $0x694] sm:$0xf0] }
  0xbc   : > { %5494 = vmatpush.bf16.msrb.mxu3 %v7981_v32  ;;  %v10304_v32 = vld [vmem:[%s11496_s12 + $0x604] sm:$0xf0]  ;;  %v7813_v38 = vor.u32 %v10322_v24, %v7812_v20  ;;  %v10378_v20 = vld [vmem:[%s11496_s12 + $0x854] sm:$0xf0]  ;;  %v8100_v24 = vld [vmem:[%s11496_s12 + $0x8d0] sm:$0xf] }
  0xbd   : > { %5456 = vmatpush.bf16.msrb.mxu0 %v7781_v33  ;;  %v7749_v33 = vor.u32 %v10306_v19, %v7748_v14  ;;  %v7741_v53 = vor.u32 %v10304_v32, %v7740_v31  ;;  %v10428_v14 = vld [vmem:[%s11496_s12 + $0x9e4] sm:$0xf0]  ;;  %v8036_v19 = vld [vmem:[%s11496_s12 + $0x850] sm:$0xf]  ;;  %v10426_v32 = vld [vmem:[%s11496_s12 + $0x9d4] sm:$0xf0] }
  0xbe   : > { %5469 = vmatpush.bf16.msrb.mxu1 %v7845_v36  ;;  %v7868_v36 = vld [vmem:[%s11496_s12 + $0x700] sm:$0xf]  ;;  %v8228_v31 = vld [vmem:[%s11496_s12 + $0x9d0] sm:$0xf] }
  0xbf   : > { %5482 = vmatpush.bf16.msrb.mxu2 %v7909_v37  ;;  %v10336_v37 = vld [vmem:[%s11496_s12 + $0x704] sm:$0xf0] }
  0xc0   : > { %5495 = vmatpush.bf16.msrb.mxu3 %v7973_v44  ;;  %v11823_v44 = vld [vmem:[#allocation1 + $0x36] sm:$0xff] }
  0xc1   : > { %5457 = vmatpush.bf16.msrb.mxu0 %v7773_v45  ;;  %v11825_v45 = vld [vmem:[#allocation1 + $0x2d] sm:$0xff] }
  0xc2   : > { %5470 = vmatpush.bf16.msrb.mxu1 %v7837_v48  ;;  %v7941_v48 = vor.u32 %v10354_v30, %v7940_v28  ;;  %1287 = vst [vmem:[#allocation1] ss:$9 sm:$0xff] %v477_v47  ;;  %v10410_v28 = vld [vmem:[%s11496_s12 + $0x954] sm:$0xf0]  ;;  %v8037_v30 = vor.u32 %v10378_v20, %v8036_v19  ;;  %v8220_v47 = vld [vmem:[%s11496_s12 + $0x9c0] sm:$0xf] }
  0xc3   : > { %5483 = vmatpush.bf16.msrb.mxu2 %v7901_v49  ;;  %v10398_v49 = vld [vmem:[%s11496_s12 + $0x8f4] sm:$0xf0]  ;;  %v8165_v34 = vor.u32 %v10410_v28, %v8164_v26  ;;  %v8004_v19 = vld [vmem:[%s11496_s12 + $0x810] sm:$0xf] }
  0xc4   : > { %5496 = vmatpush.bf16.msrb.mxu3 %v7965_v60  ;;  %v7869_v60 = vor.u32 %v10336_v37, %v7868_v36  ;;  %v8117_v62 = vor.u32 %v10398_v49, %v8116_v42  ;;  %v10376_v36 = vld [vmem:[%s11496_s12 + $0x844] sm:$0xf0]  ;;  %v8092_v37 = vld [vmem:[%s11496_s12 + $0x8c0] sm:$0xf]  ;;  %v10370_v20 = vld [vmem:[%s11496_s12 + $0x814] sm:$0xf0] }
  0xc5   : > { %5458 = vmatpush.bf16.msrb.mxu0 %v7765_v61  ;;  %v8053_v61 = vor.u32 %v10382_v41, %v8052_v40  ;;  %v10408_v40 = vld [vmem:[%s11496_s12 + $0x944] sm:$0xf0]  ;;  %v8229_v41 = vor.u32 %v10426_v32, %v8228_v31  ;;  %v8029_v42 = vor.u32 %v10376_v36, %v8028_v35  ;;  %v8132_v26 = vld [vmem:[%s11496_s12 + $0x910] sm:$0xf]  ;;  %v10402_v28 = vld [vmem:[%s11496_s12 + $0x914] sm:$0xf0]  ;;  %v8005_v31 = vor.u32 %v10370_v20, %v8004_v19 }
  0xc6   : > { %5471 = vmatpush.bf16.msrb.mxu1 %v7829_v0  ;;  %v10430_v0 = vld [vmem:[%s11496_s12 + $0x9f4] sm:$0xf0]  ;;  %v8133_v36 = vor.u32 %v10402_v28, %v8132_v26  ;;  %v8492_v19 = vld [vmem:[%s11496_s12 + $0xbe0] sm:$0xf]  ;;  %v10492_v20 = vld [vmem:[%s11496_s12 + $0xbe4] sm:$0xf0] }
  0xc7   : > { %5484 = vmatpush.bf16.msrb.mxu2 %v7893_v1  ;;  %v8181_v1 = vor.u32 %v10414_v55, %v8180_v50  ;;  %v10374_v55 = vld [vmem:[%s11496_s12 + $0x834] sm:$0xf0]  ;;  %v8292_v26 = vld [vmem:[%s11496_s12 + $0xa50] sm:$0xf] }
  0xc8   : > { %5497 = vmatpush.bf16.msrb.mxu3 %v7957_v8  ;;  %v10412_v8 = vld [vmem:[%s11496_s12 + $0x964] sm:$0xf0]  ;;  %v10418_v32 = vld [vmem:[%s11496_s12 + $0x994] sm:$0xf0] }
  0xc9   : > { %5459 = vmatpush.bf16.msrb.mxu0 %v7757_v9  ;;  %v8245_v9 = vor.u32 %v10430_v0, %v8244_v63  ;;  %v8212_v63 = vld [vmem:[%s11496_s12 + $0x9b0] sm:$0xf]  ;;  %v10422_v0 = vld [vmem:[%s11496_s12 + $0x9b4] sm:$0xf0] }
  0xca   : > { %5472 = vmatpush.bf16.msrb.mxu1 %v7821_v17  ;;  %v8109_v17 = vor.u32 %v10396_v6, %v8108_v5  ;;  %v8076_v5 = vld [vmem:[%s11496_s12 + $0x8a0] sm:$0xf]  ;;  %v10388_v6 = vld [vmem:[%s11496_s12 + $0x8a4] sm:$0xf0]  ;;  %v10442_v28 = vld [vmem:[%s11496_s12 + $0xa54] sm:$0xf0] }
  0xcb   : > { %5485 = vmatpush.bf16.msrb.mxu2 %v7885_v18  ;;  %v8173_v18 = vor.u32 %v10412_v8, %v8172_v7  ;;  %v8140_v7 = vld [vmem:[%s11496_s12 + $0x920] sm:$0xf]  ;;  %v10404_v8 = vld [vmem:[%s11496_s12 + $0x924] sm:$0xf0] }
  0xcc   : > { %5498 = vmatpush.bf16.msrb.mxu3 %v7949_v29  ;;  %v8237_v29 = vor.u32 %v10428_v14, %v8236_v11  ;;  %v8204_v11 = vld [vmem:[%s11496_s12 + $0x9a0] sm:$0xf]  ;;  %v10420_v14 = vld [vmem:[%s11496_s12 + $0x9a4] sm:$0xf0] }
  0xcd   : > { %5460 = vmatpush.bf16.msrb.mxu0 %v7749_v33  ;;  %v8101_v33 = vor.u32 %v10394_v25, %v8100_v24  ;;  %v8068_v24 = vld [vmem:[%s11496_s12 + $0x890] sm:$0xf]  ;;  %v10386_v25 = vld [vmem:[%s11496_s12 + $0x894] sm:$0xf0] }
  0xce   : > { %5473 = vmatpush.bf16.msrb.mxu1 %v7813_v38  ;;  %v10392_v38 = vld [vmem:[%s11496_s12 + $0x8c4] sm:$0xf0]  ;;  %v8069_v35 = vor.u32 %v10386_v25, %v8068_v24 }
  0xcf   : > { %5486 = vmatpush.bf16.msrb.mxu2 %v7877_v39  ;;  %v8156_v39 = vld [vmem:[%s11496_s12 + $0x940] sm:$0xf]  ;;  %v8093_v49 = vor.u32 %v10392_v38, %v8092_v37  ;;  %v10384_v38 = vld [vmem:[%s11496_s12 + $0x884] sm:$0xf0] }
  0xd0   : > { %5499 = vmatpush.bf16.msrb.mxu3 %v7941_v48  ;;  %v10424_v48 = vld [vmem:[%s11496_s12 + $0x9c4] sm:$0xf0]  ;;  %v8157_v50 = vor.u32 %v10408_v40, %v8156_v39  ;;  %v8060_v37 = vld [vmem:[%s11496_s12 + $0x880] sm:$0xf] }
  0xd1   : > { %5461 = vmatpush.bf16.msrb.mxu0 %v7741_v53  ;;  %v8020_v53 = vld [vmem:[%s11496_s12 + $0x830] sm:$0xf]  ;;  %v8124_v39 = vld [vmem:[%s11496_s12 + $0x900] sm:$0xf]  ;;  %v10400_v40 = vld [vmem:[%s11496_s12 + $0x904] sm:$0xf0] }
  0xd2   : > { %5474 = vmatpush.bf16.msrb.mxu1 %v7805_v59  ;;  %v8148_v59 = vld [vmem:[%s11496_s12 + $0x930] sm:$0xf] }
  0xd3   : > { %5487 = vmatpush.bf16.msrb.mxu2 %v7869_v60  ;;  %v10406_v60 = vld [vmem:[%s11496_s12 + $0x934] sm:$0xf0] }
  0xd4   : > { %5500 = vmatpush.bf16.msrb.mxu3 %v7933_v2  ;;  %5462 = vmatmul.bf16.vlgmr.msrb.gmra.mxu0 %v11821_v43  ;;  %v8149_v2 = vor.u32 %v10406_v60, %v8148_v59  ;;  %v8061_v59 = vor.u32 %v10384_v38, %v8060_v37  ;;  %v8125_v60 = vor.u32 %v10400_v40, %v8124_v39  ;;  %v8284_v39 = vld [vmem:[%s11496_s12 + $0xa40] sm:$0xf]  ;;  %v10440_v40 = vld [vmem:[%s11496_s12 + $0xa44] sm:$0xf0] }
  0xd5   : > { %5506 = vmatpush.bf16.msra.mxu0 %v8053_v61  ;;  %5475 = vmatmul.bf16.vlgmr.msrb.gmra.mxu1 %v11825_v45  ;;  %v8221_v61 = vor.u32 %v10424_v48, %v8220_v47  ;;  %v8372_v48 = vld [vmem:[%s11496_s12 + $0xaf0] sm:$0xf] }
  0xd6   : > { %5519 = vmatpush.bf16.msra.mxu1 %v8117_v62  ;;  %5488 = vmatmul.bf16.vlgmr.msrb.gmra.mxu2 %v11823_v44  ;;  %v8021_v62 = vor.u32 %v10374_v55, %v8020_v53  ;;  %v10478_v55 = vld [vmem:[%s11496_s12 + $0xb74] sm:$0xf0] }
  0xd7   : > { %5532 = vmatpush.bf16.msra.mxu2 %v8181_v1  ;;  %5501 = vmatmul.bf16.vlgmr.msrb.gmra.mxu3 %v11827_v46  ;;  %v8085_v1 = vor.u32 %v10390_v58, %v8084_v57  ;;  %v8188_v57 = vld [vmem:[%s11496_s12 + $0x980] sm:$0xf]  ;;  %v10416_v58 = vld [vmem:[%s11496_s12 + $0x984] sm:$0xf0] }
  0xd8   : > { %5545 = vmatpush.bf16.msra.mxu3 %v8245_v9  ;;  %v8213_v9 = vor.u32 %v10422_v0, %v8212_v63  ;;  %v8500_v63 = vld [vmem:[%s11496_s12 + $0xbf0] sm:$0xf]  ;;  %v10494_v0 = vld [vmem:[%s11496_s12 + $0xbf4] sm:$0xf0] }
  0xd9   : > { %5507 = vmatpush.bf16.msra.mxu0 %v8045_v10  ;;  %v8013_v10 = vor.u32 %v10372_v4, %v8012_v3  ;;  %v8300_v3 = vld [vmem:[%s11496_s12 + $0xa60] sm:$0xf]  ;;  %v10444_v4 = vld [vmem:[%s11496_s12 + $0xa64] sm:$0xf0] }
  0xda   : > { %5520 = vmatpush.bf16.msra.mxu1 %v8109_v17  ;;  %v8077_v17 = vor.u32 %v10388_v6, %v8076_v5  ;;  %v8364_v5 = vld [vmem:[%s11496_s12 + $0xae0] sm:$0xf]  ;;  %v10460_v6 = vld [vmem:[%s11496_s12 + $0xae4] sm:$0xf0] }
  0xdb   : > { %5533 = vmatpush.bf16.msra.mxu2 %v8173_v18  ;;  %v8141_v18 = vor.u32 %v10404_v8, %v8140_v7  ;;  %v8428_v7 = vld [vmem:[%s11496_s12 + $0xb60] sm:$0xf]  ;;  %v10476_v8 = vld [vmem:[%s11496_s12 + $0xb64] sm:$0xf0]  ;;  %v8365_v24 = vor.u32 %v10460_v6, %v8364_v5 }
  0xdc   : > { %5546 = vmatpush.bf16.msra.mxu3 %v8237_v29  ;;  %v8205_v29 = vor.u32 %v10420_v14, %v8204_v11  ;;  %v8501_v11 = vor.u32 %v10494_v0, %v8500_v63  ;;  %v11915_v14 = vld [vmem:[#allocation1 + $0x9] sm:$0xff]  ;;  %v8429_v25 = vor.u32 %v10476_v8, %v8428_v7  ;;  %v8404_v63 = vld [vmem:[%s11496_s12 + $0xb30] sm:$0xf]  ;;  %v10470_v0 = vld [vmem:[%s11496_s12 + $0xb34] sm:$0xf0] }
  0xdd   : > { %5508 = vmatpush.bf16.msra.mxu0 %v8037_v30  ;;  %v8196_v30 = vld [vmem:[%s11496_s12 + $0x990] sm:$0xf]  ;;  %v8405_v6 = vor.u32 %v10470_v0, %v8404_v63  ;;  %v8268_v7 = vld [vmem:[%s11496_s12 + $0xa20] sm:$0xf]  ;;  %v10436_v8 = vld [vmem:[%s11496_s12 + $0xa24] sm:$0xf0] }
  0xde   : > { %5521 = vmatpush.bf16.msra.mxu1 %v8101_v33  ;;  %v7996_v33 = vld [vmem:[%s11496_s12 + $0x800] sm:$0xf]  ;;  %v8197_v47 = vor.u32 %v10418_v32, %v8196_v30  ;;  %v10458_v30 = vld [vmem:[%s11496_s12 + $0xad4] sm:$0xf0]  ;;  %v11976_v0 = vld [vmem:[#allocation1 + $0x36] sm:$0xff] }
  0xdf   : > { %5534 = vmatpush.bf16.msra.mxu2 %v8165_v34  ;;  %v10368_v34 = vld [vmem:[%s11496_s12 + $0x804] sm:$0xf0]  ;;  %v10474_v32 = vld [vmem:[%s11496_s12 + $0xb54] sm:$0xf0] }
  0xe0   : > { %5547 = vmatpush.bf16.msra.mxu3 %v8229_v41  ;;  %v8308_v41 = vld [vmem:[%s11496_s12 + $0xa70] sm:$0xf]  ;;  %v7997_v53 = vor.u32 %v10368_v34, %v7996_v33  ;;  %v8493_v33 = vor.u32 %v10492_v20, %v8492_v19  ;;  %v8293_v34 = vor.u32 %v10442_v28, %v8292_v26  ;;  %v8396_v19 = vld [vmem:[%s11496_s12 + $0xb20] sm:$0xf]  ;;  %v10468_v20 = vld [vmem:[%s11496_s12 + $0xb24] sm:$0xf0] }
  0xe1   : > { %5509 = vmatpush.bf16.msra.mxu0 %v8029_v42  ;;  %v10446_v42 = vld [vmem:[%s11496_s12 + $0xa74] sm:$0xf0]  ;;  %v8460_v26 = vld [vmem:[%s11496_s12 + $0xba0] sm:$0xf]  ;;  %v10484_v28 = vld [vmem:[%s11496_s12 + $0xba4] sm:$0xf0] }
  0xe2   : > { %5522 = vmatpush.bf16.msra.mxu1 %v8093_v49  ;;  %v10462_v49 = vld [vmem:[%s11496_s12 + $0xaf4] sm:$0xf0] }
  0xe3   : > { %5535 = vmatpush.bf16.msra.mxu2 %v8157_v50  ;;  %v8436_v50 = vld [vmem:[%s11496_s12 + $0xb70] sm:$0xf]  ;;  %v11974_v63 = vld [vmem:[#allocation1 + $0x24] sm:$0xff] }
  0xe4   : > { %5548 = vmatpush.bf16.msra.mxu3 %v8221_v61  ;;  %v8309_v61 = vor.u32 %v10446_v42, %v8308_v41  ;;  %v8348_v41 = vld [vmem:[%s11496_s12 + $0xac0] sm:$0xf]  ;;  %v10456_v42 = vld [vmem:[%s11496_s12 + $0xac4] sm:$0xf0] }
  0xe5   : > { %5510 = vmatpush.bf16.msra.mxu0 %v8021_v62  ;;  %v8373_v62 = vor.u32 %v10462_v49, %v8372_v48  ;;  %v10472_v48 = vld [vmem:[%s11496_s12 + $0xb44] sm:$0xf0] }
  0xe6   : > { %5523 = vmatpush.bf16.msra.mxu1 %v8085_v1  ;;  %v8437_v1 = vor.u32 %v10478_v55, %v8436_v50  ;;  %v8285_v50 = vor.u32 %v10440_v40, %v8284_v39  ;;  %v10488_v55 = vld [vmem:[%s11496_s12 + $0xbc4] sm:$0xf0]  ;;  %v8461_v39 = vor.u32 %v10484_v28, %v8460_v26  ;;  %v10482_v40 = vld [vmem:[%s11496_s12 + $0xb94] sm:$0xf0] }
  0xe7   : > { %5536 = vmatpush.bf16.msra.mxu2 %v8149_v2  ;;  %v8189_v2 = vor.u32 %v10416_v58, %v8188_v57  ;;  %v8349_v57 = vor.u32 %v10456_v42, %v8348_v41  ;;  %v8252_v41 = vld [vmem:[%s11496_s12 + $0xa00] sm:$0xf]  ;;  %v10432_v42 = vld [vmem:[%s11496_s12 + $0xa04] sm:$0xf0] }
  0xe8   : > { %5549 = vmatpush.bf16.msra.mxu3 %v8213_v9  ;;  %v11911_v9 = vld [vmem:[#allocation1] sm:$0xff] }
  0xe9   : > { %5511 = vmatpush.bf16.msra.mxu0 %v8013_v10  ;;  %v11913_v10 = vld [vmem:[#allocation1 + $0x12] sm:$0xff] }
  0xea   : > { %5524 = vmatpush.bf16.msra.mxu1 %v8077_v17  ;;  %v11917_v17 = vld [vmem:[#allocation1 + $0x1b] sm:$0xff] }
  0xeb   : > { %5537 = vmatpush.bf16.msra.mxu2 %v8141_v18  ;;  %v8301_v18 = vor.u32 %v10444_v4, %v8300_v3  ;;  %v8468_v3 = vld [vmem:[%s11496_s12 + $0xbb0] sm:$0xf]  ;;  %v10486_v4 = vld [vmem:[%s11496_s12 + $0xbb4] sm:$0xf0] }
  0xec   : > { %5550 = vmatpush.bf16.msra.mxu3 %v8205_v29  ;;  %v8356_v29 = vld [vmem:[%s11496_s12 + $0xad0] sm:$0xf] }
  0xed   : > { %5512 = vmatpush.bf16.msra.mxu0 %v8005_v31  ;;  %v8420_v31 = vld [vmem:[%s11496_s12 + $0xb50] sm:$0xf]  ;;  %v8357_v37 = vor.u32 %v10458_v30, %v8356_v29 }
  0xee   : > { %5525 = vmatpush.bf16.msra.mxu1 %v8069_v35  ;;  %v8484_v35 = vld [vmem:[%s11496_s12 + $0xbd0] sm:$0xf]  ;;  %v8421_v38 = vor.u32 %v10474_v32, %v8420_v31  ;;  %v8397_v31 = vor.u32 %v10468_v20, %v8396_v19  ;;  %v10434_v32 = vld [vmem:[%s11496_s12 + $0xa14] sm:$0xf0]  ;;  %v8444_v20 = vld [vmem:[%s11496_s12 + $0xb80] sm:$0xf] }
  0xef   : > { %5538 = vmatpush.bf16.msra.mxu2 %v8133_v36  ;;  %v10490_v36 = vld [vmem:[%s11496_s12 + $0xbd4] sm:$0xf0]  ;;  %v8260_v29 = vld [vmem:[%s11496_s12 + $0xa10] sm:$0xf] }
  0xf0   : > { %5551 = vmatpush.bf16.msra.mxu3 %v8197_v47  ;;  %v8412_v47 = vld [vmem:[%s11496_s12 + $0xb40] sm:$0xf]  ;;  %v8485_v49 = vor.u32 %v10490_v36, %v8484_v35  ;;  %v8388_v36 = vld [vmem:[%s11496_s12 + $0xb10] sm:$0xf]  ;;  %v10542_v19 = vld [vmem:[%s11496_s12 + $0xd74] sm:$0xf0] }
  0xf1   : > { %5513 = vmatpush.bf16.msra.mxu0 %v7997_v53  ;;  %v8476_v53 = vld [vmem:[%s11496_s12 + $0xbc0] sm:$0xf]  ;;  %v8413_v58 = vor.u32 %v10472_v48, %v8412_v47  ;;  %v8261_v48 = vor.u32 %v10434_v32, %v8260_v29  ;;  %v8756_v32 = vld [vmem:[%s11496_s12 + $0xdf0] sm:$0xf] }
  0xf2   : > { %5526 = vmatpush.bf16.msra.mxu1 %v8061_v59  ;;  %v8276_v59 = vld [vmem:[%s11496_s12 + $0xa30] sm:$0xf] }
  0xf3   : > { %5539 = vmatpush.bf16.msra.mxu2 %v8125_v60  ;;  %v10438_v60 = vld [vmem:[%s11496_s12 + $0xa34] sm:$0xf0] }
  0xf4   : > { %5552 = vmatpush.bf16.msra.mxu3 %v8189_v2  ;;  %5514 = vmatmul.bf16.vlgmr.msra.gmra.mxu0 %v11911_v9  ;;  %v8277_v2 = vor.u32 %v10438_v60, %v8276_v59  ;;  %v5307_v35 = vpop.f32.mrf.mxu0  ;;  %v8564_v60 = vld [vmem:[%s11496_s12 + $0xc70] sm:$0xf] }
  0xf5   : > { %5558 = vmatpush.bf16.msrb.mxu0 %v8309_v61  ;;  %5527 = vmatmul.bf16.vlgmr.msra.gmra.mxu1 %v11915_v14  ;;  %v8340_v61 = vld [vmem:[%s11496_s12 + $0xab0] sm:$0xf] }
  0xf6   : > { %5571 = vmatpush.bf16.msrb.mxu1 %v8373_v62  ;;  %5540 = vmatmul.bf16.vlgmr.msra.gmra.mxu2 %v11913_v10  ;;  %v10454_v62 = vld [vmem:[%s11496_s12 + $0xab4] sm:$0xf0] }
  0xf7   : > { %5584 = vmatpush.bf16.msrb.mxu2 %v8437_v1  ;;  %5553 = vmatmul.bf16.vlgmr.msra.gmra.mxu3 %v11917_v17  ;;  %v8477_v1 = vor.u32 %v10488_v55, %v8476_v53  ;;  %v8341_v5 = vor.u32 %v10454_v62, %v8340_v61  ;;  %v8380_v53 = vld [vmem:[%s11496_s12 + $0xb00] sm:$0xf]  ;;  %v10464_v55 = vld [vmem:[%s11496_s12 + $0xb04] sm:$0xf0]  ;;  %v10510_v61 = vld [vmem:[%s11496_s12 + $0xc74] sm:$0xf0] }
  0xf8   : > { %5597 = vmatpush.bf16.msrb.mxu3 %v8501_v11  ;;  %v8332_v11 = vld [vmem:[%s11496_s12 + $0xaa0] sm:$0xf]  ;;  %v5320_v47 = vpop.f32.mrf.mxu1  ;;  %v8628_v62 = vld [vmem:[%s11496_s12 + $0xcf0] sm:$0xf]  ;;  %v8381_v26 = vor.u32 %v10464_v55, %v8380_v53 }
  0xf9   : > { %5559 = vmatpush.bf16.msrb.mxu0 %v8301_v18  ;;  %v10452_v18 = vld [vmem:[%s11496_s12 + $0xaa4] sm:$0xf0] }
  0xfa   : > { %5572 = vmatpush.bf16.msrb.mxu1 %v8365_v24  ;;  %v8469_v24 = vor.u32 %v10486_v4, %v8468_v3  ;;  %v8333_v30 = vor.u32 %v10452_v18, %v8332_v11  ;;  %v11980_v3 = vld [vmem:[#allocation1 + $0x3f] sm:$0xff]  ;;  %v8253_v18 = vor.u32 %v10432_v42, %v8252_v41  ;;  %v8684_v41 = vld [vmem:[%s11496_s12 + $0xd60] sm:$0xf]  ;;  %v10540_v42 = vld [vmem:[%s11496_s12 + $0xd64] sm:$0xf0] }
  0xfb   : > { %5585 = vmatpush.bf16.msrb.mxu2 %v8429_v25  ;;  %v8269_v25 = vor.u32 %v10436_v8, %v8268_v7  ;;  %v478_v4 = vld [vmem:[%s11522_s18 + $0x18] sm:$0xff] }
  0xfc   : > { %5598 = vmatpush.bf16.msrb.mxu3 %v8493_v33  ;;  %v8324_v33 = vld [vmem:[%s11496_s12 + $0xa90] sm:$0xf]  ;;  %v5346_v11 = vpop.f32.mrf.mxu3  ;;  %v5309_v29 = vpop.f32.mrf.mxu0 }
  0xfd   : > { %5560 = vmatpush.bf16.msrb.mxu0 %v8293_v34  ;;  %v10450_v34 = vld [vmem:[%s11496_s12 + $0xa94] sm:$0xf0]  ;;  %v8692_v7 = vld [vmem:[%s11496_s12 + $0xd70] sm:$0xf]  ;;  %v10536_v29 = vld [vmem:[%s11496_s12 + $0xd44] sm:$0xf0] }
  0xfe   : > { %5573 = vmatpush.bf16.msrb.mxu1 %v8357_v37  ;;  %v10466_v37 = vld [vmem:[%s11496_s12 + $0xb14] sm:$0xf0] }
  0xff   : > { %5586 = vmatpush.bf16.msrb.mxu2 %v8421_v38  ;;  %v8452_v38 = vld [vmem:[%s11496_s12 + $0xb90] sm:$0xf]  ;;  %v8389_v59 = vor.u32 %v10466_v37, %v8388_v36  ;;  %v8556_v36 = vld [vmem:[%s11496_s12 + $0xc60] sm:$0xf]  ;;  %v10508_v37 = vld [vmem:[%s11496_s12 + $0xc64] sm:$0xf0] }
 0x100   : > { %5599 = vmatpush.bf16.msrb.mxu3 %v8485_v49  ;;  %v8316_v49 = vld [vmem:[%s11496_s12 + $0xa80] sm:$0xf] }
 0x101   : > { %5561 = vmatpush.bf16.msrb.mxu0 %v8285_v50  ;;  %v10448_v50 = vld [vmem:[%s11496_s12 + $0xa84] sm:$0xf0] }
 0x102   : > { %5574 = vmatpush.bf16.msrb.mxu1 %v8349_v57  ;;  %v5321_v57 = vadd.f32 %v5320_v47, %v5307_v35 }
 0x103   : > { %5587 = vmatpush.bf16.msrb.mxu2 %v8413_v58  ;;  %v8325_v58 = vor.u32 %v10450_v34, %v8324_v33  ;;  %v10558_v33 = vld [vmem:[%s11496_s12 + $0xdf4] sm:$0xf0]  ;;  %v8693_v34 = vor.u32 %v10542_v19, %v8692_v7  ;;  %v8740_v7 = vld [vmem:[%s11496_s12 + $0xdd0] sm:$0xf]  ;;  %v8540_v19 = vld [vmem:[%s11496_s12 + $0xc40] sm:$0xf] }
 0x104   : > { %5600 = vmatpush.bf16.msrb.mxu3 %v8477_v1  ;;  %v5333_v1 = vpop.f32.mrf.mxu2  ;;  %v8757_v47 = vor.u32 %v10558_v33, %v8756_v32  ;;  %v8732_v33 = vld [vmem:[%s11496_s12 + $0xdc0] sm:$0xf] }
 0x105   : > { %5562 = vmatpush.bf16.msrb.mxu0 %v8277_v2  ;;  %v11978_v2 = vld [vmem:[#allocation1 + $0x2d] sm:$0xff]  ;;  %v5334_v8 = vadd.f32 %v5333_v1, %v5321_v57  ;;  %v8685_v57 = vor.u32 %v10540_v42, %v8684_v41  ;;  %v8676_v1 = vld [vmem:[%s11496_s12 + $0xd50] sm:$0xf]  ;;  %v10518_v42 = vld [vmem:[%s11496_s12 + $0xcb4] sm:$0xf0] }
 0x106   : > { %5575 = vmatpush.bf16.msrb.mxu1 %v8341_v5  ;;  %v8453_v5 = vor.u32 %v10482_v40, %v8452_v38  ;;  %1297 = vst [vmem:[#allocation1] ss:$9 sm:$0xff] %v478_v4  ;;  %v8620_v38 = vld [vmem:[%s11496_s12 + $0xce0] sm:$0xf]  ;;  %v10524_v40 = vld [vmem:[%s11496_s12 + $0xce4] sm:$0xf0] }
 0x107   : > { %5588 = vmatpush.bf16.msrb.mxu2 %v8405_v6  ;;  %v10526_v6 = vld [vmem:[%s11496_s12 + $0xcf4] sm:$0xf0]  ;;  %v11988_v28 = vadd.f32 %v5346_v11, %v5334_v8  ;;  %v8621_v55 = vor.u32 %v10524_v40, %v8620_v38  ;;  %v8532_v38 = vld [vmem:[%s11496_s12 + $0xc30] sm:$0xf] }
 0x108   : > { %5601 = vmatpush.bf16.msrb.mxu3 %v8469_v24  ;;  %v10480_v24 = vld [vmem:[%s11496_s12 + $0xb84] sm:$0xf0]  ;;  %v10538_v4 = vld [vmem:[%s11496_s12 + $0xd54] sm:$0xf0]  ;;  %v8596_v40 = vld [vmem:[%s11496_s12 + $0xcb0] sm:$0xf] }
 0x109   : > { %5563 = vmatpush.bf16.msrb.mxu0 %v8269_v25  ;;  %v8317_v25 = vor.u32 %v10448_v50, %v8316_v49  ;;  %v8445_v35 = vor.u32 %v10480_v24, %v8444_v20  ;;  %v8748_v49 = vld [vmem:[%s11496_s12 + $0xde0] sm:$0xf]  ;;  %v10556_v50 = vld [vmem:[%s11496_s12 + $0xde4] sm:$0xf0]  ;;  %v10554_v8 = vld [vmem:[%s11496_s12 + $0xdd4] sm:$0xf0] }
 0x10a   : > { %5576 = vmatpush.bf16.msrb.mxu1 %v8333_v30  ;;  %v8565_v30 = vor.u32 %v10510_v61, %v8564_v60  ;;  %v8612_v60 = vld [vmem:[%s11496_s12 + $0xcd0] sm:$0xf]  ;;  %v5348_v61 = vpop.f32.mrf.mxu3  ;;  %v10504_v20 = vld [vmem:[%s11496_s12 + $0xc44] sm:$0xf0]  ;;  %v8604_v24 = vld [vmem:[%s11496_s12 + $0xcc0] sm:$0xf] }
 0x10b   : > { %5589 = vmatpush.bf16.msrb.mxu2 %v8397_v31  ;;  %v8629_v31 = vor.u32 %v10526_v6, %v8628_v62  ;;  %v10522_v62 = vld [vmem:[%s11496_s12 + $0xcd4] sm:$0xf0]  ;;  %v8541_v32 = vor.u32 %v10504_v20, %v8540_v19  ;;  %v8588_v61 = vld [vmem:[%s11496_s12 + $0xca0] sm:$0xf]  ;;  %v10548_v19 = vld [vmem:[%s11496_s12 + $0xda4] sm:$0xf0] }
 0x10c   : > { %5602 = vmatpush.bf16.msrb.mxu3 %v8461_v39  ;;  %v5322_v39 = vpop.f32.mrf.mxu1  ;;  %v5335_v53 = vpop.f32.mrf.mxu2  ;;  %v8613_v11 = vor.u32 %v10522_v62, %v8612_v60  ;;  %v10500_v60 = vld [vmem:[%s11496_s12 + $0xc24] sm:$0xf0] }
 0x10d   : > { %5564 = vmatpush.bf16.msrb.mxu0 %v8261_v48  ;;  %v8557_v48 = vor.u32 %v10508_v37, %v8556_v36  ;;  %v10502_v39 = vld [vmem:[%s11496_s12 + $0xc34] sm:$0xf0]  ;;  %v8724_v53 = vld [vmem:[%s11496_s12 + $0xdb0] sm:$0xf] }
 0x10e   : > { %5577 = vmatpush.bf16.msrb.mxu1 %v8325_v58  ;;  %v8548_v58 = vld [vmem:[%s11496_s12 + $0xc50] sm:$0xf] }
 0x10f   : > { %5590 = vmatpush.bf16.msrb.mxu2 %v8389_v59  ;;  %v10506_v59 = vld [vmem:[%s11496_s12 + $0xc54] sm:$0xf0] }
 0x110   : > { %5603 = vmatpush.bf16.msrb.mxu3 %v8453_v5  ;;  %v8749_v5 = vor.u32 %v10556_v50, %v8748_v49  ;;  %v8549_v6 = vor.u32 %v10506_v59, %v8548_v58  ;;  %v8533_v50 = vor.u32 %v10502_v39, %v8532_v38  ;;  %v8524_v59 = vld [vmem:[%s11496_s12 + $0xc20] sm:$0xf]  ;;  %v10546_v39 = vld [vmem:[%s11496_s12 + $0xd94] sm:$0xf0] }
 0x111   : > { %5565 = vmatpush.bf16.msrb.mxu0 %v8253_v18  ;;  %v8677_v18 = vor.u32 %v10538_v4, %v8676_v1  ;;  %v10516_v1 = vld [vmem:[%s11496_s12 + $0xca4] sm:$0xf0]  ;;  %v8652_v4 = vld [vmem:[%s11496_s12 + $0xd20] sm:$0xf] }
 0x112   : > { %5578 = vmatpush.bf16.msrb.mxu1 %v8317_v25  ;;  %v10520_v25 = vld [vmem:[%s11496_s12 + $0xcc4] sm:$0xf0]  ;;  %v8589_v20 = vor.u32 %v10516_v1, %v8588_v61  ;;  %v8948_v61 = vld [vmem:[%s11496_s12 + $0xf70] sm:$0xf]  ;;  %v10606_v1 = vld [vmem:[%s11496_s12 + $0xf74] sm:$0xf0] }
 0x113   : > { %5591 = vmatpush.bf16.msrb.mxu2 %v8381_v26  ;;  %v8668_v26 = vld [vmem:[%s11496_s12 + $0xd40] sm:$0xf]  ;;  %v8605_v36 = vor.u32 %v10520_v25, %v8604_v24 }
 0x114   : > { %5604 = vmatpush.bf16.msrb.mxu3 %v8445_v35  ;;  %5566 = vmatmul.bf16.vlgmr.msrb.gmra.mxu0 %v11974_v63  ;;  %v8669_v37 = vor.u32 %v10536_v29, %v8668_v26  ;;  %v5372_v41 = vpop.f32.mrf.mxu1  ;;  %v8516_v26 = vld [vmem:[%s11496_s12 + $0xc10] sm:$0xf]  ;;  %v10498_v29 = vld [vmem:[%s11496_s12 + $0xc14] sm:$0xf0] }
 0x115   : > { %5610 = vmatpush.bf16.msra.mxu0 %v8565_v30  ;;  %5579 = vmatmul.bf16.vlgmr.msrb.gmra.mxu1 %v11978_v2  ;;  %v8741_v30 = vor.u32 %v10554_v8, %v8740_v7  ;;  %v8517_v38 = vor.u32 %v10498_v29, %v8516_v26  ;;  %v8812_v26 = vld [vmem:[%s11496_s12 + $0xe60] sm:$0xf]  ;;  %v10572_v29 = vld [vmem:[%s11496_s12 + $0xe64] sm:$0xf0] }
 0x116   : > { %5623 = vmatpush.bf16.msra.mxu1 %v8629_v31  ;;  %5592 = vmatmul.bf16.vlgmr.msrb.gmra.mxu2 %v11976_v0  ;;  %v5359_v31 = vpop.f32.mrf.mxu0 }
 0x117   : > { %5636 = vmatpush.bf16.msra.mxu2 %v8693_v34  ;;  %5605 = vmatmul.bf16.vlgmr.msrb.gmra.mxu3 %v11980_v3  ;;  %v10552_v34 = vld [vmem:[%s11496_s12 + $0xdc4] sm:$0xf0]  ;;  %v5360_v35 = vadd.f32 %v5359_v31, %v11988_v28 }
 0x118   : > { %5649 = vmatpush.bf16.msra.mxu3 %v8757_v47  ;;  %v8660_v47 = vld [vmem:[%s11496_s12 + $0xd30] sm:$0xf]  ;;  %v8733_v28 = vor.u32 %v10552_v34, %v8732_v33  ;;  %v10514_v33 = vld [vmem:[%s11496_s12 + $0xc94] sm:$0xf0] }
 0x119   : > { %5611 = vmatpush.bf16.msra.mxu0 %v8557_v48  ;;  %v10534_v48 = vld [vmem:[%s11496_s12 + $0xd34] sm:$0xf0]  ;;  %v5373_v49 = vadd.f32 %v5372_v41, %v5360_v35  ;;  %v5385_v62 = vpop.f32.mrf.mxu2  ;;  %v8644_v34 = vld [vmem:[%s11496_s12 + $0xd10] sm:$0xf]  ;;  %v10496_v41 = vld [vmem:[%s11496_s12 + $0xc04] sm:$0xf0] }
 0x11a   : > { %5624 = vmatpush.bf16.msra.mxu1 %v8621_v55  ;;  %v10550_v55 = vld [vmem:[%s11496_s12 + $0xdb4] sm:$0xf0]  ;;  %v8661_v58 = vor.u32 %v10534_v48, %v8660_v47  ;;  %v5398_v25 = vpop.f32.mrf.mxu3  ;;  %v8572_v48 = vld [vmem:[%s11496_s12 + $0xc80] sm:$0xf] }
 0x11b   : > { %5637 = vmatpush.bf16.msra.mxu2 %v8685_v57  ;;  %v8597_v57 = vor.u32 %v10518_v42, %v8596_v40  ;;  %v5386_v7 = vadd.f32 %v5385_v62, %v5373_v49  ;;  %v10530_v35 = vld [vmem:[%s11496_s12 + $0xd14] sm:$0xf0]  ;;  %v8508_v40 = vld [vmem:[%s11496_s12 + $0xc00] sm:$0xf]  ;;  %v10512_v49 = vld [vmem:[%s11496_s12 + $0xc84] sm:$0xf0] }
 0x11c   : > { %5650 = vmatpush.bf16.msra.mxu3 %v8749_v5  ;;  %v10532_v5 = vld [vmem:[%s11496_s12 + $0xd24] sm:$0xf0]  ;;  %v5374_v31 = vpop.f32.mrf.mxu1  ;;  %v8645_v47 = vor.u32 %v10530_v35, %v8644_v34  ;;  %v8509_v62 = vor.u32 %v10496_v41, %v8508_v40  ;;  %v12069_v35 = vld [vmem:[#allocation1] sm:$0xff]  ;;  %v8813_v40 = vor.u32 %v10572_v29, %v8812_v26  ;;  %v9004_v41 = vld [vmem:[%s11496_s12 + $0xfe0] sm:$0xf] }
 0x11d   : > { %5612 = vmatpush.bf16.msra.mxu0 %v8549_v6  ;;  %v8725_v6 = vor.u32 %v10550_v55, %v8724_v53  ;;  %v8653_v24 = vor.u32 %v10532_v5, %v8652_v4  ;;  %v8820_v53 = vld [vmem:[%s11496_s12 + $0xe70] sm:$0xf]  ;;  %v10574_v55 = vld [vmem:[%s11496_s12 + $0xe74] sm:$0xf0]  ;;  %v8700_v4 = vld [vmem:[%s11496_s12 + $0xd80] sm:$0xf] }
 0x11e   : > { %5625 = vmatpush.bf16.msra.mxu1 %v8613_v11  ;;  %v5361_v8 = vpop.f32.mrf.mxu0  ;;  %v8525_v11 = vor.u32 %v10500_v60, %v8524_v59  ;;  %v8884_v59 = vld [vmem:[%s11496_s12 + $0xef0] sm:$0xf]  ;;  %v10590_v60 = vld [vmem:[%s11496_s12 + $0xef4] sm:$0xf0]  ;;  %v10544_v5 = vld [vmem:[%s11496_s12 + $0xd84] sm:$0xf0] }
 0x11f   : > { %5638 = vmatpush.bf16.msra.mxu2 %v8677_v18  ;;  %v8716_v18 = vld [vmem:[%s11496_s12 + $0xda0] sm:$0xf]  ;;  %v10588_v31 = vld [vmem:[%s11496_s12 + $0xee4] sm:$0xf0] }
 0x120   : > { %5651 = vmatpush.bf16.msra.mxu3 %v8741_v30  ;;  %v8580_v30 = vld [vmem:[%s11496_s12 + $0xc90] sm:$0xf]  ;;  %v10604_v34 = vld [vmem:[%s11496_s12 + $0xf64] sm:$0xf0]  ;;  %v8988_v26 = vld [vmem:[%s11496_s12 + $0xfc0] sm:$0xf] }
 0x121   : > { %5613 = vmatpush.bf16.msra.mxu0 %v8541_v32  ;;  %v12040_v32 = vadd.f32 %v5398_v25, %v5386_v7  ;;  %v8581_v42 = vor.u32 %v10514_v33, %v8580_v30  ;;  %v8701_v25 = vor.u32 %v10544_v5, %v8700_v4  ;;  %v8876_v30 = vld [vmem:[%s11496_s12 + $0xee0] sm:$0xf]  ;;  %v10568_v5 = vld [vmem:[%s11496_s12 + $0xe44] sm:$0xf0] }
 0x122   : > { %5626 = vmatpush.bf16.msra.mxu1 %v8605_v36  ;;  %v8717_v36 = vor.u32 %v10548_v19, %v8716_v18  ;;  %v5400_v8 = vpop.f32.mrf.mxu3  ;;  %v8885_v18 = vor.u32 %v10590_v60, %v8884_v59  ;;  %v9012_v19 = vld [vmem:[%s11496_s12 + $0xff0] sm:$0xf]  ;;  %v8940_v33 = vld [vmem:[%s11496_s12 + $0xf60] sm:$0xf]  ;;  %v10616_v29 = vld [vmem:[%s11496_s12 + $0xfc4] sm:$0xf0] }
 0x123   : > { %5639 = vmatpush.bf16.msra.mxu2 %v8669_v37  ;;  %v8708_v37 = vld [vmem:[%s11496_s12 + $0xd90] sm:$0xf]  ;;  %v8796_v4 = vld [vmem:[%s11496_s12 + $0xe40] sm:$0xf] }
 0x124   : > { %5652 = vmatpush.bf16.msra.mxu3 %v8733_v28  ;;  %v8636_v28 = vld [vmem:[%s11496_s12 + $0xd00] sm:$0xf]  ;;  %v8996_v60 = vld [vmem:[%s11496_s12 + $0xfd0] sm:$0xf] }
 0x125   : > { %5614 = vmatpush.bf16.msra.mxu0 %v8533_v50  ;;  %v10528_v50 = vld [vmem:[%s11496_s12 + $0xd04] sm:$0xf0]  ;;  %v8924_v8 = vld [vmem:[%s11496_s12 + $0xf40] sm:$0xf] }
 0x126   : > { %5627 = vmatpush.bf16.msra.mxu1 %v8597_v57  ;;  %v5387_v57 = vpop.f32.mrf.mxu2  ;;  %v8637_v7 = vor.u32 %v10528_v50, %v8636_v28  ;;  %v10570_v28 = vld [vmem:[%s11496_s12 + $0xe54] sm:$0xf0]  ;;  %v8868_v50 = vld [vmem:[%s11496_s12 + $0xed0] sm:$0xf] }
 0x127   : > { %5640 = vmatpush.bf16.msra.mxu2 %v8661_v58  ;;  %v8709_v58 = vor.u32 %v10546_v39, %v8708_v37  ;;  %v12075_v39 = vld [vmem:[#allocation1 + $0x1b] sm:$0xff]  ;;  %v10602_v57 = vld [vmem:[%s11496_s12 + $0xf54] sm:$0xf0] }
 0x128   : > { %5653 = vmatpush.bf16.msra.mxu3 %v8725_v6  ;;  %v8573_v6 = vor.u32 %v10512_v49, %v8572_v48  ;;  %v8941_v48 = vor.u32 %v10604_v34, %v8940_v33  ;;  %v8804_v49 = vld [vmem:[%s11496_s12 + $0xe50] sm:$0xf]  ;;  %v10566_v34 = vld [vmem:[%s11496_s12 + $0xe34] sm:$0xf0] }
 0x129   : > { %5615 = vmatpush.bf16.msra.mxu0 %v8525_v11  ;;  %v8821_v11 = vor.u32 %v10574_v55, %v8820_v53  ;;  %v10586_v53 = vld [vmem:[%s11496_s12 + $0xed4] sm:$0xf0]  ;;  %v8932_v55 = vld [vmem:[%s11496_s12 + $0xf50] sm:$0xf]  ;;  %v8805_v59 = vor.u32 %v10570_v28, %v8804_v49 }
 0x12a   : > { %5628 = vmatpush.bf16.msra.mxu1 %v8589_v20  ;;  %v10622_v20 = vld [vmem:[%s11496_s12 + $0xff4] sm:$0xf0]  ;;  %v8788_v33 = vld [vmem:[%s11496_s12 + $0xe30] sm:$0xf] }
 0x12b   : > { %5641 = vmatpush.bf16.msra.mxu2 %v8653_v24  ;;  %v8949_v24 = vor.u32 %v10606_v1, %v8948_v61  ;;  %v9013_v37 = vor.u32 %v10622_v20, %v9012_v19  ;;  %v10618_v61 = vld [vmem:[%s11496_s12 + $0xfd4] sm:$0xf0]  ;;  %v8933_v1 = vor.u32 %v10602_v57, %v8932_v55  ;;  %v8980_v49 = vld [vmem:[%s11496_s12 + $0xfb0] sm:$0xf]  ;;  %v8780_v57 = vld [vmem:[%s11496_s12 + $0xe20] sm:$0xf] }
 0x12c   : > { %5654 = vmatpush.bf16.msra.mxu3 %v8717_v36  ;;  %v12071_v36 = vld [vmem:[#allocation1 + $0x12] sm:$0xff]  ;;  %v10614_v28 = vld [vmem:[%s11496_s12 + $0xfb4] sm:$0xf0] }
 0x12d   : > { %5616 = vmatpush.bf16.msra.mxu0 %v8517_v38  ;;  %v12073_v38 = vld [vmem:[#allocation1 + $0x9] sm:$0xff] }
 0x12e   : > { %5629 = vmatpush.bf16.msra.mxu1 %v8581_v42  ;;  %v10620_v42 = vld [vmem:[%s11496_s12 + $0xfe4] sm:$0xf0] }
 0x12f   : > { %5642 = vmatpush.bf16.msra.mxu2 %v8645_v47  ;;  %v8877_v47 = vor.u32 %v10588_v31, %v8876_v30 }
 0x130   : > { %5655 = vmatpush.bf16.msra.mxu3 %v8709_v58  ;;  %v9005_v58 = vor.u32 %v10620_v42, %v9004_v41  ;;  %v10582_v41 = vld [vmem:[%s11496_s12 + $0xeb4] sm:$0xf0]  ;;  %v8916_v42 = vld [vmem:[%s11496_s12 + $0xf30] sm:$0xf] }
 0x131   : > { %5617 = vmatpush.bf16.msra.mxu0 %v8509_v62  ;;  %v8869_v62 = vor.u32 %v10586_v53, %v8868_v50  ;;  %v5411_v19 = vpop.f32.mrf.mxu0 }
 0x132   : > { %5630 = vmatpush.bf16.msra.mxu1 %v8573_v6  ;;  %v8860_v6 = vld [vmem:[%s11496_s12 + $0xec0] sm:$0xf]  ;;  %v5412_v20 = vadd.f32 %v5411_v19, %v12040_v32  ;;  %v10598_v32 = vld [vmem:[%s11496_s12 + $0xf34] sm:$0xf0]  ;;  %v8772_v19 = vld [vmem:[%s11496_s12 + $0xe10] sm:$0xf] }
 0x133   : > { %5643 = vmatpush.bf16.msra.mxu2 %v8637_v7  ;;  %v10584_v7 = vld [vmem:[%s11496_s12 + $0xec4] sm:$0xf0]  ;;  %v8917_v53 = vor.u32 %v10598_v32, %v8916_v42 }
 0x134   : > { %5656 = vmatpush.bf16.msra.mxu3 %v8701_v25  ;;  %5618 = vmatmul.bf16.vlgmr.msra.gmra.mxu0 %v12069_v35  ;;  %v5424_v25 = vpop.f32.mrf.mxu1  ;;  %v8861_v30 = vor.u32 %v10584_v7, %v8860_v6  ;;  %v10560_v42 = vld [vmem:[%s11496_s12 + $0xe04] sm:$0xf0] }
 0x135   : > { %5662 = vmatpush.bf16.msrb.mxu0 %v8821_v11  ;;  %5631 = vmatmul.bf16.vlgmr.msra.gmra.mxu1 %v12073_v38  ;;  %v10600_v11 = vld [vmem:[%s11496_s12 + $0xf44] sm:$0xf0] }
 0x136   : > { %5675 = vmatpush.bf16.msrb.mxu1 %v8885_v18  ;;  %5644 = vmatmul.bf16.vlgmr.msra.gmra.mxu2 %v12071_v36  ;;  %v8997_v18 = vor.u32 %v10618_v61, %v8996_v60  ;;  %v8925_v31 = vor.u32 %v10600_v11, %v8924_v8  ;;  %v10580_v61 = vld [vmem:[%s11496_s12 + $0xea4] sm:$0xf0]  ;;  %v8972_v11 = vld [vmem:[%s11496_s12 + $0xfa0] sm:$0xf] }
 0x137   : > { %5688 = vmatpush.bf16.msrb.mxu2 %v8949_v24  ;;  %5657 = vmatmul.bf16.vlgmr.msra.gmra.mxu3 %v12075_v39  ;;  %v8797_v24 = vor.u32 %v10568_v5, %v8796_v4  ;;  %v8981_v4 = vor.u32 %v10614_v28, %v8980_v49  ;;  %v8892_v49 = vld [vmem:[%s11496_s12 + $0xf00] sm:$0xf]  ;;  %v10592_v28 = vld [vmem:[%s11496_s12 + $0xf04] sm:$0xf0] }
 0x138   : > { %5701 = vmatpush.bf16.msrb.mxu3 %v9013_v37  ;;  %v8852_v37 = vld [vmem:[%s11496_s12 + $0xeb0] sm:$0xf] }
 0x139   : > { %5663 = vmatpush.bf16.msrb.mxu0 %v8813_v40  ;;  %v5425_v40 = vadd.f32 %v5424_v25, %v5412_v20  ;;  %v8853_v50 = vor.u32 %v10582_v41, %v8852_v37  ;;  %v5437_v55 = vpop.f32.mrf.mxu2  ;;  %v5413_v6 = vpop.f32.mrf.mxu0  ;;  %v8764_v41 = vld [vmem:[%s11496_s12 + $0xe00] sm:$0xf] }
 0x13a   : > { %5676 = vmatpush.bf16.msrb.mxu1 %v8877_v47  ;;  %v8989_v47 = vor.u32 %v10616_v29, %v8988_v26  ;;  %v5450_v5 = vpop.f32.mrf.mxu3  ;;  %v10562_v26 = vld [vmem:[%s11496_s12 + $0xe14] sm:$0xf0]  ;;  %v8836_v29 = vld [vmem:[%s11496_s12 + $0xe90] sm:$0xf] }
 0x13b   : > { %5689 = vmatpush.bf16.msrb.mxu2 %v8941_v48  ;;  %v8789_v48 = vor.u32 %v10566_v34, %v8788_v33  ;;  %v5438_v60 = vadd.f32 %v5437_v55, %v5425_v40  ;;  %v10594_v33 = vld [vmem:[%s11496_s12 + $0xf14] sm:$0xf0]  ;;  %v8964_v34 = vld [vmem:[%s11496_s12 + $0xf90] sm:$0xf]  ;;  %v8773_v32 = vor.u32 %v10562_v26, %v8772_v19  ;;  %v8893_v26 = vor.u32 %v10592_v28, %v8892_v49  ;;  %v9260_v28 = vld [vmem:[%s11496_s12 + $0x11e0] sm:$0xf] }
 0x13c   : > { %5702 = vmatpush.bf16.msrb.mxu3 %v9005_v58  ;;  %v10564_v58 = vld [vmem:[%s11496_s12 + $0xe24] sm:$0xf0]  ;;  %v5426_v20 = vpop.f32.mrf.mxu1  ;;  %v10610_v40 = vld [vmem:[%s11496_s12 + $0xf94] sm:$0xf0]  ;;  %v9076_v55 = vld [vmem:[%s11496_s12 + $0x1070] sm:$0xf] }
 0x13d   : > { %5664 = vmatpush.bf16.msrb.mxu0 %v8805_v59  ;;  %v8844_v59 = vld [vmem:[%s11496_s12 + $0xea0] sm:$0xf]  ;;  %v12114_v7 = vadd.f32 %v5450_v5, %v5438_v60  ;;  %v8781_v8 = vor.u32 %v10564_v58, %v8780_v57  ;;  %v10638_v57 = vld [vmem:[%s11496_s12 + $0x1074] sm:$0xf0]  ;;  %v9140_v58 = vld [vmem:[%s11496_s12 + $0x10f0] sm:$0xf]  ;;  %v8965_v5 = vor.u32 %v10610_v40, %v8964_v34 }
 0x13e   : > { %5677 = vmatpush.bf16.msrb.mxu1 %v8869_v62  ;;  %v8908_v62 = vld [vmem:[%s11496_s12 + $0xf20] sm:$0xf]  ;;  %v12137_v60 = vld [vmem:[#allocation1 + $0x36] sm:$0xff]  ;;  %v10654_v6 = vld [vmem:[%s11496_s12 + $0x10f4] sm:$0xf0] }
 0x13f   : > { %5690 = vmatpush.bf16.msrb.mxu2 %v8933_v1  ;;  %v10596_v1 = vld [vmem:[%s11496_s12 + $0xf24] sm:$0xf0]  ;;  %v10670_v19 = vld [vmem:[%s11496_s12 + $0x1174] sm:$0xf0]  ;;  %v8956_v20 = vld [vmem:[%s11496_s12 + $0xf80] sm:$0xf] }
 0x140   : > { %5703 = vmatpush.bf16.msrb.mxu3 %v8997_v18  ;;  %v10612_v18 = vld [vmem:[%s11496_s12 + $0xfa4] sm:$0xf0]  ;;  %v8909_v25 = vor.u32 %v10596_v1, %v8908_v62  ;;  %v12141_v1 = vld [vmem:[#allocation1 + $0x3f] sm:$0xff]  ;;  %v9068_v40 = vld [vmem:[%s11496_s12 + $0x1060] sm:$0xf] }
 0x141   : > { %5665 = vmatpush.bf16.msrb.mxu0 %v8797_v24  ;;  %v8845_v24 = vor.u32 %v10580_v61, %v8844_v59  ;;  %v8973_v37 = vor.u32 %v10612_v18, %v8972_v11  ;;  %v12135_v59 = vld [vmem:[#allocation1 + $0x24] sm:$0xff]  ;;  %v5439_v61 = vpop.f32.mrf.mxu2  ;;  %v12139_v62 = vld [vmem:[#allocation1 + $0x2d] sm:$0xff]  ;;  %v8765_v18 = vor.u32 %v10560_v42, %v8764_v41 }
 0x142   : > { %5678 = vmatpush.bf16.msrb.mxu1 %v8861_v30  ;;  %v10578_v30 = vld [vmem:[%s11496_s12 + $0xe94] sm:$0xf0]  ;;  %v5452_v11 = vpop.f32.mrf.mxu3  ;;  %v10636_v41 = vld [vmem:[%s11496_s12 + $0x1064] sm:$0xf0]  ;;  %v9132_v42 = vld [vmem:[%s11496_s12 + $0x10e0] sm:$0xf] }
 0x143   : > { %5691 = vmatpush.bf16.msrb.mxu2 %v8925_v31  ;;  %v8900_v31 = vld [vmem:[%s11496_s12 + $0xf10] sm:$0xf]  ;;  %v9069_v49 = vor.u32 %v10636_v41, %v9068_v40  ;;  %v10634_v61 = vld [vmem:[%s11496_s12 + $0x1054] sm:$0xf0] }
 0x144   : > { %5704 = vmatpush.bf16.msrb.mxu3 %v8989_v47  ;;  %v8828_v47 = vld [vmem:[%s11496_s12 + $0xe80] sm:$0xf] }
 0x145   : > { %5666 = vmatpush.bf16.msrb.mxu0 %v8789_v48  ;;  %v10576_v48 = vld [vmem:[%s11496_s12 + $0xe84] sm:$0xf0] }
 0x146   : > { %5679 = vmatpush.bf16.msrb.mxu1 %v8853_v50  ;;  %v8837_v50 = vor.u32 %v10578_v30, %v8836_v29  ;;  %v9077_v29 = vor.u32 %v10638_v57, %v9076_v55  ;;  %v9141_v30 = vor.u32 %v10654_v6, %v9140_v58  ;;  %v9060_v58 = vld [vmem:[%s11496_s12 + $0x1050] sm:$0xf] }
 0x147   : > { %5692 = vmatpush.bf16.msrb.mxu2 %v8917_v53  ;;  %v8901_v53 = vor.u32 %v10594_v33, %v8900_v31  ;;  %v9268_v31 = vld [vmem:[%s11496_s12 + $0x11f0] sm:$0xf]  ;;  %v10686_v33 = vld [vmem:[%s11496_s12 + $0x11f4] sm:$0xf0] }
 0x148   : > { %5705 = vmatpush.bf16.msrb.mxu3 %v8981_v4  ;;  %v479_v4 = vld [vmem:[%s11522_s18 + $0x20] sm:$0xff]  ;;  %v9188_v6 = vld [vmem:[%s11496_s12 + $0x1150] sm:$0xf] }
 0x149   : > { %5667 = vmatpush.bf16.msrb.mxu0 %v8781_v8  ;;  %v9204_v8 = vld [vmem:[%s11496_s12 + $0x1170] sm:$0xf]  ;;  %1307 = vst [vmem:[#allocation1] ss:$9 sm:$0xff] %v479_v4 }
 0x14a   : > { %5680 = vmatpush.bf16.msrb.mxu1 %v8845_v24  ;;  %v10608_v24 = vld [vmem:[%s11496_s12 + $0xf84] sm:$0xf0]  ;;  %v9205_v34 = vor.u32 %v10670_v19, %v9204_v8  ;;  %v9124_v4 = vld [vmem:[%s11496_s12 + $0x10d0] sm:$0xf]  ;;  %v10666_v8 = vld [vmem:[%s11496_s12 + $0x1154] sm:$0xf0] }
 0x14b   : > { %5693 = vmatpush.bf16.msrb.mxu2 %v8909_v25  ;;  %v8829_v25 = vor.u32 %v10576_v48, %v8828_v47  ;;  %v10668_v47 = vld [vmem:[%s11496_s12 + $0x1164] sm:$0xf0]  ;;  %v9269_v48 = vor.u32 %v10686_v33, %v9268_v31  ;;  %v9252_v19 = vld [vmem:[%s11496_s12 + $0x11d0] sm:$0xf]  ;;  %v9180_v33 = vld [vmem:[%s11496_s12 + $0x1140] sm:$0xf] }
 0x14c   : > { %5706 = vmatpush.bf16.msrb.mxu3 %v8973_v37  ;;  %v8957_v37 = vor.u32 %v10608_v24, %v8956_v20  ;;  %v10682_v20 = vld [vmem:[%s11496_s12 + $0x11d4] sm:$0xf0]  ;;  %v10648_v31 = vld [vmem:[%s11496_s12 + $0x10c4] sm:$0xf0] }
 0x14d   : > { %5668 = vmatpush.bf16.msrb.mxu0 %v8773_v32  ;;  %v10652_v32 = vld [vmem:[%s11496_s12 + $0x10e4] sm:$0xf0] }
 0x14e   : > { %5681 = vmatpush.bf16.msrb.mxu1 %v8837_v50  ;;  %v9196_v50 = vld [vmem:[%s11496_s12 + $0x1160] sm:$0xf]  ;;  %v9133_v55 = vor.u32 %v10652_v32, %v9132_v42 }
 0x14f   : > { %5694 = vmatpush.bf16.msrb.mxu2 %v8901_v53  ;;  %v10684_v53 = vld [vmem:[%s11496_s12 + $0x11e4] sm:$0xf0]  ;;  %v9197_v57 = vor.u32 %v10668_v47, %v9196_v50  ;;  %v9244_v50 = vld [vmem:[%s11496_s12 + $0x11c0] sm:$0xf] }
 0x150   : > { %5707 = vmatpush.bf16.msrb.mxu3 %v8965_v5  ;;  %v10650_v5 = vld [vmem:[%s11496_s12 + $0x10d4] sm:$0xf0]  ;;  %v9261_v11 = vor.u32 %v10684_v53, %v9260_v28  ;;  %v10680_v47 = vld [vmem:[%s11496_s12 + $0x11c4] sm:$0xf0]  ;;  %v9044_v28 = vld [vmem:[%s11496_s12 + $0x1030] sm:$0xf] }
 0x151   : > { %5669 = vmatpush.bf16.msrb.mxu0 %v8765_v18  ;;  %v9061_v18 = vor.u32 %v10634_v61, %v9060_v58  ;;  %v9125_v24 = vor.u32 %v10650_v5, %v9124_v4  ;;  %v5463_v40 = vpop.f32.mrf.mxu0  ;;  %v10630_v53 = vld [vmem:[%s11496_s12 + $0x1034] sm:$0xf0]  ;;  %v9172_v61 = vld [vmem:[%s11496_s12 + $0x1130] sm:$0xf]  ;;  %v9245_v4 = vor.u32 %v10680_v47, %v9244_v50 }
 0x152   : > { %5682 = vmatpush.bf16.msrb.mxu1 %v8829_v25  ;;  %v9189_v25 = vor.u32 %v10666_v8, %v9188_v6  ;;  %v5464_v41 = vadd.f32 %v5463_v40, %v12114_v7  ;;  %v5476_v32 = vpop.f32.mrf.mxu1  ;;  %v10646_v58 = vld [vmem:[%s11496_s12 + $0x10b4] sm:$0xf0]  ;;  %v9045_v5 = vor.u32 %v10630_v53, %v9044_v28  ;;  %v9236_v6 = vld [vmem:[%s11496_s12 + $0x11b0] sm:$0xf] }
 0x153   : > { %5695 = vmatpush.bf16.msrb.mxu2 %v8893_v26  ;;  %v9052_v26 = vld [vmem:[%s11496_s12 + $0x1040] sm:$0xf]  ;;  %v10662_v7 = vld [vmem:[%s11496_s12 + $0x1134] sm:$0xf0]  ;;  %v9092_v53 = vld [vmem:[%s11496_s12 + $0x1090] sm:$0xf] }
 0x154   : > { %5708 = vmatpush.bf16.msrb.mxu3 %v8957_v37  ;;  %5670 = vmatmul.bf16.vlgmr.msrb.gmra.mxu0 %v12135_v59  ;;  %v9253_v37 = vor.u32 %v10682_v20, %v9252_v19  ;;  %v10678_v8 = vld [vmem:[%s11496_s12 + $0x11b4] sm:$0xf0]  ;;  %v9036_v20 = vld [vmem:[%s11496_s12 + $0x1020] sm:$0xf] }
 0x155   : > { %5714 = vmatpush.bf16.msra.mxu0 %v9077_v29  ;;  %5683 = vmatmul.bf16.vlgmr.msrb.gmra.mxu1 %v12139_v62  ;;  %v10632_v29 = vld [vmem:[%s11496_s12 + $0x1044] sm:$0xf0]  ;;  %v10626_v28 = vld [vmem:[%s11496_s12 + $0x1014] sm:$0xf0] }
 0x156   : > { %5727 = vmatpush.bf16.msra.mxu1 %v9141_v30  ;;  %5696 = vmatmul.bf16.vlgmr.msrb.gmra.mxu2 %v12137_v60  ;;  %v9116_v30 = vld [vmem:[%s11496_s12 + $0x10c0] sm:$0xf]  ;;  %v9053_v42 = vor.u32 %v10632_v29, %v9052_v26  ;;  %v10644_v29 = vld [vmem:[%s11496_s12 + $0x10a4] sm:$0xf0] }
 0x157   : > { %5740 = vmatpush.bf16.msra.mxu2 %v9205_v34  ;;  %5709 = vmatmul.bf16.vlgmr.msrb.gmra.mxu3 %v12141_v1  ;;  %v10664_v34 = vld [vmem:[%s11496_s12 + $0x1144] sm:$0xf0] }
 0x158   : > { %5753 = vmatpush.bf16.msra.mxu3 %v9269_v48  ;;  %v9117_v48 = vor.u32 %v10648_v31, %v9116_v30  ;;  %v9164_v30 = vld [vmem:[%s11496_s12 + $0x1120] sm:$0xf]  ;;  %v10660_v31 = vld [vmem:[%s11496_s12 + $0x1124] sm:$0xf0] }
 0x159   : > { %5715 = vmatpush.bf16.msra.mxu0 %v9069_v49  ;;  %v9181_v49 = vor.u32 %v10664_v34, %v9180_v33  ;;  %v5489_v19 = vpop.f32.mrf.mxu2  ;;  %v9237_v33 = vor.u32 %v10678_v8, %v9236_v6  ;;  %v9020_v6 = vld [vmem:[%s11496_s12 + $0x1000] sm:$0xf]  ;;  %v10624_v8 = vld [vmem:[%s11496_s12 + $0x1004] sm:$0xf0] }
 0x15a   : > { %5728 = vmatpush.bf16.msra.mxu1 %v9133_v55  ;;  %v9108_v55 = vld [vmem:[%s11496_s12 + $0x10b0] sm:$0xf]  ;;  %v5502_v34 = vpop.f32.mrf.mxu3  ;;  %v5478_v50 = vpop.f32.mrf.mxu1 }
 0x15b   : > { %5741 = vmatpush.bf16.msra.mxu2 %v9197_v57  ;;  %v5477_v57 = vadd.f32 %v5476_v32, %v5464_v41  ;;  %v10676_v32 = vld [vmem:[%s11496_s12 + $0x11a4] sm:$0xf0]  ;;  %v9212_v50 = vld [vmem:[%s11496_s12 + $0x1180] sm:$0xf] }
 0x15c   : > { %5754 = vmatpush.bf16.msra.mxu3 %v9261_v11  ;;  %v9109_v11 = vor.u32 %v10646_v58, %v9108_v55  ;;  %v10642_v55 = vld [vmem:[%s11496_s12 + $0x1094] sm:$0xf0] }
 0x15d   : > { %5716 = vmatpush.bf16.msra.mxu0 %v9061_v18  ;;  %v9173_v18 = vor.u32 %v10662_v7, %v9172_v61  ;;  %v5490_v26 = vadd.f32 %v5489_v19, %v5477_v57  ;;  %v9156_v57 = vld [vmem:[%s11496_s12 + $0x1110] sm:$0xf]  ;;  %v10658_v58 = vld [vmem:[%s11496_s12 + $0x1114] sm:$0xf0]  ;;  %v9084_v19 = vld [vmem:[%s11496_s12 + $0x1080] sm:$0xf] }
 0x15e   : > { %5729 = vmatpush.bf16.msra.mxu1 %v9125_v24  ;;  %v10628_v24 = vld [vmem:[%s11496_s12 + $0x1024] sm:$0xf0]  ;;  %v9220_v7 = vld [vmem:[%s11496_s12 + $0x1190] sm:$0xf] }
 0x15f   : > { %5742 = vmatpush.bf16.msra.mxu2 %v9189_v25  ;;  %v9100_v25 = vld [vmem:[%s11496_s12 + $0x10a0] sm:$0xf]  ;;  %v12194_v40 = vadd.f32 %v5502_v34, %v5490_v26  ;;  %v9037_v41 = vor.u32 %v10628_v24, %v9036_v20  ;;  %v10640_v20 = vld [vmem:[%s11496_s12 + $0x1084] sm:$0xf0]  ;;  %v10718_v34 = vld [vmem:[%s11496_s12 + $0x12f4] sm:$0xf0] }
 0x160   : > { %5755 = vmatpush.bf16.msra.mxu3 %v9253_v37  ;;  %v5465_v37 = vpop.f32.mrf.mxu0  ;;  %v9101_v47 = vor.u32 %v10644_v29, %v9100_v25  ;;  %v9148_v24 = vld [vmem:[%s11496_s12 + $0x1100] sm:$0xf]  ;;  %v10656_v26 = vld [vmem:[%s11496_s12 + $0x1104] sm:$0xf0]  ;;  %v9332_v29 = vld [vmem:[%s11496_s12 + $0x1270] sm:$0xf] }
 0x161   : > { %5717 = vmatpush.bf16.msra.mxu0 %v9053_v42  ;;  %v9228_v42 = vld [vmem:[%s11496_s12 + $0x11a0] sm:$0xf]  ;;  %v5491_v25 = vpop.f32.mrf.mxu2  ;;  %v9460_v37 = vld [vmem:[%s11496_s12 + $0x1370] sm:$0xf] }
 0x162   : > { %5730 = vmatpush.bf16.msra.mxu1 %v9117_v48  ;;  %v9165_v48 = vor.u32 %v10660_v31, %v9164_v30  ;;  %v9229_v61 = vor.u32 %v10676_v32, %v9228_v42  ;;  %v10702_v30 = vld [vmem:[%s11496_s12 + $0x1274] sm:$0xf0]  ;;  %v9021_v42 = vor.u32 %v10624_v8, %v9020_v6  ;;  %v10716_v6 = vld [vmem:[%s11496_s12 + $0x12e4] sm:$0xf0]  ;;  %v9452_v8 = vld [vmem:[%s11496_s12 + $0x1360] sm:$0xf] }
 0x163   : > { %5743 = vmatpush.bf16.msra.mxu2 %v9181_v49  ;;  %v9028_v49 = vld [vmem:[%s11496_s12 + $0x1010] sm:$0xf]  ;;  %v10734_v32 = vld [vmem:[%s11496_s12 + $0x1374] sm:$0xf0] }
 0x164   : > { %5756 = vmatpush.bf16.msra.mxu3 %v9245_v4  ;;  %v9029_v4 = vor.u32 %v10626_v28, %v9028_v49  ;;  %v9149_v49 = vor.u32 %v10656_v26, %v9148_v24  ;;  %v9333_v28 = vor.u32 %v10702_v30, %v9332_v29  ;;  %v12232_v24 = vld [vmem:[#allocation1 + $0x9] sm:$0xff]  ;;  %v12234_v25 = vld [vmem:[#allocation1 + $0x1b] sm:$0xff]  ;;  %v10748_v30 = vld [vmem:[%s11496_s12 + $0x13e4] sm:$0xf0] }
 0x165   : > { %5718 = vmatpush.bf16.msra.mxu0 %v9045_v5  ;;  %v10674_v5 = vld [vmem:[%s11496_s12 + $0x1194] sm:$0xf0]  ;;  %13407 = vst [vmem:[#allocation23_spill] sm:$0xff] %v12232_v24  ;;  %v9516_v29 = vld [vmem:[%s11496_s12 + $0x13e0] sm:$0xf] }
 0x166   : > { %5731 = vmatpush.bf16.msra.mxu1 %v9109_v11  ;;  %v9093_v11 = vor.u32 %v10642_v55, %v9092_v53  ;;  %v9221_v31 = vor.u32 %v10674_v5, %v9220_v7  ;;  %v9524_v55 = vld [vmem:[%s11496_s12 + $0x13f0] sm:$0xf]  ;;  %v9324_v7 = vld [vmem:[%s11496_s12 + $0x1260] sm:$0xf]  ;;  %13408 = vst [vmem:[#allocation24_spill] sm:$0xff] %v12234_v25 }
 0x167   : > { %5744 = vmatpush.bf16.msra.mxu2 %v9173_v18  ;;  %v9157_v18 = vor.u32 %v10658_v58, %v9156_v57  ;;  %v10750_v57 = vld [vmem:[%s11496_s12 + $0x13f4] sm:$0xf0]  ;;  %v9461_v58 = vor.u32 %v10734_v32, %v9460_v37  ;;  %v9388_v5 = vld [vmem:[%s11496_s12 + $0x12e0] sm:$0xf]  ;;  %v9444_v32 = vld [vmem:[%s11496_s12 + $0x1350] sm:$0xf] }
 0x168   : > { %5757 = vmatpush.bf16.msra.mxu3 %v9237_v33  ;;  %v9396_v33 = vld [vmem:[%s11496_s12 + $0x12f0] sm:$0xf]  ;;  %v10698_v37 = vld [vmem:[%s11496_s12 + $0x1254] sm:$0xf0] }
 0x169   : > { %5719 = vmatpush.bf16.msra.mxu0 %v9037_v41  ;;  %v5504_v41 = vpop.f32.mrf.mxu3  ;;  %v9397_v53 = vor.u32 %v10718_v34, %v9396_v33  ;;  %v9316_v34 = vld [vmem:[%s11496_s12 + $0x1250] sm:$0xf] }
 0x16a   : > { %5732 = vmatpush.bf16.msra.mxu1 %v9101_v47  ;;  %v10672_v47 = vld [vmem:[%s11496_s12 + $0x1184] sm:$0xf0]  ;;  %v9380_v41 = vld [vmem:[%s11496_s12 + $0x12d0] sm:$0xf] }
 0x16b   : > { %5745 = vmatpush.bf16.msra.mxu2 %v9165_v48  ;;  %v9085_v48 = vor.u32 %v10640_v20, %v9084_v19  ;;  %v12230_v19 = vld [vmem:[#allocation1 + $0x12] sm:$0xff]  ;;  %v9525_v20 = vor.u32 %v10750_v57, %v9524_v55  ;;  %v9308_v57 = vld [vmem:[%s11496_s12 + $0x1240] sm:$0xf] }
 0x16c   : > { %5758 = vmatpush.bf16.msra.mxu3 %v9229_v61  ;;  %v9213_v61 = vor.u32 %v10672_v47, %v9212_v50  ;;  %13406 = vst [vmem:[#allocation22_spill] sm:$0xff] %v12230_v19  ;;  %v10730_v50 = vld [vmem:[%s11496_s12 + $0x1354] sm:$0xf0]  ;;  %v9517_v47 = vor.u32 %v10748_v30, %v9516_v29  ;;  %v9500_v29 = vld [vmem:[%s11496_s12 + $0x13c0] sm:$0xf] }
 0x16d   : > { %5720 = vmatpush.bf16.msra.mxu0 %v9029_v4  ;;  %v10700_v4 = vld [vmem:[%s11496_s12 + $0x1264] sm:$0xf0]  ;;  %v9445_v55 = vor.u32 %v10730_v50, %v9444_v32  ;;  %v10710_v32 = vld [vmem:[%s11496_s12 + $0x12b4] sm:$0xf0]  ;;  %v9428_v50 = vld [vmem:[%s11496_s12 + $0x1330] sm:$0xf] }
 0x16e   : > { %5733 = vmatpush.bf16.msra.mxu1 %v9093_v11  ;;  %v10732_v11 = vld [vmem:[%s11496_s12 + $0x1364] sm:$0xf0]  ;;  %v9325_v26 = vor.u32 %v10700_v4, %v9324_v7  ;;  %v9436_v4 = vld [vmem:[%s11496_s12 + $0x1340] sm:$0xf] }
 0x16f   : > { %5746 = vmatpush.bf16.msra.mxu2 %v9157_v18  ;;  %v12228_v18 = vld [vmem:[#allocation1] sm:$0xff]  ;;  %v9453_v33 = vor.u32 %v10732_v11, %v9452_v8  ;;  %v10712_v7 = vld [vmem:[%s11496_s12 + $0x12c4] sm:$0xf0] }
 0x170   : > { %5759 = vmatpush.bf16.msra.mxu3 %v9221_v31  ;;  %13405 = vst [vmem:[#allocation21_spill] sm:$0xff] %v12228_v18  ;;  %v9389_v31 = vor.u32 %v10716_v6, %v9388_v5  ;;  %v10728_v5 = vld [vmem:[%s11496_s12 + $0x1344] sm:$0xf0] }
 0x171   : > { %5721 = vmatpush.bf16.msra.mxu0 %v9021_v42  ;;  %v10714_v42 = vld [vmem:[%s11496_s12 + $0x12d4] sm:$0xf0]  ;;  %v5515_v8 = vpop.f32.mrf.mxu0  ;;  %v10744_v30 = vld [vmem:[%s11496_s12 + $0x13c4] sm:$0xf0] }
 0x172   : > { %5734 = vmatpush.bf16.msra.mxu1 %v9085_v48  ;;  %v9317_v48 = vor.u32 %v10698_v37, %v9316_v34  ;;  %v5516_v11 = vadd.f32 %v5515_v8, %v12194_v40  ;;  %v9300_v34 = vld [vmem:[%s11496_s12 + $0x1230] sm:$0xf]  ;;  %v10694_v37 = vld [vmem:[%s11496_s12 + $0x1234] sm:$0xf0]  ;;  %v10724_v8 = vld [vmem:[%s11496_s12 + $0x1324] sm:$0xf0] }
 0x173   : > { %5747 = vmatpush.bf16.msra.mxu2 %v9149_v49  ;;  %v9508_v49 = vld [vmem:[%s11496_s12 + $0x13d0] sm:$0xf]  ;;  %v10726_v40 = vld [vmem:[%s11496_s12 + $0x1334] sm:$0xf0] }
 0x174   : > { %5760 = vmatpush.bf16.msra.mxu3 %v9213_v61  ;;  %5722 = vmatmul.bf16.vlgmr.msra.gmra.mxu0 %v12228_v18  ;;  %v9372_v61 = vld [vmem:[%s11496_s12 + $0x12c0] sm:$0xf]  ;;  %v9780_v18 = vld [vmem:[%s11496_s12 + $0x15f0] sm:$0xf] }
 0x175   : > { %5766 = vmatpush.bf16.msrb.mxu0 %v9333_v28  ;;  %5735 = vmatmul.bf16.vlgmr.msra.gmra.mxu1 %v12232_v24  ;;  %v10746_v28 = vld [vmem:[%s11496_s12 + $0x13d4] sm:$0xf0]  ;;  %v9644_v24 = vld [vmem:[%s11496_s12 + $0x14e0] sm:$0xf] }
 0x176   : > { %5779 = vmatpush.bf16.msrb.mxu1 %v9397_v53  ;;  %5748 = vmatmul.bf16.vlgmr.msra.gmra.mxu2 %v12230_v19  ;;  %v9381_v53 = vor.u32 %v10714_v42, %v9380_v41  ;;  %v9509_v6 = vor.u32 %v10746_v28, %v9508_v49  ;;  %v9364_v41 = vld [vmem:[%s11496_s12 + $0x12b0] sm:$0xf]  ;;  %v10742_v28 = vld [vmem:[%s11496_s12 + $0x13b4] sm:$0xf0] }
 0x177   : > { %5792 = vmatpush.bf16.msrb.mxu2 %v9461_v58  ;;  %5761 = vmatmul.bf16.vlgmr.msra.gmra.mxu3 %v12234_v25  ;;  %v10696_v58 = vld [vmem:[%s11496_s12 + $0x1244] sm:$0xf0]  ;;  %v9492_v49 = vld [vmem:[%s11496_s12 + $0x13b0] sm:$0xf] }
 0x178   : > { %5805 = vmatpush.bf16.msrb.mxu3 %v9525_v20  ;;  %v9309_v20 = vor.u32 %v10696_v58, %v9308_v57  ;;  %v9292_v58 = vld [vmem:[%s11496_s12 + $0x1220] sm:$0xf]  ;;  %v10736_v25 = vld [vmem:[%s11496_s12 + $0x1384] sm:$0xf0] }
 0x179   : > { %5767 = vmatpush.bf16.msrb.mxu0 %v9325_v26  ;;  %v5528_v26 = vpop.f32.mrf.mxu1  ;;  %v5541_v57 = vpop.f32.mrf.mxu2 }
 0x17a   : > { %5780 = vmatpush.bf16.msrb.mxu1 %v9389_v31  ;;  %v9373_v31 = vor.u32 %v10712_v7, %v9372_v61  ;;  %v5529_v42 = vadd.f32 %v5528_v26, %v5516_v11  ;;  %v10692_v61 = vld [vmem:[%s11496_s12 + $0x1224] sm:$0xf0]  ;;  %v9356_v7 = vld [vmem:[%s11496_s12 + $0x12a0] sm:$0xf]  ;;  %v9493_v11 = vor.u32 %v10742_v28, %v9492_v49  ;;  %v5517_v26 = vpop.f32.mrf.mxu0  ;;  %v9476_v49 = vld [vmem:[%s11496_s12 + $0x1390] sm:$0xf] }
 0x17b   : > { %5793 = vmatpush.bf16.msrb.mxu2 %v9453_v33  ;;  %v9437_v33 = vor.u32 %v10728_v5, %v9436_v4  ;;  %v10708_v5 = vld [vmem:[%s11496_s12 + $0x12a4] sm:$0xf0]  ;;  %v9652_v26 = vld [vmem:[%s11496_s12 + $0x14f0] sm:$0xf] }
 0x17c   : > { %5806 = vmatpush.bf16.msrb.mxu3 %v9517_v47  ;;  %v9501_v47 = vor.u32 %v10744_v30, %v9500_v29  ;;  %v5542_v4 = vadd.f32 %v5541_v57, %v5529_v42  ;;  %v9293_v30 = vor.u32 %v10692_v61, %v9292_v58  ;;  %v10738_v57 = vld [vmem:[%s11496_s12 + $0x1394] sm:$0xf0]  ;;  %v9340_v61 = vld [vmem:[%s11496_s12 + $0x1280] sm:$0xf] }
 0x17d   : > { %5768 = vmatpush.bf16.msrb.mxu0 %v9317_v48  ;;  %v9301_v48 = vor.u32 %v10694_v37, %v9300_v34  ;;  %v9284_v34 = vld [vmem:[%s11496_s12 + $0x1210] sm:$0xf] }
 0x17e   : > { %5781 = vmatpush.bf16.msrb.mxu1 %v9381_v53  ;;  %v9365_v53 = vor.u32 %v10710_v32, %v9364_v41  ;;  %v9357_v41 = vor.u32 %v10708_v5, %v9356_v7  ;;  %v10690_v32 = vld [vmem:[%s11496_s12 + $0x1214] sm:$0xf0]  ;;  %v10704_v7 = vld [vmem:[%s11496_s12 + $0x1284] sm:$0xf0] }
 0x17f   : > { %5794 = vmatpush.bf16.msrb.mxu2 %v9445_v55  ;;  %v9429_v55 = vor.u32 %v10726_v40, %v9428_v50  ;;  %v9348_v50 = vld [vmem:[%s11496_s12 + $0x1290] sm:$0xf]  ;;  %v10706_v40 = vld [vmem:[%s11496_s12 + $0x1294] sm:$0xf0]  ;;  %v9285_v58 = vor.u32 %v10690_v32, %v9284_v34  ;;  %v10720_v5 = vld [vmem:[%s11496_s12 + $0x1304] sm:$0xf0] }
 0x180   : > { %5807 = vmatpush.bf16.msrb.mxu3 %v9509_v6  ;;  %v9420_v6 = vld [vmem:[%s11496_s12 + $0x1320] sm:$0xf]  ;;  %v10782_v32 = vld [vmem:[%s11496_s12 + $0x14f4] sm:$0xf0] }
 0x181   : > { %5769 = vmatpush.bf16.msrb.mxu0 %v9309_v20  ;;  %v5554_v20 = vpop.f32.mrf.mxu3  ;;  %v5530_v37 = vpop.f32.mrf.mxu1  ;;  %v9421_v42 = vor.u32 %v10724_v8, %v9420_v6  ;;  %v9349_v6 = vor.u32 %v10706_v40, %v9348_v50  ;;  %v12298_v34 = vld [vmem:[#allocation1 + $0x2d] sm:$0xff]  ;;  %v9716_v50 = vld [vmem:[%s11496_s12 + $0x1570] sm:$0xf]  ;;  %v9653_v19 = vor.u32 %v10782_v32, %v9652_v26 }
 0x182   : > { %5782 = vmatpush.bf16.msrb.mxu1 %v9373_v31  ;;  %v12273_v29 = vadd.f32 %v5554_v20, %v5542_v4  ;;  %v9484_v31 = vld [vmem:[%s11496_s12 + $0x13a0] sm:$0xf]  ;;  %v10766_v20 = vld [vmem:[%s11496_s12 + $0x1474] sm:$0xf0]  ;;  %13411 = vst [vmem:[#allocation27_spill] sm:$0xff] %v12298_v34 }
 0x183   : > { %5795 = vmatpush.bf16.msrb.mxu2 %v9437_v33  ;;  %v10740_v33 = vld [vmem:[%s11496_s12 + $0x13a4] sm:$0xf0]  ;;  %v9404_v4 = vld [vmem:[%s11496_s12 + $0x1300] sm:$0xf]  ;;  %v12300_v37 = vld [vmem:[#allocation1 + $0x3f] sm:$0xff] }
 0x184   : > { %5808 = vmatpush.bf16.msrb.mxu3 %v9501_v47  ;;  %v9412_v47 = vld [vmem:[%s11496_s12 + $0x1310] sm:$0xf]  ;;  %v9485_v28 = vor.u32 %v10740_v33, %v9484_v31  ;;  %v12294_v31 = vld [vmem:[#allocation1 + $0x24] sm:$0xff]  ;;  %v5543_v33 = vpop.f32.mrf.mxu2  ;;  %13412 = vst [vmem:[#allocation28_spill] sm:$0xff] %v12300_v37 }
 0x185   : > { %5770 = vmatpush.bf16.msrb.mxu0 %v9301_v48  ;;  %v10722_v48 = vld [vmem:[%s11496_s12 + $0x1314] sm:$0xf0]  ;;  %13409 = vst [vmem:[#allocation25_spill] sm:$0xff] %v12294_v31  ;;  %v9468_v33 = vld [vmem:[%s11496_s12 + $0x1380] sm:$0xf] }
 0x186   : > { %5783 = vmatpush.bf16.msrb.mxu1 %v9365_v53  ;;  %v9276_v53 = vld [vmem:[%s11496_s12 + $0x1200] sm:$0xf]  ;;  %v9413_v8 = vor.u32 %v10722_v48, %v9412_v47  ;;  %v10798_v48 = vld [vmem:[%s11496_s12 + $0x1574] sm:$0xf0]  ;;  %v9572_v26 = vld [vmem:[%s11496_s12 + $0x1450] sm:$0xf] }
 0x187   : > { %5796 = vmatpush.bf16.msrb.mxu2 %v9429_v55  ;;  %v10688_v55 = vld [vmem:[%s11496_s12 + $0x1204] sm:$0xf0]  ;;  %v9636_v32 = vld [vmem:[%s11496_s12 + $0x14d0] sm:$0xf] }
 0x188   : > { %5809 = vmatpush.bf16.msrb.mxu3 %v9493_v11  ;;  %v9588_v11 = vld [vmem:[%s11496_s12 + $0x1470] sm:$0xf]  ;;  %v9277_v47 = vor.u32 %v10688_v55, %v9276_v53  ;;  %v9469_v53 = vor.u32 %v10736_v25, %v9468_v33  ;;  %v9580_v55 = vld [vmem:[%s11496_s12 + $0x1460] sm:$0xf]  ;;  %v10810_v33 = vld [vmem:[%s11496_s12 + $0x15d4] sm:$0xf0] }
 0x189   : > { %5771 = vmatpush.bf16.msrb.mxu0 %v9293_v30  ;;  %v12296_v30 = vld [vmem:[#allocation1 + $0x36] sm:$0xff]  ;;  %v5556_v40 = vpop.f32.mrf.mxu3  ;;  %v9772_v25 = vld [vmem:[%s11496_s12 + $0x15e0] sm:$0xf] }
 0x18a   : > { %5784 = vmatpush.bf16.msrb.mxu1 %v9357_v41  ;;  %13410 = vst [vmem:[#allocation26_spill] sm:$0xff] %v12296_v30  ;;  %v480_v41 = vld [vmem:[%s11522_s18 + $0x28] sm:$0xff]  ;;  %v10814_v40 = vld [vmem:[%s11496_s12 + $0x15f4] sm:$0xf0] }
 0x18b   : > { %5797 = vmatpush.bf16.msrb.mxu2 %v9421_v42  ;;  %v9477_v42 = vor.u32 %v10738_v57, %v9476_v49  ;;  %1317 = vst [vmem:[#allocation1] ss:$9 sm:$0xff] %v480_v41  ;;  %v9341_v49 = vor.u32 %v10704_v7, %v9340_v61  ;;  %v9589_v57 = vor.u32 %v10766_v20, %v9588_v11  ;;  %v10764_v41 = vld [vmem:[%s11496_s12 + $0x1464] sm:$0xf0] }
 0x18c   : > { %5810 = vmatpush.bf16.msrb.mxu3 %v9485_v28  ;;  %v9405_v28 = vor.u32 %v10720_v5, %v9404_v4  ;;  %v10796_v61 = vld [vmem:[%s11496_s12 + $0x1564] sm:$0xf0]  ;;  %v9781_v7 = vor.u32 %v10814_v40, %v9780_v18  ;;  %v9581_v4 = vor.u32 %v10764_v41, %v9580_v55  ;;  %v10778_v18 = vld [vmem:[%s11496_s12 + $0x14d4] sm:$0xf0]  ;;  %v9692_v55 = vld [vmem:[%s11496_s12 + $0x1540] sm:$0xf] }
 0x18d   : > { %5772 = vmatpush.bf16.msrb.mxu0 %v9285_v58  ;;  %v9717_v58 = vor.u32 %v10798_v48, %v9716_v50  ;;  %v10812_v5 = vld [vmem:[%s11496_s12 + $0x15e4] sm:$0xf0]  ;;  %v10794_v50 = vld [vmem:[%s11496_s12 + $0x1554] sm:$0xf0]  ;;  %v9764_v48 = vld [vmem:[%s11496_s12 + $0x15d0] sm:$0xf] }
 0x18e   : > { %5785 = vmatpush.bf16.msrb.mxu1 %v9349_v6  ;;  %v10780_v6 = vld [vmem:[%s11496_s12 + $0x14e4] sm:$0xf0] }
 0x18f   : > { %5798 = vmatpush.bf16.msrb.mxu2 %v9413_v8  ;;  %v9708_v8 = vld [vmem:[%s11496_s12 + $0x1560] sm:$0xf]  ;;  %v9645_v11 = vor.u32 %v10780_v6, %v9644_v24  ;;  %v9773_v24 = vor.u32 %v10812_v5, %v9772_v25  ;;  %v10760_v40 = vld [vmem:[%s11496_s12 + $0x1444] sm:$0xf0]  ;;  %v9765_v6 = vor.u32 %v10810_v33, %v9764_v48  ;;  %v9748_v48 = vld [vmem:[%s11496_s12 + $0x15b0] sm:$0xf] }
 0x190   : > { %5811 = vmatpush.bf16.msrb.mxu3 %v9477_v42  ;;  %v9709_v20 = vor.u32 %v10796_v61, %v9708_v8  ;;  %v10762_v42 = vld [vmem:[%s11496_s12 + $0x1454] sm:$0xf0]  ;;  %v10792_v41 = vld [vmem:[%s11496_s12 + $0x1544] sm:$0xf0]  ;;  %v9756_v25 = vld [vmem:[%s11496_s12 + $0x15c0] sm:$0xf] }
 0x191   : > { %5773 = vmatpush.bf16.msrb.mxu0 %v9277_v47  ;;  %v9573_v47 = vor.u32 %v10762_v42, %v9572_v26  ;;  %v5567_v8 = vpop.f32.mrf.mxu0  ;;  %v10808_v5 = vld [vmem:[%s11496_s12 + $0x15c4] sm:$0xf0]  ;;  %v9556_v26 = vld [vmem:[%s11496_s12 + $0x1430] sm:$0xf]  ;;  %v10758_v42 = vld [vmem:[%s11496_s12 + $0x1434] sm:$0xf0] }
 0x192   : > { %5786 = vmatpush.bf16.msrb.mxu1 %v9341_v49  ;;  %v9637_v49 = vor.u32 %v10778_v18, %v9636_v32  ;;  %v5568_v61 = vadd.f32 %v5567_v8, %v12273_v29  ;;  %v9620_v32 = vld [vmem:[%s11496_s12 + $0x14b0] sm:$0xf]  ;;  %v10790_v29 = vld [vmem:[%s11496_s12 + $0x1534] sm:$0xf0]  ;;  %v10788_v8 = vld [vmem:[%s11496_s12 + $0x1524] sm:$0xf0] }
 0x193   : > { %5799 = vmatpush.bf16.msrb.mxu2 %v9405_v28  ;;  %v10806_v33 = vld [vmem:[%s11496_s12 + $0x15b4] sm:$0xf0] }
 0x194   : > { %5812 = vmatpush.bf16.msrb.mxu3 %v9469_v53  ;;  %5774 = vmatmul.bf16.vlgmr.msrb.gmra.mxu0 %v12294_v31  ;;  %v10776_v53 = vld [vmem:[%s11496_s12 + $0x14c4] sm:$0xf0]  ;;  %v10157_v31 = vld [vmem:[%s11496_s12 + $0x174] sm:$0xf] }
 0x195   : > { %5818 = vmatpush.bf16.msra.mxu0 %v9589_v57  ;;  %5787 = vmatmul.bf16.vlgmr.msrb.gmra.mxu1 %v12298_v34  ;;  %v9564_v57 = vld [vmem:[%s11496_s12 + $0x1440] sm:$0xf]  ;;  %v10123_v34 = vld [vmem:[%s11496_s12 + $0x64] sm:$0xf] }
 0x196   : > { %5831 = vmatpush.bf16.msra.mxu1 %v9653_v19  ;;  %5800 = vmatmul.bf16.vlgmr.msrb.gmra.mxu2 %v12296_v30  ;;  %v9700_v19 = vld [vmem:[%s11496_s12 + $0x1550] sm:$0xf]  ;;  %v10860_v30 = vld [vmem:[%s11496_s12 + $0x1764] sm:$0xf0] }
 0x197   : > { %5844 = vmatpush.bf16.msra.mxu2 %v9717_v58  ;;  %5813 = vmatmul.bf16.vlgmr.msrb.gmra.mxu3 %v12300_v37  ;;  %v9701_v28 = vor.u32 %v10794_v50, %v9700_v19  ;;  %v9628_v58 = vld [vmem:[%s11496_s12 + $0x14c0] sm:$0xf]  ;;  %v10774_v19 = vld [vmem:[%s11496_s12 + $0x14b4] sm:$0xf0]  ;;  %v9684_v50 = vld [vmem:[%s11496_s12 + $0x1530] sm:$0xf] }
 0x198   : > { %5857 = vmatpush.bf16.msra.mxu3 %v9781_v7  ;;  %v9565_v7 = vor.u32 %v10760_v40, %v9564_v57  ;;  %v9548_v40 = vld [vmem:[%s11496_s12 + $0x1420] sm:$0xf]  ;;  %v10844_v37 = vld [vmem:[%s11496_s12 + $0x16e4] sm:$0xf0] }
 0x199   : > { %5819 = vmatpush.bf16.msra.mxu0 %v9581_v4  ;;  %v5580_v4 = vpop.f32.mrf.mxu1  ;;  %v5593_v57 = vpop.f32.mrf.mxu2 }
 0x19a   : > { %5832 = vmatpush.bf16.msra.mxu1 %v9645_v11  ;;  %v9629_v11 = vor.u32 %v10776_v53, %v9628_v58  ;;  %v5581_v18 = vadd.f32 %v5580_v4, %v5568_v61  ;;  %v10756_v58 = vld [vmem:[%s11496_s12 + $0x1424] sm:$0xf0]  ;;  %v9612_v53 = vld [vmem:[%s11496_s12 + $0x14a0] sm:$0xf]  ;;  %v9749_v61 = vor.u32 %v10806_v33, %v9748_v48  ;;  %v5569_v4 = vpop.f32.mrf.mxu0  ;;  %v9732_v33 = vld [vmem:[%s11496_s12 + $0x1590] sm:$0xf] }
 0x19b   : > { %5845 = vmatpush.bf16.msra.mxu2 %v9709_v20  ;;  %v9693_v20 = vor.u32 %v10792_v41, %v9692_v55  ;;  %v10772_v41 = vld [vmem:[%s11496_s12 + $0x14a4] sm:$0xf0]  ;;  %v10830_v4 = vld [vmem:[%s11496_s12 + $0x1674] sm:$0xf0] }
 0x19c   : > { %5858 = vmatpush.bf16.msra.mxu3 %v9773_v24  ;;  %v9757_v24 = vor.u32 %v10808_v5, %v9756_v25  ;;  %v5594_v55 = vadd.f32 %v5593_v57, %v5581_v18  ;;  %v9549_v5 = vor.u32 %v10756_v58, %v9548_v40  ;;  %v9540_v18 = vld [vmem:[%s11496_s12 + $0x1410] sm:$0xf]  ;;  %v9532_v57 = vld [vmem:[%s11496_s12 + $0x1400] sm:$0xf]  ;;  %v10752_v40 = vld [vmem:[%s11496_s12 + $0x1404] sm:$0xf0] }
 0x19d   : > { %5820 = vmatpush.bf16.msra.mxu0 %v9573_v47  ;;  %v9557_v47 = vor.u32 %v10758_v42, %v9556_v26  ;;  %v9613_v42 = vor.u32 %v10772_v41, %v9612_v53  ;;  %v10768_v41 = vld [vmem:[%s11496_s12 + $0x1484] sm:$0xf0] }
 0x19e   : > { %5833 = vmatpush.bf16.msra.mxu1 %v9637_v49  ;;  %v9621_v49 = vor.u32 %v10774_v19, %v9620_v32  ;;  %v10754_v19 = vld [vmem:[%s11496_s12 + $0x1414] sm:$0xf0] }
 0x19f   : > { %5846 = vmatpush.bf16.msra.mxu2 %v9701_v28  ;;  %v9685_v28 = vor.u32 %v10790_v29, %v9684_v50  ;;  %v9604_v50 = vld [vmem:[%s11496_s12 + $0x1490] sm:$0xf]  ;;  %v10770_v29 = vld [vmem:[%s11496_s12 + $0x1494] sm:$0xf0] }
 0x1a0   : > { %5859 = vmatpush.bf16.msra.mxu3 %v9765_v6  ;;  %v9676_v6 = vld [vmem:[%s11496_s12 + $0x1520] sm:$0xf]  ;;  %v9605_v58 = vor.u32 %v10770_v29, %v9604_v50  ;;  %v10800_v50 = vld [vmem:[%s11496_s12 + $0x1584] sm:$0xf0] }
 0x1a1   : > { %5821 = vmatpush.bf16.msra.mxu0 %v9565_v7  ;;  %v5606_v7 = vpop.f32.mrf.mxu3  ;;  %v5582_v26 = vpop.f32.mrf.mxu1  ;;  %v9677_v32 = vor.u32 %v10788_v8, %v9676_v6  ;;  %v9660_v6 = vld [vmem:[%s11496_s12 + $0x1500] sm:$0xf] }
 0x1a2   : > { %5834 = vmatpush.bf16.msra.mxu1 %v9629_v11  ;;  %v12353_v25 = vadd.f32 %v5606_v7, %v5594_v55  ;;  %v9740_v11 = vld [vmem:[%s11496_s12 + $0x15a0] sm:$0xf]  ;;  %v5595_v8 = vpop.f32.mrf.mxu2  ;;  %v9844_v7 = vld [vmem:[%s11496_s12 + $0x1670] sm:$0xf] }
 0x1a3   : > { %5847 = vmatpush.bf16.msra.mxu2 %v9693_v20  ;;  %v10804_v20 = vld [vmem:[%s11496_s12 + $0x15a4] sm:$0xf0]  ;;  %v9596_v55 = vld [vmem:[%s11496_s12 + $0x1480] sm:$0xf]  ;;  %v9972_v26 = vld [vmem:[%s11496_s12 + $0x1770] sm:$0xf] }
 0x1a4   : > { %5860 = vmatpush.bf16.msra.mxu3 %v9757_v24  ;;  %v9668_v24 = vld [vmem:[%s11496_s12 + $0x1510] sm:$0xf]  ;;  %v9741_v48 = vor.u32 %v10804_v20, %v9740_v11  ;;  %v10846_v20 = vld [vmem:[%s11496_s12 + $0x16f4] sm:$0xf0]  ;;  %v9597_v29 = vor.u32 %v10768_v41, %v9596_v55  ;;  %v12389_v55 = vld [vmem:[#allocation1 + $0x12] sm:$0xff] }
 0x1a5   : > { %5822 = vmatpush.bf16.msra.mxu0 %v9557_v47  ;;  %v10786_v47 = vld [vmem:[%s11496_s12 + $0x1514] sm:$0xf0]  ;;  %v9908_v11 = vld [vmem:[%s11496_s12 + $0x16f0] sm:$0xf]  ;;  %13414 = vst [vmem:[#allocation30_spill] sm:$0xff] %v12389_v55 }
 0x1a6   : > { %5835 = vmatpush.bf16.msra.mxu1 %v9621_v49  ;;  %v9541_v49 = vor.u32 %v10754_v19, %v9540_v18  ;;  %v9669_v53 = vor.u32 %v10786_v47, %v9668_v24  ;;  %v10862_v18 = vld [vmem:[%s11496_s12 + $0x1774] sm:$0xf0]  ;;  %v9724_v19 = vld [vmem:[%s11496_s12 + $0x1580] sm:$0xf]  ;;  %v9845_v47 = vor.u32 %v10830_v4, %v9844_v7 }
 0x1a7   : > { %5848 = vmatpush.bf16.msra.mxu2 %v9685_v28  ;;  %v10802_v28 = vld [vmem:[%s11496_s12 + $0x1594] sm:$0xf0]  ;;  %v9725_v8 = vor.u32 %v10800_v50, %v9724_v19  ;;  %v10028_v4 = vld [vmem:[%s11496_s12 + $0x17e0] sm:$0xf]  ;;  %v9956_v50 = vld [vmem:[%s11496_s12 + $0x1750] sm:$0xf] }
 0x1a8   : > { %5861 = vmatpush.bf16.msra.mxu3 %v9749_v61  ;;  %v10784_v61 = vld [vmem:[%s11496_s12 + $0x1504] sm:$0xf0]  ;;  %v10842_v19 = vld [vmem:[%s11496_s12 + $0x16d4] sm:$0xf0] }
 0x1a9   : > { %5823 = vmatpush.bf16.msra.mxu0 %v9549_v5  ;;  %v9733_v5 = vor.u32 %v10802_v28, %v9732_v33  ;;  %v9661_v24 = vor.u32 %v10784_v61, %v9660_v6  ;;  %v10036_v33 = vld [vmem:[%s11496_s12 + $0x17f0] sm:$0xf]  ;;  %v10878_v28 = vld [vmem:[%s11496_s12 + $0x17f4] sm:$0xf0]  ;;  %v12391_v6 = vld [vmem:[#allocation1 + $0x9] sm:$0xff] }
 0x1aa   : > { %5836 = vmatpush.bf16.msra.mxu1 %v9613_v42  ;;  %v5608_v42 = vpop.f32.mrf.mxu3  ;;  %v10037_v41 = vor.u32 %v10878_v28, %v10036_v33  ;;  %13415 = vst [vmem:[#allocation31_spill] sm:$0xff] %v12391_v6  ;;  %v12393_v61 = vld [vmem:[#allocation1 + $0x1b] sm:$0xff]  ;;  %v9820_v28 = vld [vmem:[%s11496_s12 + $0x1640] sm:$0xf] }
 0x1ab   : > { %5849 = vmatpush.bf16.msra.mxu2 %v9677_v32  ;;  %v9533_v32 = vor.u32 %v10752_v40, %v9532_v57  ;;  %v9836_v57 = vld [vmem:[%s11496_s12 + $0x1660] sm:$0xf]  ;;  %v10828_v40 = vld [vmem:[%s11496_s12 + $0x1664] sm:$0xf0]  ;;  %13416 = vst [vmem:[#allocation32_spill] sm:$0xff] %v12393_v61 }
 0x1ac   : > { %5862 = vmatpush.bf16.msra.mxu3 %v9741_v48  ;;  %v9909_v48 = vor.u32 %v10846_v20, %v9908_v11  ;;  %v9900_v42 = vld [vmem:[%s11496_s12 + $0x16e0] sm:$0xf]  ;;  %v9837_v7 = vor.u32 %v10828_v40, %v9836_v57  ;;  %v10840_v57 = vld [vmem:[%s11496_s12 + $0x16c4] sm:$0xf0] }
 0x1ad   : > { %5824 = vmatpush.bf16.msra.mxu0 %v9541_v49  ;;  %v9973_v49 = vor.u32 %v10862_v18, %v9972_v26  ;;  %v9901_v11 = vor.u32 %v10844_v37, %v9900_v42  ;;  %v9828_v26 = vld [vmem:[%s11496_s12 + $0x1650] sm:$0xf]  ;;  %v9948_v40 = vld [vmem:[%s11496_s12 + $0x1740] sm:$0xf]  ;;  %v10856_v42 = vld [vmem:[%s11496_s12 + $0x1744] sm:$0xf0] }
 0x1ae   : > { %5837 = vmatpush.bf16.msra.mxu1 %v9605_v58  ;;  %v9964_v58 = vld [vmem:[%s11496_s12 + $0x1760] sm:$0xf]  ;;  %v9892_v18 = vld [vmem:[%s11496_s12 + $0x16d0] sm:$0xf] }
 0x1af   : > { %5850 = vmatpush.bf16.msra.mxu2 %v9669_v53  ;;  %v12387_v53 = vld [vmem:[#allocation1] sm:$0xff]  ;;  %v9965_v20 = vor.u32 %v10860_v30, %v9964_v58 }
 0x1b0   : > { %5863 = vmatpush.bf16.msra.mxu3 %v9733_v5  ;;  %13413 = vst [vmem:[#allocation29_spill] sm:$0xff] %v12387_v53  ;;  %v10876_v5 = vld [vmem:[%s11496_s12 + $0x17e4] sm:$0xf0] }
 0x1b1   : > { %5825 = vmatpush.bf16.msra.mxu0 %v9533_v32  ;;  %v10826_v32 = vld [vmem:[%s11496_s12 + $0x1654] sm:$0xf0]  ;;  %v10029_v30 = vor.u32 %v10876_v5, %v10028_v4 }
 0x1b2   : > { %5838 = vmatpush.bf16.msra.mxu1 %v9597_v29  ;;  %v10858_v29 = vld [vmem:[%s11496_s12 + $0x1754] sm:$0xf0]  ;;  %v9829_v37 = vor.u32 %v10826_v32, %v9828_v26  ;;  %v5632_v5 = vpop.f32.mrf.mxu1  ;;  %v9949_v32 = vor.u32 %v10856_v42, %v9948_v40  ;;  %v10820_v40 = vld [vmem:[%s11496_s12 + $0x1624] sm:$0xf0]  ;;  %v9868_v42 = vld [vmem:[%s11496_s12 + $0x16a0] sm:$0xf] }
 0x1b3   : > { %5851 = vmatpush.bf16.msra.mxu2 %v9661_v24  ;;  %v10020_v24 = vld [vmem:[%s11496_s12 + $0x17d0] sm:$0xf]  ;;  %v9957_v33 = vor.u32 %v10858_v29, %v9956_v50 }
 0x1b4   : > { %5864 = vmatpush.bf16.msra.mxu3 %v9725_v8  ;;  %5826 = vmatmul.bf16.vlgmr.msra.gmra.mxu0 %v12387_v53  ;;  %v9884_v8 = vld [vmem:[%s11496_s12 + $0x16c0] sm:$0xf]  ;;  %v9876_v50 = vld [vmem:[%s11496_s12 + $0x16b0] sm:$0xf]  ;;  %v10864_v53 = vld [vmem:[%s11496_s12 + $0x1784] sm:$0xf0] }
 0x1b5   : > { %5870 = vmatpush.bf16.msrb.mxu0 %v9845_v47  ;;  %5839 = vmatmul.bf16.vlgmr.msra.gmra.mxu1 %v12391_v6  ;;  %v10874_v47 = vld [vmem:[%s11496_s12 + $0x17d4] sm:$0xf0]  ;;  %v9885_v26 = vor.u32 %v10840_v57, %v9884_v8  ;;  %v9804_v57 = vld [vmem:[%s11496_s12 + $0x1620] sm:$0xf] }
 0x1b6   : > { %5883 = vmatpush.bf16.msrb.mxu1 %v9909_v48  ;;  %5852 = vmatmul.bf16.vlgmr.msra.gmra.mxu2 %v12389_v55  ;;  %v9893_v48 = vor.u32 %v10842_v19, %v9892_v18  ;;  %v10021_v58 = vor.u32 %v10874_v47, %v10020_v24  ;;  %v9812_v18 = vld [vmem:[%s11496_s12 + $0x1630] sm:$0xf]  ;;  %v10822_v19 = vld [vmem:[%s11496_s12 + $0x1634] sm:$0xf0]  ;;  %v7094_v55 = vld [vmem:[%s11496_s12 + $0xf8] sm:$0xf0] }
 0x1b7   : > { %5896 = vmatpush.bf16.msrb.mxu2 %v9973_v49  ;;  %5865 = vmatmul.bf16.vlgmr.msra.gmra.mxu3 %v12393_v61  ;;  %v10824_v49 = vld [vmem:[%s11496_s12 + $0x1644] sm:$0xf0]  ;;  %v9813_v47 = vor.u32 %v10822_v19, %v9812_v18  ;;  %v9996_v18 = vld [vmem:[%s11496_s12 + $0x17a0] sm:$0xf]  ;;  %v12459_v61 = vld [vmem:[#allocation1 + $0x3f] sm:$0xff] }
 0x1b8   : > { %5909 = vmatpush.bf16.msrb.mxu3 %v10037_v41  ;;  %v5619_v41 = vpop.f32.mrf.mxu0  ;;  %v9821_v4 = vor.u32 %v10824_v49, %v9820_v28  ;;  %v10868_v19 = vld [vmem:[%s11496_s12 + $0x17a4] sm:$0xf0]  ;;  %13417 = vst [vmem:[#allocation33_spill] sm:$0xff] %v12459_v61 }
 0x1b9   : > { %5871 = vmatpush.bf16.msrb.mxu0 %v9837_v7  ;;  %v5620_v7 = vadd.f32 %v5619_v41, %v12353_v25  ;;  %v10854_v25 = vld [vmem:[%s11496_s12 + $0x1734] sm:$0xf0]  ;;  %v5645_v8 = vpop.f32.mrf.mxu2 }
 0x1ba   : > { %5884 = vmatpush.bf16.msrb.mxu1 %v9901_v11  ;;  %v10012_v11 = vld [vmem:[%s11496_s12 + $0x17c0] sm:$0xf] }
 0x1bb   : > { %5897 = vmatpush.bf16.msrb.mxu2 %v9965_v20  ;;  %v10872_v20 = vld [vmem:[%s11496_s12 + $0x17c4] sm:$0xf0]  ;;  %v5633_v29 = vadd.f32 %v5632_v5, %v5620_v7  ;;  %v9932_v7 = vld [vmem:[%s11496_s12 + $0x1720] sm:$0xf] }
 0x1bc   : > { %5910 = vmatpush.bf16.msrb.mxu3 %v10029_v30  ;;  %v10838_v30 = vld [vmem:[%s11496_s12 + $0x16b4] sm:$0xf0]  ;;  %v10013_v24 = vor.u32 %v10872_v20, %v10012_v11  ;;  %v10852_v5 = vld [vmem:[%s11496_s12 + $0x1724] sm:$0xf0]  ;;  %v5658_v11 = vpop.f32.mrf.mxu3 }
 0x1bd   : > { %5872 = vmatpush.bf16.msrb.mxu0 %v9829_v37  ;;  %v9940_v37 = vld [vmem:[%s11496_s12 + $0x1730] sm:$0xf]  ;;  %v9877_v28 = vor.u32 %v10838_v30, %v9876_v50  ;;  %v5646_v41 = vadd.f32 %v5645_v8, %v5633_v29  ;;  %v5634_v29 = vpop.f32.mrf.mxu1 }
 0x1be   : > { %5885 = vmatpush.bf16.msrb.mxu1 %v9893_v48  ;;  %v10004_v48 = vld [vmem:[%s11496_s12 + $0x17b0] sm:$0xf]  ;;  %v9941_v49 = vor.u32 %v10854_v25, %v9940_v37  ;;  %v9933_v37 = vor.u32 %v10852_v5, %v9932_v7  ;;  %v10818_v25 = vld [vmem:[%s11496_s12 + $0x1614] sm:$0xf0]  ;;  %v9916_v7 = vld [vmem:[%s11496_s12 + $0x1700] sm:$0xf] }
 0x1bf   : > { %5898 = vmatpush.bf16.msrb.mxu2 %v9957_v33  ;;  %v10870_v33 = vld [vmem:[%s11496_s12 + $0x17b4] sm:$0xf0]  ;;  %v9796_v50 = vld [vmem:[%s11496_s12 + $0x1610] sm:$0xf]  ;;  %v10848_v5 = vld [vmem:[%s11496_s12 + $0x1704] sm:$0xf0] }
 0x1c0   : > { %5911 = vmatpush.bf16.msrb.mxu3 %v10021_v58  ;;  %v10836_v58 = vld [vmem:[%s11496_s12 + $0x16a4] sm:$0xf0]  ;;  %v5621_v20 = vpop.f32.mrf.mxu0  ;;  %v9988_v8 = vld [vmem:[%s11496_s12 + $0x1790] sm:$0xf]  ;;  %v10894_v29 = vld [vmem:[%s11496_s12 + $0x1874] sm:$0xf0] }
 0x1c1   : > { %5873 = vmatpush.bf16.msrb.mxu0 %v9821_v4  ;;  %v10005_v4 = vor.u32 %v10870_v33, %v10004_v48  ;;  %v9869_v30 = vor.u32 %v10836_v58, %v9868_v42  ;;  %v9924_v48 = vld [vmem:[%s11496_s12 + $0x1710] sm:$0xf]  ;;  %v10850_v33 = vld [vmem:[%s11496_s12 + $0x1714] sm:$0xf0]  ;;  %v9797_v42 = vor.u32 %v10818_v25, %v9796_v50  ;;  %v10832_v58 = vld [vmem:[%s11496_s12 + $0x1684] sm:$0xf0]  ;;  %v5647_v50 = vpop.f32.mrf.mxu2 }
 0x1c2   : > { %5886 = vmatpush.bf16.msrb.mxu1 %v9885_v26  ;;  %v12432_v26 = vadd.f32 %v5658_v11, %v5646_v41  ;;  %v9852_v41 = vld [vmem:[%s11496_s12 + $0x1680] sm:$0xf]  ;;  %v9925_v20 = vor.u32 %v10850_v33, %v9924_v48 }
 0x1c3   : > { %5899 = vmatpush.bf16.msrb.mxu2 %v9949_v32  ;;  %v9805_v32 = vor.u32 %v10820_v40, %v9804_v57  ;;  %v9997_v57 = vor.u32 %v10868_v19, %v9996_v18  ;;  %v10866_v40 = vld [vmem:[%s11496_s12 + $0x1794] sm:$0xf0]  ;;  %v10125_v18 = vld [vmem:[%s11496_s12 + $0x74] sm:$0xf]  ;;  %v12457_v25 = vld [vmem:[#allocation1 + $0x2d] sm:$0xff] }
 0x1c4   : > { %5912 = vmatpush.bf16.msrb.mxu3 %v10013_v24  ;;  %v9860_v24 = vld [vmem:[%s11496_s12 + $0x1690] sm:$0xf]  ;;  %v12453_v19 = vld [vmem:[#allocation1 + $0x24] sm:$0xff]  ;;  %v5660_v48 = vpop.f32.mrf.mxu3  ;;  %v9980_v50 = vld [vmem:[%s11496_s12 + $0x1780] sm:$0xf] }
 0x1c5   : > { %5874 = vmatpush.bf16.msrb.mxu0 %v9813_v47  ;;  %v10834_v47 = vld [vmem:[%s11496_s12 + $0x1694] sm:$0xf0]  ;;  %v7158_v48 = vld [vmem:[%s11496_s12 + $0x178] sm:$0xf0] }
 0x1c6   : > { %5887 = vmatpush.bf16.msrb.mxu1 %v9877_v28  ;;  %v9788_v28 = vld [vmem:[%s11496_s12 + $0x1600] sm:$0xf]  ;;  %v9861_v11 = vor.u32 %v10834_v47, %v9860_v24  ;;  %v7030_v24 = vld [vmem:[%s11496_s12 + $0x78] sm:$0xf0]  ;;  %v10141_v47 = vld [vmem:[%s11496_s12 + $0xf4] sm:$0xf] }
 0x1c7   : > { %5900 = vmatpush.bf16.msrb.mxu2 %v9941_v49  ;;  %v10816_v49 = vld [vmem:[%s11496_s12 + $0x1604] sm:$0xf0]  ;;  %v7033_v6 = vor.u32 %v10125_v18, %v7030_v24  ;;  %v10890_v18 = vld [vmem:[%s11496_s12 + $0x1854] sm:$0xf0]  ;;  %v7078_v24 = vld [vmem:[%s11496_s12 + $0xd8] sm:$0xf0] }
 0x1c8   : > { %5913 = vmatpush.bf16.msrb.mxu3 %v10005_v4  ;;  %v10100_v4 = vld [vmem:[%s11496_s12 + $0x1870] sm:$0xf]  ;;  %v9789_v33 = vor.u32 %v10816_v49, %v9788_v28  ;;  %v9981_v28 = vor.u32 %v10864_v53, %v9980_v50  ;;  %v10092_v49 = vld [vmem:[%s11496_s12 + $0x1860] sm:$0xf]  ;;  %v10155_v53 = vld [vmem:[%s11496_s12 + $0x164] sm:$0xf] }
 0x1c9   : > { %5875 = vmatpush.bf16.msrb.mxu0 %v9805_v32  ;;  %v12455_v32 = vld [vmem:[#allocation1 + $0x36] sm:$0xff]  ;;  %v7142_v50 = vld [vmem:[%s11496_s12 + $0x158] sm:$0xf0] }
 0x1ca   : > { %5888 = vmatpush.bf16.msrb.mxu1 %v9869_v30  ;;  %v481_v30 = vld [vmem:[%s11522_s18 + $0x30] sm:$0x1] }
 0x1cb   : > { %5901 = vmatpush.bf16.msrb.mxu2 %v9933_v37  ;;  %v9989_v37 = vor.u32 %v10866_v40, %v9988_v8  ;;  %1327 = vst [vmem:[#allocation1] ss:$9 sm:$0xff] %v481_v30  ;;  %v9853_v8 = vor.u32 %v10832_v58, %v9852_v41  ;;  %v10101_v40 = vor.u32 %v10894_v29, %v10100_v4  ;;  %v10892_v30 = vld [vmem:[%s11496_s12 + $0x1864] sm:$0xf0]  ;;  %v7086_v41 = vld [vmem:[%s11496_s12 + $0xe8] sm:$0xf0] }
 0x1cc   : > { %5914 = vmatpush.bf16.msrb.mxu3 %v9997_v57  ;;  %v9917_v57 = vor.u32 %v10848_v5, %v9916_v7  ;;  %v7161_v58 = vor.u32 %v10157_v31, %v7158_v48  ;;  %v7150_v7 = vld [vmem:[%s11496_s12 + $0x168] sm:$0xf0]  ;;  %v10084_v29 = vld [vmem:[%s11496_s12 + $0x1850] sm:$0xf]  ;;  %v7014_v31 = vld [vmem:[%s11496_s12 + $0x58] sm:$0xf0] }
 0x1cd   : > { %5876 = vmatpush.bf16.msrb.mxu0 %v9797_v42  ;;  %v7097_v42 = vor.u32 %v10141_v47, %v7094_v55  ;;  %v10093_v55 = vor.u32 %v10892_v30, %v10092_v49  ;;  %v10085_v47 = vor.u32 %v10890_v18, %v10084_v29  ;;  %v10888_v48 = vld [vmem:[%s11496_s12 + $0x1844] sm:$0xf0]  ;;  %v10135_v49 = vld [vmem:[%s11496_s12 + $0xc4] sm:$0xf]  ;;  %v7070_v30 = vld [vmem:[%s11496_s12 + $0xc8] sm:$0xf0] }
 0x1ce   : > { %5889 = vmatpush.bf16.msrb.mxu1 %v9861_v11  ;;  %v7022_v11 = vld [vmem:[%s11496_s12 + $0x68] sm:$0xf0]  ;;  %v10068_v29 = vld [vmem:[%s11496_s12 + $0x1830] sm:$0xf]  ;;  %v10886_v18 = vld [vmem:[%s11496_s12 + $0x1834] sm:$0xf0] }
 0x1cf   : > { %5902 = vmatpush.bf16.msrb.mxu2 %v9925_v20  ;;  %v10139_v20 = vld [vmem:[%s11496_s12 + $0xe4] sm:$0xf]  ;;  %v7025_v5 = vor.u32 %v10123_v34, %v7022_v11  ;;  %v7153_v34 = vor.u32 %v10155_v53, %v7150_v7  ;;  %v7134_v7 = vld [vmem:[%s11496_s12 + $0x148] sm:$0xf0] }
 0x1d0   : > { %5915 = vmatpush.bf16.msrb.mxu3 %v9989_v37  ;;  %v7089_v4 = vor.u32 %v10139_v20, %v7086_v41  ;;  %v10121_v37 = vld [vmem:[%s11496_s12 + $0x54] sm:$0xf]  ;;  %v10151_v53 = vld [vmem:[%s11496_s12 + $0x144] sm:$0xf] }
 0x1d1   : > { %5877 = vmatpush.bf16.msrb.mxu0 %v9789_v33  ;;  %v10153_v33 = vld [vmem:[%s11496_s12 + $0x154] sm:$0xf]  ;;  %v5671_v20 = vpop.f32.mrf.mxu0 }
 0x1d2   : > { %5890 = vmatpush.bf16.msrb.mxu1 %v9853_v8  ;;  %v7017_v8 = vor.u32 %v10121_v37, %v7014_v31  ;;  %v7145_v11 = vor.u32 %v10153_v33, %v7142_v50  ;;  %v5672_v41 = vadd.f32 %v5671_v20, %v12432_v26  ;;  %v10117_v37 = vld [vmem:[%s11496_s12 + $0x34] sm:$0xf]  ;;  %v7062_v26 = vld [vmem:[%s11496_s12 + $0xb8] sm:$0xf0]  ;;  %v7054_v20 = vld [vmem:[%s11496_s12 + $0xa8] sm:$0xf0] }
 0x1d3   : > { %5903 = vmatpush.bf16.msrb.mxu2 %v9917_v57  ;;  %v10149_v33 = vld [vmem:[%s11496_s12 + $0x134] sm:$0xf]  ;;  %v7126_v50 = vld [vmem:[%s11496_s12 + $0x138] sm:$0xf0] }
 0x1d4   : > { %5916 = vmatpush.bf16.msrb.mxu3 %v9981_v28  ;;  %5878 = vmatmul.bf16.vlgmr.msrb.gmra.mxu0 %v12453_v19  ;;  %v7006_v28 = vld [vmem:[%s11496_s12 + $0x48] sm:$0xf0] }
 0x1d5   : > { %5922 = vmatpush.bf16.msra.mxu0 %v10101_v40  ;;  %5891 = vmatmul.bf16.vlgmr.msrb.gmra.mxu1 %v12457_v25  ;;  %v10076_v40 = vld [vmem:[%s11496_s12 + $0x1840] sm:$0xf] }
 0x1d6   : > { %5935 = vmatpush.bf16.msra.mxu1 %v7033_v6  ;;  %5904 = vmatmul.bf16.vlgmr.msrb.gmra.mxu2 %v12455_v32  ;;  %v10137_v6 = vld [vmem:[%s11496_s12 + $0xd4] sm:$0xf] }
 0x1d7   : > { %5948 = vmatpush.bf16.msra.mxu2 %v7097_v42  ;;  %5917 = vmatmul.bf16.vlgmr.msrb.gmra.mxu3 %v12459_v61  ;;  %v7081_v57 = vor.u32 %v10137_v6, %v7078_v24  ;;  %v10119_v42 = vld [vmem:[%s11496_s12 + $0x44] sm:$0xf]  ;;  %v6998_v6 = vld [vmem:[%s11496_s12 + $0x38] sm:$0xf0]  ;;  %v10133_v24 = vld [vmem:[%s11496_s12 + $0xb4] sm:$0xf] }
 0x1d8   : > { %5961 = vmatpush.bf16.msra.mxu3 %v7161_v58  ;;  %v10077_v58 = vor.u32 %v10888_v48, %v10076_v40  ;;  %v10060_v48 = vld [vmem:[%s11496_s12 + $0x1820] sm:$0xf]  ;;  %v7278_v61 = vld [vmem:[%s11496_s12 + $0x268] sm:$0xf0] }
 0x1d9   : > { %5923 = vmatpush.bf16.msra.mxu0 %v10093_v55  ;;  %v5684_v55 = vpop.f32.mrf.mxu1  ;;  %v5697_v40 = vpop.f32.mrf.mxu2 }
 0x1da   : > { %5936 = vmatpush.bf16.msra.mxu1 %v7025_v5  ;;  %v7009_v5 = vor.u32 %v10119_v42, %v7006_v28  ;;  %v5685_v31 = vadd.f32 %v5684_v55, %v5672_v41  ;;  %v10884_v42 = vld [vmem:[%s11496_s12 + $0x1824] sm:$0xf0]  ;;  %v10115_v28 = vld [vmem:[%s11496_s12 + $0x24] sm:$0xf]  ;;  %v7129_v41 = vor.u32 %v10149_v33, %v7126_v50  ;;  %v5673_v55 = vpop.f32.mrf.mxu0  ;;  %v10145_v50 = vld [vmem:[%s11496_s12 + $0x114] sm:$0xf] }
 0x1db   : > { %5949 = vmatpush.bf16.msra.mxu2 %v7089_v4  ;;  %v7073_v4 = vor.u32 %v10135_v49, %v7070_v30  ;;  %v6990_v30 = vld [vmem:[%s11496_s12 + $0x28] sm:$0xf0]  ;;  %v7222_v55 = vld [vmem:[%s11496_s12 + $0x1f8] sm:$0xf0] }
 0x1dc   : > { %5962 = vmatpush.bf16.msra.mxu3 %v7153_v34  ;;  %v7137_v34 = vor.u32 %v10151_v53, %v7134_v7  ;;  %v5698_v49 = vadd.f32 %v5697_v40, %v5685_v31  ;;  %v10061_v7 = vor.u32 %v10884_v42, %v10060_v48  ;;  %v10052_v31 = vld [vmem:[%s11496_s12 + $0x1810] sm:$0xf]  ;;  %v10044_v40 = vld [vmem:[%s11496_s12 + $0x1800] sm:$0xf]  ;;  %v10880_v48 = vld [vmem:[%s11496_s12 + $0x1804] sm:$0xf0] }
 0x1dd   : > { %5924 = vmatpush.bf16.msra.mxu0 %v10085_v47  ;;  %v10069_v47 = vor.u32 %v10886_v18, %v10068_v29  ;;  %v6993_v18 = vor.u32 %v10115_v28, %v6990_v30  ;;  %v6974_v30 = vld [vmem:[%s11496_s12 + $0x8] sm:$0xf0] }
 0x1de   : > { %5937 = vmatpush.bf16.msra.mxu1 %v7017_v8  ;;  %v7001_v8 = vor.u32 %v10117_v37, %v6998_v6  ;;  %v10882_v6 = vld [vmem:[%s11496_s12 + $0x1814] sm:$0xf0] }
 0x1df   : > { %5950 = vmatpush.bf16.msra.mxu2 %v7081_v57  ;;  %v7065_v57 = vor.u32 %v10133_v24, %v7062_v26  ;;  %v10113_v24 = vld [vmem:[%s11496_s12 + $0x14] sm:$0xf]  ;;  %v6982_v26 = vld [vmem:[%s11496_s12 + $0x18] sm:$0xf0] }
 0x1e0   : > { %5963 = vmatpush.bf16.msra.mxu3 %v7145_v11  ;;  %v10131_v11 = vld [vmem:[%s11496_s12 + $0xa4] sm:$0xf]  ;;  %v6985_v42 = vor.u32 %v10113_v24, %v6982_v26  ;;  %v7102_v24 = vld [vmem:[%s11496_s12 + $0x108] sm:$0xf0] }
 0x1e1   : > { %5925 = vmatpush.bf16.msra.mxu0 %v10077_v58  ;;  %v5710_v58 = vpop.f32.mrf.mxu3  ;;  %v5686_v29 = vpop.f32.mrf.mxu1  ;;  %v7057_v37 = vor.u32 %v10131_v11, %v7054_v20  ;;  %v10127_v11 = vld [vmem:[%s11496_s12 + $0x84] sm:$0xf] }
 0x1e2   : > { %5938 = vmatpush.bf16.msra.mxu1 %v7009_v5  ;;  %v12512_v53 = vadd.f32 %v5710_v58, %v5698_v49  ;;  %v10147_v5 = vld [vmem:[%s11496_s12 + $0x124] sm:$0xf]  ;;  %v5699_v20 = vpop.f32.mrf.mxu2  ;;  %v10173_v58 = vld [vmem:[%s11496_s12 + $0x1f4] sm:$0xf] }
 0x1e3   : > { %5951 = vmatpush.bf16.msra.mxu2 %v7073_v4  ;;  %v7118_v4 = vld [vmem:[%s11496_s12 + $0x128] sm:$0xf0]  ;;  %v10111_v49 = vld [vmem:[%s11496_s12 + $0x4] sm:$0xf]  ;;  %v10205_v29 = vld [vmem:[%s11496_s12 + $0x2f4] sm:$0xf] }
 0x1e4   : > { %5964 = vmatpush.bf16.msra.mxu3 %v7137_v34  ;;  %v10129_v34 = vld [vmem:[%s11496_s12 + $0x94] sm:$0xf]  ;;  %v7121_v33 = vor.u32 %v10147_v5, %v7118_v4  ;;  %v7286_v4 = vld [vmem:[%s11496_s12 + $0x278] sm:$0xf0]  ;;  %v6977_v26 = vor.u32 %v10111_v49, %v6974_v30  ;;  %v7214_v20 = vld [vmem:[%s11496_s12 + $0x1e8] sm:$0xf0] }
 0x1e5   : > { %5926 = vmatpush.bf16.msra.mxu0 %v10069_v47  ;;  %v7046_v47 = vld [vmem:[%s11496_s12 + $0x98] sm:$0xf0]  ;;  %v10189_v5 = vld [vmem:[%s11496_s12 + $0x274] sm:$0xf]  ;;  %v7342_v49 = vld [vmem:[%s11496_s12 + $0x2e8] sm:$0xf0] }
 0x1e6   : > { %5939 = vmatpush.bf16.msra.mxu1 %v7001_v8  ;;  %v10053_v8 = vor.u32 %v10882_v6, %v10052_v31  ;;  %v7049_v28 = vor.u32 %v10129_v34, %v7046_v47  ;;  %v7350_v31 = vld [vmem:[%s11496_s12 + $0x2f8] sm:$0xf0]  ;;  %v10143_v6 = vld [vmem:[%s11496_s12 + $0x104] sm:$0xf]  ;;  %v10221_v47 = vld [vmem:[%s11496_s12 + $0x374] sm:$0xf] }
 0x1e7   : > { %5952 = vmatpush.bf16.msra.mxu2 %v7065_v57  ;;  %v7110_v57 = vld [vmem:[%s11496_s12 + $0x118] sm:$0xf0]  ;;  %v1328_v30 = vld [vmem:[#allocation1] sm:$0xff] }
 0x1e8   : > { %5965 = vmatpush.bf16.msra.mxu3 %v7129_v41  ;;  %v7038_v41 = vld [vmem:[%s11496_s12 + $0x88] sm:$0xf0] }
 0x1e9   : > { %5927 = vmatpush.bf16.msra.mxu0 %v10061_v7  ;;  %v7113_v7 = vor.u32 %v10145_v50, %v7110_v57  ;;  %v7041_v34 = vor.u32 %v10127_v11, %v7038_v41  ;;  %v7225_v50 = vor.u32 %v10173_v58, %v7222_v55  ;;  %v7289_v57 = vor.u32 %v10189_v5, %v7286_v4  ;;  %v10219_v11 = vld [vmem:[%s11496_s12 + $0x364] sm:$0xf]  ;;  %v7406_v41 = vld [vmem:[%s11496_s12 + $0x368] sm:$0xf0]  ;;  %v7206_v4 = vld [vmem:[%s11496_s12 + $0x1d8] sm:$0xf0] }
 0x1ea   : > { %5940 = vmatpush.bf16.msra.mxu1 %v6993_v18  ;;  %v5712_v18 = vpop.f32.mrf.mxu3 }
 0x1eb   : > { %5953 = vmatpush.bf16.msra.mxu2 %v7057_v37  ;;  %v10045_v37 = vor.u32 %v10880_v48, %v10044_v40  ;;  %v7353_v40 = vor.u32 %v10205_v29, %v7350_v31  ;;  %v7105_v48 = vor.u32 %v10143_v6, %v7102_v24  ;;  %v10187_v18 = vld [vmem:[%s11496_s12 + $0x264] sm:$0xf]  ;;  %v10185_v29 = vld [vmem:[%s11496_s12 + $0x254] sm:$0xf]  ;;  %v7409_v31 = vor.u32 %v10219_v11, %v7406_v41  ;;  %v7334_v24 = vld [vmem:[%s11496_s12 + $0x2d8] sm:$0xf0] }
 0x1ec   : > { %5966 = vmatpush.bf16.msra.mxu3 %v7121_v33  ;;  %v7414_v33 = vld [vmem:[%s11496_s12 + $0x378] sm:$0xf0]  ;;  %v7281_v55 = vor.u32 %v10187_v18, %v7278_v61  ;;  %v10201_v6 = vld [vmem:[%s11496_s12 + $0x2d4] sm:$0xf]  ;;  %v10215_v18 = vld [vmem:[%s11496_s12 + $0x344] sm:$0xf] }
 0x1ed   : > { %5928 = vmatpush.bf16.msra.mxu0 %v10053_v8  ;;  %v10171_v8 = vld [vmem:[%s11496_s12 + $0x1e4] sm:$0xf]  ;;  %v10165_v11 = vld [vmem:[%s11496_s12 + $0x1b4] sm:$0xf] }
 0x1ee   : > { %5941 = vmatpush.bf16.msra.mxu1 %v6985_v42  ;;  %v7417_v42 = vor.u32 %v10221_v47, %v7414_v33  ;;  %v7217_v58 = vor.u32 %v10171_v8, %v7214_v20  ;;  %v10167_v33 = vld [vmem:[%s11496_s12 + $0x1c4] sm:$0xf] }
 0x1ef   : > { %5954 = vmatpush.bf16.msra.mxu2 %v7049_v28  ;;  %v10203_v28 = vld [vmem:[%s11496_s12 + $0x2e4] sm:$0xf] }
 0x1f0   : > { %5967 = vmatpush.bf16.msra.mxu3 %v7113_v7  ;;  %v10169_v7 = vld [vmem:[%s11496_s12 + $0x1d4] sm:$0xf]  ;;  %v7345_v5 = vor.u32 %v10203_v28, %v7342_v49  ;;  %v10183_v8 = vld [vmem:[%s11496_s12 + $0x244] sm:$0xf] }
 0x1f1   : > { %5929 = vmatpush.bf16.msra.mxu0 %v10045_v37  ;;  %v7270_v37 = vld [vmem:[%s11496_s12 + $0x258] sm:$0xf0]  ;;  %v7209_v61 = vor.u32 %v10169_v7, %v7206_v4  ;;  %v5723_v20 = vpop.f32.mrf.mxu0 }
 0x1f2   : > { %5942 = vmatpush.bf16.msra.mxu1 %v6977_v26  ;;  %v10217_v26 = vld [vmem:[%s11496_s12 + $0x354] sm:$0xf]  ;;  %v7273_v47 = vor.u32 %v10185_v29, %v7270_v37  ;;  %v5724_v28 = vadd.f32 %v5723_v20, %v12512_v53  ;;  %v7254_v7 = vld [vmem:[%s11496_s12 + $0x238] sm:$0xf0]  ;;  %v7374_v20 = vld [vmem:[%s11496_s12 + $0x328] sm:$0xf0] }
 0x1f3   : > { %5955 = vmatpush.bf16.msra.mxu2 %v7041_v34  ;;  %v7398_v34 = vld [vmem:[%s11496_s12 + $0x358] sm:$0xf0]  ;;  %v10197_v29 = vld [vmem:[%s11496_s12 + $0x2b4] sm:$0xf] }
 0x1f4   : > { %5968 = vmatpush.bf16.msra.mxu3 %v7105_v48  ;;  %5930 = vmatmul.bf16.vlgmr.msra.gmra.mxu0 %v1328_v30  ;;  %v7326_v48 = vld [vmem:[%s11496_s12 + $0x2c8] sm:$0xf0]  ;;  %v5736_v30 = vpop.f32.mrf.mxu1  ;;  %v7318_v37 = vld [vmem:[%s11496_s12 + $0x2b8] sm:$0xf0]  ;;  %v10213_v53 = vld [vmem:[%s11496_s12 + $0x334] sm:$0xf] }
 0x1f5   : > { %5974 = vmatpush.bf16.msrb.mxu0 %v7225_v50  ;;  %5943 = vmatmul.bf16.vlgmr.msra.gmra.mxu1 %v11629_v22  ;;  %v7337_v50 = vor.u32 %v10201_v6, %v7334_v24  ;;  %v10199_v22 = vld [vmem:[%s11496_s12 + $0x2c4] sm:$0xf] }
 0x1f6   : > { %5987 = vmatpush.bf16.msrb.mxu1 %v7289_v57  ;;  %5956 = vmatmul.bf16.vlgmr.msra.gmra.mxu2 %v11636_v27  ;;  %v7198_v57 = vld [vmem:[%s11496_s12 + $0x1c8] sm:$0xf0]  ;;  %v7401_v27 = vor.u32 %v10217_v26, %v7398_v34  ;;  %v7329_v41 = vor.u32 %v10199_v22, %v7326_v48  ;;  %v10163_v26 = vld [vmem:[%s11496_s12 + $0x1a4] sm:$0xf]  ;;  %v7321_v34 = vor.u32 %v10197_v29, %v7318_v37  ;;  %v10209_v29 = vld [vmem:[%s11496_s12 + $0x314] sm:$0xf] }
 0x1f7   : > { %6000 = vmatpush.bf16.msrb.mxu2 %v7353_v40  ;;  %v7262_v40 = vld [vmem:[%s11496_s12 + $0x248] sm:$0xf0]  ;;  %5969 = vmatmul.bf16.vlgmr.msra.gmra.mxu3 %v11627_v21  ;;  %v7201_v49 = vor.u32 %v10167_v33, %v7198_v57  ;;  %v10179_v33 = vld [vmem:[%s11496_s12 + $0x224] sm:$0xf]  ;;  %v7366_v37 = vld [vmem:[%s11496_s12 + $0x318] sm:$0xf0] }
 0x1f8   : > { %6013 = vmatpush.bf16.msrb.mxu3 %v7417_v42  ;;  %v7390_v42 = vld [vmem:[%s11496_s12 + $0x348] sm:$0xf0]  ;;  %v7265_v21 = vor.u32 %v10183_v8, %v7262_v40  ;;  %v10195_v40 = vld [vmem:[%s11496_s12 + $0x2a4] sm:$0xf] }
 0x1f9   : > { %5975 = vmatpush.bf16.msrb.mxu0 %v7217_v58  ;;  %v7190_v58 = vld [vmem:[%s11496_s12 + $0x1b8] sm:$0xf0]  ;;  %v7393_v4 = vor.u32 %v10215_v18, %v7390_v42  ;;  %v10211_v48 = vld [vmem:[%s11496_s12 + $0x324] sm:$0xf]  ;;  %v5725_v18 = vpop.f32.mrf.mxu0 }
 0x1fa   : > { %5988 = vmatpush.bf16.msrb.mxu1 %v7281_v55  ;;  %v10181_v55 = vld [vmem:[%s11496_s12 + $0x234] sm:$0xf]  ;;  %v7193_v6 = vor.u32 %v10165_v11, %v7190_v58  ;;  %v5762_v22 = vpop.f32.mrf.mxu3 }
 0x1fb   : > { %6001 = vmatpush.bf16.msrb.mxu2 %v7345_v5  ;;  %v5737_v5 = vadd.f32 %v5736_v30, %v5724_v28  ;;  %v7257_v24 = vor.u32 %v10181_v55, %v7254_v7  ;;  %v10177_v58 = vld [vmem:[%s11496_s12 + $0x214] sm:$0xf]  ;;  %v7238_v55 = vld [vmem:[%s11496_s12 + $0x218] sm:$0xf0]  ;;  %v7377_v7 = vor.u32 %v10211_v48, %v7374_v20 }
 0x1fc   : > { %6014 = vmatpush.bf16.msrb.mxu3 %v7409_v31  ;;  %v7382_v31 = vld [vmem:[%s11496_s12 + $0x338] sm:$0xf0]  ;;  %v5738_v30 = vpop.f32.mrf.mxu1  ;;  %v10269_v48 = vld [vmem:[%s11496_s12 + $0x4f4] sm:$0xf] }
 0x1fd   : > { %5976 = vmatpush.bf16.msrb.mxu0 %v7209_v61  ;;  %v5749_v61 = vpop.f32.mrf.mxu2  ;;  %v7385_v8 = vor.u32 %v10213_v53, %v7382_v31  ;;  %v7241_v31 = vor.u32 %v10177_v58, %v7238_v55  ;;  %v7606_v20 = vld [vmem:[%s11496_s12 + $0x4f8] sm:$0xf0]  ;;  %v7358_v30 = vld [vmem:[%s11496_s12 + $0x308] sm:$0xf0]  ;;  %v10285_v58 = vld [vmem:[%s11496_s12 + $0x574] sm:$0xf] }
 0x1fe   : > { %5989 = vmatpush.bf16.msrb.mxu1 %v7273_v47  ;;  %v7182_v47 = vld [vmem:[%s11496_s12 + $0x1a8] sm:$0xf0]  ;;  %v5750_v57 = vadd.f32 %v5749_v61, %v5737_v5  ;;  %v10193_v5 = vld [vmem:[%s11496_s12 + $0x294] sm:$0xf]  ;;  %v7670_v55 = vld [vmem:[%s11496_s12 + $0x578] sm:$0xf0] }
 0x1ff   : > { %6002 = vmatpush.bf16.msrb.mxu2 %v7337_v50  ;;  %v7246_v50 = vld [vmem:[%s11496_s12 + $0x228] sm:$0xf0]  ;;  %v7185_v28 = vor.u32 %v10163_v26, %v7182_v47  ;;  %v10175_v26 = vld [vmem:[%s11496_s12 + $0x204] sm:$0xf] }
 0x200   : > { %6015 = vmatpush.bf16.msrb.mxu3 %v7401_v27  ;;  %v7310_v27 = vld [vmem:[%s11496_s12 + $0x2a8] sm:$0xf0]  ;;  %v12584_v42 = vadd.f32 %v5762_v22, %v5750_v57  ;;  %v10191_v47 = vld [vmem:[%s11496_s12 + $0x284] sm:$0xf]  ;;  %v7369_v57 = vor.u32 %v10209_v29, %v7366_v37  ;;  %v7542_v22 = vld [vmem:[%s11496_s12 + $0x478] sm:$0xf0] }
 0x201   : > { %5977 = vmatpush.bf16.msrb.mxu0 %v7201_v49  ;;  %v7249_v49 = vor.u32 %v10179_v33, %v7246_v50  ;;  %v7313_v11 = vor.u32 %v10195_v40, %v7310_v27  ;;  %v7230_v61 = vld [vmem:[%s11496_s12 + $0x208] sm:$0xf0]  ;;  %v7478_v40 = vld [vmem:[%s11496_s12 + $0x3f8] sm:$0xf0]  ;;  %v10253_v27 = vld [vmem:[%s11496_s12 + $0x474] sm:$0xf] }
 0x202   : > { %5990 = vmatpush.bf16.msrb.mxu1 %v7265_v21  ;;  %v10161_v21 = vld [vmem:[%s11496_s12 + $0x194] sm:$0xf]  ;;  %v7294_v33 = vld [vmem:[%s11496_s12 + $0x288] sm:$0xf0]  ;;  %v5764_v18 = vpop.f32.mrf.mxu3  ;;  %v10251_v37 = vld [vmem:[%s11496_s12 + $0x464] sm:$0xf] }
 0x203   : > { %6003 = vmatpush.bf16.msrb.mxu2 %v7329_v41  ;;  %v7174_v41 = vld [vmem:[%s11496_s12 + $0x198] sm:$0xf0]  ;;  %v7470_v29 = vld [vmem:[%s11496_s12 + $0x3e8] sm:$0xf0] }
 0x204   : > { %6016 = vmatpush.bf16.msrb.mxu3 %v7393_v4  ;;  %v7302_v4 = vld [vmem:[%s11496_s12 + $0x298] sm:$0xf0]  ;;  %v7177_v53 = vor.u32 %v10161_v21, %v7174_v41  ;;  %v10207_v21 = vld [vmem:[%s11496_s12 + $0x304] sm:$0xf] }
 0x205   : > { %5978 = vmatpush.bf16.msrb.mxu0 %v7193_v6  ;;  %v10159_v6 = vld [vmem:[%s11496_s12 + $0x184] sm:$0xf]  ;;  %v5751_v50 = vpop.f32.mrf.mxu2 }
 0x206   : > { %5991 = vmatpush.bf16.msrb.mxu1 %v7257_v24  ;;  %v7166_v24 = vld [vmem:[%s11496_s12 + $0x188] sm:$0xf0] }
 0x207   : > { %6004 = vmatpush.bf16.msrb.mxu2 %v7321_v34  ;;  %v7305_v34 = vor.u32 %v10193_v5, %v7302_v4  ;;  %v7609_v5 = vor.u32 %v10269_v48, %v7606_v20  ;;  %v10235_v4 = vld [vmem:[%s11496_s12 + $0x3e4] sm:$0xf]  ;;  %v7590_v48 = vld [vmem:[%s11496_s12 + $0x4d8] sm:$0xf0] }
 0x208   : > { %6017 = vmatpush.bf16.msrb.mxu3 %v7385_v8  ;;  %v10237_v8 = vld [vmem:[%s11496_s12 + $0x3f4] sm:$0xf] }
 0x209   : > { %5979 = vmatpush.bf16.msrb.mxu0 %v7185_v28  ;;  %v7169_v28 = vor.u32 %v10159_v6, %v7166_v24  ;;  %v7481_v41 = vor.u32 %v10237_v8, %v7478_v40  ;;  %v10267_v6 = vld [vmem:[%s11496_s12 + $0x4e4] sm:$0xf]  ;;  %v7598_v24 = vld [vmem:[%s11496_s12 + $0x4e8] sm:$0xf0]  ;;  %v7462_v8 = vld [vmem:[%s11496_s12 + $0x3d8] sm:$0xf0] }
 0x20a   : > { %5992 = vmatpush.bf16.msrb.mxu1 %v7249_v49  ;;  %v7233_v49 = vor.u32 %v10175_v26, %v7230_v61  ;;  %v7673_v26 = vor.u32 %v10285_v58, %v7670_v55  ;;  %v10283_v61 = vld [vmem:[%s11496_s12 + $0x564] sm:$0xf]  ;;  %v7601_v50 = vor.u32 %v10267_v6, %v7598_v24  ;;  %v10249_v40 = vld [vmem:[%s11496_s12 + $0x454] sm:$0xf]  ;;  %v7582_v55 = vld [vmem:[%s11496_s12 + $0x4c8] sm:$0xf0] }
 0x20b   : > { %6005 = vmatpush.bf16.msrb.mxu2 %v7313_v11  ;;  %v7297_v11 = vor.u32 %v10191_v47, %v7294_v33  ;;  %v7662_v47 = vld [vmem:[%s11496_s12 + $0x568] sm:$0xf0]  ;;  %v10263_v58 = vld [vmem:[%s11496_s12 + $0x4c4] sm:$0xf]  ;;  %v10229_v6 = vld [vmem:[%s11496_s12 + $0x3b4] sm:$0xf] }
 0x20c   : > { %6018 = vmatpush.bf16.msrb.mxu3 %v7377_v7  ;;  %v7545_v7 = vor.u32 %v10253_v27, %v7542_v22  ;;  %v7526_v27 = vld [vmem:[%s11496_s12 + $0x458] sm:$0xf0]  ;;  %v10265_v22 = vld [vmem:[%s11496_s12 + $0x4d4] sm:$0xf]  ;;  %v7665_v20 = vor.u32 %v10283_v61, %v7662_v47 }
 0x20d   : > { %5980 = vmatpush.bf16.msrb.mxu0 %v7177_v53  ;;  %v7361_v53 = vor.u32 %v10207_v21, %v7358_v30  ;;  %v7593_v21 = vor.u32 %v10265_v22, %v7590_v48  ;;  %v10231_v30 = vld [vmem:[%s11496_s12 + $0x3c4] sm:$0xf]  ;;  %v7446_v24 = vld [vmem:[%s11496_s12 + $0x3b8] sm:$0xf0]  ;;  %v10261_v61 = vld [vmem:[%s11496_s12 + $0x4b4] sm:$0xf] }
 0x20e   : > { %5993 = vmatpush.bf16.msrb.mxu1 %v7241_v31  ;;  %v7534_v31 = vld [vmem:[%s11496_s12 + $0x468] sm:$0xf0]  ;;  %v7574_v47 = vld [vmem:[%s11496_s12 + $0x4b8] sm:$0xf0]  ;;  %v10227_v22 = vld [vmem:[%s11496_s12 + $0x3a4] sm:$0xf] }
 0x20f   : > { %6006 = vmatpush.bf16.msrb.mxu2 %v7305_v34  ;;  %v7473_v34 = vor.u32 %v10235_v4, %v7470_v29  ;;  %v7537_v33 = vor.u32 %v10251_v37, %v7534_v31  ;;  %v10279_v4 = vld [vmem:[%s11496_s12 + $0x544] sm:$0xf]  ;;  %v7646_v29 = vld [vmem:[%s11496_s12 + $0x548] sm:$0xf0] }
 0x210   : > { %6019 = vmatpush.bf16.msrb.mxu3 %v7369_v57  ;;  %v10233_v57 = vld [vmem:[%s11496_s12 + $0x3d4] sm:$0xf]  ;;  %v7438_v48 = vld [vmem:[%s11496_s12 + $0x3a8] sm:$0xf0] }
 0x211   : > { %5981 = vmatpush.bf16.msrb.mxu0 %v7169_v28  ;;  %v7465_v18 = vor.u32 %v10233_v57, %v7462_v8  ;;  %v10281_v28 = vld [vmem:[%s11496_s12 + $0x554] sm:$0xf]  ;;  %v7638_v8 = vld [vmem:[%s11496_s12 + $0x538] sm:$0xf0] }
 0x212   : > { %5994 = vmatpush.bf16.msrb.mxu1 %v7233_v49  ;;  %v7654_v49 = vld [vmem:[%s11496_s12 + $0x558] sm:$0xf0]  ;;  %v5788_v31 = vpop.f32.mrf.mxu1  ;;  %v10277_v57 = vld [vmem:[%s11496_s12 + $0x534] sm:$0xf] }
 0x213   : > { %6007 = vmatpush.bf16.msrb.mxu2 %v7297_v11  ;;  %v7454_v11 = vld [vmem:[%s11496_s12 + $0x3c8] sm:$0xf0] }
 0x214   : > { %6020 = vmatpush.bf16.msrb.mxu3 %v7361_v53  ;;  %5982 = vmatmul.bf16.vlgmr.msrb.gmra.mxu0 %v11631_v23  ;;  %v7529_v23 = vor.u32 %v10249_v40, %v7526_v27  ;;  %v7585_v53 = vor.u32 %v10263_v58, %v7582_v55  ;;  %v7577_v27 = vor.u32 %v10261_v61, %v7574_v47  ;;  %v7630_v58 = vld [vmem:[%s11496_s12 + $0x528] sm:$0xf0]  ;;  %v7622_v61 = vld [vmem:[%s11496_s12 + $0x518] sm:$0xf0]  ;;  %v10223_v47 = vld [vmem:[%s11496_s12 + $0x384] sm:$0xf] }
 0x215   : > { %6026 = vmatpush.bf16.msra.mxu0 %v7481_v41  ;;  %5995 = vmatmul.bf16.vlgmr.msrb.gmra.mxu1 %v11659_v52  ;;  %v10247_v41 = vld [vmem:[%s11496_s12 + $0x444] sm:$0xf]  ;;  %v7657_v52 = vor.u32 %v10281_v28, %v7654_v49  ;;  %v7502_v28 = vld [vmem:[%s11496_s12 + $0x428] sm:$0xf0] }
 0x216   : > { %6039 = vmatpush.bf16.msra.mxu1 %v7545_v7  ;;  %6008 = vmatmul.bf16.vlgmr.msrb.gmra.mxu2 %v11664_v56  ;;  %v7518_v56 = vld [vmem:[%s11496_s12 + $0x448] sm:$0xf0]  ;;  %v5775_v7 = vpop.f32.mrf.mxu0  ;;  %v10259_v49 = vld [vmem:[%s11496_s12 + $0x4a4] sm:$0xf] }
 0x217   : > { %6052 = vmatpush.bf16.msra.mxu2 %v7609_v5  ;;  %6021 = vmatmul.bf16.vlgmr.msrb.gmra.mxu3 %v11657_v51  ;;  %v7457_v5 = vor.u32 %v10231_v30, %v7454_v11  ;;  %v5776_v51 = vadd.f32 %v5775_v7, %v12584_v42  ;;  %v7521_v37 = vor.u32 %v10247_v41, %v7518_v56  ;;  %v10275_v56 = vld [vmem:[%s11496_s12 + $0x524] sm:$0xf] }
 0x218   : > { %6065 = vmatpush.bf16.msra.mxu3 %v7673_v26  ;;  %v10245_v26 = vld [vmem:[%s11496_s12 + $0x434] sm:$0xf]  ;;  %v7449_v42 = vor.u32 %v10229_v6, %v7446_v24  ;;  %v7641_v30 = vor.u32 %v10277_v57, %v7638_v8  ;;  %v7441_v41 = vor.u32 %v10227_v22, %v7438_v48  ;;  %v7558_v6 = vld [vmem:[%s11496_s12 + $0x498] sm:$0xf0]  ;;  %v7633_v24 = vor.u32 %v10275_v56, %v7630_v58  ;;  %v10239_v57 = vld [vmem:[%s11496_s12 + $0x404] sm:$0xf] }
 0x219   : > { %6027 = vmatpush.bf16.msra.mxu0 %v7473_v34  ;;  %v7510_v34 = vld [vmem:[%s11496_s12 + $0x438] sm:$0xf0]  ;;  %v7486_v8 = vld [vmem:[%s11496_s12 + $0x408] sm:$0xf0]  ;;  %v10301_v22 = vld [vmem:[%s11496_s12 + $0x5f4] sm:$0xf] }
 0x21a   : > { %6040 = vmatpush.bf16.msra.mxu1 %v7537_v33  ;;  %v5789_v33 = vadd.f32 %v5788_v31, %v5776_v51  ;;  %v7513_v40 = vor.u32 %v10245_v26, %v7510_v34  ;;  %v5814_v11 = vpop.f32.mrf.mxu3  ;;  %v10241_v51 = vld [vmem:[%s11496_s12 + $0x414] sm:$0xf]  ;;  %v7734_v48 = vld [vmem:[%s11496_s12 + $0x5f8] sm:$0xf0]  ;;  %v7489_v58 = vor.u32 %v10239_v57, %v7486_v8 }
 0x21b   : > { %6053 = vmatpush.bf16.msra.mxu2 %v7601_v50  ;;  %v7649_v50 = vor.u32 %v10279_v4, %v7646_v29  ;;  %v10225_v4 = vld [vmem:[%s11496_s12 + $0x394] sm:$0xf]  ;;  %v7430_v29 = vld [vmem:[%s11496_s12 + $0x398] sm:$0xf0] }
 0x21c   : > { %6066 = vmatpush.bf16.msra.mxu3 %v7665_v20  ;;  %v10243_v20 = vld [vmem:[%s11496_s12 + $0x424] sm:$0xf]  ;;  %v10257_v31 = vld [vmem:[%s11496_s12 + $0x494] sm:$0xf]  ;;  %v7433_v34 = vor.u32 %v10225_v4, %v7430_v29  ;;  %v7926_v29 = vld [vmem:[%s11496_s12 + $0x778] sm:$0xf0] }
 0x21d   : > { %6028 = vmatpush.bf16.msra.mxu0 %v7465_v18  ;;  %v5801_v18 = vpop.f32.mrf.mxu2  ;;  %v7505_v7 = vor.u32 %v10243_v20, %v7502_v28  ;;  %v10273_v26 = vld [vmem:[%s11496_s12 + $0x514] sm:$0xf] }
 0x21e   : > { %6041 = vmatpush.bf16.msra.mxu1 %v7529_v23  ;;  %v7566_v23 = vld [vmem:[%s11496_s12 + $0x4a8] sm:$0xf0]  ;;  %v5777_v55 = vpop.f32.mrf.mxu0  ;;  %v10317_v28 = vld [vmem:[%s11496_s12 + $0x674] sm:$0xf] }
 0x21f   : > { %6054 = vmatpush.bf16.msra.mxu2 %v7593_v21  ;;  %v5802_v21 = vadd.f32 %v5801_v18, %v5789_v33  ;;  %v7422_v33 = vld [vmem:[%s11496_s12 + $0x388] sm:$0xf0]  ;;  %v7625_v18 = vor.u32 %v10273_v26, %v7622_v61  ;;  %v10349_v4 = vld [vmem:[%s11496_s12 + $0x774] sm:$0xf]  ;;  %v10331_v26 = vld [vmem:[%s11496_s12 + $0x6e4] sm:$0xf] }
 0x220   : > { %6067 = vmatpush.bf16.msra.mxu3 %v7657_v52  ;;  %v7929_v61 = vor.u32 %v10349_v4, %v7926_v29  ;;  %v10297_v8 = vld [vmem:[%s11496_s12 + $0x5d4] sm:$0xf] }
 0x221   : > { %6029 = vmatpush.bf16.msra.mxu0 %v7457_v5  ;;  %v12655_v52 = vadd.f32 %v5814_v11, %v5802_v21  ;;  %v7569_v5 = vor.u32 %v10259_v49, %v7566_v23  ;;  %v7798_v49 = vld [vmem:[%s11496_s12 + $0x678] sm:$0xf0]  ;;  %v10333_v23 = vld [vmem:[%s11496_s12 + $0x6f4] sm:$0xf]  ;;  %v7425_v21 = vor.u32 %v10223_v47, %v7422_v33  ;;  %v10271_v11 = vld [vmem:[%s11496_s12 + $0x504] sm:$0xf] }
 0x222   : > { %6042 = vmatpush.bf16.msra.mxu1 %v7521_v37  ;;  %v5790_v37 = vpop.f32.mrf.mxu1  ;;  %v5816_v56 = vpop.f32.mrf.mxu3  ;;  %v10347_v33 = vld [vmem:[%s11496_s12 + $0x764] sm:$0xf] }
 0x223   : > { %6055 = vmatpush.bf16.msra.mxu2 %v7585_v53  ;;  %v7494_v53 = vld [vmem:[%s11496_s12 + $0x418] sm:$0xf0]  ;;  %v7838_v56 = vld [vmem:[%s11496_s12 + $0x6c8] sm:$0xf0] }
 0x224   : > { %6068 = vmatpush.bf16.msra.mxu3 %v7649_v50  ;;  %v7497_v50 = vor.u32 %v10241_v51, %v7494_v53  ;;  %v10299_v53 = vld [vmem:[%s11496_s12 + $0x5e4] sm:$0xf] }
 0x225   : > { %6030 = vmatpush.bf16.msra.mxu0 %v7449_v42  ;;  %v7561_v42 = vor.u32 %v10257_v31, %v7558_v6  ;;  %v5803_v20 = vpop.f32.mrf.mxu2  ;;  %v7726_v31 = vld [vmem:[%s11496_s12 + $0x5e8] sm:$0xf0]  ;;  %v10315_v6 = vld [vmem:[%s11496_s12 + $0x664] sm:$0xf] }
 0x226   : > { %6043 = vmatpush.bf16.msra.mxu1 %v7513_v40  ;;  %v10255_v40 = vld [vmem:[%s11496_s12 + $0x484] sm:$0xf]  ;;  %v7729_v47 = vor.u32 %v10299_v53, %v7726_v31  ;;  %v7846_v20 = vld [vmem:[%s11496_s12 + $0x6d8] sm:$0xf0]  ;;  %v10293_v53 = vld [vmem:[%s11496_s12 + $0x5b4] sm:$0xf] }
 0x227   : > { %6056 = vmatpush.bf16.msra.mxu2 %v7577_v27  ;;  %v7550_v27 = vld [vmem:[%s11496_s12 + $0x488] sm:$0xf0]  ;;  %v7702_v31 = vld [vmem:[%s11496_s12 + $0x5b8] sm:$0xf0] }
 0x228   : > { %6069 = vmatpush.bf16.msra.mxu3 %v7641_v30  ;;  %v7862_v30 = vld [vmem:[%s11496_s12 + $0x6f8] sm:$0xf0]  ;;  %v7553_v55 = vor.u32 %v10255_v40, %v7550_v27  ;;  %v10313_v27 = vld [vmem:[%s11496_s12 + $0x654] sm:$0xf] }
 0x229   : > { %6031 = vmatpush.bf16.msra.mxu0 %v7441_v41  ;;  %v7614_v41 = vld [vmem:[%s11496_s12 + $0x508] sm:$0xf0]  ;;  %v7865_v51 = vor.u32 %v10333_v23, %v7862_v30  ;;  %v7718_v40 = vld [vmem:[%s11496_s12 + $0x5d8] sm:$0xf0] }
 0x22a   : > { %6044 = vmatpush.bf16.msra.mxu1 %v7505_v7  ;;  %v7737_v7 = vor.u32 %v10301_v22, %v7734_v48  ;;  %v7617_v37 = vor.u32 %v10271_v11, %v7614_v41  ;;  %v7782_v22 = vld [vmem:[%s11496_s12 + $0x658] sm:$0xf0]  ;;  %v10329_v48 = vld [vmem:[%s11496_s12 + $0x6d4] sm:$0xf]  ;;  %v7710_v30 = vld [vmem:[%s11496_s12 + $0x5c8] sm:$0xf0] }
 0x22b   : > { %6057 = vmatpush.bf16.msra.mxu2 %v7569_v5  ;;  %v7801_v5 = vor.u32 %v10317_v28, %v7798_v49  ;;  %v7721_v28 = vor.u32 %v10297_v8, %v7718_v40  ;;  %v7910_v49 = vld [vmem:[%s11496_s12 + $0x758] sm:$0xf0]  ;;  %v7849_v23 = vor.u32 %v10329_v48, %v7846_v20  ;;  %v10311_v11 = vld [vmem:[%s11496_s12 + $0x644] sm:$0xf]  ;;  %v7774_v41 = vld [vmem:[%s11496_s12 + $0x648] sm:$0xf0] }
 0x22c   : > { %6070 = vmatpush.bf16.msra.mxu3 %v7633_v24  ;;  %v7790_v24 = vld [vmem:[%s11496_s12 + $0x668] sm:$0xf0]  ;;  %v7777_v29 = vor.u32 %v10311_v11, %v7774_v41  ;;  %v10291_v8 = vld [vmem:[%s11496_s12 + $0x5a4] sm:$0xf] }
 0x22d   : > { %6032 = vmatpush.bf16.msra.mxu0 %v7433_v34  ;;  %v7854_v34 = vld [vmem:[%s11496_s12 + $0x6e8] sm:$0xf0]  ;;  %v10323_v20 = vld [vmem:[%s11496_s12 + $0x6a4] sm:$0xf] }
 0x22e   : > { %6045 = vmatpush.bf16.msra.mxu1 %v7497_v50  ;;  %v7918_v50 = vld [vmem:[%s11496_s12 + $0x768] sm:$0xf0]  ;;  %v7857_v57 = vor.u32 %v10331_v26, %v7854_v34  ;;  %v10325_v26 = vld [vmem:[%s11496_s12 + $0x6b4] sm:$0xf]  ;;  %v7830_v34 = vld [vmem:[%s11496_s12 + $0x6b8] sm:$0xf0] }
 0x22f   : > { %6058 = vmatpush.bf16.msra.mxu2 %v7561_v42  ;;  %v7793_v42 = vor.u32 %v10315_v6, %v7790_v24  ;;  %v10309_v6 = vld [vmem:[%s11496_s12 + $0x634] sm:$0xf]  ;;  %v7766_v24 = vld [vmem:[%s11496_s12 + $0x638] sm:$0xf0]  ;;  %v7694_v40 = vld [vmem:[%s11496_s12 + $0x5a8] sm:$0xf0] }
 0x230   : > { %6071 = vmatpush.bf16.msra.mxu3 %v7625_v18  ;;  %v7921_v18 = vor.u32 %v10347_v33, %v7918_v50  ;;  %v10341_v33 = vld [vmem:[%s11496_s12 + $0x734] sm:$0xf]  ;;  %v7894_v50 = vld [vmem:[%s11496_s12 + $0x738] sm:$0xf0]  ;;  %v7758_v48 = vld [vmem:[%s11496_s12 + $0x628] sm:$0xf0] }
 0x231   : > { %6033 = vmatpush.bf16.msra.mxu0 %v7425_v21  ;;  %v10295_v21 = vld [vmem:[%s11496_s12 + $0x5c4] sm:$0xf] }
 0x232   : > { %6046 = vmatpush.bf16.msra.mxu1 %v7489_v58  ;;  %v5827_v58 = vpop.f32.mrf.mxu0 }
 0x233   : > { %6059 = vmatpush.bf16.msra.mxu2 %v7553_v55  ;;  %v7713_v55 = vor.u32 %v10295_v21, %v7710_v30  ;;  %v5828_v4 = vadd.f32 %v5827_v58, %v12655_v52  ;;  %v7705_v52 = vor.u32 %v10293_v53, %v7702_v31  ;;  %v7886_v21 = vld [vmem:[%s11496_s12 + $0x728] sm:$0xf0]  ;;  %v10305_v58 = vld [vmem:[%s11496_s12 + $0x614] sm:$0xf]  ;;  %v7878_v53 = vld [vmem:[%s11496_s12 + $0x718] sm:$0xf0] }
 0x234   : > { %6072 = vmatpush.bf16.msra.mxu3 %v7617_v37  ;;  %6034 = vmatmul.bf16.vlgmr.msra.gmra.mxu0 %v11661_v54  ;;  %v10345_v54 = vld [vmem:[%s11496_s12 + $0x754] sm:$0xf]  ;;  %v5840_v37 = vpop.f32.mrf.mxu1  ;;  %v10287_v31 = vld [vmem:[%s11496_s12 + $0x584] sm:$0xf] }
 0x235   : > { %6078 = vmatpush.bf16.msrb.mxu0 %v7737_v7  ;;  %6047 = vmatmul.bf16.vlgmr.msra.gmra.mxu1 %v11758_v12  ;;  %v10327_v12 = vld [vmem:[%s11496_s12 + $0x6c4] sm:$0xf] }
 0x236   : > { %6091 = vmatpush.bf16.msrb.mxu1 %v7801_v5  ;;  %6060 = vmatmul.bf16.vlgmr.msra.gmra.mxu2 %v11762_v15  ;;  %v7785_v15 = vor.u32 %v10313_v27, %v7782_v22  ;;  %v10343_v7 = vld [vmem:[%s11496_s12 + $0x744] sm:$0xf]  ;;  %v7902_v5 = vld [vmem:[%s11496_s12 + $0x748] sm:$0xf0] }
 0x237   : > { %6104 = vmatpush.bf16.msrb.mxu2 %v7865_v51  ;;  %6073 = vmatmul.bf16.vlgmr.msra.gmra.mxu3 %v11760_v13  ;;  %v7913_v13 = vor.u32 %v10345_v54, %v7910_v49  ;;  %v7841_v51 = vor.u32 %v10327_v12, %v7838_v56  ;;  %v10307_v27 = vld [vmem:[%s11496_s12 + $0x624] sm:$0xf]  ;;  %v7897_v54 = vor.u32 %v10341_v33, %v7894_v50  ;;  %v10289_v56 = vld [vmem:[%s11496_s12 + $0x594] sm:$0xf]  ;;  %v7990_v50 = vld [vmem:[%s11496_s12 + $0x7f8] sm:$0xf0] }
 0x238   : > { %6117 = vmatpush.bf16.msrb.mxu3 %v7929_v61  ;;  %v5841_v61 = vadd.f32 %v5840_v37, %v5828_v4  ;;  %v7761_v41 = vor.u32 %v10307_v27, %v7758_v48  ;;  %v7814_v4 = vld [vmem:[%s11496_s12 + $0x698] sm:$0xf0]  ;;  %v10365_v33 = vld [vmem:[%s11496_s12 + $0x7f4] sm:$0xf] }
 0x239   : > { %6079 = vmatpush.bf16.msrb.mxu0 %v7729_v47  ;;  %v7905_v47 = vor.u32 %v10343_v7, %v7902_v5  ;;  %v5853_v22 = vpop.f32.mrf.mxu2  ;;  %v7750_v7 = vld [vmem:[%s11496_s12 + $0x618] sm:$0xf0]  ;;  %v10321_v5 = vld [vmem:[%s11496_s12 + $0x694] sm:$0xf] }
 0x23a   : > { %6092 = vmatpush.bf16.msrb.mxu1 %v7793_v42  ;;  %v7769_v42 = vor.u32 %v10309_v6, %v7766_v24  ;;  %v5866_v49 = vpop.f32.mrf.mxu3  ;;  %v5829_v30 = vpop.f32.mrf.mxu0  ;;  %v7678_v6 = vld [vmem:[%s11496_s12 + $0x588] sm:$0xf0]  ;;  %v7753_v24 = vor.u32 %v10305_v58, %v7750_v7  ;;  %v10397_v27 = vld [vmem:[%s11496_s12 + $0x8f4] sm:$0xf]  ;;  %v8118_v48 = vld [vmem:[%s11496_s12 + $0x8f8] sm:$0xf0] }
 0x23b   : > { %6105 = vmatpush.bf16.msrb.mxu2 %v7857_v57  ;;  %v7833_v57 = vor.u32 %v10325_v26, %v7830_v34  ;;  %v7817_v26 = vor.u32 %v10321_v5, %v7814_v4  ;;  %v10303_v34 = vld [vmem:[%s11496_s12 + $0x604] sm:$0xf]  ;;  %v8182_v30 = vld [vmem:[%s11496_s12 + $0x978] sm:$0xf0]  ;;  %v8110_v5 = vld [vmem:[%s11496_s12 + $0x8e8] sm:$0xf0] }
 0x23c   : > { %6118 = vmatpush.bf16.msrb.mxu3 %v7921_v18  ;;  %v7822_v18 = vld [vmem:[%s11496_s12 + $0x6a8] sm:$0xf0]  ;;  %v10379_v58 = vld [vmem:[%s11496_s12 + $0x864] sm:$0xf] }
 0x23d   : > { %6080 = vmatpush.bf16.msrb.mxu0 %v7721_v28  ;;  %v5854_v28 = vadd.f32 %v5853_v22, %v5841_v61  ;;  %v7825_v12 = vor.u32 %v10323_v20, %v7822_v18  ;;  %v7742_v61 = vld [vmem:[%s11496_s12 + $0x608] sm:$0xf0]  ;;  %v7681_v22 = vor.u32 %v10287_v31, %v7678_v6  ;;  %v10335_v20 = vld [vmem:[%s11496_s12 + $0x704] sm:$0xf]  ;;  %v10361_v6 = vld [vmem:[%s11496_s12 + $0x7d4] sm:$0xf] }
 0x23e   : > { %6093 = vmatpush.bf16.msrb.mxu1 %v7785_v15  ;;  %v7697_v15 = vor.u32 %v10291_v8, %v7694_v40  ;;  %v10381_v8 = vld [vmem:[%s11496_s12 + $0x874] sm:$0xf]  ;;  %v8054_v40 = vld [vmem:[%s11496_s12 + $0x878] sm:$0xf0]  ;;  %v7870_v18 = vld [vmem:[%s11496_s12 + $0x708] sm:$0xf0] }
 0x23f   : > { %6106 = vmatpush.bf16.msrb.mxu2 %v7849_v23  ;;  %v10339_v23 = vld [vmem:[%s11496_s12 + $0x724] sm:$0xf]  ;;  %v12726_v11 = vadd.f32 %v5866_v49, %v5854_v28 }
 0x240   : > { %6119 = vmatpush.bf16.msrb.mxu3 %v7913_v13  ;;  %v7686_v13 = vld [vmem:[%s11496_s12 + $0x598] sm:$0xf0]  ;;  %v10395_v7 = vld [vmem:[%s11496_s12 + $0x8e4] sm:$0xf] }
 0x241   : > { %6081 = vmatpush.bf16.msrb.mxu0 %v7713_v55  ;;  %v5842_v55 = vpop.f32.mrf.mxu1  ;;  %v7689_v37 = vor.u32 %v10289_v56, %v7686_v13  ;;  %v10363_v56 = vld [vmem:[%s11496_s12 + $0x7e4] sm:$0xf]  ;;  %v7982_v13 = vld [vmem:[%s11496_s12 + $0x7e8] sm:$0xf0]  ;;  %v8113_v31 = vor.u32 %v10395_v7, %v8110_v5  ;;  %v10405_v7 = vld [vmem:[%s11496_s12 + $0x934] sm:$0xf] }
 0x242   : > { %6094 = vmatpush.bf16.msrb.mxu1 %v7777_v29  ;;  %v7889_v29 = vor.u32 %v10339_v23, %v7886_v21  ;;  %v5868_v28 = vpop.f32.mrf.mxu3  ;;  %v8057_v23 = vor.u32 %v10381_v8, %v8054_v40  ;;  %v10413_v21 = vld [vmem:[%s11496_s12 + $0x974] sm:$0xf]  ;;  %v8046_v55 = vld [vmem:[%s11496_s12 + $0x868] sm:$0xf0]  ;;  %v10375_v40 = vld [vmem:[%s11496_s12 + $0x844] sm:$0xf] }
 0x243   : > { %6107 = vmatpush.bf16.msrb.mxu2 %v7841_v51  ;;  %v10337_v51 = vld [vmem:[%s11496_s12 + $0x714] sm:$0xf]  ;;  %v8185_v4 = vor.u32 %v10413_v21, %v8182_v30  ;;  %v7966_v8 = vld [vmem:[%s11496_s12 + $0x7c8] sm:$0xf0]  ;;  %v7958_v30 = vld [vmem:[%s11496_s12 + $0x7b8] sm:$0xf0] }
 0x244   : > { %6120 = vmatpush.bf16.msrb.mxu3 %v7905_v47  ;;  %v10319_v47 = vld [vmem:[%s11496_s12 + $0x684] sm:$0xf]  ;;  %v8158_v28 = vld [vmem:[%s11496_s12 + $0x948] sm:$0xf0]  ;;  %v10357_v21 = vld [vmem:[%s11496_s12 + $0x7b4] sm:$0xf] }
 0x245   : > { %6082 = vmatpush.bf16.msrb.mxu0 %v7705_v52  ;;  %v7806_v52 = vld [vmem:[%s11496_s12 + $0x688] sm:$0xf0]  ;;  %v8150_v5 = vld [vmem:[%s11496_s12 + $0x938] sm:$0xf0] }
 0x246   : > { %6095 = vmatpush.bf16.msrb.mxu1 %v7769_v42  ;;  %v5855_v42 = vpop.f32.mrf.mxu2  ;;  %v7809_v49 = vor.u32 %v10319_v47, %v7806_v52  ;;  %v8102_v47 = vld [vmem:[%s11496_s12 + $0x8d8] sm:$0xf0] }
 0x247   : > { %6108 = vmatpush.bf16.msrb.mxu2 %v7833_v57  ;;  %v7881_v57 = vor.u32 %v10337_v51, %v7878_v53  ;;  %v10411_v51 = vld [vmem:[%s11496_s12 + $0x964] sm:$0xf]  ;;  %v8049_v53 = vor.u32 %v10379_v58, %v8046_v55 }
 0x248   : > { %6121 = vmatpush.bf16.msrb.mxu3 %v7897_v54  ;;  %v7745_v54 = vor.u32 %v10303_v34, %v7742_v61  ;;  %v8038_v34 = vld [vmem:[%s11496_s12 + $0x858] sm:$0xf0]  ;;  %v10393_v61 = vld [vmem:[%s11496_s12 + $0x8d4] sm:$0xf] }
 0x249   : > { %6083 = vmatpush.bf16.msrb.mxu0 %v7697_v15  ;;  %v7993_v15 = vor.u32 %v10365_v33, %v7990_v50  ;;  %v8166_v50 = vld [vmem:[%s11496_s12 + $0x958] sm:$0xf0]  ;;  %v8105_v42 = vor.u32 %v10393_v61, %v8102_v47  ;;  %v8153_v61 = vor.u32 %v10405_v7, %v8150_v5  ;;  %v10445_v7 = vld [vmem:[%s11496_s12 + $0xa74] sm:$0xf] }
 0x24a   : > { %6096 = vmatpush.bf16.msrb.mxu1 %v7761_v41  ;;  %v8121_v41 = vor.u32 %v10397_v27, %v8118_v48  ;;  %v8030_v27 = vld [vmem:[%s11496_s12 + $0x848] sm:$0xf0]  ;;  %v8310_v5 = vld [vmem:[%s11496_s12 + $0xa78] sm:$0xf0] }
 0x24b   : > { %6109 = vmatpush.bf16.msrb.mxu2 %v7825_v12  ;;  %v7873_v12 = vor.u32 %v10335_v20, %v7870_v18  ;;  %v10407_v18 = vld [vmem:[%s11496_s12 + $0x944] sm:$0xf] }
 0x24c   : > { %6122 = vmatpush.bf16.msrb.mxu3 %v7889_v29  ;;  %v7985_v29 = vor.u32 %v10363_v56, %v7982_v13  ;;  %v10389_v56 = vld [vmem:[%s11496_s12 + $0x8b4] sm:$0xf]  ;;  %v8086_v13 = vld [vmem:[%s11496_s12 + $0x8b8] sm:$0xf0]  ;;  %v8161_v55 = vor.u32 %v10407_v18, %v8158_v28 }
 0x24d   : > { %6084 = vmatpush.bf16.msrb.mxu0 %v7689_v37  ;;  %v8174_v37 = vld [vmem:[%s11496_s12 + $0x968] sm:$0xf0]  ;;  %v10401_v18 = vld [vmem:[%s11496_s12 + $0x914] sm:$0xf] }
 0x24e   : > { %6097 = vmatpush.bf16.msrb.mxu1 %v7753_v24  ;;  %v7974_v24 = vld [vmem:[%s11496_s12 + $0x7d8] sm:$0xf0]  ;;  %v8177_v52 = vor.u32 %v10411_v51, %v8174_v37  ;;  %v10355_v51 = vld [vmem:[%s11496_s12 + $0x7a4] sm:$0xf]  ;;  %v7950_v37 = vld [vmem:[%s11496_s12 + $0x7a8] sm:$0xf0] }
 0x24f   : > { %6110 = vmatpush.bf16.msrb.mxu2 %v7817_v26  ;;  %v10377_v26 = vld [vmem:[%s11496_s12 + $0x854] sm:$0xf]  ;;  %v7977_v33 = vor.u32 %v10361_v6, %v7974_v24  ;;  %v8014_v6 = vld [vmem:[%s11496_s12 + $0x828] sm:$0xf0]  ;;  %v10387_v24 = vld [vmem:[%s11496_s12 + $0x8a4] sm:$0xf] }
 0x250   : > { %6123 = vmatpush.bf16.msrb.mxu3 %v7881_v57  ;;  %v10359_v57 = vld [vmem:[%s11496_s12 + $0x7c4] sm:$0xf] }
 0x251   : > { %6085 = vmatpush.bf16.msrb.mxu0 %v7681_v22  ;;  %v8094_v22 = vld [vmem:[%s11496_s12 + $0x8c8] sm:$0xf0]  ;;  %v5879_v48 = vpop.f32.mrf.mxu0  ;;  %v7969_v20 = vor.u32 %v10359_v57, %v7966_v8  ;;  %v10353_v8 = vld [vmem:[%s11496_s12 + $0x794] sm:$0xf] }
 0x252   : > { %6098 = vmatpush.bf16.msrb.mxu1 %v7745_v54  ;;  %v5880_v54 = vadd.f32 %v5879_v48, %v12726_v11  ;;  %v7961_v11 = vor.u32 %v10357_v21, %v7958_v30  ;;  %v8070_v48 = vld [vmem:[%s11496_s12 + $0x898] sm:$0xf0]  ;;  %v10367_v30 = vld [vmem:[%s11496_s12 + $0x804] sm:$0xf] }
 0x253   : > { %6111 = vmatpush.bf16.msrb.mxu2 %v7809_v49  ;;  %v8033_v49 = vor.u32 %v10375_v40, %v8030_v27  ;;  %v7942_v40 = vld [vmem:[%s11496_s12 + $0x798] sm:$0xf0]  ;;  %v10369_v27 = vld [vmem:[%s11496_s12 + $0x814] sm:$0xf] }
 0x254   : > { %6124 = vmatpush.bf16.msrb.mxu3 %v7873_v12  ;;  %6086 = vmatmul.bf16.vlgmr.msrb.gmra.mxu0 %v11764_v16  ;;  %v10409_v16 = vld [vmem:[%s11496_s12 + $0x954] sm:$0xf]  ;;  %v8022_v12 = vld [vmem:[%s11496_s12 + $0x838] sm:$0xf0]  ;;  %v7945_v28 = vor.u32 %v10353_v8, %v7942_v40  ;;  %v10459_v8 = vld [vmem:[%s11496_s12 + $0xae4] sm:$0xf] }
 0x255   : > { %6130 = vmatpush.bf16.msra.mxu0 %v7993_v15  ;;  %6099 = vmatmul.bf16.vlgmr.msrb.gmra.mxu1 %v11821_v43  ;;  %v10391_v43 = vld [vmem:[%s11496_s12 + $0x8c4] sm:$0xf]  ;;  %v8366_v40 = vld [vmem:[%s11496_s12 + $0xae8] sm:$0xf0] }
 0x256   : > { %6143 = vmatpush.bf16.msra.mxu1 %v8057_v23  ;;  %6112 = vmatmul.bf16.vlgmr.msrb.gmra.mxu2 %v11825_v45  ;;  %v8041_v45 = vor.u32 %v10377_v26, %v8038_v34  ;;  %v8097_v15 = vor.u32 %v10391_v43, %v8094_v22  ;;  %v5892_v23 = vpop.f32.mrf.mxu1  ;;  %v8078_v26 = vld [vmem:[%s11496_s12 + $0x8a8] sm:$0xf0]  ;;  %v8006_v22 = vld [vmem:[%s11496_s12 + $0x818] sm:$0xf0] }
 0x257   : > { %6156 = vmatpush.bf16.msra.mxu2 %v8121_v41  ;;  %6125 = vmatmul.bf16.vlgmr.msrb.gmra.mxu3 %v11823_v44  ;;  %v8169_v44 = vor.u32 %v10409_v16, %v8166_v50  ;;  %v10373_v41 = vld [vmem:[%s11496_s12 + $0x834] sm:$0xf]  ;;  %v5893_v58 = vadd.f32 %v5892_v23, %v5880_v54  ;;  %v8142_v16 = vld [vmem:[%s11496_s12 + $0x928] sm:$0xf0]  ;;  %v8081_v57 = vor.u32 %v10387_v24, %v8078_v26  ;;  %v8134_v54 = vld [vmem:[%s11496_s12 + $0x918] sm:$0xf0] }
 0x258   : > { %6169 = vmatpush.bf16.msra.mxu3 %v8185_v4  ;;  %v8025_v4 = vor.u32 %v10373_v41, %v8022_v12  ;;  %v8009_v23 = vor.u32 %v10369_v27, %v8006_v22  ;;  %v7998_v41 = vld [vmem:[%s11496_s12 + $0x808] sm:$0xf0]  ;;  %v10383_v12 = vld [vmem:[%s11496_s12 + $0x884] sm:$0xf] }
 0x259   : > { %6131 = vmatpush.bf16.msra.mxu0 %v7985_v29  ;;  %v8089_v29 = vor.u32 %v10389_v56, %v8086_v13  ;;  %v5881_v50 = vpop.f32.mrf.mxu0  ;;  %v8062_v56 = vld [vmem:[%s11496_s12 + $0x888] sm:$0xf0]  ;;  %v10429_v13 = vld [vmem:[%s11496_s12 + $0x9f4] sm:$0xf]  ;;  %v10475_v22 = vld [vmem:[%s11496_s12 + $0xb64] sm:$0xf] }
 0x25a   : > { %6144 = vmatpush.bf16.msra.mxu1 %v8049_v53  ;;  %v10371_v53 = vld [vmem:[%s11496_s12 + $0x824] sm:$0xf]  ;;  %v5918_v47 = vpop.f32.mrf.mxu3  ;;  %v8065_v24 = vor.u32 %v10383_v12, %v8062_v56  ;;  %v8238_v50 = vld [vmem:[%s11496_s12 + $0x9e8] sm:$0xf0] }
 0x25b   : > { %6157 = vmatpush.bf16.msra.mxu2 %v8113_v31  ;;  %v5905_v31 = vpop.f32.mrf.mxu2  ;;  %v10423_v56 = vld [vmem:[%s11496_s12 + $0x9c4] sm:$0xf] }
 0x25c   : > { %6170 = vmatpush.bf16.msra.mxu3 %v8177_v52  ;;  %v5906_v34 = vadd.f32 %v5905_v31, %v5893_v58  ;;  %v7953_v52 = vor.u32 %v10355_v51, %v7950_v37  ;;  %v8246_v58 = vld [vmem:[%s11496_s12 + $0x9f8] sm:$0xf0]  ;;  %v10399_v37 = vld [vmem:[%s11496_s12 + $0x904] sm:$0xf] }
 0x25d   : > { %6132 = vmatpush.bf16.msra.mxu0 %v7977_v33  ;;  %v10403_v33 = vld [vmem:[%s11496_s12 + $0x924] sm:$0xf]  ;;  %v8374_v51 = vld [vmem:[%s11496_s12 + $0xaf8] sm:$0xf0]  ;;  %v8249_v26 = vor.u32 %v10429_v13, %v8246_v58  ;;  %v8222_v13 = vld [vmem:[%s11496_s12 + $0x9c8] sm:$0xf0] }
 0x25e   : > { %6145 = vmatpush.bf16.msra.mxu1 %v8041_v45  ;;  %v12797_v45 = vadd.f32 %v5918_v47, %v5906_v34  ;;  %v5894_v43 = vpop.f32.mrf.mxu1  ;;  %v8313_v34 = vor.u32 %v10445_v7, %v8310_v5  ;;  %v8438_v47 = vld [vmem:[%s11496_s12 + $0xb78] sm:$0xf0]  ;;  %v10439_v58 = vld [vmem:[%s11496_s12 + $0xa44] sm:$0xf]  ;;  %v8225_v5 = vor.u32 %v10423_v56, %v8222_v13  ;;  %v10449_v56 = vld [vmem:[%s11496_s12 + $0xa94] sm:$0xf] }
 0x25f   : > { %6158 = vmatpush.bf16.msra.mxu2 %v8105_v42  ;;  %v8017_v42 = vor.u32 %v10371_v53, %v8014_v6  ;;  %v8126_v53 = vld [vmem:[%s11496_s12 + $0x908] sm:$0xf0]  ;;  %v8001_v6 = vor.u32 %v10367_v30, %v7998_v41  ;;  %v8422_v41 = vld [vmem:[%s11496_s12 + $0xb58] sm:$0xf0] }
 0x260   : > { %6171 = vmatpush.bf16.msra.mxu3 %v8169_v44  ;;  %v10385_v44 = vld [vmem:[%s11496_s12 + $0x894] sm:$0xf]  ;;  %v8326_v13 = vld [vmem:[%s11496_s12 + $0xa98] sm:$0xf0] }
 0x261   : > { %6133 = vmatpush.bf16.msra.mxu0 %v7969_v20  ;;  %v8145_v20 = vor.u32 %v10403_v33, %v8142_v16  ;;  %v8073_v21 = vor.u32 %v10385_v44, %v8070_v48  ;;  %v8129_v33 = vor.u32 %v10399_v37, %v8126_v53  ;;  %v10427_v16 = vld [vmem:[%s11496_s12 + $0x9e4] sm:$0xf]  ;;  %v8430_v44 = vld [vmem:[%s11496_s12 + $0xb68] sm:$0xf0] }
 0x262   : > { %6146 = vmatpush.bf16.msra.mxu1 %v8033_v49  ;;  %v10351_v49 = vld [vmem:[%s11496_s12 + $0x784] sm:$0xf]  ;;  %v5920_v31 = vpop.f32.mrf.mxu3  ;;  %v8241_v43 = vor.u32 %v10427_v16, %v8238_v50  ;;  %v8406_v16 = vld [vmem:[%s11496_s12 + $0xb38] sm:$0xf0] }
 0x263   : > { %6159 = vmatpush.bf16.msra.mxu2 %v8097_v15  ;;  %v7934_v15 = vld [vmem:[%s11496_s12 + $0x788] sm:$0xf0]  ;;  %v10421_v31 = vld [vmem:[%s11496_s12 + $0x9b4] sm:$0xf] }
 0x264   : > { %6172 = vmatpush.bf16.msra.mxu3 %v8161_v55  ;;  %v5907_v55 = vpop.f32.mrf.mxu2 }
 0x265   : > { %6134 = vmatpush.bf16.msra.mxu0 %v7961_v11  ;;  %v8137_v11 = vor.u32 %v10401_v18, %v8134_v54  ;;  %v10425_v18 = vld [vmem:[%s11496_s12 + $0x9d4] sm:$0xf]  ;;  %v8286_v55 = vld [vmem:[%s11496_s12 + $0xa48] sm:$0xf0] }
 0x266   : > { %6147 = vmatpush.bf16.msra.mxu1 %v8025_v4  ;;  %v10461_v4 = vld [vmem:[%s11496_s12 + $0xaf4] sm:$0xf]  ;;  %v8289_v37 = vor.u32 %v10439_v58, %v8286_v55 }
 0x267   : > { %6160 = vmatpush.bf16.msra.mxu2 %v8089_v29  ;;  %v7937_v29 = vor.u32 %v10351_v49, %v7934_v15  ;;  %v10441_v54 = vld [vmem:[%s11496_s12 + $0xa54] sm:$0xf]  ;;  %v8294_v49 = vld [vmem:[%s11496_s12 + $0xa58] sm:$0xf0] }
 0x268   : > { %6173 = vmatpush.bf16.msra.mxu3 %v8153_v61  ;;  %v10477_v61 = vld [vmem:[%s11496_s12 + $0xb74] sm:$0xf] }
 0x269   : > { %6135 = vmatpush.bf16.msra.mxu0 %v7953_v52  ;;  %v8377_v52 = vor.u32 %v10461_v4, %v8374_v51  ;;  %v8441_v27 = vor.u32 %v10477_v61, %v8438_v47  ;;  %v10457_v15 = vld [vmem:[%s11496_s12 + $0xad4] sm:$0xf]  ;;  %v10471_v4 = vld [vmem:[%s11496_s12 + $0xb44] sm:$0xf]  ;;  %v8342_v47 = vld [vmem:[%s11496_s12 + $0xab8] sm:$0xf0] }
 0x26a   : > { %6148 = vmatpush.bf16.msra.mxu1 %v8017_v42  ;;  %v10443_v42 = vld [vmem:[%s11496_s12 + $0xa64] sm:$0xf]  ;;  %v10453_v61 = vld [vmem:[%s11496_s12 + $0xab4] sm:$0xf] }
 0x26b   : > { %6161 = vmatpush.bf16.msra.mxu2 %v8081_v57  ;;  %v8302_v57 = vld [vmem:[%s11496_s12 + $0xa68] sm:$0xf0] }
 0x26c   : > { %6174 = vmatpush.bf16.msra.mxu3 %v8145_v20  ;;  %v8305_v48 = vor.u32 %v10443_v42, %v8302_v57  ;;  %v8369_v20 = vor.u32 %v10459_v8, %v8366_v40  ;;  %v8345_v42 = vor.u32 %v10453_v61, %v8342_v47  ;;  %v10419_v57 = vld [vmem:[%s11496_s12 + $0x9a4] sm:$0xf]  ;;  %v8206_v8 = vld [vmem:[%s11496_s12 + $0x9a8] sm:$0xf0]  ;;  %v10509_v61 = vld [vmem:[%s11496_s12 + $0xc74] sm:$0xf] }
 0x26d   : > { %6136 = vmatpush.bf16.msra.mxu0 %v7945_v28  ;;  %v8230_v28 = vld [vmem:[%s11496_s12 + $0x9d8] sm:$0xf0]  ;;  %v10435_v40 = vld [vmem:[%s11496_s12 + $0xa24] sm:$0xf] }
 0x26e   : > { %6149 = vmatpush.bf16.msra.mxu1 %v8009_v23  ;;  %v8358_v23 = vld [vmem:[%s11496_s12 + $0xad8] sm:$0xf0]  ;;  %v8233_v30 = vor.u32 %v10425_v18, %v8230_v28  ;;  %v10467_v18 = vld [vmem:[%s11496_s12 + $0xb24] sm:$0xf]  ;;  %v8398_v28 = vld [vmem:[%s11496_s12 + $0xb28] sm:$0xf0] }
 0x26f   : > { %6162 = vmatpush.bf16.msra.mxu2 %v8073_v21  ;;  %v8433_v21 = vor.u32 %v10475_v22, %v8430_v44  ;;  %v8361_v12 = vor.u32 %v10457_v15, %v8358_v23  ;;  %v8334_v22 = vld [vmem:[%s11496_s12 + $0xaa8] sm:$0xf0]  ;;  %v8401_v55 = vor.u32 %v10467_v18, %v8398_v28  ;;  %v8566_v47 = vld [vmem:[%s11496_s12 + $0xc78] sm:$0xf0]  ;;  %v10491_v18 = vld [vmem:[%s11496_s12 + $0xbe4] sm:$0xf] }
 0x270   : > { %6175 = vmatpush.bf16.msra.mxu3 %v8137_v11  ;;  %v8350_v11 = vld [vmem:[%s11496_s12 + $0xac8] sm:$0xf0] }
 0x271   : > { %6137 = vmatpush.bf16.msra.mxu0 %v7937_v29  ;;  %v5931_v7 = vpop.f32.mrf.mxu0  ;;  %v8414_v29 = vld [vmem:[%s11496_s12 + $0xb48] sm:$0xf0] }
 0x272   : > { %6150 = vmatpush.bf16.msra.mxu1 %v8001_v6  ;;  %v12852_v51 = vadd.f32 %v5931_v7, %v12797_v45  ;;  %v8214_v6 = vld [vmem:[%s11496_s12 + $0x9b8] sm:$0xf0]  ;;  %v10415_v7 = vld [vmem:[%s11496_s12 + $0x984] sm:$0xf]  ;;  %v8494_v28 = vld [vmem:[%s11496_s12 + $0xbe8] sm:$0xf0] }
 0x273   : > { %6163 = vmatpush.bf16.msra.mxu2 %v8065_v24  ;;  %v10437_v24 = vld [vmem:[%s11496_s12 + $0xa34] sm:$0xf]  ;;  %v8217_v45 = vor.u32 %v10421_v31, %v8214_v6  ;;  %v10447_v31 = vld [vmem:[%s11496_s12 + $0xa84] sm:$0xf]  ;;  %v8318_v6 = vld [vmem:[%s11496_s12 + $0xa88] sm:$0xf0] }
 0x274   : > { %6176 = vmatpush.bf16.msra.mxu3 %v8129_v33  ;;  %6138 = vmatmul.bf16.vlgmr.msra.gmra.mxu0 %v11827_v46  ;;  %v10473_v46 = vld [vmem:[%s11496_s12 + $0xb54] sm:$0xf] }
 0x275   : > { %6182 = vmatpush.bf16.msrb.mxu0 %v8249_v26  ;;  %6151 = vmatmul.bf16.vlgmr.msra.gmra.mxu1 %v11911_v9  ;;  %v10455_v9 = vld [vmem:[%s11496_s12 + $0xac4] sm:$0xf]  ;;  %v5944_v26 = vpop.f32.mrf.mxu1  ;;  %v10469_v33 = vld [vmem:[%s11496_s12 + $0xb34] sm:$0xf] }
 0x276   : > { %6195 = vmatpush.bf16.msrb.mxu1 %v8313_v34  ;;  %6164 = vmatmul.bf16.vlgmr.msra.gmra.mxu2 %v11915_v14  ;;  %v8297_v14 = vor.u32 %v10441_v54, %v8294_v49  ;;  %v8353_v53 = vor.u32 %v10455_v9, %v8350_v11  ;;  %v8278_v34 = vld [vmem:[%s11496_s12 + $0xa38] sm:$0xf0]  ;;  %v8409_v44 = vor.u32 %v10469_v33, %v8406_v16  ;;  %v10465_v9 = vld [vmem:[%s11496_s12 + $0xb14] sm:$0xf] }
 0x277   : > { %6208 = vmatpush.bf16.msrb.mxu2 %v8377_v52  ;;  %6177 = vmatmul.bf16.vlgmr.msra.gmra.mxu3 %v11913_v10  ;;  %v8425_v10 = vor.u32 %v10473_v46, %v8422_v41  ;;  %v8417_v52 = vor.u32 %v10471_v4, %v8414_v29  ;;  %v8281_v50 = vor.u32 %v10437_v24, %v8278_v34  ;;  %v10433_v46 = vld [vmem:[%s11496_s12 + $0xa14] sm:$0xf]  ;;  %v8630_v16 = vld [vmem:[%s11496_s12 + $0xcf8] sm:$0xf0] }
 0x278   : > { %6221 = vmatpush.bf16.msrb.mxu3 %v8441_v27  ;;  %v8270_v27 = vld [vmem:[%s11496_s12 + $0xa28] sm:$0xf0]  ;;  %v8329_v29 = vor.u32 %v10449_v56, %v8326_v13  ;;  %v10493_v24 = vld [vmem:[%s11496_s12 + $0xbf4] sm:$0xf]  ;;  %v8486_v13 = vld [vmem:[%s11496_s12 + $0xbd8] sm:$0xf0] }
 0x279   : > { %6183 = vmatpush.bf16.msrb.mxu0 %v8241_v43  ;;  %v10451_v43 = vld [vmem:[%s11496_s12 + $0xaa4] sm:$0xf]  ;;  %v5933_v49 = vpop.f32.mrf.mxu0  ;;  %v8273_v15 = vor.u32 %v10435_v40, %v8270_v27  ;;  %v10489_v56 = vld [vmem:[%s11496_s12 + $0xbd4] sm:$0xf] }
 0x27a   : > { %6196 = vmatpush.bf16.msrb.mxu1 %v8305_v48  ;;  %v5957_v48 = vpop.f32.mrf.mxu2  ;;  %v8337_v23 = vor.u32 %v10451_v43, %v8334_v22  ;;  %v5970_v41 = vpop.f32.mrf.mxu3  ;;  %v8569_v43 = vor.u32 %v10509_v61, %v8566_v47  ;;  %v10541_v22 = vld [vmem:[%s11496_s12 + $0xd74] sm:$0xf]  ;;  %v8558_v49 = vld [vmem:[%s11496_s12 + $0xc68] sm:$0xf0]  ;;  %v10535_v61 = vld [vmem:[%s11496_s12 + $0xd44] sm:$0xf] }
 0x27b   : > { %6209 = vmatpush.bf16.msrb.mxu2 %v8369_v20  ;;  %v8209_v20 = vor.u32 %v10419_v57, %v8206_v8  ;;  %v5958_v54 = vadd.f32 %v5957_v48, %v5944_v26  ;;  %v8502_v26 = vld [vmem:[%s11496_s12 + $0xbf8] sm:$0xf0]  ;;  %v8321_v8 = vor.u32 %v10447_v31, %v8318_v6  ;;  %v10503_v31 = vld [vmem:[%s11496_s12 + $0xc44] sm:$0xf]  ;;  %v8542_v6 = vld [vmem:[%s11496_s12 + $0xc48] sm:$0xf0] }
 0x27c   : > { %6222 = vmatpush.bf16.msrb.mxu3 %v8433_v21  ;;  %v10417_v21 = vld [vmem:[%s11496_s12 + $0x994] sm:$0xf]  ;;  %v8505_v27 = vor.u32 %v10493_v24, %v8502_v26  ;;  %v8606_v24 = vld [vmem:[%s11496_s12 + $0xcc8] sm:$0xf0] }
 0x27d   : > { %6184 = vmatpush.bf16.msrb.mxu0 %v8233_v30  ;;  %v8198_v30 = vld [vmem:[%s11496_s12 + $0x998] sm:$0xf0]  ;;  %v12876_v58 = vadd.f32 %v5970_v41, %v5958_v54  ;;  %v10507_v54 = vld [vmem:[%s11496_s12 + $0xc64] sm:$0xf]  ;;  %v8686_v41 = vld [vmem:[%s11496_s12 + $0xd68] sm:$0xf0] }
 0x27e   : > { %6197 = vmatpush.bf16.msrb.mxu1 %v8297_v14  ;;  %v5946_v14 = vpop.f32.mrf.mxu1  ;;  %v8201_v11 = vor.u32 %v10417_v21, %v8198_v30  ;;  %v8497_v30 = vor.u32 %v10491_v18, %v8494_v28  ;;  %v8670_v47 = vld [vmem:[%s11496_s12 + $0xd48] sm:$0xf0]  ;;  %v10483_v28 = vld [vmem:[%s11496_s12 + $0xba4] sm:$0xf] }
 0x27f   : > { %6210 = vmatpush.bf16.msrb.mxu2 %v8361_v12  ;;  %v8262_v12 = vld [vmem:[%s11496_s12 + $0xa18] sm:$0xf0]  ;;  %v8561_v14 = vor.u32 %v10507_v54, %v8558_v49  ;;  %v8462_v54 = vld [vmem:[%s11496_s12 + $0xba8] sm:$0xf0]  ;;  %v10499_v49 = vld [vmem:[%s11496_s12 + $0xc24] sm:$0xf] }
 0x280   : > { %6223 = vmatpush.bf16.msrb.mxu3 %v8425_v10  ;;  %v8390_v10 = vld [vmem:[%s11496_s12 + $0xb18] sm:$0xf0]  ;;  %v8265_v4 = vor.u32 %v10433_v46, %v8262_v12  ;;  %v10539_v46 = vld [vmem:[%s11496_s12 + $0xd64] sm:$0xf] }
 0x281   : > { %6185 = vmatpush.bf16.msrb.mxu0 %v8225_v5  ;;  %v8190_v5 = vld [vmem:[%s11496_s12 + $0x988] sm:$0xf0]  ;;  %v8393_v34 = vor.u32 %v10465_v9, %v8390_v10  ;;  %v8550_v9 = vld [vmem:[%s11496_s12 + $0xc58] sm:$0xf0] }
 0x282   : > { %6198 = vmatpush.bf16.msrb.mxu1 %v8289_v37  ;;  %v10431_v37 = vld [vmem:[%s11496_s12 + $0xa04] sm:$0xf]  ;;  %v8193_v33 = vor.u32 %v10415_v7, %v8190_v5  ;;  %v5972_v40 = vpop.f32.mrf.mxu3  ;;  %v8614_v10 = vld [vmem:[%s11496_s12 + $0xcd8] sm:$0xf0]  ;;  %v8689_v7 = vor.u32 %v10539_v46, %v8686_v41  ;;  %v8489_v5 = vor.u32 %v10489_v56, %v8486_v13  ;;  %v8654_v13 = vld [vmem:[%s11496_s12 + $0xd28] sm:$0xf0] }
 0x283   : > { %6211 = vmatpush.bf16.msrb.mxu2 %v8353_v53  ;;  %v8254_v53 = vld [vmem:[%s11496_s12 + $0xa08] sm:$0xf0]  ;;  %v10517_v40 = vld [vmem:[%s11496_s12 + $0xcb4] sm:$0xf]  ;;  %v10531_v56 = vld [vmem:[%s11496_s12 + $0xd24] sm:$0xf] }
 0x284   : > { %6224 = vmatpush.bf16.msrb.mxu3 %v8417_v52  ;;  %v10525_v52 = vld [vmem:[%s11496_s12 + $0xcf4] sm:$0xf]  ;;  %v8257_v57 = vor.u32 %v10431_v37, %v8254_v53  ;;  %v10487_v37 = vld [vmem:[%s11496_s12 + $0xbc4] sm:$0xf]  ;;  %v8478_v53 = vld [vmem:[%s11496_s12 + $0xbc8] sm:$0xf0] }
 0x285   : > { %6186 = vmatpush.bf16.msrb.mxu0 %v8217_v45  ;;  %v5959_v45 = vpop.f32.mrf.mxu2  ;;  %v8633_v48 = vor.u32 %v10525_v52, %v8630_v16  ;;  %v10485_v16 = vld [vmem:[%s11496_s12 + $0xbb4] sm:$0xf] }
 0x286   : > { %6199 = vmatpush.bf16.msrb.mxu1 %v8281_v50  ;;  %v10463_v50 = vld [vmem:[%s11496_s12 + $0xb04] sm:$0xf]  ;;  %v8545_v45 = vor.u32 %v10503_v31, %v8542_v6  ;;  %v10529_v31 = vld [vmem:[%s11496_s12 + $0xd14] sm:$0xf] }
 0x287   : > { %6212 = vmatpush.bf16.msrb.mxu2 %v8345_v42  ;;  %v8382_v42 = vld [vmem:[%s11496_s12 + $0xb08] sm:$0xf0] }
 0x288   : > { %6225 = vmatpush.bf16.msrb.mxu3 %v8409_v44  ;;  %v8694_v44 = vld [vmem:[%s11496_s12 + $0xd78] sm:$0xf0] }
 0x289   : > { %6187 = vmatpush.bf16.msrb.mxu0 %v8209_v20  ;;  %v8385_v20 = vor.u32 %v10463_v50, %v8382_v42  ;;  %v8697_v21 = vor.u32 %v10541_v22, %v8694_v44  ;;  %v8470_v50 = vld [vmem:[%s11496_s12 + $0xbb8] sm:$0xf0]  ;;  %v10501_v42 = vld [vmem:[%s11496_s12 + $0xc34] sm:$0xf] }
 0x28a   : > { %6200 = vmatpush.bf16.msrb.mxu1 %v8273_v15  ;;  %v10523_v15 = vld [vmem:[%s11496_s12 + $0xce4] sm:$0xf]  ;;  %v8473_v22 = vor.u32 %v10485_v16, %v8470_v50  ;;  %v10533_v44 = vld [vmem:[%s11496_s12 + $0xd34] sm:$0xf]  ;;  %v8758_v16 = vld [vmem:[%s11496_s12 + $0xdf8] sm:$0xf0] }
 0x28b   : > { %6213 = vmatpush.bf16.msrb.mxu2 %v8337_v23  ;;  %v8622_v23 = vld [vmem:[%s11496_s12 + $0xce8] sm:$0xf0] }
 0x28c   : > { %6226 = vmatpush.bf16.msrb.mxu3 %v8401_v55  ;;  %v8625_v12 = vor.u32 %v10523_v15, %v8622_v23  ;;  %v10505_v55 = vld [vmem:[%s11496_s12 + $0xc54] sm:$0xf]  ;;  %v8526_v23 = vld [vmem:[%s11496_s12 + $0xc28] sm:$0xf0] }
 0x28d   : > { %6188 = vmatpush.bf16.msrb.mxu0 %v8201_v11  ;;  %v10521_v11 = vld [vmem:[%s11496_s12 + $0xcd4] sm:$0xf] }
 0x28e   : > { %6201 = vmatpush.bf16.msrb.mxu1 %v8265_v4  ;;  %v8678_v4 = vld [vmem:[%s11496_s12 + $0xd58] sm:$0xf0] }
 0x28f   : > { %6214 = vmatpush.bf16.msrb.mxu2 %v8329_v29  ;;  %v8617_v29 = vor.u32 %v10521_v11, %v8614_v10  ;;  %v10481_v10 = vld [vmem:[%s11496_s12 + $0xb94] sm:$0xf] }
 0x290   : > { %6227 = vmatpush.bf16.msrb.mxu3 %v8393_v34  ;;  %v8481_v34 = vor.u32 %v10487_v37, %v8478_v53  ;;  %v8582_v37 = vld [vmem:[%s11496_s12 + $0xc98] sm:$0xf0]  ;;  %v8657_v53 = vor.u32 %v10531_v56, %v8654_v13 }
 0x291   : > { %6189 = vmatpush.bf16.msrb.mxu0 %v8193_v33  ;;  %v5983_v26 = vpop.f32.mrf.mxu0 }
 0x292   : > { %6202 = vmatpush.bf16.msrb.mxu1 %v8257_v57  ;;  %v5984_v52 = vadd.f32 %v5983_v26, %v12876_v58  ;;  %v5996_v57 = vpop.f32.mrf.mxu1  ;;  %v8673_v58 = vor.u32 %v10535_v61, %v8670_v47  ;;  %v10495_v61 = vld [vmem:[%s11496_s12 + $0xc04] sm:$0xf]  ;;  %v8510_v47 = vld [vmem:[%s11496_s12 + $0xc08] sm:$0xf0] }
 0x293   : > { %6215 = vmatpush.bf16.msrb.mxu2 %v8321_v8  ;;  %v8534_v8 = vld [vmem:[%s11496_s12 + $0xc38] sm:$0xf0] }
 0x294   : > { %6228 = vmatpush.bf16.msrb.mxu3 %v8385_v20  ;;  %6190 = vmatmul.bf16.vlgmr.msrb.gmra.mxu0 %v11917_v17  ;;  %v10537_v17 = vld [vmem:[%s11496_s12 + $0xd54] sm:$0xf]  ;;  %v8537_v20 = vor.u32 %v10501_v42, %v8534_v8  ;;  %v8822_v8 = vld [vmem:[%s11496_s12 + $0xe78] sm:$0xf0] }
 0x295   : > { %6234 = vmatpush.bf16.msra.mxu0 %v8505_v27  ;;  %6203 = vmatmul.bf16.vlgmr.msrb.gmra.mxu1 %v11974_v63  ;;  %v10519_v63 = vld [vmem:[%s11496_s12 + $0xcc4] sm:$0xf]  ;;  %v8598_v27 = vld [vmem:[%s11496_s12 + $0xcb8] sm:$0xf0] }
 0x296   : > { %6247 = vmatpush.bf16.msra.mxu1 %v8569_v43  ;;  %6216 = vmatmul.bf16.vlgmr.msrb.gmra.mxu2 %v11978_v2  ;;  %v8553_v2 = vor.u32 %v10505_v55, %v8550_v9  ;;  %v8609_v33 = vor.u32 %v10519_v63, %v8606_v24  ;;  %v5997_v43 = vadd.f32 %v5996_v57, %v5984_v52  ;;  %v8646_v63 = vld [vmem:[%s11496_s12 + $0xd18] sm:$0xf0]  ;;  %v10479_v24 = vld [vmem:[%s11496_s12 + $0xb84] sm:$0xf]  ;;  %v10573_v57 = vld [vmem:[%s11496_s12 + $0xe74] sm:$0xf] }
 0x297   : > { %6260 = vmatpush.bf16.msra.mxu2 %v8633_v48  ;;  %6229 = vmatmul.bf16.vlgmr.msrb.gmra.mxu3 %v11976_v0  ;;  %v8681_v0 = vor.u32 %v10537_v17, %v8678_v4  ;;  %v8662_v48 = vld [vmem:[%s11496_s12 + $0xd38] sm:$0xf0]  ;;  %v8601_v18 = vor.u32 %v10517_v40, %v8598_v27  ;;  %v8529_v55 = vor.u32 %v10499_v49, %v8526_v23  ;;  %v10511_v52 = vld [vmem:[%s11496_s12 + $0xc84] sm:$0xf]  ;;  %v10589_v40 = vld [vmem:[%s11496_s12 + $0xef4] sm:$0xf] }
 0x298   : > { %6273 = vmatpush.bf16.msra.mxu3 %v8697_v21  ;;  %v10515_v21 = vld [vmem:[%s11496_s12 + $0xca4] sm:$0xf]  ;;  %v8665_v46 = vor.u32 %v10533_v44, %v8662_v48  ;;  %v8649_v42 = vor.u32 %v10529_v31, %v8646_v63  ;;  %v8513_v44 = vor.u32 %v10495_v61, %v8510_v47  ;;  %v8950_v49 = vld [vmem:[%s11496_s12 + $0xf78] sm:$0xf0]  ;;  %v8862_v61 = vld [vmem:[%s11496_s12 + $0xec8] sm:$0xf0] }
 0x299   : > { %6235 = vmatpush.bf16.msra.mxu0 %v8497_v30  ;;  %v6009_v15 = vpop.f32.mrf.mxu2  ;;  %v8590_v30 = vld [vmem:[%s11496_s12 + $0xca8] sm:$0xf0] }
 0x29a   : > { %6248 = vmatpush.bf16.msra.mxu1 %v8561_v14  ;;  %v6010_v41 = vadd.f32 %v6009_v15, %v5997_v43  ;;  %v5985_v14 = vpop.f32.mrf.mxu0  ;;  %v8593_v9 = vor.u32 %v10515_v21, %v8590_v30  ;;  %v6022_v11 = vpop.f32.mrf.mxu3  ;;  %v8886_v43 = vld [vmem:[%s11496_s12 + $0xef8] sm:$0xf0]  ;;  %v10555_v21 = vld [vmem:[%s11496_s12 + $0xde4] sm:$0xf]  ;;  %v8750_v30 = vld [vmem:[%s11496_s12 + $0xde8] sm:$0xf0] }
 0x29b   : > { %6261 = vmatpush.bf16.msra.mxu2 %v8625_v12  ;;  %v8465_v12 = vor.u32 %v10483_v28, %v8462_v54  ;;  %v5998_v17 = vpop.f32.mrf.mxu1  ;;  %v8825_v28 = vor.u32 %v10573_v57, %v8822_v8  ;;  %v10605_v54 = vld [vmem:[%s11496_s12 + $0xf74] sm:$0xf]  ;;  %v8889_v15 = vor.u32 %v10589_v40, %v8886_v43  ;;  %v10587_v14 = vld [vmem:[%s11496_s12 + $0xee4] sm:$0xf]  ;;  %v8753_v13 = vor.u32 %v10555_v21, %v8750_v30  ;;  %v8726_v40 = vld [vmem:[%s11496_s12 + $0xdb8] sm:$0xf0] }
 0x29c   : > { %6274 = vmatpush.bf16.msra.mxu3 %v8689_v7  ;;  %v8454_v7 = vld [vmem:[%s11496_s12 + $0xb98] sm:$0xf0]  ;;  %v12944_v4 = vadd.f32 %v6022_v11, %v6010_v41  ;;  %v8814_v41 = vld [vmem:[%s11496_s12 + $0xe68] sm:$0xf0]  ;;  %v8953_v56 = vor.u32 %v10605_v54, %v8950_v49  ;;  %v10569_v17 = vld [vmem:[%s11496_s12 + $0xe54] sm:$0xf] }
 0x29d   : > { %6236 = vmatpush.bf16.msra.mxu0 %v8489_v5  ;;  %v10497_v5 = vld [vmem:[%s11496_s12 + $0xc14] sm:$0xf]  ;;  %v8457_v6 = vor.u32 %v10481_v10, %v8454_v7  ;;  %v10563_v21 = vld [vmem:[%s11496_s12 + $0xe24] sm:$0xf] }
 0x29e   : > { %6249 = vmatpush.bf16.msra.mxu1 %v8553_v2  ;;  %v8518_v2 = vld [vmem:[%s11496_s12 + $0xc18] sm:$0xf0]  ;;  %v10553_v7 = vld [vmem:[%s11496_s12 + $0xdd4] sm:$0xf] }
 0x29f   : > { %6262 = vmatpush.bf16.msra.mxu2 %v8617_v29  ;;  %v10513_v29 = vld [vmem:[%s11496_s12 + $0xc94] sm:$0xf]  ;;  %v8521_v26 = vor.u32 %v10497_v5, %v8518_v2  ;;  %v8742_v5 = vld [vmem:[%s11496_s12 + $0xdd8] sm:$0xf0] }
 0x2a0   : > { %6275 = vmatpush.bf16.msra.mxu3 %v8681_v0  ;;  %v8446_v0 = vld [vmem:[%s11496_s12 + $0xb88] sm:$0xf0]  ;;  %v8806_v2 = vld [vmem:[%s11496_s12 + $0xe58] sm:$0xf0]  ;;  %v8745_v31 = vor.u32 %v10553_v7, %v8742_v5  ;;  %v10549_v8 = vld [vmem:[%s11496_s12 + $0xdb4] sm:$0xf] }
 0x2a1   : > { %6237 = vmatpush.bf16.msra.mxu0 %v8481_v34  ;;  %v8585_v34 = vor.u32 %v10513_v29, %v8582_v37  ;;  %v6011_v50 = vpop.f32.mrf.mxu2  ;;  %v8449_v27 = vor.u32 %v10479_v24, %v8446_v0  ;;  %v10585_v29 = vld [vmem:[%s11496_s12 + $0xed4] sm:$0xf]  ;;  %v8870_v37 = vld [vmem:[%s11496_s12 + $0xed8] sm:$0xf0]  ;;  %v10551_v24 = vld [vmem:[%s11496_s12 + $0xdc4] sm:$0xf] }
 0x2a2   : > { %6250 = vmatpush.bf16.msra.mxu1 %v8545_v45  ;;  %v8574_v45 = vld [vmem:[%s11496_s12 + $0xc88] sm:$0xf0]  ;;  %v8873_v63 = vor.u32 %v10585_v29, %v8870_v37  ;;  %v8710_v29 = vld [vmem:[%s11496_s12 + $0xd98] sm:$0xf0]  ;;  %v10561_v37 = vld [vmem:[%s11496_s12 + $0xe14] sm:$0xf] }
 0x2a3   : > { %6263 = vmatpush.bf16.msra.mxu2 %v8609_v33  ;;  %v10557_v33 = vld [vmem:[%s11496_s12 + $0xdf4] sm:$0xf]  ;;  %v8577_v48 = vor.u32 %v10511_v52, %v8574_v45  ;;  %v8734_v0 = vld [vmem:[%s11496_s12 + $0xdc8] sm:$0xf0] }
 0x2a4   : > { %6276 = vmatpush.bf16.msra.mxu3 %v8673_v58  ;;  %v10527_v58 = vld [vmem:[%s11496_s12 + $0xd04] sm:$0xf]  ;;  %v8737_v45 = vor.u32 %v10551_v24, %v8734_v0  ;;  %v8926_v50 = vld [vmem:[%s11496_s12 + $0xf48] sm:$0xf0]  ;;  %v8902_v24 = vld [vmem:[%s11496_s12 + $0xf18] sm:$0xf0] }
 0x2a5   : > { %6238 = vmatpush.bf16.msra.mxu0 %v8473_v22  ;;  %v8638_v22 = vld [vmem:[%s11496_s12 + $0xd08] sm:$0xf0]  ;;  %v10543_v0 = vld [vmem:[%s11496_s12 + $0xd84] sm:$0xf] }
 0x2a6   : > { %6251 = vmatpush.bf16.msra.mxu1 %v8537_v20  ;;  %v6024_v20 = vpop.f32.mrf.mxu3  ;;  %v8641_v23 = vor.u32 %v10527_v58, %v8638_v22  ;;  %v8790_v58 = vld [vmem:[%s11496_s12 + $0xe38] sm:$0xf0]  ;;  %v10581_v22 = vld [vmem:[%s11496_s12 + $0xeb4] sm:$0xf] }
 0x2a7   : > { %6264 = vmatpush.bf16.msra.mxu2 %v8601_v18  ;;  %v8761_v18 = vor.u32 %v10557_v33, %v8758_v16  ;;  %v10599_v16 = vld [vmem:[%s11496_s12 + $0xf44] sm:$0xf]  ;;  %v10597_v20 = vld [vmem:[%s11496_s12 + $0xf34] sm:$0xf] }
 0x2a8   : > { %6277 = vmatpush.bf16.msra.mxu3 %v8665_v46  ;;  %v10571_v46 = vld [vmem:[%s11496_s12 + $0xe64] sm:$0xf] }
 0x2a9   : > { %6239 = vmatpush.bf16.msra.mxu0 %v8465_v12  ;;  %v8878_v12 = vld [vmem:[%s11496_s12 + $0xee8] sm:$0xf0]  ;;  %v8817_v11 = vor.u32 %v10571_v46, %v8814_v41  ;;  %v10579_v41 = vld [vmem:[%s11496_s12 + $0xea4] sm:$0xf] }
 0x2aa   : > { %6252 = vmatpush.bf16.msra.mxu1 %v8529_v55  ;;  %v10603_v55 = vld [vmem:[%s11496_s12 + $0xf64] sm:$0xf]  ;;  %v8881_v10 = vor.u32 %v10587_v14, %v8878_v12  ;;  %v8782_v46 = vld [vmem:[%s11496_s12 + $0xe28] sm:$0xf0] }
 0x2ab   : > { %6265 = vmatpush.bf16.msra.mxu2 %v8593_v9  ;;  %v8942_v9 = vld [vmem:[%s11496_s12 + $0xf68] sm:$0xf0]  ;;  %v8785_v5 = vor.u32 %v10563_v21, %v8782_v46  ;;  %v10635_v21 = vld [vmem:[%s11496_s12 + $0x1064] sm:$0xf] }
 0x2ac   : > { %6278 = vmatpush.bf16.msra.mxu3 %v8657_v53  ;;  %v8945_v53 = vor.u32 %v10603_v55, %v8942_v9  ;;  %v8846_v14 = vld [vmem:[%s11496_s12 + $0xea8] sm:$0xf0]  ;;  %v10651_v46 = vld [vmem:[%s11496_s12 + $0x10e4] sm:$0xf] }
 0x2ad   : > { %6240 = vmatpush.bf16.msra.mxu0 %v8457_v6  ;;  %v8934_v6 = vld [vmem:[%s11496_s12 + $0xf58] sm:$0xf0] }
 0x2ae   : > { %6253 = vmatpush.bf16.msra.mxu1 %v8521_v26  ;;  %v10567_v26 = vld [vmem:[%s11496_s12 + $0xe44] sm:$0xf] }
 0x2af   : > { %6266 = vmatpush.bf16.msra.mxu2 %v8585_v34  ;;  %v8798_v34 = vld [vmem:[%s11496_s12 + $0xe48] sm:$0xf0] }
 0x2b0   : > { %6279 = vmatpush.bf16.msra.mxu3 %v8649_v42  ;;  %v8801_v42 = vor.u32 %v10567_v26, %v8798_v34  ;;  %v8702_v26 = vld [vmem:[%s11496_s12 + $0xd88] sm:$0xf0] }
 0x2b1   : > { %6241 = vmatpush.bf16.msra.mxu0 %v8449_v27  ;;  %v6035_v47 = vpop.f32.mrf.mxu0  ;;  %v10565_v27 = vld [vmem:[%s11496_s12 + $0xe34] sm:$0xf] }
 0x2b2   : > { %6254 = vmatpush.bf16.msra.mxu1 %v8513_v44  ;;  %v6036_v52 = vadd.f32 %v6035_v47, %v12944_v4  ;;  %v6048_v33 = vpop.f32.mrf.mxu1  ;;  %v8854_v4 = vld [vmem:[%s11496_s12 + $0xeb8] sm:$0xf0]  ;;  %v8929_v44 = vor.u32 %v10599_v16, %v8926_v50  ;;  %v10575_v47 = vld [vmem:[%s11496_s12 + $0xe84] sm:$0xf] }
 0x2b3   : > { %6267 = vmatpush.bf16.msra.mxu2 %v8577_v48  ;;  %v8729_v48 = vor.u32 %v10549_v8, %v8726_v40  ;;  %v8857_v54 = vor.u32 %v10581_v22, %v8854_v4  ;;  %v9014_v16 = vld [vmem:[%s11496_s12 + $0xff8] sm:$0xf0]  ;;  %v10653_v8 = vld [vmem:[%s11496_s12 + $0x10f4] sm:$0xf]  ;;  %v8894_v22 = vld [vmem:[%s11496_s12 + $0xf08] sm:$0xf0] }
 0x2b4   : > { %6280 = vmatpush.bf16.msra.mxu3 %v8641_v23  ;;  %6242 = vmatmul.bf16.vlgmr.msra.gmra.mxu0 %v11980_v3  ;;  %v10601_v3 = vld [vmem:[%s11496_s12 + $0xf54] sm:$0xf]  ;;  %v6049_v43 = vadd.f32 %v6048_v33, %v6036_v52  ;;  %v8718_v23 = vld [vmem:[%s11496_s12 + $0xda8] sm:$0xf0] }
 0x2b5   : > { %6286 = vmatpush.bf16.msrb.mxu0 %v8761_v18  ;;  %6255 = vmatmul.bf16.vlgmr.msra.gmra.mxu1 %v12069_v35  ;;  %v10583_v35 = vld [vmem:[%s11496_s12 + $0xec4] sm:$0xf]  ;;  %v8918_v18 = vld [vmem:[%s11496_s12 + $0xf38] sm:$0xf0]  ;;  %v10621_v33 = vld [vmem:[%s11496_s12 + $0xff4] sm:$0xf] }
 0x2b6   : > { %6299 = vmatpush.bf16.msrb.mxu1 %v8825_v28  ;;  %6268 = vmatmul.bf16.vlgmr.msra.gmra.mxu2 %v12073_v38  ;;  %v8809_v38 = vor.u32 %v10569_v17, %v8806_v2  ;;  %v8865_v57 = vor.u32 %v10583_v35, %v8862_v61  ;;  %v8793_v28 = vor.u32 %v10565_v27, %v8790_v58  ;;  %v10545_v2 = vld [vmem:[%s11496_s12 + $0xd94] sm:$0xf]  ;;  %v10559_v61 = vld [vmem:[%s11496_s12 + $0xe04] sm:$0xf] }
 0x2b7   : > { %6312 = vmatpush.bf16.msrb.mxu2 %v8889_v15  ;;  %6281 = vmatmul.bf16.vlgmr.msra.gmra.mxu3 %v12071_v36  ;;  %v8937_v36 = vor.u32 %v10601_v3, %v8934_v6  ;;  %v10547_v15 = vld [vmem:[%s11496_s12 + $0xda4] sm:$0xf]  ;;  %v8921_v12 = vor.u32 %v10597_v20, %v8918_v18  ;;  %v8849_v17 = vor.u32 %v10579_v41, %v8846_v14  ;;  %v8838_v3 = vld [vmem:[%s11496_s12 + $0xe98] sm:$0xf0]  ;;  %v10669_v18 = vld [vmem:[%s11496_s12 + $0x1174] sm:$0xf] }
 0x2b8   : > { %6325 = vmatpush.bf16.msrb.mxu3 %v8953_v56  ;;  %v8721_v9 = vor.u32 %v10547_v15, %v8718_v23  ;;  %v8705_v27 = vor.u32 %v10543_v0, %v8702_v26  ;;  %v10591_v58 = vld [vmem:[%s11496_s12 + $0xf04] sm:$0xf]  ;;  %v9006_v23 = vld [vmem:[%s11496_s12 + $0xfe8] sm:$0xf0] }
 0x2b9   : > { %6287 = vmatpush.bf16.msrb.mxu0 %v8753_v13  ;;  %v6061_v49 = vpop.f32.mrf.mxu2  ;;  %v6037_v13 = vpop.f32.mrf.mxu0  ;;  %v10619_v15 = vld [vmem:[%s11496_s12 + $0xfe4] sm:$0xf]  ;;  %v9134_v41 = vld [vmem:[%s11496_s12 + $0x10e8] sm:$0xf0] }
 0x2ba   : > { %6300 = vmatpush.bf16.msrb.mxu1 %v8817_v11  ;;  %v6062_v30 = vadd.f32 %v6061_v49, %v6049_v43  ;;  %v6074_v56 = vpop.f32.mrf.mxu3  ;;  %v10595_v11 = vld [vmem:[%s11496_s12 + $0xf24] sm:$0xf]  ;;  %v6050_v7 = vpop.f32.mrf.mxu1  ;;  %v9142_v43 = vld [vmem:[%s11496_s12 + $0x10f8] sm:$0xf0]  ;;  %v8897_v49 = vor.u32 %v10591_v58, %v8894_v22  ;;  %v9198_v13 = vld [vmem:[%s11496_s12 + $0x1168] sm:$0xf0] }
 0x2bb   : > { %6313 = vmatpush.bf16.msrb.mxu2 %v8881_v10  ;;  %v8910_v10 = vld [vmem:[%s11496_s12 + $0xf28] sm:$0xf0]  ;;  %v8998_v7 = vld [vmem:[%s11496_s12 + $0xfd8] sm:$0xf0] }
 0x2bc   : > { %6326 = vmatpush.bf16.msrb.mxu3 %v8945_v53  ;;  %v13010_v55 = vadd.f32 %v6074_v56, %v6062_v30  ;;  %v8774_v53 = vld [vmem:[%s11496_s12 + $0xe18] sm:$0xf0]  ;;  %v8913_v6 = vor.u32 %v10595_v11, %v8910_v10  ;;  %v9070_v30 = vld [vmem:[%s11496_s12 + $0x1068] sm:$0xf0]  ;;  %v10667_v56 = vld [vmem:[%s11496_s12 + $0x1164] sm:$0xf]  ;;  %v9137_v11 = vor.u32 %v10651_v46, %v9134_v41 }
 0x2bd   : > { %6288 = vmatpush.bf16.msrb.mxu0 %v8745_v31  ;;  %v10577_v31 = vld [vmem:[%s11496_s12 + $0xe94] sm:$0xf]  ;;  %v8777_v34 = vor.u32 %v10561_v37, %v8774_v53  ;;  %v9201_v37 = vor.u32 %v10667_v56, %v9198_v13  ;;  %v9118_v0 = vld [vmem:[%s11496_s12 + $0x10c8] sm:$0xf0]  ;;  %v9174_v58 = vld [vmem:[%s11496_s12 + $0x1138] sm:$0xf0] }
 0x2be   : > { %6301 = vmatpush.bf16.msrb.mxu1 %v8809_v38  ;;  %v10593_v38 = vld [vmem:[%s11496_s12 + $0xf14] sm:$0xf]  ;;  %v8841_v35 = vor.u32 %v10577_v31, %v8838_v3  ;;  %v9190_v31 = vld [vmem:[%s11496_s12 + $0x1158] sm:$0xf0] }
 0x2bf   : > { %6314 = vmatpush.bf16.msrb.mxu2 %v8873_v63  ;;  %v8713_v63 = vor.u32 %v10545_v2, %v8710_v29  ;;  %v8905_v50 = vor.u32 %v10593_v38, %v8902_v24  ;;  %v10617_v10 = vld [vmem:[%s11496_s12 + $0xfd4] sm:$0xf]  ;;  %v9126_v29 = vld [vmem:[%s11496_s12 + $0x10d8] sm:$0xf0]  ;;  %v8990_v38 = vld [vmem:[%s11496_s12 + $0xfc8] sm:$0xf0] }
 0x2c0   : > { %6327 = vmatpush.bf16.msrb.mxu3 %v8937_v36  ;;  %v8766_v36 = vld [vmem:[%s11496_s12 + $0xe08] sm:$0xf0]  ;;  %v10649_v2 = vld [vmem:[%s11496_s12 + $0x10d4] sm:$0xf]  ;;  %v9001_v53 = vor.u32 %v10617_v10, %v8998_v7  ;;  %v8966_v10 = vld [vmem:[%s11496_s12 + $0xf98] sm:$0xf0] }
 0x2c1   : > { %6289 = vmatpush.bf16.msrb.mxu0 %v8737_v45  ;;  %v6063_v52 = vpop.f32.mrf.mxu2  ;;  %v8830_v45 = vld [vmem:[%s11496_s12 + $0xe88] sm:$0xf0]  ;;  %v8769_v4 = vor.u32 %v10559_v61, %v8766_v36  ;;  %v9129_v3 = vor.u32 %v10649_v2, %v9126_v29  ;;  %v10663_v36 = vld [vmem:[%s11496_s12 + $0x1144] sm:$0xf]  ;;  %v10625_v7 = vld [vmem:[%s11496_s12 + $0x1014] sm:$0xf] }
 0x2c2   : > { %6302 = vmatpush.bf16.msrb.mxu1 %v8801_v42  ;;  %v10637_v42 = vld [vmem:[%s11496_s12 + $0x1074] sm:$0xf]  ;;  %v6076_v40 = vpop.f32.mrf.mxu3  ;;  %v9054_v24 = vld [vmem:[%s11496_s12 + $0x1048] sm:$0xf0]  ;;  %v9094_v2 = vld [vmem:[%s11496_s12 + $0x1098] sm:$0xf0] }
 0x2c3   : > { %6315 = vmatpush.bf16.msrb.mxu2 %v8865_v57  ;;  %v9078_v57 = vld [vmem:[%s11496_s12 + $0x1078] sm:$0xf0] }
 0x2c4   : > { %6328 = vmatpush.bf16.msrb.mxu3 %v8929_v44  ;;  %v8833_v44 = vor.u32 %v10575_v47, %v8830_v45  ;;  %v9081_v20 = vor.u32 %v10637_v42, %v9078_v57  ;;  %v9182_v47 = vld [vmem:[%s11496_s12 + $0x1148] sm:$0xf0]  ;;  %v9046_v57 = vld [vmem:[%s11496_s12 + $0x1038] sm:$0xf0] }
 0x2c5   : > { %6290 = vmatpush.bf16.msrb.mxu0 %v8729_v48  ;;  %v9017_v48 = vor.u32 %v10621_v33, %v9014_v16  ;;  %v10613_v33 = vld [vmem:[%s11496_s12 + $0xfb4] sm:$0xf]  ;;  %v8982_v16 = vld [vmem:[%s11496_s12 + $0xfb8] sm:$0xf0]  ;;  %v9185_v40 = vor.u32 %v10663_v36, %v9182_v47 }
 0x2c6   : > { %6303 = vmatpush.bf16.msrb.mxu1 %v8793_v28  ;;  %v9206_v28 = vld [vmem:[%s11496_s12 + $0x1178] sm:$0xf0]  ;;  %v10717_v36 = vld [vmem:[%s11496_s12 + $0x12f4] sm:$0xf] }
 0x2c7   : > { %6316 = vmatpush.bf16.msrb.mxu2 %v8857_v54  ;;  %v9145_v54 = vor.u32 %v10653_v8, %v9142_v43  ;;  %v9209_v14 = vor.u32 %v10669_v18, %v9206_v28  ;;  %v10645_v8 = vld [vmem:[%s11496_s12 + $0x10b4] sm:$0xf]  ;;  %v10627_v18 = vld [vmem:[%s11496_s12 + $0x1024] sm:$0xf] }
 0x2c8   : > { %6329 = vmatpush.bf16.msrb.mxu3 %v8921_v12  ;;  %v9009_v12 = vor.u32 %v10619_v15, %v9006_v23  ;;  %v10661_v43 = vld [vmem:[%s11496_s12 + $0x1134] sm:$0xf]  ;;  %v9102_v15 = vld [vmem:[%s11496_s12 + $0x10a8] sm:$0xf0] }
 0x2c9   : > { %6291 = vmatpush.bf16.msrb.mxu0 %v8721_v9  ;;  %v9073_v9 = vor.u32 %v10635_v21, %v9070_v30  ;;  %v9177_v23 = vor.u32 %v10661_v43, %v9174_v58  ;;  %v10683_v58 = vld [vmem:[%s11496_s12 + $0x11e4] sm:$0xf] }
 0x2ca   : > { %6304 = vmatpush.bf16.msrb.mxu1 %v8785_v5  ;;  %v10633_v5 = vld [vmem:[%s11496_s12 + $0x1054] sm:$0xf] }
 0x2cb   : > { %6317 = vmatpush.bf16.msrb.mxu2 %v8849_v17  ;;  %v9062_v17 = vld [vmem:[%s11496_s12 + $0x1058] sm:$0xf0] }
 0x2cc   : > { %6330 = vmatpush.bf16.msrb.mxu3 %v8913_v6  ;;  %v10615_v6 = vld [vmem:[%s11496_s12 + $0xfc4] sm:$0xf] }
 0x2cd   : > { %6292 = vmatpush.bf16.msrb.mxu0 %v8713_v63  ;;  %v10631_v63 = vld [vmem:[%s11496_s12 + $0x1044] sm:$0xf] }
 0x2ce   : > { %6305 = vmatpush.bf16.msrb.mxu1 %v8777_v34  ;;  %v9057_v52 = vor.u32 %v10631_v63, %v9054_v24  ;;  %v9022_v63 = vld [vmem:[%s11496_s12 + $0x1008] sm:$0xf0]  ;;  %v10639_v24 = vld [vmem:[%s11496_s12 + $0x1084] sm:$0xf] }
 0x2cf   : > { %6318 = vmatpush.bf16.msrb.mxu2 %v8841_v35  ;;  %v8993_v35 = vor.u32 %v10615_v6, %v8990_v38  ;;  %v10623_v38 = vld [vmem:[%s11496_s12 + $0x1004] sm:$0xf] }
 0x2d0   : > { %6331 = vmatpush.bf16.msrb.mxu3 %v8905_v50  ;;  %v10629_v50 = vld [vmem:[%s11496_s12 + $0x1034] sm:$0xf] }
 0x2d1   : > { %6293 = vmatpush.bf16.msrb.mxu0 %v8705_v27  ;;  %v6087_v26 = vpop.f32.mrf.mxu0  ;;  %v8985_v27 = vor.u32 %v10613_v33, %v8982_v16  ;;  %v9049_v22 = vor.u32 %v10629_v50, %v9046_v57  ;;  %v10655_v33 = vld [vmem:[%s11496_s12 + $0x1104] sm:$0xf]  ;;  %v9150_v16 = vld [vmem:[%s11496_s12 + $0x1108] sm:$0xf0]  ;;  %v9025_v50 = vor.u32 %v10623_v38, %v9022_v63 }
 0x2d2   : > { %6306 = vmatpush.bf16.msrb.mxu1 %v8769_v4  ;;  %v6088_v34 = vadd.f32 %v6087_v26, %v13010_v55  ;;  %v6100_v61 = vpop.f32.mrf.mxu1  ;;  %v9110_v55 = vld [vmem:[%s11496_s12 + $0x10b8] sm:$0xf0]  ;;  %v9153_v43 = vor.u32 %v10655_v33, %v9150_v16  ;;  %v10725_v16 = vld [vmem:[%s11496_s12 + $0x1334] sm:$0xf] }
 0x2d3   : > { %6319 = vmatpush.bf16.msrb.mxu2 %v8833_v44  ;;  %v9113_v4 = vor.u32 %v10645_v8, %v9110_v55  ;;  %v9270_v26 = vld [vmem:[%s11496_s12 + $0x11f8] sm:$0xf0]  ;;  %v10733_v55 = vld [vmem:[%s11496_s12 + $0x1374] sm:$0xf] }
 0x2d4   : > { %6332 = vmatpush.bf16.msrb.mxu3 %v8897_v49  ;;  %6294 = vmatmul.bf16.vlgmr.msrb.gmra.mxu0 %v12075_v39  ;;  %v10665_v39 = vld [vmem:[%s11496_s12 + $0x1154] sm:$0xf]  ;;  %v6101_v42 = vadd.f32 %v6100_v61, %v6088_v34  ;;  %v10643_v49 = vld [vmem:[%s11496_s12 + $0x10a4] sm:$0xf]  ;;  %v9334_v61 = vld [vmem:[%s11496_s12 + $0x1278] sm:$0xf0] }
 0x2d5   : > { %6338 = vmatpush.bf16.msra.mxu0 %v9017_v48  ;;  %6307 = vmatmul.bf16.vlgmr.msrb.gmra.mxu1 %v12135_v59  ;;  %v10647_v59 = vld [vmem:[%s11496_s12 + $0x10c4] sm:$0xf] }
 0x2d6   : > { %6351 = vmatpush.bf16.msra.mxu1 %v9081_v20  ;;  %6320 = vmatmul.bf16.vlgmr.msrb.gmra.mxu2 %v12139_v62  ;;  %v9065_v62 = vor.u32 %v10633_v5, %v9062_v17  ;;  %v9121_v45 = vor.u32 %v10647_v59, %v9118_v0  ;;  %v10611_v48 = vld [vmem:[%s11496_s12 + $0xfa4] sm:$0xf]  ;;  %v8974_v20 = vld [vmem:[%s11496_s12 + $0xfa8] sm:$0xf0]  ;;  %v9030_v5 = vld [vmem:[%s11496_s12 + $0x1018] sm:$0xf0] }
 0x2d7   : > { %6364 = vmatpush.bf16.msra.mxu2 %v9145_v54  ;;  %6333 = vmatmul.bf16.vlgmr.msrb.gmra.mxu3 %v12137_v60  ;;  %v9193_v60 = vor.u32 %v10665_v39, %v9190_v31  ;;  %v9038_v54 = vld [vmem:[%s11496_s12 + $0x1028] sm:$0xf0]  ;;  %v8977_v41 = vor.u32 %v10611_v48, %v8974_v20  ;;  %v10641_v17 = vld [vmem:[%s11496_s12 + $0x1094] sm:$0xf]  ;;  %v9158_v39 = vld [vmem:[%s11496_s12 + $0x1118] sm:$0xf0] }
 0x2d8   : > { %6377 = vmatpush.bf16.msra.mxu3 %v9209_v14  ;;  %v10659_v14 = vld [vmem:[%s11496_s12 + $0x1124] sm:$0xf]  ;;  %v9041_v13 = vor.u32 %v10627_v18, %v9038_v54  ;;  %v9097_v6 = vor.u32 %v10641_v17, %v9094_v2  ;;  %v9086_v0 = vld [vmem:[%s11496_s12 + $0x1088] sm:$0xf0] }
 0x2d9   : > { %6339 = vmatpush.bf16.msra.mxu0 %v9009_v12  ;;  %v6113_v44 = vpop.f32.mrf.mxu2  ;;  %v6089_v30 = vpop.f32.mrf.mxu0  ;;  %v9166_v12 = vld [vmem:[%s11496_s12 + $0x1128] sm:$0xf0]  ;;  %v10607_v31 = vld [vmem:[%s11496_s12 + $0xf84] sm:$0xf] }
 0x2da   : > { %6352 = vmatpush.bf16.msra.mxu1 %v9073_v9  ;;  %v6114_v28 = vadd.f32 %v6113_v44, %v6101_v42  ;;  %v6126_v21 = vpop.f32.mrf.mxu3  ;;  %v6102_v56 = vpop.f32.mrf.mxu1  ;;  %v9105_v9 = vor.u32 %v10643_v49, %v9102_v15  ;;  %v9169_v29 = vor.u32 %v10659_v14, %v9166_v12  ;;  %v9089_v42 = vor.u32 %v10639_v24, %v9086_v0  ;;  %v9326_v44 = vld [vmem:[%s11496_s12 + $0x1268] sm:$0xf0]  ;;  %v10715_v48 = vld [vmem:[%s11496_s12 + $0x12e4] sm:$0xf]  ;;  %v9254_v30 = vld [vmem:[%s11496_s12 + $0x11d8] sm:$0xf0] }
 0x2db   : > { %6365 = vmatpush.bf16.msra.mxu2 %v9137_v11  ;;  %v10609_v11 = vld [vmem:[%s11496_s12 + $0xf94] sm:$0xf]  ;;  %v9390_v20 = vld [vmem:[%s11496_s12 + $0x12e8] sm:$0xf0]  ;;  %v10731_v54 = vld [vmem:[%s11496_s12 + $0x1364] sm:$0xf] }
 0x2dc   : > { %6378 = vmatpush.bf16.msra.mxu3 %v9201_v37  ;;  %v13081_v46 = vadd.f32 %v6126_v21, %v6114_v28  ;;  %v10657_v37 = vld [vmem:[%s11496_s12 + $0x1114] sm:$0xf]  ;;  %v9454_v49 = vld [vmem:[%s11496_s12 + $0x1368] sm:$0xf0]  ;;  %v13418_v14 = vld [vmem:[#allocation23_spill] sm:$0xff] }
 0x2dd   : > { %6340 = vmatpush.bf16.msra.mxu0 %v9001_v53  ;;  %v8969_v53 = vor.u32 %v10609_v11, %v8966_v10  ;;  %v9161_v34 = vor.u32 %v10657_v37, %v9158_v39  ;;  %v10681_v21 = vld [vmem:[%s11496_s12 + $0x11d4] sm:$0xf]  ;;  %v9318_v12 = vld [vmem:[%s11496_s12 + $0x1258] sm:$0xf0]  ;;  %v9457_v11 = vor.u32 %v10731_v54, %v9454_v49  ;;  %v9246_v37 = vld [vmem:[%s11496_s12 + $0x11c8] sm:$0xf0] }
 0x2de   : > { %6353 = vmatpush.bf16.msra.mxu1 %v9065_v62  ;;  %v8958_v62 = vld [vmem:[%s11496_s12 + $0xf88] sm:$0xf0]  ;;  %v10713_v56 = vld [vmem:[%s11496_s12 + $0x12d4] sm:$0xf]  ;;  %v10723_v54 = vld [vmem:[%s11496_s12 + $0x1324] sm:$0xf] }
 0x2df   : > { %6366 = vmatpush.bf16.msra.mxu2 %v9129_v3  ;;  %v9033_v3 = vor.u32 %v10625_v7, %v9030_v5  ;;  %v13420_v10 = vld [vmem:[#allocation22_spill] sm:$0xff]  ;;  %v9257_v7 = vor.u32 %v10681_v21, %v9254_v30  ;;  %v9446_v5 = vld [vmem:[%s11496_s12 + $0x1358] sm:$0xf0]  ;;  %v9310_v39 = vld [vmem:[%s11496_s12 + $0x1248] sm:$0xf0] }
 0x2e0   : > { %6379 = vmatpush.bf16.msra.mxu3 %v9193_v60  ;;  %v10685_v60 = vld [vmem:[%s11496_s12 + $0x11f4] sm:$0xf]  ;;  %v9438_v0 = vld [vmem:[%s11496_s12 + $0x1348] sm:$0xf0] }
 0x2e1   : > { %6341 = vmatpush.bf16.msra.mxu0 %v8993_v35  ;;  %v6115_v59 = vpop.f32.mrf.mxu2  ;;  %v10701_v35 = vld [vmem:[%s11496_s12 + $0x1274] sm:$0xf]  ;;  %v9273_v57 = vor.u32 %v10685_v60, %v9270_v26  ;;  %v9422_v49 = vld [vmem:[%s11496_s12 + $0x1328] sm:$0xf0] }
 0x2e2   : > { %6354 = vmatpush.bf16.msra.mxu1 %v9057_v52  ;;  %v6128_v47 = vpop.f32.mrf.mxu3  ;;  %v8961_v52 = vor.u32 %v10607_v31, %v8958_v62  ;;  %v9337_v8 = vor.u32 %v10701_v35, %v9334_v61  ;;  %v10711_v31 = vld [vmem:[%s11496_s12 + $0x12c4] sm:$0xf]  ;;  %v9374_v62 = vld [vmem:[%s11496_s12 + $0x12c8] sm:$0xf0]  ;;  %v9238_v35 = vld [vmem:[%s11496_s12 + $0x11b8] sm:$0xf0] }
 0x2e3   : > { %6367 = vmatpush.bf16.msra.mxu2 %v9121_v45  ;;  %v9398_v45 = vld [vmem:[%s11496_s12 + $0x12f8] sm:$0xf0]  ;;  %v10727_v59 = vld [vmem:[%s11496_s12 + $0x1344] sm:$0xf]  ;;  %v9377_v26 = vor.u32 %v10711_v31, %v9374_v62  ;;  %v10693_v61 = vld [vmem:[%s11496_s12 + $0x1234] sm:$0xf] }
 0x2e4   : > { %6380 = vmatpush.bf16.msra.mxu3 %v9185_v40  ;;  %v9462_v40 = vld [vmem:[%s11496_s12 + $0x1378] sm:$0xf0]  ;;  %v10673_v30 = vld [vmem:[%s11496_s12 + $0x1194] sm:$0xf]  ;;  %v9342_v31 = vld [vmem:[%s11496_s12 + $0x1288] sm:$0xf0] }
 0x2e5   : > { %6342 = vmatpush.bf16.msra.mxu0 %v8985_v27  ;;  %v9401_v27 = vor.u32 %v10717_v36, %v9398_v45  ;;  %v9465_v18 = vor.u32 %v10733_v55, %v9462_v40  ;;  %v9302_v47 = vld [vmem:[%s11496_s12 + $0x1238] sm:$0xf0]  ;;  %v9441_v45 = vor.u32 %v10727_v59, %v9438_v0  ;;  %v10675_v55 = vld [vmem:[%s11496_s12 + $0x11a4] sm:$0xf]  ;;  %v9230_v40 = vld [vmem:[%s11496_s12 + $0x11a8] sm:$0xf0] }
 0x2e6   : > { %6355 = vmatpush.bf16.msra.mxu1 %v9049_v22  ;;  %v9262_v22 = vld [vmem:[%s11496_s12 + $0x11e8] sm:$0xf0]  ;;  %v10749_v62 = vld [vmem:[%s11496_s12 + $0x13f4] sm:$0xf] }
 0x2e7   : > { %6368 = vmatpush.bf16.msra.mxu2 %v9113_v4  ;;  %v10699_v4 = vld [vmem:[%s11496_s12 + $0x1264] sm:$0xf]  ;;  %v9265_v28 = vor.u32 %v10683_v58, %v9262_v22  ;;  %v9294_v58 = vld [vmem:[%s11496_s12 + $0x1228] sm:$0xf0] }
 0x2e8   : > { %6381 = vmatpush.bf16.msra.mxu3 %v9177_v23  ;;  %v9329_v15 = vor.u32 %v10699_v4, %v9326_v44  ;;  %v9393_v23 = vor.u32 %v10715_v48, %v9390_v20  ;;  %v10707_v22 = vld [vmem:[%s11496_s12 + $0x12a4] sm:$0xf]  ;;  %v9358_v4 = vld [vmem:[%s11496_s12 + $0x12a8] sm:$0xf0] }
 0x2e9   : > { %6343 = vmatpush.bf16.msra.mxu0 %v8977_v41  ;;  %v10697_v41 = vld [vmem:[%s11496_s12 + $0x1254] sm:$0xf]  ;;  %v9361_v21 = vor.u32 %v10707_v22, %v9358_v4 }
 0x2ea   : > { %6356 = vmatpush.bf16.msra.mxu1 %v9041_v13  ;;  %v9382_v13 = vld [vmem:[%s11496_s12 + $0x12d8] sm:$0xf0]  ;;  %v9321_v17 = vor.u32 %v10697_v41, %v9318_v12 }
 0x2eb   : > { %6369 = vmatpush.bf16.msra.mxu2 %v9105_v9  ;;  %v13419_v9 = vld [vmem:[#allocation21_spill] sm:$0xff]  ;;  %v9385_v2 = vor.u32 %v10713_v56, %v9382_v13  ;;  %v9222_v41 = vld [vmem:[%s11496_s12 + $0x1198] sm:$0xf0]  ;;  %v10705_v56 = vld [vmem:[%s11496_s12 + $0x1294] sm:$0xf] }
 0x2ec   : > { %6382 = vmatpush.bf16.msra.mxu3 %v9169_v29  ;;  %v10679_v29 = vld [vmem:[%s11496_s12 + $0x11c4] sm:$0xf]  ;;  %v9286_v12 = vld [vmem:[%s11496_s12 + $0x1218] sm:$0xf0] }
 0x2ed   : > { %6344 = vmatpush.bf16.msra.mxu0 %v8969_v53  ;;  %v10695_v53 = vld [vmem:[%s11496_s12 + $0x1244] sm:$0xf]  ;;  %v9249_v63 = vor.u32 %v10679_v29, %v9246_v37  ;;  %v9350_v13 = vld [vmem:[%s11496_s12 + $0x1298] sm:$0xf0]  ;;  %v9278_v37 = vld [vmem:[%s11496_s12 + $0x1208] sm:$0xf0] }
 0x2ee   : > { %6357 = vmatpush.bf16.msra.mxu1 %v9033_v3  ;;  %v9313_v60 = vor.u32 %v10695_v53, %v9310_v39  ;;  %v10687_v29 = vld [vmem:[%s11496_s12 + $0x1204] sm:$0xf] }
 0x2ef   : > { %6370 = vmatpush.bf16.msra.mxu2 %v9097_v6  ;;  %v10703_v53 = vld [vmem:[%s11496_s12 + $0x1284] sm:$0xf] }
 0x2f0   : > { %6383 = vmatpush.bf16.msra.mxu3 %v9161_v34  ;;  %v10677_v34 = vld [vmem:[%s11496_s12 + $0x11b4] sm:$0xf] }
 0x2f1   : > { %6345 = vmatpush.bf16.msra.mxu0 %v8961_v52  ;;  %v6139_v6 = vpop.f32.mrf.mxu0  ;;  %v10709_v52 = vld [vmem:[%s11496_s12 + $0x12b4] sm:$0xf]  ;;  %v9241_v33 = vor.u32 %v10677_v34, %v9238_v35  ;;  %v9406_v34 = vld [vmem:[%s11496_s12 + $0x1308] sm:$0xf0]  ;;  %v9281_v35 = vor.u32 %v10687_v29, %v9278_v37 }
 0x2f2   : > { %6358 = vmatpush.bf16.msra.mxu1 %v9025_v50  ;;  %v6140_v38 = vadd.f32 %v6139_v6, %v13081_v46  ;;  %v6152_v24 = vpop.f32.mrf.mxu1  ;;  %v9366_v46 = vld [vmem:[%s11496_s12 + $0x12b8] sm:$0xf0] }
 0x2f3   : > { %6371 = vmatpush.bf16.msra.mxu2 %v9089_v42  ;;  %v9430_v50 = vld [vmem:[%s11496_s12 + $0x1338] sm:$0xf0]  ;;  %v9305_v42 = vor.u32 %v10693_v61, %v9302_v47  ;;  %v9345_v61 = vor.u32 %v10703_v53, %v9342_v31  ;;  %v10791_v31 = vld [vmem:[%s11496_s12 + $0x1544] sm:$0xf] }
 0x2f4   : > { %6384 = vmatpush.bf16.msra.mxu3 %v9153_v43  ;;  %6346 = vmatmul.bf16.vlgmr.msra.gmra.mxu0 %v12141_v1  ;;  %v10729_v1 = vld [vmem:[%s11496_s12 + $0x1354] sm:$0xf]  ;;  %v6153_v36 = vadd.f32 %v6152_v24, %v6140_v38  ;;  %v9433_v44 = vor.u32 %v10725_v16, %v9430_v50  ;;  %v10747_v16 = vld [vmem:[%s11496_s12 + $0x13e4] sm:$0xf]  ;;  %v9518_v50 = vld [vmem:[%s11496_s12 + $0x13e8] sm:$0xf0] }
 0x2f5   : > { %6390 = vmatpush.bf16.msrb.mxu0 %v9273_v57  ;;  %6359 = vmatmul.bf16.vlgmr.msra.gmra.mxu1 %v13419_v9  ;;  %v9449_v3 = vor.u32 %v10729_v1, %v9446_v5  ;;  %v9369_v57 = vor.u32 %v10709_v52, %v9366_v46  ;;  %v9425_v9 = vor.u32 %v10723_v54, %v9422_v49  ;;  %v10671_v1 = vld [vmem:[%s11496_s12 + $0x1184] sm:$0xf]  ;;  %v9214_v5 = vld [vmem:[%s11496_s12 + $0x1188] sm:$0xf0]  ;;  %v10765_v38 = vld [vmem:[%s11496_s12 + $0x1474] sm:$0xf] }
 0x2f6   : > { %6403 = vmatpush.bf16.msrb.mxu1 %v9337_v8  ;;  %6372 = vmatmul.bf16.vlgmr.msra.gmra.mxu2 %v13418_v14  ;;  %v10689_v14 = vld [vmem:[%s11496_s12 + $0x1214] sm:$0xf]  ;;  %v9217_v0 = vor.u32 %v10671_v1, %v9214_v5  ;;  %v9718_v46 = vld [vmem:[%s11496_s12 + $0x1578] sm:$0xf0]  ;;  %v9566_v1 = vld [vmem:[%s11496_s12 + $0x1448] sm:$0xf0] }
 0x2f7   : > { %6416 = vmatpush.bf16.msrb.mxu2 %v9401_v27  ;;  %6385 = vmatmul.bf16.vlgmr.msra.gmra.mxu3 %v13420_v10  ;;  %v10691_v27 = vld [vmem:[%s11496_s12 + $0x1224] sm:$0xf]  ;;  %v9225_v10 = vor.u32 %v10673_v30, %v9222_v41  ;;  %v10781_v24 = vld [vmem:[%s11496_s12 + $0x14f4] sm:$0xf]  ;;  %v13422_v54 = vld [vmem:[#allocation27_spill] sm:$0xff] }
 0x2f8   : > { %6429 = vmatpush.bf16.msrb.mxu3 %v9465_v18  ;;  %v10797_v52 = vld [vmem:[%s11496_s12 + $0x1574] sm:$0xf]  ;;  %v9574_v49 = vld [vmem:[%s11496_s12 + $0x1458] sm:$0xf0]  ;;  %v10775_v5 = vld [vmem:[%s11496_s12 + $0x14c4] sm:$0xf] }
 0x2f9   : > { %6391 = vmatpush.bf16.msrb.mxu0 %v9265_v28  ;;  %v6165_v8 = vpop.f32.mrf.mxu2  ;;  %v6141_v20 = vpop.f32.mrf.mxu0  ;;  %v9233_v28 = vor.u32 %v10675_v55, %v9230_v40  ;;  %v9646_v55 = vld [vmem:[%s11496_s12 + $0x14e8] sm:$0xf0]  ;;  %v9721_v40 = vor.u32 %v10797_v52, %v9718_v46  ;;  %v13424_v41 = vld [vmem:[#allocation26_spill] sm:$0xff]  ;;  %v10739_v46 = vld [vmem:[%s11496_s12 + $0x13a4] sm:$0xf] }
 0x2fa   : > { %6404 = vmatpush.bf16.msrb.mxu1 %v9329_v15  ;;  %v6166_v43 = vadd.f32 %v6165_v8, %v6153_v36  ;;  %v6178_v48 = vpop.f32.mrf.mxu3  ;;  %v6154_v15 = vpop.f32.mrf.mxu1  ;;  %v10779_v8 = vld [vmem:[%s11496_s12 + $0x14e4] sm:$0xf]  ;;  %v10761_v20 = vld [vmem:[%s11496_s12 + $0x1454] sm:$0xf] }
 0x2fb   : > { %6417 = vmatpush.bf16.msrb.mxu2 %v9393_v23  ;;  %v9297_v23 = vor.u32 %v10691_v27, %v9294_v58  ;;  %v9521_v27 = vor.u32 %v10747_v16, %v9518_v50  ;;  %v9710_v58 = vld [vmem:[%s11496_s12 + $0x1568] sm:$0xf0]  ;;  %v9649_v4 = vor.u32 %v10779_v8, %v9646_v55  ;;  %v10777_v15 = vld [vmem:[%s11496_s12 + $0x14d4] sm:$0xf] }
 0x2fc   : > { %6430 = vmatpush.bf16.msrb.mxu3 %v9457_v11  ;;  %v13152_v18 = vadd.f32 %v6178_v48, %v6166_v43  ;;  %v10721_v11 = vld [vmem:[%s11496_s12 + $0x1314] sm:$0xf]  ;;  %v10795_v43 = vld [vmem:[%s11496_s12 + $0x1564] sm:$0xf]  ;;  %v9510_v48 = vld [vmem:[%s11496_s12 + $0x13d8] sm:$0xf0] }
 0x2fd   : > { %6392 = vmatpush.bf16.msrb.mxu0 %v9257_v7  ;;  %v9414_v7 = vld [vmem:[%s11496_s12 + $0x1318] sm:$0xf0]  ;;  %v9713_v30 = vor.u32 %v10795_v43, %v9710_v58  ;;  %v9550_v50 = vld [vmem:[%s11496_s12 + $0x1428] sm:$0xf0]  ;;  %v10787_v58 = vld [vmem:[%s11496_s12 + $0x1524] sm:$0xf] }
 0x2fe   : > { %6405 = vmatpush.bf16.msrb.mxu1 %v9321_v17  ;;  %v9289_v17 = vor.u32 %v10689_v14, %v9286_v12  ;;  %v9417_v6 = vor.u32 %v10721_v11, %v9414_v7  ;;  %v10793_v12 = vld [vmem:[%s11496_s12 + $0x1554] sm:$0xf]  ;;  %v10743_v11 = vld [vmem:[%s11496_s12 + $0x13c4] sm:$0xf] }
 0x2ff   : > { %6418 = vmatpush.bf16.msrb.mxu2 %v9385_v2  ;;  %v9353_v2 = vor.u32 %v10705_v56, %v9350_v13  ;;  %v9702_v56 = vld [vmem:[%s11496_s12 + $0x1558] sm:$0xf0]  ;;  %v9577_v13 = vor.u32 %v10761_v20, %v9574_v49  ;;  %v10759_v7 = vld [vmem:[%s11496_s12 + $0x1444] sm:$0xf]  ;;  %v10737_v20 = vld [vmem:[%s11496_s12 + $0x1394] sm:$0xf] }
 0x300   : > { %6431 = vmatpush.bf16.msrb.mxu3 %v9449_v3  ;;  %v9526_v3 = vld [vmem:[%s11496_s12 + $0x13f8] sm:$0xf0] }
 0x301   : > { %6393 = vmatpush.bf16.msrb.mxu0 %v9249_v63  ;;  %v6167_v39 = vpop.f32.mrf.mxu2  ;;  %v9590_v63 = vld [vmem:[%s11496_s12 + $0x1478] sm:$0xf0]  ;;  %v9529_v36 = vor.u32 %v10749_v62, %v9526_v3  ;;  %v9694_v62 = vld [vmem:[%s11496_s12 + $0x1548] sm:$0xf0]  ;;  %v9569_v3 = vor.u32 %v10759_v7, %v9566_v1  ;;  %v10767_v7 = vld [vmem:[%s11496_s12 + $0x1484] sm:$0xf] }
 0x302   : > { %6406 = vmatpush.bf16.msrb.mxu1 %v9313_v60  ;;  %v6180_v59 = vpop.f32.mrf.mxu3  ;;  %v9654_v60 = vld [vmem:[%s11496_s12 + $0x14f8] sm:$0xf0]  ;;  %v9593_v47 = vor.u32 %v10765_v38, %v9590_v63  ;;  %v10741_v38 = vld [vmem:[%s11496_s12 + $0x13b4] sm:$0xf] }
 0x303   : > { %6419 = vmatpush.bf16.msrb.mxu2 %v9377_v26  ;;  %v10719_v26 = vld [vmem:[%s11496_s12 + $0x1304] sm:$0xf]  ;;  %v9494_v63 = vld [vmem:[%s11496_s12 + $0x13b8] sm:$0xf0] }
 0x304   : > { %6432 = vmatpush.bf16.msrb.mxu3 %v9441_v45  ;;  %v9657_v45 = vor.u32 %v10781_v24, %v9654_v60  ;;  %v10757_v24 = vld [vmem:[%s11496_s12 + $0x1434] sm:$0xf]  ;;  %v9542_v49 = vld [vmem:[%s11496_s12 + $0x1418] sm:$0xf0] }
 0x305   : > { %6394 = vmatpush.bf16.msrb.mxu0 %v9241_v33  ;;  %v9409_v33 = vor.u32 %v10719_v26, %v9406_v34  ;;  %v10773_v60 = vld [vmem:[%s11496_s12 + $0x14b4] sm:$0xf]  ;;  %v9697_v26 = vor.u32 %v10791_v31, %v9694_v62  ;;  %v9497_v34 = vor.u32 %v10741_v38, %v9494_v63  ;;  %v9662_v38 = vld [vmem:[%s11496_s12 + $0x1508] sm:$0xf0] }
 0x306   : > { %6407 = vmatpush.bf16.msrb.mxu1 %v9305_v42  ;;  %v10763_v42 = vld [vmem:[%s11496_s12 + $0x1464] sm:$0xf] }
 0x307   : > { %6420 = vmatpush.bf16.msrb.mxu2 %v9369_v57  ;;  %v9582_v57 = vld [vmem:[%s11496_s12 + $0x1468] sm:$0xf0] }
 0x308   : > { %6433 = vmatpush.bf16.msrb.mxu3 %v9433_v44  ;;  %v9585_v22 = vor.u32 %v10763_v42, %v9582_v57  ;;  %v10745_v44 = vld [vmem:[%s11496_s12 + $0x13d4] sm:$0xf]  ;;  %v10771_v42 = vld [vmem:[%s11496_s12 + $0x14a4] sm:$0xf]  ;;  %v9614_v57 = vld [vmem:[%s11496_s12 + $0x14a8] sm:$0xf0] }
 0x309   : > { %6395 = vmatpush.bf16.msrb.mxu0 %v9233_v28  ;;  %v13421_v28 = vld [vmem:[#allocation24_spill] sm:$0xff]  ;;  %v9513_v14 = vor.u32 %v10745_v44, %v9510_v48  ;;  %v9617_v48 = vor.u32 %v10771_v42, %v9614_v57 }
 0x30a   : > { %6408 = vmatpush.bf16.msrb.mxu1 %v9297_v23  ;;  %v9638_v23 = vld [vmem:[%s11496_s12 + $0x14d8] sm:$0xf0] }
 0x30b   : > { %6421 = vmatpush.bf16.msrb.mxu2 %v9361_v21  ;;  %v13423_v21 = vld [vmem:[#allocation25_spill] sm:$0xff] }
 0x30c   : > { %6434 = vmatpush.bf16.msrb.mxu3 %v9425_v9  ;;  %v9641_v9 = vor.u32 %v10777_v15, %v9638_v23  ;;  %v10769_v15 = vld [vmem:[%s11496_s12 + $0x1494] sm:$0xf]  ;;  %v9606_v23 = vld [vmem:[%s11496_s12 + $0x1498] sm:$0xf0] }
 0x30d   : > { %6396 = vmatpush.bf16.msrb.mxu0 %v9225_v10  ;;  %v9502_v10 = vld [vmem:[%s11496_s12 + $0x13c8] sm:$0xf0] }
 0x30e   : > { %6409 = vmatpush.bf16.msrb.mxu1 %v9289_v17  ;;  %v9630_v17 = vld [vmem:[%s11496_s12 + $0x14c8] sm:$0xf0]  ;;  %v9505_v53 = vor.u32 %v10743_v11, %v9502_v10  ;;  %v10751_v11 = vld [vmem:[%s11496_s12 + $0x1404] sm:$0xf] }
 0x30f   : > { %6422 = vmatpush.bf16.msrb.mxu2 %v9353_v2  ;;  %v9705_v2 = vor.u32 %v10793_v12, %v9702_v56  ;;  %v10735_v12 = vld [vmem:[%s11496_s12 + $0x1384] sm:$0xf]  ;;  %v9470_v56 = vld [vmem:[%s11496_s12 + $0x1388] sm:$0xf0] }
 0x310   : > { %6435 = vmatpush.bf16.msrb.mxu3 %v9417_v6  ;;  %v9633_v6 = vor.u32 %v10775_v5, %v9630_v17  ;;  %v9534_v10 = vld [vmem:[%s11496_s12 + $0x1408] sm:$0xf0]  ;;  %v10813_v17 = vld [vmem:[%s11496_s12 + $0x15f4] sm:$0xf]  ;;  %v9473_v62 = vor.u32 %v10735_v12, %v9470_v56  ;;  %v10839_v56 = vld [vmem:[%s11496_s12 + $0x16c4] sm:$0xf] }
 0x311   : > { %6397 = vmatpush.bf16.msrb.mxu0 %v9217_v0  ;;  %v6191_v29 = vpop.f32.mrf.mxu0  ;;  %v9558_v0 = vld [vmem:[%s11496_s12 + $0x1438] sm:$0xf0]  ;;  %v9598_v5 = vld [vmem:[%s11496_s12 + $0x1488] sm:$0xf0]  ;;  %v9537_v63 = vor.u32 %v10751_v11, %v9534_v10 }
 0x312   : > { %6410 = vmatpush.bf16.msrb.mxu1 %v9281_v35  ;;  %v6192_v37 = vadd.f32 %v6191_v29, %v13152_v18  ;;  %v6204_v39 = vpop.f32.mrf.mxu1  ;;  %v9622_v18 = vld [vmem:[%s11496_s12 + $0x14b8] sm:$0xf0]  ;;  %v10789_v35 = vld [vmem:[%s11496_s12 + $0x1534] sm:$0xf]  ;;  %v9822_v12 = vld [vmem:[%s11496_s12 + $0x1648] sm:$0xf0] }
 0x313   : > { %6423 = vmatpush.bf16.msrb.mxu2 %v9345_v61  ;;  %v9686_v61 = vld [vmem:[%s11496_s12 + $0x1538] sm:$0xf0] }
 0x314   : > { %6436 = vmatpush.bf16.msrb.mxu3 %v9409_v33  ;;  %6398 = vmatmul.bf16.vlgmr.msrb.gmra.mxu0 %v13421_v28  ;;  %v6205_v59 = vadd.f32 %v6204_v39, %v6192_v37  ;;  %v10755_v33 = vld [vmem:[%s11496_s12 + $0x1424] sm:$0xf]  ;;  %v9689_v8 = vor.u32 %v10789_v35, %v9686_v61  ;;  %v9478_v28 = vld [vmem:[%s11496_s12 + $0x1398] sm:$0xf0]  ;;  %v10829_v37 = vld [vmem:[%s11496_s12 + $0x1674] sm:$0xf] }
 0x315   : > { %6442 = vmatpush.bf16.msra.mxu0 %v9529_v36  ;;  %6411 = vmatmul.bf16.vlgmr.msrb.gmra.mxu1 %v13423_v21  ;;  %v9561_v36 = vor.u32 %v10757_v24, %v9558_v0  ;;  %v9553_v44 = vor.u32 %v10755_v33, %v9550_v50  ;;  %v10845_v39 = vld [vmem:[%s11496_s12 + $0x16f4] sm:$0xf]  ;;  %v9601_v24 = vor.u32 %v10767_v7, %v9598_v5  ;;  %v10811_v35 = vld [vmem:[%s11496_s12 + $0x15e4] sm:$0xf]  ;;  %v9774_v61 = vld [vmem:[%s11496_s12 + $0x15e8] sm:$0xf0] }
 0x316   : > { %6455 = vmatpush.bf16.msra.mxu1 %v9593_v47  ;;  %6424 = vmatmul.bf16.vlgmr.msrb.gmra.mxu2 %v13422_v54  ;;  %v9625_v47 = vor.u32 %v10773_v60, %v9622_v18  ;;  %v10753_v54 = vld [vmem:[%s11496_s12 + $0x1414] sm:$0xf]  ;;  %v9974_v18 = vld [vmem:[%s11496_s12 + $0x1778] sm:$0xf0]  ;;  %v9777_v33 = vor.u32 %v10811_v35, %v9774_v61  ;;  %v9966_v50 = vld [vmem:[%s11496_s12 + $0x1768] sm:$0xf0] }
 0x317   : > { %6468 = vmatpush.bf16.msra.mxu2 %v9657_v45  ;;  %6437 = vmatmul.bf16.vlgmr.msrb.gmra.mxu3 %v13424_v41  ;;  %v9486_v45 = vld [vmem:[%s11496_s12 + $0x13a8] sm:$0xf0]  ;;  %v9481_v41 = vor.u32 %v10737_v20, %v9478_v28  ;;  %v10861_v60 = vld [vmem:[%s11496_s12 + $0x1774] sm:$0xf]  ;;  %v10855_v5 = vld [vmem:[%s11496_s12 + $0x1744] sm:$0xf] }
 0x318   : > { %6481 = vmatpush.bf16.msra.mxu3 %v9721_v40  ;;  %v9489_v43 = vor.u32 %v10739_v46, %v9486_v45  ;;  %v9902_v46 = vld [vmem:[%s11496_s12 + $0x16e8] sm:$0xf0]  ;;  %v9977_v45 = vor.u32 %v10861_v60, %v9974_v18  ;;  %v13428_v28 = vld [vmem:[#allocation30_spill] sm:$0xff]  ;;  %v10803_v18 = vld [vmem:[%s11496_s12 + $0x15a4] sm:$0xf] }
 0x319   : > { %6443 = vmatpush.bf16.msra.mxu0 %v9521_v27  ;;  %v6217_v52 = vpop.f32.mrf.mxu2  ;;  %v6193_v40 = vpop.f32.mrf.mxu0  ;;  %v9806_v61 = vld [vmem:[%s11496_s12 + $0x1628] sm:$0xf0] }
 0x31a   : > { %6456 = vmatpush.bf16.msra.mxu1 %v9585_v22  ;;  %v6218_v16 = vadd.f32 %v6217_v52, %v6205_v59  ;;  %v6230_v55 = vpop.f32.mrf.mxu3  ;;  %v9678_v22 = vld [vmem:[%s11496_s12 + $0x1528] sm:$0xf0]  ;;  %v10843_v52 = vld [vmem:[%s11496_s12 + $0x16e4] sm:$0xf]  ;;  %v10825_v40 = vld [vmem:[%s11496_s12 + $0x1654] sm:$0xf] }
 0x31b   : > { %6469 = vmatpush.bf16.msra.mxu2 %v9649_v4  ;;  %v6206_v4 = vpop.f32.mrf.mxu1  ;;  %v9681_v21 = vor.u32 %v10787_v58, %v9678_v22  ;;  %v9905_v57 = vor.u32 %v10843_v52, %v9902_v46  ;;  %v13426_v58 = vld [vmem:[#allocation31_spill] sm:$0xff] }
 0x31c   : > { %6482 = vmatpush.bf16.msra.mxu3 %v9713_v30  ;;  %v13223_v27 = vadd.f32 %v6230_v55, %v6218_v16  ;;  %v10785_v30 = vld [vmem:[%s11496_s12 + $0x1514] sm:$0xf]  ;;  %v10859_v16 = vld [vmem:[%s11496_s12 + $0x1764] sm:$0xf]  ;;  %v9766_v55 = vld [vmem:[%s11496_s12 + $0x15d8] sm:$0xf0] }
 0x31d   : > { %6444 = vmatpush.bf16.msra.mxu0 %v9513_v14  ;;  %v9670_v14 = vld [vmem:[%s11496_s12 + $0x1518] sm:$0xf0]  ;;  %v10841_v4 = vld [vmem:[%s11496_s12 + $0x16d4] sm:$0xf]  ;;  %v9969_v20 = vor.u32 %v10859_v16, %v9966_v50  ;;  %v10851_v50 = vld [vmem:[%s11496_s12 + $0x1724] sm:$0xf] }
 0x31e   : > { %6457 = vmatpush.bf16.msra.mxu1 %v9577_v13  ;;  %v9545_v13 = vor.u32 %v10753_v54, %v9542_v49  ;;  %v9673_v29 = vor.u32 %v10785_v30, %v9670_v14  ;;  %v9830_v22 = vld [vmem:[%s11496_s12 + $0x1658] sm:$0xf0]  ;;  %v10857_v49 = vld [vmem:[%s11496_s12 + $0x1754] sm:$0xf]  ;;  %v10807_v30 = vld [vmem:[%s11496_s12 + $0x15c4] sm:$0xf] }
 0x31f   : > { %6470 = vmatpush.bf16.msra.mxu2 %v9641_v9  ;;  %v9609_v9 = vor.u32 %v10769_v15, %v9606_v23  ;;  %v9958_v15 = vld [vmem:[%s11496_s12 + $0x1758] sm:$0xf0]  ;;  %v9833_v23 = vor.u32 %v10825_v40, %v9830_v22  ;;  %v10823_v14 = vld [vmem:[%s11496_s12 + $0x1644] sm:$0xf]  ;;  %v10801_v40 = vld [vmem:[%s11496_s12 + $0x1594] sm:$0xf] }
 0x320   : > { %6483 = vmatpush.bf16.msra.mxu3 %v9705_v2  ;;  %v9782_v2 = vld [vmem:[%s11496_s12 + $0x15f8] sm:$0xf0] }
 0x321   : > { %6445 = vmatpush.bf16.msra.mxu0 %v9505_v53  ;;  %v6219_v1 = vpop.f32.mrf.mxu2  ;;  %v9846_v53 = vld [vmem:[%s11496_s12 + $0x1678] sm:$0xf0]  ;;  %v9785_v59 = vor.u32 %v10813_v17, %v9782_v2  ;;  %v9950_v17 = vld [vmem:[%s11496_s12 + $0x1748] sm:$0xf0]  ;;  %v9825_v2 = vor.u32 %v10823_v14, %v9822_v12  ;;  %v10831_v12 = vld [vmem:[%s11496_s12 + $0x1684] sm:$0xf] }
 0x322   : > { %6458 = vmatpush.bf16.msra.mxu1 %v9569_v3  ;;  %v6232_v31 = vpop.f32.mrf.mxu3  ;;  %v9910_v3 = vld [vmem:[%s11496_s12 + $0x16f8] sm:$0xf0]  ;;  %v9849_v0 = vor.u32 %v10829_v37, %v9846_v53  ;;  %v10805_v37 = vld [vmem:[%s11496_s12 + $0x15b4] sm:$0xf] }
 0x323   : > { %6471 = vmatpush.bf16.msra.mxu2 %v9633_v6  ;;  %v10783_v6 = vld [vmem:[%s11496_s12 + $0x1504] sm:$0xf]  ;;  %v9750_v53 = vld [vmem:[%s11496_s12 + $0x15b8] sm:$0xf0] }
 0x324   : > { %6484 = vmatpush.bf16.msra.mxu3 %v9697_v26  ;;  %v9913_v26 = vor.u32 %v10845_v39, %v9910_v3  ;;  %v10821_v39 = vld [vmem:[%s11496_s12 + $0x1634] sm:$0xf]  ;;  %v9798_v22 = vld [vmem:[%s11496_s12 + $0x1618] sm:$0xf0] }
 0x325   : > { %6446 = vmatpush.bf16.msra.mxu0 %v9497_v34  ;;  %v9665_v34 = vor.u32 %v10783_v6, %v9662_v38  ;;  %v10837_v3 = vld [vmem:[%s11496_s12 + $0x16b4] sm:$0xf]  ;;  %v9953_v6 = vor.u32 %v10855_v5, %v9950_v17  ;;  %v9753_v38 = vor.u32 %v10805_v37, %v9750_v53  ;;  %v10847_v17 = vld [vmem:[%s11496_s12 + $0x1704] sm:$0xf] }
 0x326   : > { %6459 = vmatpush.bf16.msra.mxu1 %v9561_v36  ;;  %v10827_v36 = vld [vmem:[%s11496_s12 + $0x1664] sm:$0xf] }
 0x327   : > { %6472 = vmatpush.bf16.msra.mxu2 %v9625_v47  ;;  %v9838_v47 = vld [vmem:[%s11496_s12 + $0x1668] sm:$0xf0] }
 0x328   : > { %6485 = vmatpush.bf16.msra.mxu3 %v9689_v8  ;;  %v9841_v42 = vor.u32 %v10827_v36, %v9838_v47  ;;  %v10809_v8 = vld [vmem:[%s11496_s12 + $0x15d4] sm:$0xf]  ;;  %v10835_v36 = vld [vmem:[%s11496_s12 + $0x16a4] sm:$0xf]  ;;  %v9870_v47 = vld [vmem:[%s11496_s12 + $0x16a8] sm:$0xf0] }
 0x329   : > { %6447 = vmatpush.bf16.msra.mxu0 %v9489_v43  ;;  %v13425_v43 = vld [vmem:[#allocation28_spill] sm:$0xff]  ;;  %v9769_v54 = vor.u32 %v10809_v8, %v9766_v55  ;;  %v9873_v55 = vor.u32 %v10835_v36, %v9870_v47  ;;  %v10078_v47 = vld [vmem:[%s11496_s12 + $0x1848] sm:$0xf0] }
 0x32a   : > { %6460 = vmatpush.bf16.msra.mxu1 %v9553_v44  ;;  %v9894_v44 = vld [vmem:[%s11496_s12 + $0x16d8] sm:$0xf0]  ;;  %v10887_v36 = vld [vmem:[%s11496_s12 + $0x1844] sm:$0xf] }
 0x32b   : > { %6473 = vmatpush.bf16.msra.mxu2 %v9617_v48  ;;  %v13427_v48 = vld [vmem:[#allocation29_spill] sm:$0xff] }
 0x32c   : > { %6486 = vmatpush.bf16.msra.mxu3 %v9681_v21  ;;  %v9897_v21 = vor.u32 %v10841_v4, %v9894_v44  ;;  %v10833_v4 = vld [vmem:[%s11496_s12 + $0x1694] sm:$0xf]  ;;  %v9862_v44 = vld [vmem:[%s11496_s12 + $0x1698] sm:$0xf0] }
 0x32d   : > { %6448 = vmatpush.bf16.msra.mxu0 %v9481_v41  ;;  %v9758_v41 = vld [vmem:[%s11496_s12 + $0x15c8] sm:$0xf0] }
 0x32e   : > { %6461 = vmatpush.bf16.msra.mxu1 %v9545_v13  ;;  %v9886_v13 = vld [vmem:[%s11496_s12 + $0x16c8] sm:$0xf0]  ;;  %v9761_v7 = vor.u32 %v10807_v30, %v9758_v41  ;;  %v10815_v30 = vld [vmem:[%s11496_s12 + $0x1604] sm:$0xf] }
 0x32f   : > { %6474 = vmatpush.bf16.msra.mxu2 %v9609_v9  ;;  %v9961_v9 = vor.u32 %v10857_v49, %v9958_v15  ;;  %v10799_v49 = vld [vmem:[%s11496_s12 + $0x1584] sm:$0xf]  ;;  %v9790_v41 = vld [vmem:[%s11496_s12 + $0x1608] sm:$0xf0] }
 0x330   : > { %6487 = vmatpush.bf16.msra.mxu3 %v9673_v29  ;;  %v9889_v29 = vor.u32 %v10839_v56, %v9886_v13  ;;  %v9854_v56 = vld [vmem:[%s11496_s12 + $0x1688] sm:$0xf0]  ;;  %v10877_v13 = vld [vmem:[%s11496_s12 + $0x17f4] sm:$0xf] }
 0x331   : > { %6449 = vmatpush.bf16.msra.mxu0 %v9473_v62  ;;  %v6243_v11 = vpop.f32.mrf.mxu0  ;;  %v9814_v62 = vld [vmem:[%s11496_s12 + $0x1638] sm:$0xf0]  ;;  %v9857_v37 = vor.u32 %v10831_v12, %v9854_v56  ;;  %v10863_v12 = vld [vmem:[%s11496_s12 + $0x1784] sm:$0xf]  ;;  %v9982_v56 = vld [vmem:[%s11496_s12 + $0x1788] sm:$0xf0] }
 0x332   : > { %6462 = vmatpush.bf16.msra.mxu1 %v9537_v63  ;;  %v6244_v10 = vadd.f32 %v6243_v11, %v13223_v27  ;;  %v6256_v1 = vpop.f32.mrf.mxu1  ;;  %v9878_v27 = vld [vmem:[%s11496_s12 + $0x16b8] sm:$0xf0]  ;;  %v10853_v63 = vld [vmem:[%s11496_s12 + $0x1734] sm:$0xf] }
 0x333   : > { %6475 = vmatpush.bf16.msra.mxu2 %v9601_v24  ;;  %v9942_v24 = vld [vmem:[%s11496_s12 + $0x1738] sm:$0xf0] }
 0x334   : > { %6488 = vmatpush.bf16.msra.mxu3 %v9665_v34  ;;  %6450 = vmatmul.bf16.vlgmr.msra.gmra.mxu0 %v13425_v43  ;;  %v6257_v31 = vadd.f32 %v6256_v1, %v6244_v10  ;;  %v10819_v34 = vld [vmem:[%s11496_s12 + $0x1624] sm:$0xf]  ;;  %v9945_v52 = vor.u32 %v10853_v63, %v9942_v24  ;;  %v9734_v43 = vld [vmem:[%s11496_s12 + $0x1598] sm:$0xf0]  ;;  %v10893_v10 = vld [vmem:[%s11496_s12 + $0x1874] sm:$0xf] }
 0x335   : > { %6494 = vmatpush.bf16.msrb.mxu0 %v9785_v59  ;;  %6463 = vmatmul.bf16.vlgmr.msra.gmra.mxu1 %v13427_v48  ;;  %v9817_v59 = vor.u32 %v10821_v39, %v9814_v62  ;;  %v9809_v8 = vor.u32 %v10819_v34, %v9806_v61  ;;  %v10038_v11 = vld [vmem:[%s11496_s12 + $0x17f8] sm:$0xf0]  ;;  %v10875_v62 = vld [vmem:[%s11496_s12 + $0x17e4] sm:$0xf]  ;;  %v10014_v61 = vld [vmem:[%s11496_s12 + $0x17c8] sm:$0xf0] }
 0x336   : > { %6507 = vmatpush.bf16.msrb.mxu1 %v9849_v0  ;;  %6476 = vmatmul.bf16.vlgmr.msra.gmra.mxu2 %v13426_v58  ;;  %v9881_v0 = vor.u32 %v10837_v3, %v9878_v27  ;;  %v10817_v58 = vld [vmem:[%s11496_s12 + $0x1614] sm:$0xf]  ;;  %v10041_v53 = vor.u32 %v10877_v13, %v10038_v11  ;;  %v10030_v3 = vld [vmem:[%s11496_s12 + $0x17e8] sm:$0xf0]  ;;  %v10891_v27 = vld [vmem:[%s11496_s12 + $0x1864] sm:$0xf] }
 0x337   : > { %6520 = vmatpush.bf16.msrb.mxu2 %v9913_v26  ;;  %6489 = vmatmul.bf16.vlgmr.msra.gmra.mxu3 %v13428_v28  ;;  %v9742_v26 = vld [vmem:[%s11496_s12 + $0x15a8] sm:$0xf0]  ;;  %v10849_v28 = vld [vmem:[%s11496_s12 + $0x1714] sm:$0xf]  ;;  %v9801_v15 = vor.u32 %v10817_v58, %v9798_v22  ;;  %v13429_v63 = vld [vmem:[#allocation32_spill] sm:$0xff] }
 0x338   : > { %6533 = vmatpush.bf16.msrb.mxu3 %v9977_v45  ;;  %v9745_v16 = vor.u32 %v10803_v18, %v9742_v26  ;;  %v10086_v18 = vld [vmem:[%s11496_s12 + $0x1858] sm:$0xf0]  ;;  %v10883_v22 = vld [vmem:[%s11496_s12 + $0x1824] sm:$0xf]  ;;  %v10046_v11 = vld [vmem:[%s11496_s12 + $0x1808] sm:$0xf0] }
 0x339   : > { %6495 = vmatpush.bf16.msrb.mxu0 %v9777_v33  ;;  %v6269_v60 = vpop.f32.mrf.mxu2  ;;  %v6245_v45 = vpop.f32.mrf.mxu0 }
 0x33a   : > { %6508 = vmatpush.bf16.msrb.mxu1 %v9841_v42  ;;  %v6270_v35 = vadd.f32 %v6269_v60, %v6257_v31  ;;  %v6282_v46 = vpop.f32.mrf.mxu3  ;;  %v9934_v42 = vld [vmem:[%s11496_s12 + $0x1728] sm:$0xf0]  ;;  %v10889_v60 = vld [vmem:[%s11496_s12 + $0x1854] sm:$0xf] }
 0x33b   : > { %6521 = vmatpush.bf16.msrb.mxu2 %v9905_v57  ;;  %v6258_v57 = vpop.f32.mrf.mxu1  ;;  %v9937_v48 = vor.u32 %v10851_v50, %v9934_v42  ;;  %v10089_v34 = vor.u32 %v10889_v60, %v10086_v18  ;;  %v10869_v45 = vld [vmem:[%s11496_s12 + $0x17b4] sm:$0xf] }
 0x33c   : > { %6534 = vmatpush.bf16.msrb.mxu3 %v9969_v20  ;;  %v13294_v33 = vadd.f32 %v6282_v46, %v6270_v35  ;;  %v9737_v20 = vor.u32 %v10801_v40, %v9734_v43  ;;  %v10871_v35 = vld [vmem:[%s11496_s12 + $0x17c4] sm:$0xf]  ;;  %v10081_v46 = vor.u32 %v10887_v36, %v10078_v47  ;;  %v10885_v42 = vld [vmem:[%s11496_s12 + $0x1834] sm:$0xf]  ;;  %v10070_v57 = vld [vmem:[%s11496_s12 + $0x1838] sm:$0xf0] }
 0x33d   : > { %6496 = vmatpush.bf16.msrb.mxu0 %v9769_v54  ;;  %v9926_v54 = vld [vmem:[%s11496_s12 + $0x1718] sm:$0xf0]  ;;  %v9998_v43 = vld [vmem:[%s11496_s12 + $0x17a8] sm:$0xf0] }
 0x33e   : > { %6509 = vmatpush.bf16.msrb.mxu1 %v9833_v23  ;;  %v9865_v23 = vor.u32 %v10833_v4, %v9862_v44  ;;  %v10062_v4 = vld [vmem:[%s11496_s12 + $0x1828] sm:$0xf0] }
 0x33f   : > { %6522 = vmatpush.bf16.msrb.mxu2 %v9897_v21  ;;  %v9726_v21 = vld [vmem:[%s11496_s12 + $0x1588] sm:$0xf0] }
 0x340   : > { %6535 = vmatpush.bf16.msrb.mxu3 %v9961_v9  ;;  %v9929_v9 = vor.u32 %v10849_v28, %v9926_v54  ;;  %v9729_v5 = vor.u32 %v10799_v49, %v9726_v21  ;;  %v10065_v49 = vor.u32 %v10883_v22, %v10062_v4  ;;  %v10881_v21 = vld [vmem:[%s11496_s12 + $0x1814] sm:$0xf] }
 0x341   : > { %6497 = vmatpush.bf16.msrb.mxu0 %v9761_v7  ;;  %v6271_v14 = vpop.f32.mrf.mxu2  ;;  %v10102_v7 = vld [vmem:[%s11496_s12 + $0x1878] sm:$0xf0] }
 0x342   : > { %6510 = vmatpush.bf16.msrb.mxu1 %v9825_v2  ;;  %v6284_v1 = vpop.f32.mrf.mxu3  ;;  %v9918_v2 = vld [vmem:[%s11496_s12 + $0x1708] sm:$0xf0]  ;;  %v10105_v39 = vor.u32 %v10893_v10, %v10102_v7  ;;  %v9985_v7 = vor.u32 %v10863_v12, %v9982_v56 }
 0x343   : > { %6523 = vmatpush.bf16.msrb.mxu2 %v9889_v29  ;;  %v9793_v29 = vor.u32 %v10815_v30, %v9790_v41  ;;  %v9921_v31 = vor.u32 %v10847_v17, %v9918_v2  ;;  %v10054_v30 = vld [vmem:[%s11496_s12 + $0x1818] sm:$0xf0]  ;;  %v11013_v17 = vld [vmem:[#allocation1] sm:$0xff] }
 0x344   : > { %6536 = vmatpush.bf16.msrb.mxu3 %v9953_v6  ;;  %v10094_v6 = vld [vmem:[%s11496_s12 + $0x1868] sm:$0xf0]  ;;  %v10057_v14 = vor.u32 %v10881_v21, %v10054_v30 }
 0x345   : > { %6498 = vmatpush.bf16.msrb.mxu0 %v9753_v38  ;;  %v10033_v38 = vor.u32 %v10875_v62, %v10030_v3  ;;  %v10097_v24 = vor.u32 %v10891_v27, %v10094_v6 }
 0x346   : > { %6511 = vmatpush.bf16.msrb.mxu1 %v9817_v59  ;;  %v10873_v59 = vld [vmem:[%s11496_s12 + $0x17d4] sm:$0xf] }
 0x347   : > { %6524 = vmatpush.bf16.msrb.mxu2 %v9881_v0  ;;  %v10022_v0 = vld [vmem:[%s11496_s12 + $0x17d8] sm:$0xf0] }
 0x348   : > { %6537 = vmatpush.bf16.msrb.mxu3 %v9945_v52  ;;  %v10025_v26 = vor.u32 %v10873_v59, %v10022_v0 }
 0x349   : > { %6499 = vmatpush.bf16.msrb.mxu0 %v9745_v16  ;;  %v10006_v16 = vld [vmem:[%s11496_s12 + $0x17b8] sm:$0xf0] }
 0x34a   : > { %6512 = vmatpush.bf16.msrb.mxu1 %v9809_v8  ;;  %v10009_v8 = vor.u32 %v10869_v45, %v10006_v16 }
 0x34b   : > { %6525 = vmatpush.bf16.msrb.mxu2 %v9873_v55  ;;  %v10073_v55 = vor.u32 %v10885_v42, %v10070_v57 }
 0x34c   : > { %6538 = vmatpush.bf16.msrb.mxu3 %v9937_v48 }
 0x34d   : > { %6500 = vmatpush.bf16.msrb.mxu0 %v9737_v20 }
 0x34e   : > { %6513 = vmatpush.bf16.msrb.mxu1 %v9801_v15  ;;  %v10865_v15 = vld [vmem:[%s11496_s12 + $0x1794] sm:$0xf] }
 0x34f   : > { %6526 = vmatpush.bf16.msrb.mxu2 %v9865_v23  ;;  %v9990_v23 = vld [vmem:[%s11496_s12 + $0x1798] sm:$0xf0] }
 0x350   : > { %6539 = vmatpush.bf16.msrb.mxu3 %v9929_v9  ;;  %v9993_v41 = vor.u32 %v10865_v15, %v9990_v23  ;;  %v10879_v9 = vld [vmem:[%s11496_s12 + $0x1804] sm:$0xf] }
 0x351   : > { %6501 = vmatpush.bf16.msrb.mxu0 %v9729_v5  ;;  %v6295_v52 = vpop.f32.mrf.mxu0  ;;  %v10049_v1 = vor.u32 %v10879_v9, %v10046_v11  ;;  %v13430_v5 = vld [vmem:[#allocation33_spill] sm:$0xff] }
 0x352   : > { %6514 = vmatpush.bf16.msrb.mxu1 %v9793_v29 }
 0x353   : > { %6527 = vmatpush.bf16.msrb.mxu2 %v9857_v37 }
 0x354   : > { %6540 = vmatpush.bf16.msrb.mxu3 %v9921_v31  ;;  %6502 = vmatmul.bf16.vlgmr.msrb.gmra.mxu0 %v13429_v63 }
 0x355   : > { %6546 = vmatpush.bf16.msra.mxu0 %v10041_v53  ;;  %6515 = vmatmul.bf16.vlgmr.msrb.gmra.mxu1 %v12453_v19  ;;  %v6296_v19 = vadd.f32 %v6295_v52, %v13294_v33  ;;  %v10867_v33 = vld [vmem:[%s11496_s12 + $0x17a4] sm:$0xf] }
 0x356   : > { %6559 = vmatpush.bf16.msra.mxu1 %v10105_v39  ;;  %6528 = vmatmul.bf16.vlgmr.msrb.gmra.mxu2 %v12457_v25  ;;  %v10017_v25 = vor.u32 %v10871_v35, %v10014_v61  ;;  %v10001_v28 = vor.u32 %v10867_v33, %v9998_v43 }
 0x357   : > { %6541 = vmatmul.bf16.vlgmr.msrb.gmra.mxu3 %v12455_v32  ;;  %v6308_v32 = vpop.f32.mrf.mxu1 }
 0x358   : > { %v6309_v50 = vadd.f32 %v6308_v32, %v6296_v19 }
 0x359   : > { %6547 = vmatpush.bf16.msra.mxu0 %v10033_v38  ;;  %v6321_v40 = vpop.f32.mrf.mxu2  ;;  %v6297_v48 = vpop.f32.mrf.mxu0 }
 0x35a   : > { %6560 = vmatpush.bf16.msra.mxu1 %v10097_v24  ;;  %v6322_v58 = vadd.f32 %v6321_v40, %v6309_v50  ;;  %v6334_v44 = vpop.f32.mrf.mxu3 }
 0x35c   : > { %v6335_v20 = vadd.f32 %v6334_v44, %v6322_v58 }
 0x35d   : > { %6548 = vmatpush.bf16.msra.mxu0 %v10025_v26 }
 0x35e   : > { %6561 = vmatpush.bf16.msra.mxu1 %v10089_v34 }
 0x35f   : > { %v6310_v54 = vpop.f32.mrf.mxu1 }
 0x361   : > { %6549 = vmatpush.bf16.msra.mxu0 %v10017_v25  ;;  %v6323_v13 = vpop.f32.mrf.mxu2 }
 0x362   : > { %6562 = vmatpush.bf16.msra.mxu1 %v10081_v46  ;;  %v6336_v10 = vpop.f32.mrf.mxu3 }
 0x365   : > { %6550 = vmatpush.bf16.msra.mxu0 %v10009_v8 }
 0x366   : > { %6563 = vmatpush.bf16.msra.mxu1 %v10073_v55 }
 0x369   : > { %6551 = vmatpush.bf16.msra.mxu0 %v10001_v28 }
 0x36a   : > { %6564 = vmatpush.bf16.msra.mxu1 %v10065_v49 }
 0x36d   : > { %6552 = vmatpush.bf16.msra.mxu0 %v9993_v41 }
 0x36e   : > { %6565 = vmatpush.bf16.msra.mxu1 %v10057_v14  ;;  %v474_v14 = vld [vmem:[#allocation2] sm:$0xf] }
 0x371   : > { %6553 = vmatpush.bf16.msra.mxu0 %v9985_v7  ;;  %v6347_v2 = vpop.f32.mrf.mxu0 }
 0x372   : > { %6566 = vmatpush.bf16.msra.mxu1 %v10049_v1  ;;  %v6348_v29 = vadd.f32 %v6347_v2, %v6335_v20  ;;  %v6360_v37 = vpop.f32.mrf.mxu1 }
 0x374   : > { %6554 = vmatmul.bf16.vlgmr.msra.gmra.mxu0 %v13430_v5  ;;  %v6361_v53 = vadd.f32 %v6360_v37, %v6348_v29 }
 0x375   : > { %6567 = vmatmul.bf16.vlgmr.msra.gmra.mxu1 %v11013_v17 }
 0x379   : > { %v6373_v39 = vpop.f32.mrf.mxu2  ;;  %v6349_v3 = vpop.f32.mrf.mxu0 }
 0x37a   : > { %v6374_v31 = vadd.f32 %v6373_v39, %v6361_v53  ;;  %v6386_v62 = vpop.f32.mrf.mxu3  ;;  %v6362_v6 = vpop.f32.mrf.mxu1 }
 0x37c   : > { %v6387_v27 = vadd.f32 %v6386_v62, %v6374_v31 }
 0x381   : > { %v6375_v38 = vpop.f32.mrf.mxu2 }
 0x382   : > { %v6388_v63 = vpop.f32.mrf.mxu3 }
 0x391   : > { %v6399_v24 = vpop.f32.mrf.mxu0 }
 0x392   : > { %v6400_v59 = vadd.f32 %v6399_v24, %v6387_v27  ;;  %v6412_v0 = vpop.f32.mrf.mxu1 }
 0x394   : > { %v6413_v60 = vadd.f32 %v6412_v0, %v6400_v59 }
 0x399   : > { %v6425_v18 = vpop.f32.mrf.mxu2  ;;  %v6401_v34 = vpop.f32.mrf.mxu0 }
 0x39a   : > { %v6438_v26 = vpop.f32.mrf.mxu3  ;;  %v6414_v35 = vpop.f32.mrf.mxu1  ;;  %v6426_v42 = vadd.f32 %v6425_v18, %v6413_v60 }
 0x39c   : > { %v6439_v8 = vadd.f32 %v6438_v26, %v6426_v42 }
 0x3a1   : > { %v6427_v61 = vpop.f32.mrf.mxu2 }
 0x3a2   : > { %v6440_v36 = vpop.f32.mrf.mxu3 }
 0x3b1   : > { %v6451_v47 = vpop.f32.mrf.mxu0 }
 0x3b2   : > { %v6464_v52 = vpop.f32.mrf.mxu1  ;;  %v6452_v55 = vadd.f32 %v6451_v47, %v6439_v8 }
 0x3b4   : > { %v6465_v22 = vadd.f32 %v6464_v52, %v6452_v55 }
 0x3b9   : > { %v6477_v19 = vpop.f32.mrf.mxu2  ;;  %v6453_v32 = vpop.f32.mrf.mxu0 }
 0x3ba   : > { %v6490_v25 = vpop.f32.mrf.mxu3  ;;  %v6466_v46 = vpop.f32.mrf.mxu1  ;;  %v6478_v4 = vadd.f32 %v6477_v19, %v6465_v22 }
 0x3bc   : > { %v6491_v48 = vadd.f32 %v6490_v25, %v6478_v4 }
 0x3c1   : > { %v6479_v45 = vpop.f32.mrf.mxu2 }
 0x3c2   : > { %v6492_v16 = vpop.f32.mrf.mxu3 }
 0x3d1   : > { %v6503_v50 = vpop.f32.mrf.mxu0 }
 0x3d2   : > { %v6516_v57 = vpop.f32.mrf.mxu1  ;;  %v6504_v28 = vadd.f32 %v6503_v50, %v6491_v48 }
 0x3d4   : > { %v6517_v54 = vadd.f32 %v6516_v57, %v6504_v28 }
 0x3d9   : > { %v6529_v40 = vpop.f32.mrf.mxu2  ;;  %v6505_v33 = vpop.f32.mrf.mxu0 }
 0x3da   : > { %v6542_v43 = vpop.f32.mrf.mxu3  ;;  %v6518_v58 = vpop.f32.mrf.mxu1  ;;  %v6530_v49 = vadd.f32 %v6529_v40, %v6517_v54 }
 0x3dc   : > { %v6543_v15 = vadd.f32 %v6542_v43, %v6530_v49 }
 0x3e1   : > { %v6531_v44 = vpop.f32.mrf.mxu2 }
 0x3e2   : > { %v6544_v20 = vpop.f32.mrf.mxu3 }
 0x3f1   : > { %v6555_v23 = vpop.f32.mrf.mxu0 }
 0x3f2   : > { %v6556_v21 = vadd.f32 %v6555_v23, %v6543_v15  ;;  %v6568_v30 = vpop.f32.mrf.mxu1 }
 0x3f4   : > { %v6569_v41 = vadd.f32 %v6568_v30, %v6556_v21 }
 0x3f6   : > { %v6574_v12 = vrot.slane %v6569_v41, 6 }
 0x3f7   : > { %6583 = sbr.rel (%p10106_p1) target bundleno = 1451 (0x5ab), region = 96 }
 0x3f8   : > { %v6576_v56 = vsel %vm6575_vm0, %v12852_v51, %v6574_v12 }
 0x3f9   : > { %v6578_v13 = vadd.f32 %v6576_v56, %v474_v14  ;;  %v6557_v9 = vpop.f32.mrf.mxu0 }
 0x3fa   : > { %v6570_v11 = vpop.f32.mrf.mxu1 }
 0x3fb   : > { %6579 = vst [vmem:[#allocation2] sm:$0xf] %v6578_v13 }
 0x3fc   : > { %v6609_v10 = vld [vmem:[#allocation7 + $0x78] sm:$0xff]  ;;  %v6608_v7 = vld [vmem:[#allocation7 + $0x70] sm:$0xff]  ;;  %v6607_v17 = vld [vmem:[#allocation7 + $0x68] sm:$0xff] }
 0x3fd   : > { %v6625_v1 = vld [vmem:[#allocation7 + $0xf8] sm:$0xff]  ;;  %6636 = vmatpush.msra.mxu0 %v6609_v10  ;;  %v6624_v5 = vld [vmem:[#allocation7 + $0xf0] sm:$0xff]  ;;  %v6623_v2 = vld [vmem:[#allocation7 + $0xe8] sm:$0xff] }
 0x3fe   : > { %6656 = vmatpush.msra.mxu1 %v6625_v1  ;;  %v6606_v29 = vld [vmem:[#allocation7 + $0x60] sm:$0xff]  ;;  %v6605_v51 = vld [vmem:[#allocation7 + $0x58] sm:$0xff]  ;;  %v6604_v39 = vld [vmem:[#allocation7 + $0x50] sm:$0xff] }
 0x3ff   : > { %6637 = vmatpush.msra.mxu0 %v6608_v7  ;;  %v6622_v37 = vld [vmem:[#allocation7 + $0xe0] sm:$0xff]  ;;  %v6621_v53 = vld [vmem:[#allocation7 + $0xd8] sm:$0xff]  ;;  %v6620_v31 = vld [vmem:[#allocation7 + $0xd0] sm:$0xff] }
 0x400   : > { %6657 = vmatpush.msra.mxu1 %v6624_v5  ;;  %v6603_v62 = vld [vmem:[#allocation7 + $0x48] sm:$0xff]  ;;  %v6585_v27 = vld [vmem:[#allocation5] sm:$0x3]  ;;  %v6602_v6 = vld [vmem:[#allocation7 + $0x40] sm:$0xff] }
 0x401   : > { %6638 = vmatpush.msra.mxu0 %v6607_v17  ;;  %v6619_v3 = vld [vmem:[#allocation7 + $0xc8] sm:$0xff]  ;;  %v6587_v38 = vperm.slane %v6585_v27, 0  ;;  %v6588_v63 = vperm.slane %v6585_v27, 1  ;;  %v6707_v24 = vld [vmem:[#allocation10 + $0xf0] sm:$0xff]  ;;  %v6708_v59 = vld [vmem:[#allocation10 + $0xf8] sm:$0xff] }
 0x402   : > { %6658 = vmatpush.msra.mxu1 %v6623_v2  ;;  %v6618_v0 = vld [vmem:[#allocation7 + $0xc0] sm:$0xff]  ;;  %6715 = vmatpush.msra.mxu2 %v6707_v24  ;;  %v6706_v18 = vld [vmem:[#allocation10 + $0xe8] sm:$0xff]  ;;  %v6584_v26 = vld [vmem:[#allocation2] sm:$0xf] }
 0x403   : > { %6639 = vmatpush.msra.mxu0 %v6606_v29  ;;  %6735 = vmatpush.msra.mxu3 %v6708_v59  ;;  %v6705_v60 = vld [vmem:[#allocation10 + $0xe0] sm:$0xff]  ;;  %v6589_v34 = vrot.slane %v6588_v63, 6  ;;  %v6703_v35 = vld [vmem:[#allocation10 + $0xd0] sm:$0xff]  ;;  %v6704_v61 = vld [vmem:[#allocation10 + $0xd8] sm:$0xff] }
 0x404   : > { %6659 = vmatpush.msra.mxu1 %v6622_v37  ;;  %v6601_v36 = vld [vmem:[#allocation7 + $0x38] sm:$0xff]  ;;  %6716 = vmatpush.msra.mxu2 %v6705_v60  ;;  %v6701_v19 = vld [vmem:[#allocation10 + $0xc0] sm:$0xff]  ;;  %v6702_v25 = vld [vmem:[#allocation10 + $0xc8] sm:$0xff] }
 0x405   : > { %6640 = vmatpush.msra.mxu0 %v6605_v51  ;;  %v6617_v47 = vld [vmem:[#allocation7 + $0xb8] sm:$0xff]  ;;  %6736 = vmatpush.msra.mxu3 %v6706_v18  ;;  %v6590_v52 = vsel %vm6575_vm0, %v6587_v38, %v6589_v34  ;;  %v6600_v32 = vld [vmem:[#allocation7 + $0x30] sm:$0xff]  ;;  %v6599_v42 = vld [vmem:[#allocation7 + $0x28] sm:$0xff] }
 0x406   : > { %6660 = vmatpush.msra.mxu1 %v6621_v53  ;;  %v6616_v46 = vld [vmem:[#allocation7 + $0xb0] sm:$0xff]  ;;  %v6592_v45 = vadd.f32 %v6590_v52, %v6584_v26  ;;  %6717 = vmatpush.msra.mxu2 %v6703_v35  ;;  %v6700_v50 = vld [vmem:[#allocation10 + $0xb8] sm:$0xff]  ;;  %v6615_v57 = vld [vmem:[#allocation7 + $0xa8] sm:$0xff] }
 0x407   : > { %6641 = vmatpush.msra.mxu0 %v6604_v39  ;;  %6737 = vmatpush.msra.mxu3 %v6704_v61  ;;  %v6699_v16 = vld [vmem:[#allocation10 + $0xb0] sm:$0xff]  ;;  %v6697_v55 = vld [vmem:[#allocation10 + $0xa0] sm:$0xff]  ;;  %v6698_v40 = vld [vmem:[#allocation10 + $0xa8] sm:$0xff] }
 0x408   : > { %6661 = vmatpush.msra.mxu1 %v6620_v31  ;;  %v6593_v8 = vmax.f32 %v6592_v45, 0.0  ;;  %6718 = vmatpush.msra.mxu2 %v6701_v19  ;;  %v6598_v33 = vld [vmem:[#allocation7 + $0x20] sm:$0xff]  ;;  %v6695_v58 = vld [vmem:[#allocation10 + $0x90] sm:$0xff]  ;;  %v6694_v20 = vld [vmem:[#allocation10 + $0x88] sm:$0xff] }
 0x409   : > { %6642 = vmatpush.msra.mxu0 %v6603_v62  ;;  %6738 = vmatpush.msra.mxu3 %v6702_v25  ;;  %v6614_v43 = vld [vmem:[#allocation7 + $0xa0] sm:$0xff]  ;;  %v6597_v4 = vld [vmem:[#allocation7 + $0x18] sm:$0xff]  ;;  %v6596_v28 = vld [vmem:[#allocation7 + $0x10] sm:$0xff] }
 0x40a   : > { %6662 = vmatpush.msra.mxu1 %v6619_v3  ;;  %6631 = vst [vmem:[#allocation1] ss:$4 sm:$0xff] %v6593_v8  ;;  %6719 = vmatpush.msra.mxu2 %v6699_v16  ;;  %v6696_v22 = vld [vmem:[#allocation10 + $0x98] sm:$0xff]  ;;  %v6693_v48 = vld [vmem:[#allocation10 + $0x80] sm:$0xff]  ;;  %v6612_v54 = vld [vmem:[#allocation7 + $0x90] sm:$0xff] }
 0x40b   : > { %6643 = vmatpush.msra.mxu0 %v6602_v6  ;;  %6739 = vmatpush.msra.mxu3 %v6700_v50  ;;  %v6613_v44 = vld [vmem:[#allocation7 + $0x98] sm:$0xff]  ;;  %v6595_v23 = vld [vmem:[#allocation7 + $0x8] sm:$0xff]  ;;  %v6594_v14 = vld [vmem:[#allocation7] sm:$0xff] }
 0x40c   : > { %6663 = vmatpush.msra.mxu1 %v6618_v0  ;;  %6720 = vmatpush.msra.mxu2 %v6697_v55  ;;  %v6691_v49 = vld [vmem:[#allocation10 + $0x70] sm:$0xff]  ;;  %v6692_v15 = vld [vmem:[#allocation10 + $0x78] sm:$0xff]  ;;  %v6611_v21 = vld [vmem:[#allocation7 + $0x88] sm:$0xff] }
 0x40d   : > { %6644 = vmatpush.msra.mxu0 %v6601_v36  ;;  %6740 = vmatpush.msra.mxu3 %v6698_v40  ;;  %v6689_v30 = vld [vmem:[#allocation10 + $0x60] sm:$0xff]  ;;  %v6690_v41 = vld [vmem:[#allocation10 + $0x68] sm:$0xff]  ;;  %v6687_v9 = vld [vmem:[#allocation10 + $0x50] sm:$0xff] }
 0x40e   : > { %6664 = vmatpush.msra.mxu1 %v6617_v47  ;;  %6721 = vmatpush.msra.mxu2 %v6695_v58  ;;  %v6610_v12 = vld [vmem:[#allocation7 + $0x80] sm:$0xff]  ;;  %v6686_v7 = vld [vmem:[#allocation10 + $0x48] sm:$0xff]  ;;  %v6683_v1 = vld [vmem:[#allocation10 + $0x30] sm:$0xff] }
 0x40f   : > { %6645 = vmatpush.msra.mxu0 %v6600_v32  ;;  %6741 = vmatpush.msra.mxu3 %v6696_v22  ;;  %v6688_v11 = vld [vmem:[#allocation10 + $0x58] sm:$0xff]  ;;  %v6685_v10 = vld [vmem:[#allocation10 + $0x40] sm:$0xff]  ;;  %v6682_v2 = vld [vmem:[#allocation10 + $0x28] sm:$0xff] }
 0x410   : > { %6665 = vmatpush.msra.mxu1 %v6616_v46  ;;  %6722 = vmatpush.msra.mxu2 %v6693_v48  ;;  %v6684_v5 = vld [vmem:[#allocation10 + $0x38] sm:$0xff]  ;;  %v6681_v17 = vld [vmem:[#allocation10 + $0x20] sm:$0xff]  ;;  %v6679_v29 = vld [vmem:[#allocation10 + $0x10] sm:$0xff] }
 0x411   : > { %6646 = vmatpush.msra.mxu0 %v6599_v42  ;;  %6742 = vmatpush.msra.mxu3 %v6694_v20  ;;  %v6632_v56 = vld.sshfl [vmem:[#allocation1] sm:$0xff pattern:$0x73625140]  ;;  %v6633_v13 = vld.sshfl [vmem:[#allocation1 + $0x8] sm:$0xff pattern:$0x73625140] }
 0x412   : > { %6666 = vmatpush.msra.mxu1 %v6615_v57  ;;  %6723 = vmatpush.msra.mxu2 %v6691_v49  ;;  %v6680_v37 = vld [vmem:[#allocation10 + $0x18] sm:$0xff]  ;;  %v6677_v51 = vld [vmem:[#allocation10] sm:$0xff]  ;;  %v6678_v53 = vld [vmem:[#allocation10 + $0x8] sm:$0xff] }
 0x413   : > { %6647 = vmatpush.msra.mxu0 %v6598_v33  ;;  %6743 = vmatpush.msra.mxu3 %v6692_v15  ;;  %v6772_v39 = vld [vmem:[#allocation13 + $0x78] sm:$0xff]  ;;  %v6771_v62 = vld [vmem:[#allocation13 + $0x70] sm:$0xff]  ;;  %v6770_v27 = vld [vmem:[#allocation13 + $0x68] sm:$0xff] }
 0x414   : > { %6667 = vmatpush.msra.mxu1 %v6614_v43  ;;  %6724 = vmatpush.msra.mxu2 %v6689_v30  ;;  %v6788_v31 = vld [vmem:[#allocation13 + $0xf8] sm:$0xff]  ;;  %v6787_v3 = vld [vmem:[#allocation13 + $0xf0] sm:$0xff]  ;;  %v6786_v6 = vld [vmem:[#allocation13 + $0xe8] sm:$0xff] }
 0x415   : > { %6648 = vmatpush.msra.mxu0 %v6597_v4  ;;  %6744 = vmatpush.msra.mxu3 %v6690_v41  ;;  %v6769_v38 = vld [vmem:[#allocation13 + $0x60] sm:$0xff]  ;;  %v6768_v24 = vld [vmem:[#allocation13 + $0x58] sm:$0xff]  ;;  %v6767_v0 = vld [vmem:[#allocation13 + $0x50] sm:$0xff] }
 0x416   : > { %6668 = vmatpush.msra.mxu1 %v6613_v44  ;;  %6725 = vmatpush.msra.mxu2 %v6687_v9  ;;  %v6785_v63 = vld [vmem:[#allocation13 + $0xe0] sm:$0xff]  ;;  %v6784_v59 = vld [vmem:[#allocation13 + $0xd8] sm:$0xff]  ;;  %v6783_v60 = vld [vmem:[#allocation13 + $0xd0] sm:$0xff] }
 0x417   : > { %6649 = vmatpush.msra.mxu0 %v6596_v28  ;;  %6745 = vmatpush.msra.mxu3 %v6688_v11  ;;  %v6766_v18 = vld [vmem:[#allocation13 + $0x48] sm:$0xff]  ;;  %v6765_v34 = vld [vmem:[#allocation13 + $0x40] sm:$0xff]  ;;  %v6764_v61 = vld [vmem:[#allocation13 + $0x38] sm:$0xff] }
 0x418   : > { %6669 = vmatpush.msra.mxu1 %v6612_v54  ;;  %6726 = vmatpush.msra.mxu2 %v6685_v10  ;;  %v6782_v26 = vld [vmem:[#allocation13 + $0xc8] sm:$0xff]  ;;  %v6781_v35 = vld [vmem:[#allocation13 + $0xc0] sm:$0xff]  ;;  %v6780_v36 = vld [vmem:[#allocation13 + $0xb8] sm:$0xff] }
 0x419   : > { %6650 = vmatpush.msra.mxu0 %v6595_v23  ;;  %6746 = vmatpush.msra.mxu3 %v6686_v7  ;;  %v6763_v47 = vld [vmem:[#allocation13 + $0x30] sm:$0xff]  ;;  %v6762_v19 = vld [vmem:[#allocation13 + $0x28] sm:$0xff]  ;;  %v6761_v32 = vld [vmem:[#allocation13 + $0x20] sm:$0xff] }
 0x41a   : > { %6670 = vmatpush.msra.mxu1 %v6611_v21  ;;  %6727 = vmatpush.msra.mxu2 %v6683_v1  ;;  %v6779_v52 = vld [vmem:[#allocation13 + $0xb0] sm:$0xff]  ;;  %v6778_v25 = vld [vmem:[#allocation13 + $0xa8] sm:$0xff]  ;;  %v6777_v46 = vld [vmem:[#allocation13 + $0xa0] sm:$0xff] }
 0x41b   : > { %6651 = vmatpush.msra.mxu0 %v6594_v14  ;;  %6747 = vmatpush.msra.mxu3 %v6684_v5  ;;  %v11014_v45 = vld [vmem:[#allocation8] ss:$0 sm:$0xff]  ;;  %v6759_v33 = vld [vmem:[#allocation13 + $0x10] sm:$0xff]  ;;  %v6758_v58 = vld [vmem:[#allocation13 + $0x8] sm:$0xff] }
 0x41c   : > { %6671 = vmatpush.msra.mxu1 %v6610_v12  ;;  %6652 = vmatmul.f32.vlgmr.msra.gmra.mxu0 %v6632_v56  ;;  %v6760_v16 = vld [vmem:[#allocation13 + $0x18] sm:$0xff]  ;;  %v6775_v43 = vld [vmem:[#allocation13 + $0x90] sm:$0xff]  ;;  %v6774_v22 = vld [vmem:[#allocation13 + $0x88] sm:$0xff] }
 0x41d   : > { %6672 = vmatmul.f32.vlgmr.msra.gmra.mxu1 %v6633_v13  ;;  %6728 = vmatpush.msra.mxu2 %v6681_v17  ;;  %v6776_v50 = vld [vmem:[#allocation13 + $0x98] sm:$0xff]  ;;  %v6757_v4 = vld [vmem:[#allocation13] sm:$0xff] }
 0x41e   : > { %6748 = vmatpush.msra.mxu3 %v6682_v2  ;;  %6793 = vmatpush.msrb.mxu0 %v6772_v39  ;;  %v6773_v44 = vld [vmem:[#allocation13 + $0x80] sm:$0xff]  ;;  %v6709_v48 = vld [vmem:[#allocation11] sm:$0x3] }
 0x41f   : > { %6729 = vmatpush.msra.mxu2 %v6679_v29  ;;  %6813 = vmatpush.msrb.mxu1 %v6788_v31  ;;  %v6711_v20 = vperm.slane %v6709_v48, 0  ;;  %v6712_v28 = vperm.slane %v6709_v48, 1  ;;  %v11015_v41 = vld [vmem:[#allocation14] ss:$0 sm:$0xff] }
 0x420   : > { %6749 = vmatpush.msra.mxu3 %v6680_v37  ;;  %6794 = vmatpush.msrb.mxu0 %v6771_v62 }
 0x421   : > { %6730 = vmatpush.msra.mxu2 %v6677_v51  ;;  %6814 = vmatpush.msrb.mxu1 %v6787_v3 }
 0x422   : > { %6750 = vmatpush.msra.mxu3 %v6678_v53  ;;  %6795 = vmatpush.msrb.mxu0 %v6770_v27 }
 0x423   : > { %6815 = vmatpush.msrb.mxu1 %v6786_v6 }
 0x424   : > { %6796 = vmatpush.msrb.mxu0 %v6769_v38 }
 0x425   : > { %6816 = vmatpush.msrb.mxu1 %v6785_v63 }
 0x426   : > { %6797 = vmatpush.msrb.mxu0 %v6768_v24 }
 0x427   : > { %6817 = vmatpush.msrb.mxu1 %v6784_v59 }
 0x428   : > { %6798 = vmatpush.msrb.mxu0 %v6767_v0 }
 0x429   : > { %6818 = vmatpush.msrb.mxu1 %v6783_v60 }
 0x42a   : > { %6799 = vmatpush.msrb.mxu0 %v6766_v18 }
 0x42b   : > { %6819 = vmatpush.msrb.mxu1 %v6782_v26 }
 0x42c   : > { %6800 = vmatpush.msrb.mxu0 %v6765_v34 }
 0x42d   : > { %6820 = vmatpush.msrb.mxu1 %v6781_v35 }
 0x42e   : > { %6801 = vmatpush.msrb.mxu0 %v6764_v61 }
 0x42f   : > { %6821 = vmatpush.msrb.mxu1 %v6780_v36 }
 0x430   : > { %6802 = vmatpush.msrb.mxu0 %v6763_v47 }
 0x431   : > { %6822 = vmatpush.msrb.mxu1 %v6779_v52 }
 0x432   : > { %6803 = vmatpush.msrb.mxu0 %v6762_v19 }
 0x433   : > { %6823 = vmatpush.msrb.mxu1 %v6778_v25 }
 0x434   : > { %6804 = vmatpush.msrb.mxu0 %v6761_v32 }
 0x435   : > { %6824 = vmatpush.msrb.mxu1 %v6777_v46 }
 0x436   : > { %6805 = vmatpush.msrb.mxu0 %v6760_v16 }
 0x437   : > { %6825 = vmatpush.msrb.mxu1 %v6776_v50 }
 0x438   : > { %6806 = vmatpush.msrb.mxu0 %v6759_v33 }
 0x439   : > { %6826 = vmatpush.msrb.mxu1 %v6775_v43 }
 0x43a   : > { %6807 = vmatpush.msrb.mxu0 %v6758_v58 }
 0x43b   : > { %6827 = vmatpush.msrb.mxu1 %v6774_v22 }
 0x43c   : > { %6808 = vmatpush.msrb.mxu0 %v6757_v4 }
 0x43d   : > { %6828 = vmatpush.msrb.mxu1 %v6773_v44 }
 0x499   : > { %v6653_v42 = vpop.f32.mrf.mxu0 }
 0x49a   : > { %v6673_v57 = vpop.f32.mrf.mxu1  ;;  %v6654_v8 = vadd.f32 %v11014_v45, %v6653_v42 }
 0x49c   : > { %v6674_v55 = vadd.f32 %v6673_v57, %v6654_v8 }
 0x49e   : > { %v6676_v40 = vmax.f32 %v6674_v55, 0.0 }
 0x4a0   : > { %6731 = vmatmul.f32.vlgmr.msra.gmra.mxu2 %v6676_v40  ;;  %6751 = vmatmul.f32.vlgmr.msra.gmra.mxu3 %v6676_v40 }
 0x523   : > { %v6732_v54 = vpop.f32.mrf.mxu2  ;;  %v6752_v49 = vpop.f32.mrf.mxu3 }
 0x524   : > { %v6733_v15 = vadd.f32 %v6732_v54, %v6711_v20  ;;  %v6753_v23 = vadd.f32 %v6752_v49, %v6712_v28 }
 0x526   : > { %v6755_v21 = vmax.f32 %v6733_v15, 0.0  ;;  %v6756_v30 = vmax.f32 %v6753_v23, 0.0 }
 0x528   : > { %6809 = vmatmul.f32.vlgmr.msrb.gmra.mxu0 %v6755_v21  ;;  %6829 = vmatmul.f32.vlgmr.msrb.gmra.mxu1 %v6756_v30 }
 0x5a5   : > { %v6810_v14 = vpop.f32.mrf.mxu0  ;;  %v6830_v56 = vpop.f32.mrf.mxu1 }
 0x5a6   : > { %v6811_v12 = vadd.f32 %v11015_v41, %v6810_v14 }
 0x5a8   : > { %v6831_v13 = vadd.f32 %v6830_v56, %v6811_v12 }
 0x5aa   : > { %6833 = vst [vmem:[%s13381_s9] sm:$0x3] %v6831_v13 }
 0x5ab PF: > { %p23_p3 = scmp.ge.s32.totalorder %s11451_s28, 4   ;;  %s13431_s30 = smov %s11298_s10 }
 0x5ac   : > { %s13432_s10 = smov %s11302_s11  ;;  %s13433_s11 = smov %s11462_s21 }
 0x5ad   : > { %s13434_s12 = smov %s11451_s28  ;;  %25 = sbr.rel (!%p23_p3) target bundleno = 9 (0x9), region = 131 }
 0x5b2   :  { %6845 = vsyncpa [#allocation4], 1 }
 0x5b3   :  { %6847 = vsyncpa [#allocation4 + $0x1], 1 }
 0x5b4   :  { %6848 = vsyncpa [#allocation6], 1 }
 0x5b5   :  { %6849 = vsyncpa [#allocation9], 1 }
 0x5b6   :  { %6850 = vsyncpa [#allocation12], 1 }
 0x5b7   :  { %6851 = vsyncpa [#allocation15], 1 }

</bundles_post_ra>
